<compile_context>
chip_gen: v6e
topology: v6e:2x2x1
jax: 0.10.0
libtpu: 0.0.40
codegen_flags: <defaults>
</compile_context>

<pallas_src>
import functools
import math

import jax
import jax.numpy as jnp
from jax import lax
from jax.experimental import pallas as pl
from jax.experimental.pallas import tpu as pltpu


def _round_up(v, m):
    return (v + m - 1) // m * m


def _decode_block_kernel(x_ref, w1_ref, w2_ref, b1_ref, b2_ref, out_ref,
                         pad_ref, *, H, W, Cp, Wp, A):
    """One packed image: ReLU(BN2(conv2(ReLU(BN1(conv1(x))))) + x).

    Layout of pad_ref (flat 2-D, (TOT, Cp) f32): image pixel (i, j) lives at
    flat row A + i*Wp + j.  Columns j in [W, Wp) inside the stored block and
    the rows outside [A, A + H*Wp) are zero, so every 3x3 tap is a single
    contiguous row-slice of length H*Wp (zero pad rows absorb the row wrap).
    """
    f32 = jnp.float32
    M = H * Wp
    TOT = pad_ref.shape[0]

    # ---- halo-only zeroing (top & bottom row ranges); interior rows are
    # fully rewritten below.  Done every step so megacore-split cores with
    # their own scratch stay correct; it is only ~2*Wp rows. -----------------
    pad_ref[0:A, :] = jnp.zeros((A, Cp), f32)
    pad_ref[A + M:TOT, :] = jnp.zeros((TOT - A - M, Cp), f32)

    def conv3x3(w_ref, b_ref):
        # 3x3 "same" conv as 9 contiguous (M, Cp) @ (Cp, Cp) MXU matmuls.
        # BN scale is folded into w_ref; BN shift (bias) seeds the accumulator.
        acc = jnp.broadcast_to(b_ref[...].astype(f32), (M, Cp))
        for k in range(9):
            dy, dx = divmod(k, 3)
            start = A + (dy - 1) * Wp + (dx - 1)          # static int offset
            acc = acc + jnp.dot(pad_ref[start:start + M, :], w_ref[k],
                                preferred_element_type=f32)
        return acc                                        # (M, Cp)

    # ---- stage x: image rows + zero right-pad columns, one aligned store ---
    xrows = jnp.concatenate(
        [x_ref[...].astype(f32), jnp.zeros((H, Wp - W, Cp), f32)], axis=1)
    pad_ref[A:A + M, :] = xrows.reshape(M, Cp)

    # ---- conv1 + folded BN1 + ReLU; pad columns forced back to zero --------
    z1 = conv3x3(w1_ref, b1_ref).reshape(H, Wp, Cp)
    col = lax.broadcasted_iota(jnp.int32, (1, Wp, Cp), 1)
    y1 = jnp.where(col < W, jnp.maximum(z1, 0.0), 0.0)

    # ---- reuse the same pad buffer for the second conv ---------------------
    pad_ref[A:A + M, :] = y1.reshape(M, Cp)

    # ---- conv2 + folded BN2 + identity shortcut + final ReLU ---------------
    z2 = conv3x3(w2_ref, b2_ref).reshape(H, Wp, Cp)[:, :W, :]
    out_ref[...] = jnp.maximum(z2 + x_ref[...].astype(f32), 0.0
                               ).astype(out_ref.dtype)


def basic_decode_block(x, w1, bn1, w2, bn2, *, eps=1e-5):
    """BasicDecodeBlock.forward (scale=1, non-preactive, eval-mode BN).

    x        : (B, C, H, W)  NCHW, like the PyTorch module
    w1, w2   : (C, C, 3, 3)  OIHW conv weights (bias=False since batchnorm=True)
    bn1, bn2 : dicts with per-channel 'gamma', 'beta', 'mean', 'var'  each (C,)
    returns  : (B, C, H, W)
    """
    B, C, H, W = x.shape
    assert w1.shape == (C, C, 3, 3) and w2.shape == (C, C, 3, 3)

    # Pack P batch elements along channels so the lane axis is 128-dense.
    P = math.gcd(B, max(1, 128 // C))
    Bg, Cp = B // P, P * C

    def fold(w, bn):
        s = bn["gamma"] / jnp.sqrt(bn["var"] + eps)            # (C,)
        b = bn["beta"] - bn["mean"] * s                        # (C,)
        # OIHW -> (ky, kx, Cin, Cout); BN scale folded into output channels.
        wm = (jnp.transpose(w, (2, 3, 1, 0)) * s[None, None, None, :]
              ).reshape(9, C, C).astype(jnp.float32)
        # Block-diagonal expansion for the packed channel axis.
        wb = jnp.zeros((9, Cp, Cp), jnp.float32)
        for p in range(P):
            wb = wb.at[:, p * C:(p + 1) * C, p * C:(p + 1) * C].set(wm)
        return wb, jnp.tile(b, P).reshape(1, Cp).astype(jnp.float32)

    w1b, b1 = fold(w1, bn1)
    w2b, b2 = fold(w2, bn2)

    # NCHW -> (Bg, H, W, Cp): P packed images' channels on the lane axis.
    x_p = (jnp.transpose(x, (0, 2, 3, 1))
           .reshape(Bg, P, H, W, C)
           .transpose(0, 2, 3, 1, 4)
           .reshape(Bg, H, W, Cp))

    Wp = _round_up(W + 3, 8)                 # padded row length (tap halos)
    A = _round_up(Wp + 1, 8)                 # 8-aligned start of image rows
    TOT = _round_up(A + (H + 1) * Wp + 1, 8)  # covers the furthest tap read

    kernel = functools.partial(_decode_block_kernel,
                               H=H, W=W, Cp=Cp, Wp=Wp, A=A)
    out_p = pl.pallas_call(
        kernel,
        out_shape=jax.ShapeDtypeStruct((Bg, H, W, Cp), x.dtype),
        grid_spec=pltpu.PrefetchScalarGridSpec(
            num_scalar_prefetch=0,
            grid=(Bg,),
            in_specs=[
                pl.BlockSpec((None, H, W, Cp), lambda b: (b, 0, 0, 0)),
                pl.BlockSpec((9, Cp, Cp), lambda b: (0, 0, 0)),
                pl.BlockSpec((9, Cp, Cp), lambda b: (0, 0, 0)),
                pl.BlockSpec((1, Cp), lambda b: (0, 0)),
                pl.BlockSpec((1, Cp), lambda b: (0, 0)),
            ],
            out_specs=pl.BlockSpec((None, H, W, Cp), lambda b: (b, 0, 0, 0)),
            scratch_shapes=[pltpu.VMEM((TOT, Cp), jnp.float32)],
        ),
        compiler_params=pltpu.CompilerParams(
            dimension_semantics=("parallel",)),
    )(x_p, w1b, w2b, b1, b2)

    # Unpack channels -> batch, back to NCHW.
    out = (out_p.reshape(Bg, H, W, P, C)
           .transpose(0, 3, 4, 1, 2)
           .reshape(B, C, H, W))
    return out


def _reference(x, w1, bn1, w2, bn2, *, eps=1e-5):
    """Pure-JAX mirror of the PyTorch module (eval-mode BN)."""
    def bn(y, p):
        s = p["gamma"] / jnp.sqrt(p["var"] + eps)
        return (s[None, :, None, None] * (y - p["mean"][None, :, None, None])
                + p["beta"][None, :, None, None])

    def conv(y, w):
        return jax.lax.conv_general_dilated(
            y, w, window_strides=(1, 1), padding=((1, 1), (1, 1)),
            dimension_numbers=("NCHW", "OIHW", "NCHW"),
            precision=jax.lax.Precision.HIGHEST)

    y = jax.nn.relu(bn(conv(x, w1), bn1))
    y = bn(conv(y, w2), bn2)
    return jax.nn.relu(y + x)          # identity shortcut + non-preactive ReLU


if __name__ == "__main__":
    # scale == 1 => in_channels == out_channels; NCHW like the PyTorch module.
    # B=4 keeps 2 grid steps after 2-way channel packing (both v7x cores busy).
    B, C, H, W = 4, 64, 16, 16
    keys = jax.random.split(jax.random.PRNGKey(0), 11)

    x = jax.random.normal(keys[0], (B, C, H, W), dtype=jnp.float32)
    wscale = 0.06                               # ~Kaiming scale for 3x3xC fan-in
    w1 = wscale * jax.random.normal(keys[1], (C, C, 3, 3), dtype=jnp.float32)
    w2 = wscale * jax.random.normal(keys[2], (C, C, 3, 3), dtype=jnp.float32)

    def make_bn(k0, k1, k2, k3):
        return dict(
            gamma=0.8 + 0.4 * jax.random.uniform(k0, (C,), dtype=jnp.float32),
            beta=0.1 * jax.random.normal(k1, (C,), dtype=jnp.float32),
            mean=0.1 * jax.random.normal(k2, (C,), dtype=jnp.float32),
            var=0.5 + jax.random.uniform(k3, (C,), dtype=jnp.float32),
        )

    bn1 = make_bn(*keys[3:7])
    bn2 = make_bn(*keys[7:11])

    out = basic_decode_block(x, w1, bn1, w2, bn2)
    jax.block_until_ready(out)

    ref = _reference(x, w1, bn1, w2, bn2)
    assert out.shape == ref.shape == (B, C, H, W)
    max_err = float(jnp.max(jnp.abs(out - ref)))
    # All-f32 MXU path: tight tolerance so packing/tap indexing is validated.
    assert jnp.allclose(out, ref, atol=1e-3, rtol=1e-3), f"max abs err {max_err}"

    print("KERNEL_OK")
</pallas_src>

<mosaic_0001>
module attributes {stable_mosaic.version = 11 : i64} {
  func.func @_decode_block_kernel(%arg0: i32, %arg1: memref<1x16x16x128xf32, #tpu.memory_space<vmem>>, %arg2: memref<9x128x128xf32, #tpu.memory_space<vmem>>, %arg3: memref<9x128x128xf32, #tpu.memory_space<vmem>>, %arg4: memref<1x128xf32, #tpu.memory_space<vmem>>, %arg5: memref<1x128xf32, #tpu.memory_space<vmem>>, %arg6: memref<1x16x16x128xf32, #tpu.memory_space<vmem>>, %arg7: memref<448x128xf32, #tpu.memory_space<vmem>>) attributes {dimension_semantics = [#tpu.dimension_semantics<parallel>], iteration_bounds = array<i64: 2>, scalar_prefetch = 0 : i64, scratch_operands = 1 : i64, tpu.core_type = #tpu.core_type<tc>, window_params = [{transform_indices = @transform_0, window_bounds = array<i64: 1, 16, 16, 128>}, {pipeline_mode = #tpu.pipeline_mode<synchronous>, transform_indices = @transform_1, window_bounds = array<i64: 9, 128, 128>}, {pipeline_mode = #tpu.pipeline_mode<synchronous>, transform_indices = @transform_2, window_bounds = array<i64: 9, 128, 128>}, {pipeline_mode = #tpu.pipeline_mode<synchronous>, transform_indices = @transform_3, window_bounds = array<i64: 1, 128>}, {pipeline_mode = #tpu.pipeline_mode<synchronous>, transform_indices = @transform_4, window_bounds = array<i64: 1, 128>}, {transform_indices = @transform_5, window_bounds = array<i64: 1, 16, 16, 128>}]} {
    %cst = arith.constant 0.000000e+00 : f32
    %0 = vector.broadcast %cst : f32 to vector<32x128xf32>
    %c0 = arith.constant 0 : index
    %c0_0 = arith.constant 0 : index
    %1 = vector.load %arg7[%c0, %c0_0] : memref<448x128xf32, #tpu.memory_space<vmem>>, vector<32x128xf32>
    tpu.vector_store %arg7[%c0, %c0_0], %0 {strides = array<i32>} : memref<448x128xf32, #tpu.memory_space<vmem>>, vector<32x128xf32>,
    %cst_1 = arith.constant 0.000000e+00 : f32
    %2 = vector.broadcast %cst_1 : f32 to vector<32x128xf32>
    %c416 = arith.constant 416 : index
    %c0_2 = arith.constant 0 : index
    %3 = vector.load %arg7[%c416, %c0_2] : memref<448x128xf32, #tpu.memory_space<vmem>>, vector<32x128xf32>
    tpu.vector_store %arg7[%c416, %c0_2], %2 {strides = array<i32>} : memref<448x128xf32, #tpu.memory_space<vmem>>, vector<32x128xf32>,
    %c0_3 = arith.constant 0 : index
    %c0_4 = arith.constant 0 : index
    %c0_5 = arith.constant 0 : index
    %c0_6 = arith.constant 0 : index
    %4 = vector.load %arg1[%c0_3, %c0_4, %c0_5, %c0_6] : memref<1x16x16x128xf32, #tpu.memory_space<vmem>>, vector<1x16x16x128xf32>
    %5 = vector.shape_cast %4 : vector<1x16x16x128xf32> to vector<16x16x128xf32>
    %cst_7 = arith.constant 0.000000e+00 : f32
    %6 = vector.broadcast %cst_7 : f32 to vector<16x8x128xf32>
    %7 = tpu.concatenate %5, %6 in 1 : vector<16x16x128xf32>, vector<16x8x128xf32> -> vector<16x24x128xf32>
    %8 = vector.shape_cast %7 : vector<16x24x128xf32> to vector<384x128xf32>
    %c32 = arith.constant 32 : index
    %c0_8 = arith.constant 0 : index
    %9 = vector.load %arg7[%c32, %c0_8] : memref<448x128xf32, #tpu.memory_space<vmem>>, vector<384x128xf32>
    tpu.vector_store %arg7[%c32, %c0_8], %8 {strides = array<i32>} : memref<448x128xf32, #tpu.memory_space<vmem>>, vector<384x128xf32>,
    %c0_9 = arith.constant 0 : index
    %c0_10 = arith.constant 0 : index
    %10 = vector.load %arg4[%c0_9, %c0_10] : memref<1x128xf32, #tpu.memory_space<vmem>>, vector<1x128xf32>
    %11 = vector.shape_cast %10 : vector<1x128xf32> to vector<1x128xf32>
    %12 = vector.broadcast %11 : vector<1x128xf32> to vector<384x128xf32>
    %c7 = arith.constant 7 : index
    %c0_11 = arith.constant 0 : index
    %13 = vector.load %arg7[%c7, %c0_11] : memref<448x128xf32, #tpu.memory_space<vmem>>, vector<384x128xf32>
    %c0_12 = arith.constant 0 : index
    %c0_13 = arith.constant 0 : index
    %c0_14 = arith.constant 0 : index
    %14 = vector.load %arg2[%c0_12, %c0_13, %c0_14] : memref<9x128x128xf32, #tpu.memory_space<vmem>>, vector<1x128x128xf32>
    %15 = vector.shape_cast %14 : vector<1x128x128xf32> to vector<128x128xf32>
    %cst_15 = arith.constant dense<0.000000e+00> : vector<384x128xf32>
    %16 = tpu.matmul %13, %15, %cst_15 {dimension_numbers = #tpu.dot_dimension_numbers<[1], [0], [0], [1], [0, 0, 1, 1], [], []>} : vector<384x128xf32>, vector<128x128xf32>, vector<384x128xf32> -> vector<384x128xf32>
    %17 = arith.addf %12, %16 : vector<384x128xf32>
    %c8 = arith.constant 8 : index
    %c0_16 = arith.constant 0 : index
    %18 = vector.load %arg7[%c8, %c0_16] : memref<448x128xf32, #tpu.memory_space<vmem>>, vector<384x128xf32>
    %c1 = arith.constant 1 : index
    %c0_17 = arith.constant 0 : index
    %c0_18 = arith.constant 0 : index
    %19 = vector.load %arg2[%c1, %c0_17, %c0_18] : memref<9x128x128xf32, #tpu.memory_space<vmem>>, vector<1x128x128xf32>
    %20 = vector.shape_cast %19 : vector<1x128x128xf32> to vector<128x128xf32>
    %cst_19 = arith.constant dense<0.000000e+00> : vector<384x128xf32>
    %21 = tpu.matmul %18, %20, %cst_19 {dimension_numbers = #tpu.dot_dimension_numbers<[1], [0], [0], [1], [0, 0, 1, 1], [], []>} : vector<384x128xf32>, vector<128x128xf32>, vector<384x128xf32> -> vector<384x128xf32>
    %22 = arith.addf %17, %21 : vector<384x128xf32>
    %c9 = arith.constant 9 : index
    %c0_20 = arith.constant 0 : index
    %23 = vector.load %arg7[%c9, %c0_20] : memref<448x128xf32, #tpu.memory_space<vmem>>, vector<384x128xf32>
    %c2 = arith.constant 2 : index
    %c0_21 = arith.constant 0 : index
    %c0_22 = arith.constant 0 : index
    %24 = vector.load %arg2[%c2, %c0_21, %c0_22] : memref<9x128x128xf32, #tpu.memory_space<vmem>>, vector<1x128x128xf32>
    %25 = vector.shape_cast %24 : vector<1x128x128xf32> to vector<128x128xf32>
    %cst_23 = arith.constant dense<0.000000e+00> : vector<384x128xf32>
    %26 = tpu.matmul %23, %25, %cst_23 {dimension_numbers = #tpu.dot_dimension_numbers<[1], [0], [0], [1], [0, 0, 1, 1], [], []>} : vector<384x128xf32>, vector<128x128xf32>, vector<384x128xf32> -> vector<384x128xf32>
    %27 = arith.addf %22, %26 : vector<384x128xf32>
    %c31 = arith.constant 31 : index
    %c0_24 = arith.constant 0 : index
    %28 = vector.load %arg7[%c31, %c0_24] : memref<448x128xf32, #tpu.memory_space<vmem>>, vector<384x128xf32>
    %c3 = arith.constant 3 : index
    %c0_25 = arith.constant 0 : index
    %c0_26 = arith.constant 0 : index
    %29 = vector.load %arg2[%c3, %c0_25, %c0_26] : memref<9x128x128xf32, #tpu.memory_space<vmem>>, vector<1x128x128xf32>
    %30 = vector.shape_cast %29 : vector<1x128x128xf32> to vector<128x128xf32>
    %cst_27 = arith.constant dense<0.000000e+00> : vector<384x128xf32>
    %31 = tpu.matmul %28, %30, %cst_27 {dimension_numbers = #tpu.dot_dimension_numbers<[1], [0], [0], [1], [0, 0, 1, 1], [], []>} : vector<384x128xf32>, vector<128x128xf32>, vector<384x128xf32> -> vector<384x128xf32>
    %32 = arith.addf %27, %31 : vector<384x128xf32>
    %c32_28 = arith.constant 32 : index
    %c0_29 = arith.constant 0 : index
    %33 = vector.load %arg7[%c32_28, %c0_29] : memref<448x128xf32, #tpu.memory_space<vmem>>, vector<384x128xf32>
    %c4 = arith.constant 4 : index
    %c0_30 = arith.constant 0 : index
    %c0_31 = arith.constant 0 : index
    %34 = vector.load %arg2[%c4, %c0_30, %c0_31] : memref<9x128x128xf32, #tpu.memory_space<vmem>>, vector<1x128x128xf32>
    %35 = vector.shape_cast %34 : vector<1x128x128xf32> to vector<128x128xf32>
    %cst_32 = arith.constant dense<0.000000e+00> : vector<384x128xf32>
    %36 = tpu.matmul %33, %35, %cst_32 {dimension_numbers = #tpu.dot_dimension_numbers<[1], [0], [0], [1], [0, 0, 1, 1], [], []>} : vector<384x128xf32>, vector<128x128xf32>, vector<384x128xf32> -> vector<384x128xf32>
    %37 = arith.addf %32, %36 : vector<384x128xf32>
    %c33 = arith.constant 33 : index
    %c0_33 = arith.constant 0 : index
    %38 = vector.load %arg7[%c33, %c0_33] : memref<448x128xf32, #tpu.memory_space<vmem>>, vector<384x128xf32>
    %c5 = arith.constant 5 : index
    %c0_34 = arith.constant 0 : index
    %c0_35 = arith.constant 0 : index
    %39 = vector.load %arg2[%c5, %c0_34, %c0_35] : memref<9x128x128xf32, #tpu.memory_space<vmem>>, vector<1x128x128xf32>
    %40 = vector.shape_cast %39 : vector<1x128x128xf32> to vector<128x128xf32>
    %cst_36 = arith.constant dense<0.000000e+00> : vector<384x128xf32>
    %41 = tpu.matmul %38, %40, %cst_36 {dimension_numbers = #tpu.dot_dimension_numbers<[1], [0], [0], [1], [0, 0, 1, 1], [], []>} : vector<384x128xf32>, vector<128x128xf32>, vector<384x128xf32> -> vector<384x128xf32>
    %42 = arith.addf %37, %41 : vector<384x128xf32>
    %c55 = arith.constant 55 : index
    %c0_37 = arith.constant 0 : index
    %43 = vector.load %arg7[%c55, %c0_37] : memref<448x128xf32, #tpu.memory_space<vmem>>, vector<384x128xf32>
    %c6 = arith.constant 6 : index
    %c0_38 = arith.constant 0 : index
    %c0_39 = arith.constant 0 : index
    %44 = vector.load %arg2[%c6, %c0_38, %c0_39] : memref<9x128x128xf32, #tpu.memory_space<vmem>>, vector<1x128x128xf32>
    %45 = vector.shape_cast %44 : vector<1x128x128xf32> to vector<128x128xf32>
    %cst_40 = arith.constant dense<0.000000e+00> : vector<384x128xf32>
    %46 = tpu.matmul %43, %45, %cst_40 {dimension_numbers = #tpu.dot_dimension_numbers<[1], [0], [0], [1], [0, 0, 1, 1], [], []>} : vector<384x128xf32>, vector<128x128xf32>, vector<384x128xf32> -> vector<384x128xf32>
    %47 = arith.addf %42, %46 : vector<384x128xf32>
    %c56 = arith.constant 56 : index
    %c0_41 = arith.constant 0 : index
    %48 = vector.load %arg7[%c56, %c0_41] : memref<448x128xf32, #tpu.memory_space<vmem>>, vector<384x128xf32>
    %c7_42 = arith.constant 7 : index
    %c0_43 = arith.constant 0 : index
    %c0_44 = arith.constant 0 : index
    %49 = vector.load %arg2[%c7_42, %c0_43, %c0_44] : memref<9x128x128xf32, #tpu.memory_space<vmem>>, vector<1x128x128xf32>
    %50 = vector.shape_cast %49 : vector<1x128x128xf32> to vector<128x128xf32>
    %cst_45 = arith.constant dense<0.000000e+00> : vector<384x128xf32>
    %51 = tpu.matmul %48, %50, %cst_45 {dimension_numbers = #tpu.dot_dimension_numbers<[1], [0], [0], [1], [0, 0, 1, 1], [], []>} : vector<384x128xf32>, vector<128x128xf32>, vector<384x128xf32> -> vector<384x128xf32>
    %52 = arith.addf %47, %51 : vector<384x128xf32>
    %c57 = arith.constant 57 : index
    %c0_46 = arith.constant 0 : index
    %53 = vector.load %arg7[%c57, %c0_46] : memref<448x128xf32, #tpu.memory_space<vmem>>, vector<384x128xf32>
    %c8_47 = arith.constant 8 : index
    %c0_48 = arith.constant 0 : index
    %c0_49 = arith.constant 0 : index
    %54 = vector.load %arg2[%c8_47, %c0_48, %c0_49] : memref<9x128x128xf32, #tpu.memory_space<vmem>>, vector<1x128x128xf32>
    %55 = vector.shape_cast %54 : vector<1x128x128xf32> to vector<128x128xf32>
    %cst_50 = arith.constant dense<0.000000e+00> : vector<384x128xf32>
    %56 = tpu.matmul %53, %55, %cst_50 {dimension_numbers = #tpu.dot_dimension_numbers<[1], [0], [0], [1], [0, 0, 1, 1], [], []>} : vector<384x128xf32>, vector<128x128xf32>, vector<384x128xf32> -> vector<384x128xf32>
    %57 = arith.addf %52, %56 : vector<384x128xf32>
    %58 = vector.shape_cast %57 : vector<384x128xf32> to vector<16x24x128xf32>
    %59 = tpu.iota {dimensions = array<i32: 1>} : vector<1x24x128xi32>
    %c16_i32 = arith.constant 16 : i32
    %60 = vector.broadcast %c16_i32 : i32 to vector<1x24x128xi32>
    %61 = arith.cmpi slt, %59, %60 : vector<1x24x128xi32>
    %cst_51 = arith.constant 0.000000e+00 : f32
    %62 = vector.broadcast %cst_51 : f32 to vector<16x24x128xf32>
    %63 = arith.maximumf %58, %62 : vector<16x24x128xf32>
    %cst_52 = arith.constant 0.000000e+00 : f32
    %64 = vector.shape_cast %61 : vector<1x24x128xi1> to vector<1x24x128xi1>
    %65 = vector.broadcast %64 : vector<1x24x128xi1> to vector<16x24x128xi1>
    %66 = vector.broadcast %cst_52 : f32 to vector<16x24x128xf32>
    %67 = arith.select %65, %63, %66 : vector<16x24x128xi1>, vector<16x24x128xf32>
    %68 = vector.shape_cast %67 : vector<16x24x128xf32> to vector<384x128xf32>
    %c32_53 = arith.constant 32 : index
    %c0_54 = arith.constant 0 : index
    %69 = vector.load %arg7[%c32_53, %c0_54] : memref<448x128xf32, #tpu.memory_space<vmem>>, vector<384x128xf32>
    tpu.vector_store %arg7[%c32_53, %c0_54], %68 {strides = array<i32>} : memref<448x128xf32, #tpu.memory_space<vmem>>, vector<384x128xf32>,
    %c0_55 = arith.constant 0 : index
    %c0_56 = arith.constant 0 : index
    %70 = vector.load %arg5[%c0_55, %c0_56] : memref<1x128xf32, #tpu.memory_space<vmem>>, vector<1x128xf32>
    %71 = vector.shape_cast %70 : vector<1x128xf32> to vector<1x128xf32>
    %72 = vector.broadcast %71 : vector<1x128xf32> to vector<384x128xf32>
    %c7_57 = arith.constant 7 : index
    %c0_58 = arith.constant 0 : index
    %73 = vector.load %arg7[%c7_57, %c0_58] : memref<448x128xf32, #tpu.memory_space<vmem>>, vector<384x128xf32>
    %c0_59 = arith.constant 0 : index
    %c0_60 = arith.constant 0 : index
    %c0_61 = arith.constant 0 : index
    %74 = vector.load %arg3[%c0_59, %c0_60, %c0_61] : memref<9x128x128xf32, #tpu.memory_space<vmem>>, vector<1x128x128xf32>
    %75 = vector.shape_cast %74 : vector<1x128x128xf32> to vector<128x128xf32>
    %cst_62 = arith.constant dense<0.000000e+00> : vector<384x128xf32>
    %76 = tpu.matmul %73, %75, %cst_62 {dimension_numbers = #tpu.dot_dimension_numbers<[1], [0], [0], [1], [0, 0, 1, 1], [], []>} : vector<384x128xf32>, vector<128x128xf32>, vector<384x128xf32> -> vector<384x128xf32>
    %77 = arith.addf %72, %76 : vector<384x128xf32>
    %c8_63 = arith.constant 8 : index
    %c0_64 = arith.constant 0 : index
    %78 = vector.load %arg7[%c8_63, %c0_64] : memref<448x128xf32, #tpu.memory_space<vmem>>, vector<384x128xf32>
    %c1_65 = arith.constant 1 : index
    %c0_66 = arith.constant 0 : index
    %c0_67 = arith.constant 0 : index
    %79 = vector.load %arg3[%c1_65, %c0_66, %c0_67] : memref<9x128x128xf32, #tpu.memory_space<vmem>>, vector<1x128x128xf32>
    %80 = vector.shape_cast %79 : vector<1x128x128xf32> to vector<128x128xf32>
    %cst_68 = arith.constant dense<0.000000e+00> : vector<384x128xf32>
    %81 = tpu.matmul %78, %80, %cst_68 {dimension_numbers = #tpu.dot_dimension_numbers<[1], [0], [0], [1], [0, 0, 1, 1], [], []>} : vector<384x128xf32>, vector<128x128xf32>, vector<384x128xf32> -> vector<384x128xf32>
    %82 = arith.addf %77, %81 : vector<384x128xf32>
    %c9_69 = arith.constant 9 : index
    %c0_70 = arith.constant 0 : index
    %83 = vector.load %arg7[%c9_69, %c0_70] : memref<448x128xf32, #tpu.memory_space<vmem>>, vector<384x128xf32>
    %c2_71 = arith.constant 2 : index
    %c0_72 = arith.constant 0 : index
    %c0_73 = arith.constant 0 : index
    %84 = vector.load %arg3[%c2_71, %c0_72, %c0_73] : memref<9x128x128xf32, #tpu.memory_space<vmem>>, vector<1x128x128xf32>
    %85 = vector.shape_cast %84 : vector<1x128x128xf32> to vector<128x128xf32>
    %cst_74 = arith.constant dense<0.000000e+00> : vector<384x128xf32>
    %86 = tpu.matmul %83, %85, %cst_74 {dimension_numbers = #tpu.dot_dimension_numbers<[1], [0], [0], [1], [0, 0, 1, 1], [], []>} : vector<384x128xf32>, vector<128x128xf32>, vector<384x128xf32> -> vector<384x128xf32>
    %87 = arith.addf %82, %86 : vector<384x128xf32>
    %c31_75 = arith.constant 31 : index
    %c0_76 = arith.constant 0 : index
    %88 = vector.load %arg7[%c31_75, %c0_76] : memref<448x128xf32, #tpu.memory_space<vmem>>, vector<384x128xf32>
    %c3_77 = arith.constant 3 : index
    %c0_78 = arith.constant 0 : index
    %c0_79 = arith.constant 0 : index
    %89 = vector.load %arg3[%c3_77, %c0_78, %c0_79] : memref<9x128x128xf32, #tpu.memory_space<vmem>>, vector<1x128x128xf32>
    %90 = vector.shape_cast %89 : vector<1x128x128xf32> to vector<128x128xf32>
    %cst_80 = arith.constant dense<0.000000e+00> : vector<384x128xf32>
    %91 = tpu.matmul %88, %90, %cst_80 {dimension_numbers = #tpu.dot_dimension_numbers<[1], [0], [0], [1], [0, 0, 1, 1], [], []>} : vector<384x128xf32>, vector<128x128xf32>, vector<384x128xf32> -> vector<384x128xf32>
    %92 = arith.addf %87, %91 : vector<384x128xf32>
    %c32_81 = arith.constant 32 : index
    %c0_82 = arith.constant 0 : index
    %93 = vector.load %arg7[%c32_81, %c0_82] : memref<448x128xf32, #tpu.memory_space<vmem>>, vector<384x128xf32>
    %c4_83 = arith.constant 4 : index
    %c0_84 = arith.constant 0 : index
    %c0_85 = arith.constant 0 : index
    %94 = vector.load %arg3[%c4_83, %c0_84, %c0_85] : memref<9x128x128xf32, #tpu.memory_space<vmem>>, vector<1x128x128xf32>
    %95 = vector.shape_cast %94 : vector<1x128x128xf32> to vector<128x128xf32>
    %cst_86 = arith.constant dense<0.000000e+00> : vector<384x128xf32>
    %96 = tpu.matmul %93, %95, %cst_86 {dimension_numbers = #tpu.dot_dimension_numbers<[1], [0], [0], [1], [0, 0, 1, 1], [], []>} : vector<384x128xf32>, vector<128x128xf32>, vector<384x128xf32> -> vector<384x128xf32>
    %97 = arith.addf %92, %96 : vector<384x128xf32>
    %c33_87 = arith.constant 33 : index
    %c0_88 = arith.constant 0 : index
    %98 = vector.load %arg7[%c33_87, %c0_88] : memref<448x128xf32, #tpu.memory_space<vmem>>, vector<384x128xf32>
    %c5_89 = arith.constant 5 : index
    %c0_90 = arith.constant 0 : index
    %c0_91 = arith.constant 0 : index
    %99 = vector.load %arg3[%c5_89, %c0_90, %c0_91] : memref<9x128x128xf32, #tpu.memory_space<vmem>>, vector<1x128x128xf32>
    %100 = vector.shape_cast %99 : vector<1x128x128xf32> to vector<128x128xf32>
    %cst_92 = arith.constant dense<0.000000e+00> : vector<384x128xf32>
    %101 = tpu.matmul %98, %100, %cst_92 {dimension_numbers = #tpu.dot_dimension_numbers<[1], [0], [0], [1], [0, 0, 1, 1], [], []>} : vector<384x128xf32>, vector<128x128xf32>, vector<384x128xf32> -> vector<384x128xf32>
    %102 = arith.addf %97, %101 : vector<384x128xf32>
    %c55_93 = arith.constant 55 : index
    %c0_94 = arith.constant 0 : index
    %103 = vector.load %arg7[%c55_93, %c0_94] : memref<448x128xf32, #tpu.memory_space<vmem>>, vector<384x128xf32>
    %c6_95 = arith.constant 6 : index
    %c0_96 = arith.constant 0 : index
    %c0_97 = arith.constant 0 : index
    %104 = vector.load %arg3[%c6_95, %c0_96, %c0_97] : memref<9x128x128xf32, #tpu.memory_space<vmem>>, vector<1x128x128xf32>
    %105 = vector.shape_cast %104 : vector<1x128x128xf32> to vector<128x128xf32>
    %cst_98 = arith.constant dense<0.000000e+00> : vector<384x128xf32>
    %106 = tpu.matmul %103, %105, %cst_98 {dimension_numbers = #tpu.dot_dimension_numbers<[1], [0], [0], [1], [0, 0, 1, 1], [], []>} : vector<384x128xf32>, vector<128x128xf32>, vector<384x128xf32> -> vector<384x128xf32>
    %107 = arith.addf %102, %106 : vector<384x128xf32>
    %c56_99 = arith.constant 56 : index
    %c0_100 = arith.constant 0 : index
    %108 = vector.load %arg7[%c56_99, %c0_100] : memref<448x128xf32, #tpu.memory_space<vmem>>, vector<384x128xf32>
    %c7_101 = arith.constant 7 : index
    %c0_102 = arith.constant 0 : index
    %c0_103 = arith.constant 0 : index
    %109 = vector.load %arg3[%c7_101, %c0_102, %c0_103] : memref<9x128x128xf32, #tpu.memory_space<vmem>>, vector<1x128x128xf32>
    %110 = vector.shape_cast %109 : vector<1x128x128xf32> to vector<128x128xf32>
    %cst_104 = arith.constant dense<0.000000e+00> : vector<384x128xf32>
    %111 = tpu.matmul %108, %110, %cst_104 {dimension_numbers = #tpu.dot_dimension_numbers<[1], [0], [0], [1], [0, 0, 1, 1], [], []>} : vector<384x128xf32>, vector<128x128xf32>, vector<384x128xf32> -> vector<384x128xf32>
    %112 = arith.addf %107, %111 : vector<384x128xf32>
    %c57_105 = arith.constant 57 : index
    %c0_106 = arith.constant 0 : index
    %113 = vector.load %arg7[%c57_105, %c0_106] : memref<448x128xf32, #tpu.memory_space<vmem>>, vector<384x128xf32>
    %c8_107 = arith.constant 8 : index
    %c0_108 = arith.constant 0 : index
    %c0_109 = arith.constant 0 : index
    %114 = vector.load %arg3[%c8_107, %c0_108, %c0_109] : memref<9x128x128xf32, #tpu.memory_space<vmem>>, vector<1x128x128xf32>
    %115 = vector.shape_cast %114 : vector<1x128x128xf32> to vector<128x128xf32>
    %cst_110 = arith.constant dense<0.000000e+00> : vector<384x128xf32>
    %116 = tpu.matmul %113, %115, %cst_110 {dimension_numbers = #tpu.dot_dimension_numbers<[1], [0], [0], [1], [0, 0, 1, 1], [], []>} : vector<384x128xf32>, vector<128x128xf32>, vector<384x128xf32> -> vector<384x128xf32>
    %117 = arith.addf %112, %116 : vector<384x128xf32>
    %118 = vector.shape_cast %117 : vector<384x128xf32> to vector<16x24x128xf32>
    %119 = vector.extract_strided_slice %118 {offsets = [0, 0, 0], sizes = [16, 16, 128], strides = [1, 1, 1]} : vector<16x24x128xf32> to vector<16x16x128xf32>
    %c0_111 = arith.constant 0 : index
    %c0_112 = arith.constant 0 : index
    %c0_113 = arith.constant 0 : index
    %c0_114 = arith.constant 0 : index
    %120 = vector.load %arg1[%c0_111, %c0_112, %c0_113, %c0_114] : memref<1x16x16x128xf32, #tpu.memory_space<vmem>>, vector<1x16x16x128xf32>
    %121 = vector.shape_cast %120 : vector<1x16x16x128xf32> to vector<16x16x128xf32>
    %122 = arith.addf %119, %121 : vector<16x16x128xf32>
    %cst_115 = arith.constant 0.000000e+00 : f32
    %123 = vector.broadcast %cst_115 : f32 to vector<16x16x128xf32>
    %124 = arith.maximumf %122, %123 : vector<16x16x128xf32>
    %c0_116 = arith.constant 0 : index
    %c0_117 = arith.constant 0 : index
    %c0_118 = arith.constant 0 : index
    %c0_119 = arith.constant 0 : index
    %125 = vector.load %arg6[%c0_116, %c0_117, %c0_118, %c0_119] : memref<1x16x16x128xf32, #tpu.memory_space<vmem>>, vector<1x16x16x128xf32>
    %126 = vector.shape_cast %125 : vector<1x16x16x128xf32> to vector<16x16x128xf32>
    %127 = vector.shape_cast %124 : vector<16x16x128xf32> to vector<1x16x16x128xf32>
    tpu.vector_store %arg6[%c0_116, %c0_117, %c0_118, %c0_119], %127 {strides = array<i32>} : memref<1x16x16x128xf32, #tpu.memory_space<vmem>>, vector<1x16x16x128xf32>,
    return
  }
  func.func @transform_0(%arg0: i32) -> (i32, i32, i32, i32) {
    %c0_i32 = arith.constant 0 : i32
    %c0_i32_0 = arith.constant 0 : i32
    %c0_i32_1 = arith.constant 0 : i32
    %c0_i32_2 = arith.constant 0 : i32
    return %arg0, %c0_i32, %c0_i32_0, %c0_i32_1 : i32, i32, i32, i32
  }
  func.func @transform_1(%arg0: i32) -> (i32, i32, i32) {
    %c0_i32 = arith.constant 0 : i32
    %c0_i32_0 = arith.constant 0 : i32
    %c0_i32_1 = arith.constant 0 : i32
    %c0_i32_2 = arith.constant 0 : i32
    return %c0_i32, %c0_i32_0, %c0_i32_1 : i32, i32, i32
  }
  func.func @transform_2(%arg0: i32) -> (i32, i32, i32) {
    %c0_i32 = arith.constant 0 : i32
    %c0_i32_0 = arith.constant 0 : i32
    %c0_i32_1 = arith.constant 0 : i32
    %c0_i32_2 = arith.constant 0 : i32
    return %c0_i32, %c0_i32_0, %c0_i32_1 : i32, i32, i32
  }
  func.func @transform_3(%arg0: i32) -> (i32, i32) {
    %c0_i32 = arith.constant 0 : i32
    %c0_i32_0 = arith.constant 0 : i32
    %c0_i32_1 = arith.constant 0 : i32
    return %c0_i32, %c0_i32_0 : i32, i32
  }
  func.func @transform_4(%arg0: i32) -> (i32, i32) {
    %c0_i32 = arith.constant 0 : i32
    %c0_i32_0 = arith.constant 0 : i32
    %c0_i32_1 = arith.constant 0 : i32
    return %c0_i32, %c0_i32_0 : i32, i32
  }
  func.func @transform_5(%arg0: i32) -> (i32, i32, i32, i32) {
    %c0_i32 = arith.constant 0 : i32
    %c0_i32_0 = arith.constant 0 : i32
    %c0_i32_1 = arith.constant 0 : i32
    %c0_i32_2 = arith.constant 0 : i32
    return %arg0, %c0_i32, %c0_i32_0, %c0_i32_1 : i32, i32, i32, i32
  }
}

</mosaic_0001>

<bundles_post_ra>
// kernel: tpu_custom_call.1
= control target key start
LH: loop header
LB: loop body
LE: loop exit
PB: predicated region body
PF: predicated region fallthrough
CT: control target
= control target key end

     0   :  { %10 = vsyncpa [#allocation4], 0  ;;  %s14023_s0 = inlined_call_operand.hbm [shape: f32[2,16,16,128], index: 0, kind: input, shape index: {}]   ;;  %s14024_s1 = inlined_call_operand.hbm [shape: f32[9,128,128], index: 1, kind: input, shape index: {}]   ;;  %s14025_s2 = inlined_call_operand.hbm [shape: f32[9,128,128], index: 2, kind: input, shape index: {}]   ;;  %s14026_s3 = inlined_call_operand.vmem [shape: f32[1,128], index: 3, kind: input, shape index: {}]   ;;  %s14027_s4 = inlined_call_operand.vmem [shape: f32[1,128], index: 4, kind: input, shape index: {}]   ;;  %s14028_s5 = inlined_call_operand.hbm [shape: f32[2,16,16,128], index: 5, kind: output, shape index: {}]  }
   0x1   :  { %12 = vsyncpa [#allocation4 + $0x1], 0 }
   0x2   :  { %13 = vsyncpa [#allocation7], 0 }
   0x3   :  { %14 = vsyncpa [#allocation5], 0 }
   0x4   :  { %16 = vsyncpa [#allocation5 + $0x1], 0  ;;  %s11314_s18 = smov 0   ;;  %s11316_s19 = smov 0  }
   0x5   :  { %s11318_s20 = smov 0   ;;  %s11320_s21 = smov 0  }
   0x6 LB: > { %s11335_s22 = sadd.s32 4294967295, %s11273_s21   ;;  %s7999_s23 = sadd.s32 4294967294, %s11273_s21   ;;  %s11273_s21 = sphi %s11320_s21, %s14245_s21   ;;  %s11269_s20 = sphi %s11318_s20, %s14244_s20   ;;  %s11265_s19 = sphi %s11316_s19, %s14243_s19   ;;  %s11261_s18 = sphi %s11314_s18, %s14242_s18  }
   0x7   : > { %p42_p0 = scmp.ne.s32.totalorder %s11265_s19, %s11261_s18  ;;  %p14029_p1 = scmp.eq.s32.totalorder %s11335_s22, 0 }
   0x8   : > { %p150_p2 = scmp.eq.s32.totalorder %s11335_s22, 1  ;;  %p156_p3 = scmp.eq.s32.totalorder %s7999_s23, 1 }
   0x9   : > { %p11344_p4 = por %p14029_p1, %p42_p0  ;;  %p8000_p5 = scmp.ge.s32.totalorder %s11273_s21, 1 }
   0xa   : > { %p11349_p6 = por %p156_p3, %p42_p0  ;;  %p163_p7 = scmp.lt.s32.totalorder %s11273_s21, 3 }
   0xb   : > { %s14044_s24 = scalar_select %p11344_p4, 1, 0 }
   0xc   : > { %s14045_s25 = scalar_select %p11349_p6, 1, 0 }
   0xd   : > { %p11354_p8 = pnand %p8000_p5, %p163_p7  ;;  %s11275_s27 = smov [#allocation6]  }
   0xe   : > { %s175_s28 = sshll.u32 %s11275_s27, 4  ;;  %s11276_s30 = smov [#allocation8]   ;;  %s176_s28 = int_to_ptr.vmem [resolvable:$true] %s175_s28 }
   0xf   : > { %s14046_s26 = scalar_select %p11354_p8, 1, 0 }
  0x10   : > { %p11057_p9 = pneg %p11354_p8  ;;  %s188_s6 = sshll.u32 %s11276_s30, 4  ;;  %s189_s6 = int_to_ptr.vmem [resolvable:$true] %s188_s6 }
  0x11   : > { %s11136_s7 = scalar_lea.vmem %s176_s28, 18432  ;;  %p11144_p5 = scmp.lt.s32.totalorder %s176_s28, %s176_s28 }
  0x12   : > { %p11363_p11 = pnand %p11057_p9, %p14029_p1  ;;  %p11137_p13 = scmp.ne.s32.totalorder %s176_s28, %s11136_s7 }
  0x13   : > { %p11145_p7 = scmp.lt.s32.totalorder %s11136_s7, %s11136_s7 }
  0x14   : > { %p11127_p12 = pneg %p11363_p11 }
  0x15   : > { %p11146_p10 = por %p11145_p7, %p11144_p5 }
  0x16   : > { %p11139_p0 = pnand %p11137_p13, %p11127_p12 }
  0x18   : > { %p11140_p3 = pneg %p11139_p0 }
  0x1a   : > { %p11147_p9 = pnand %p11146_p10, %p11140_p3 }
  0x1c   : > { %11150 = shalt.err (!%p11147_p9)
}
  0x1d   : > { %s14030_s8 = smov 128   ;;  %s11278_s9 = smov 8  }
  0x1e   : > { %11060 = dma.hbm_to_vmem [thread:$0]  (!%p11363_p11), %s14024_s1, 18432, %s176_s28, [#allocation7], %s14030_s8, %s14030_s8, %s11278_s9  }
  0x1f   : > { %s11162_s12 = scalar_lea.vmem %s189_s6, 18432  ;;  %p11170_p10 = scmp.lt.s32.totalorder %s189_s6, %s189_s6 }
  0x20   : > { %p11163_p13 = scmp.ne.s32.totalorder %s189_s6, %s11162_s12  ;;  %p11171_p3 = scmp.lt.s32.totalorder %s11162_s12, %s11162_s12 }
  0x22   : > { %p11165_p0 = pnand %p11163_p13, %p11127_p12  ;;  %p11172_p7 = por %p11171_p3, %p11170_p10 }
  0x24   : > { %p11166_p5 = pneg %p11165_p0 }
  0x26   : > { %p11173_p9 = pnand %p11172_p7, %p11166_p5 }
  0x28   : > { %11176 = shalt.err (!%p11173_p9)
}
  0x29   : > { %11063 = dma.hbm_to_vmem [thread:$0]  (!%p11363_p11), %s14025_s2, 18432, %s189_s6, [#allocation7], %s14030_s8, %s14030_s8, %s11278_s9  }
  0x2a   : > { %s11392_s15 = sadd.s32 1, %s11273_s21   ;;  %s29_s16 = sadd.s32 1, %s11269_s20 }
  0x2b   : > { %s26_s17 = ssub.s32 %s11273_s21, %s11392_s15  ;;  %p36_p12 = scmp.ne.s32.totalorder %s11269_s20, %s11265_s19 }
  0x2c   : > { %p27_p13 = scmp.eq.s32.totalorder %s26_s17, 0  ;;  %p37_p0 = scmp.eq.s32.totalorder %s11273_s21, 0 }
  0x2d   : > { %p11402_p5 = por %p150_p2, %p36_p12  ;;  %p11074_p10 = scmp.lt.s32.totalorder %s11273_s21, 2 }
  0x2e   : > { %s11408_s27 = scalar_select %p27_p13, %s11269_s20, %s29_s16  }
  0x2f   : > { %s14048_s23 = scalar_select %p11402_p5, 1, 0 }
  0x30   : > { %p38_p3 = por %p37_p0, %p36_p12  ;;  %s208_s28 = sand.u32 1, %s11269_s20  }
  0x31   : > { %s8004_s29 = sshll.u32 %s208_s28, 8  ;;  %s8019_s30 = sshll.u32 %s11273_s21, 12 }
  0x32   : > { %s11415_s10 = scalar_lea.hbm %s14023_s0, %s8019_s30  ;;  %s212_s11 = scalar_lea.vmem [#allocation3], %s8004_s29 }
  0x33   : > { %s219_s12 = sshll.u32 %s212_s11, 4  ;;  %p11419_p2 = pnand %p11074_p10, %p38_p3  ;;  %s11417_s12 = int_to_ptr.vmem [resolvable:$true] %s219_s12 }
  0x34   : > { %s11423_s14 = scalar_lea.sflag [#allocation4], %s208_s28  ;;  %s11177_s16 = scalar_lea.hbm %s11415_s10, 4096 }
  0x35   : > { %p11178_p11 = scmp.ne.s32.totalorder %s11415_s10, %s11177_s16  ;;  %p11179_p7 = pneg %p11419_p2 }
  0x36   : > { %s11182_s29 = scalar_lea.hbm %s14023_s0, 8192  ;;  %p11183_p13 = scmp.lt.s32.totalorder %s11415_s10, %s14023_s0 }
  0x37   : > { %p11180_p9 = pnand %p11179_p7, %p11178_p11  ;;  %p11184_p0 = scmp.lt.s32.totalorder %s11182_s29, %s11177_s16 }
  0x39   : > { %p11181_p12 = pneg %p11180_p9  ;;  %p11185_p10 = por %p11184_p0, %p11183_p13 }
  0x3b   : > { %p11186_p3 = pnand %p11185_p10, %p11181_p12 }
  0x3d   : > { %11189 = shalt.err (!%p11186_p3)
}
  0x3e   : > { %s11190_s28 = scalar_lea.vmem %s11417_s12, 4096  ;;  %s11279_s11 = smov [#allocation3]  }
  0x3f   : > { %p11191_p1 = scmp.ne.s32.totalorder %s11417_s12, %s11190_s28  ;;  %s11195_s8 = sshll.u32 %s11279_s11, 4  ;;  %s11196_s8 = int_to_ptr.vmem [resolvable:$false] %s11195_s8 }
  0x40   : > { %s11197_s17 = scalar_lea.vmem %s11196_s8, 8192  ;;  %p11198_p9 = scmp.lt.s32.totalorder %s11417_s12, %s11196_s8 }
  0x41   : > { %p11193_p6 = pnand %p11191_p1, %p11179_p7  ;;  %p11199_p5 = scmp.lt.s32.totalorder %s11197_s17, %s11190_s28 }
  0x43   : > { %p11194_p11 = pneg %p11193_p6  ;;  %p11200_p4 = por %p11199_p5, %p11198_p9 }
  0x45   : > { %p11201_p8 = pnand %p11200_p4, %p11194_p11 }
  0x47   : > { %11204 = shalt.err (!%p11201_p8)
}
  0x48   : > { %s14050_s16 = smov 128   ;;  %p14051_p1 = scmp.ne.s32.totalorder %s14046_s26, 0 }
  0x49   : > { %11067 = dma.hbm_to_vmem [thread:$0]  (!%p11419_p2), %s11415_s10, 4096, %s11417_s12, %s11423_s14, %s14050_s16, %s14050_s16, %s11278_s9  }
  0x4a   : > { %231 = sbr.rel (%p14051_p1) target bundleno = 1398 (0x576), region = 40 }
  0x4f   : > { %s11450_s30 = sand.u32 1, %s11265_s19   ;;  %p14052_p4 = scmp.ne.s32.totalorder %s14044_s24, 0 }
  0x50   : > { %s8008_s8 = sshll.u32 %s11450_s30, 8  ;;  %s234_s29 = scalar_lea.sflag [#allocation4], %s11450_s30 }
  0x51   : > { %s11456_s13 = scalar_lea.vmem [#allocation3], %s8008_s8 }
  0x52   : > { %11248 = dma.done.wait (%p14052_p4), %s234_s29, 4096  }
  0x53   : > { %11250 = vsyncadd (%p14052_p4), %s234_s29, 4294963200  ;;  %p14053_p6 = scmp.eq.s32.totalorder %s11335_s22, 0 }
  0x55   : > { %11252 = dma.done.wait (%p14053_p6), [#allocation7], 36864   ;;  %p14054_p8 = pmov %p14053_p6 }
  0x56   : > { %v11280_v0 = vmov 0.0   ;;  %v430_v1 = vld [vmem:[#allocation6 + $0x78] sm:$0xff]  ;;  %v429_v2 = vld [vmem:[#allocation6 + $0x70] sm:$0xff]  ;;  %v428_v5 = vld [vmem:[#allocation6 + $0x68] sm:$0xff]  ;;  %s13881_s6 = scalar_lea.vmem [#allocation9], %s8008_s8  ;;  %s8020_s7 = sshll.u32 %s11335_s22, 12 }
  0x57   : > { %11254 = vsyncadd (%p14054_p8), [#allocation7], 4294930432  ;;  %272 = vst [vmem:[#allocation2] sm:$0xff] %v11280_v0  ;;  %9309 = vmatprep.mubr.f32.mxu1 %v11280_v0  ;;  %v848_v3 = vld [vmem:[#allocation6 + $0xf8] sm:$0xff]  ;;  %9173 = vmatprep.subr.mxu0 %v430_v1  ;;  %v847_v4 = vld [vmem:[#allocation6 + $0xf0] sm:$0xff]  ;;  %s7907_s28 = sshll.u32 %s13881_s6, 4  ;;  %s13977_s16 = scalar_lea.hbm %s14028_s5, %s8020_s7  ;;  %s13979_s28 = int_to_ptr.vmem [resolvable:$true] %s7907_s28 }
  0x58   : > { %273 = vst [vmem:[#allocation2 + $0x8] sm:$0xff] %v11280_v0  ;;  %274 = vst [vmem:[#allocation2 + $0x10] sm:$0xff] %v11280_v0  ;;  %9277 = vmatprep.subr.mxu1 %v848_v3  ;;  %9174 = vmatpush3.msra.mxu0 %v430_v1  ;;  %v846_v6 = vld [vmem:[#allocation6 + $0xe8] sm:$0xff]  ;;  %v427_v7 = vld [vmem:[#allocation6 + $0x60] sm:$0xff]  ;;  %s7894_s8 = scalar_lea.sflag [#allocation5], %s11450_s30  ;;  %s11205_s29 = scalar_lea.vmem %s13979_s28, 4096 }
  0x59   : > { %275 = vst [vmem:[#allocation2 + $0x18] sm:$0xff] %v11280_v0  ;;  %276 = vst [vmem:[#allocation2 + $0x1a0] sm:$0xff] %v11280_v0  ;;  %9278 = vmatpush3.msra.mxu1 %v848_v3  ;;  %9175 = vmatprep.subr.mxu0 %v429_v2  ;;  %v845_v8 = vld [vmem:[#allocation6 + $0xe0] sm:$0xff]  ;;  %v426_v9 = vld [vmem:[#allocation6 + $0x58] sm:$0xff]  ;;  %p11206_p5 = scmp.ne.s32.totalorder %s13979_s28, %s11205_s29  ;;  %p14239_p2 = scmp.ne.s32.totalorder %s14048_s23, 0 }
  0x5a   : > { %277 = vst [vmem:[#allocation2 + $0x1a8] sm:$0xff] %v11280_v0  ;;  %278 = vst [vmem:[#allocation2 + $0x1b0] sm:$0xff] %v11280_v0  ;;  %9279 = vmatprep.subr.mxu1 %v847_v4  ;;  %9176 = vmatpush3.msra.mxu0 %v429_v2  ;;  %v844_v10 = vld [vmem:[#allocation6 + $0xd8] sm:$0xff]  ;;  %v425_v11 = vld [vmem:[#allocation6 + $0x50] sm:$0xff]  ;;  %s11281_s22 = smov [#allocation9]  }
  0x5b   : > { %279 = vst [vmem:[#allocation2 + $0x1b8] sm:$0xff] %v11280_v0  ;;  %314 = vst [vmem:[#allocation2 + $0x30] sm:$0xff] %v11280_v0  ;;  %9280 = vmatpush3.msra.mxu1 %v847_v4  ;;  %9177 = vmatprep.subr.mxu0 %v428_v5  ;;  %v843_v12 = vld [vmem:[#allocation6 + $0xd0] sm:$0xff]  ;;  %v424_v13 = vld [vmem:[#allocation6 + $0x48] sm:$0xff]  ;;  %p11207_p7 = pnand %p11206_p5, %p14239_p2 }
  0x5c   : > { %317 = vst [vmem:[#allocation2 + $0x48] sm:$0xff] %v11280_v0  ;;  %320 = vst [vmem:[#allocation2 + $0x60] sm:$0xff] %v11280_v0  ;;  %9281 = vmatprep.subr.mxu1 %v846_v6  ;;  %9178 = vmatpush3.msra.mxu0 %v428_v5  ;;  %v842_v14 = vld [vmem:[#allocation6 + $0xc8] sm:$0xff]  ;;  %v423_v15 = vld [vmem:[#allocation6 + $0x40] sm:$0xff] }
  0x5d   : > { %323 = vst [vmem:[#allocation2 + $0x78] sm:$0xff] %v11280_v0  ;;  %326 = vst [vmem:[#allocation2 + $0x90] sm:$0xff] %v11280_v0  ;;  %9282 = vmatpush3.msra.mxu1 %v846_v6  ;;  %9179 = vmatprep.subr.mxu0 %v427_v7  ;;  %v841_v16 = vld [vmem:[#allocation6 + $0xc0] sm:$0xff]  ;;  %v11495_v18 = vld [vmem:[%s11456_s13 + $0x8] sm:$0xff]  ;;  %p11208_p12 = pneg %p11207_p7 }
  0x5e   : > { %329 = vst [vmem:[#allocation2 + $0xa8] sm:$0xff] %v11280_v0  ;;  %332 = vst [vmem:[#allocation2 + $0xc0] sm:$0xff] %v11280_v0  ;;  %9283 = vmatprep.subr.mxu1 %v845_v8  ;;  %9180 = vmatpush3.msra.mxu0 %v427_v7  ;;  %v11492_v17 = vld [vmem:[%s11456_s13] sm:$0xff]  ;;  %v422_v19 = vld [vmem:[#allocation6 + $0x38] sm:$0xff] }
  0x5f   : > { %335 = vst [vmem:[#allocation2 + $0xd8] sm:$0xff] %v11280_v0  ;;  %338 = vst [vmem:[#allocation2 + $0xf0] sm:$0xff] %v11280_v0  ;;  %9284 = vmatpush3.msra.mxu1 %v845_v8  ;;  %9181 = vmatprep.subr.mxu0 %v426_v9  ;;  %v11500_v20 = vld [vmem:[%s11456_s13 + $0x10] sm:$0xff]  ;;  %v11503_v21 = vld [vmem:[%s11456_s13 + $0x18] sm:$0xff] }
  0x60   : > { %341 = vst [vmem:[#allocation2 + $0x108] sm:$0xff] %v11280_v0  ;;  %344 = vst [vmem:[#allocation2 + $0x120] sm:$0xff] %v11280_v0  ;;  %9285 = vmatprep.subr.mxu1 %v844_v10  ;;  %9182 = vmatpush3.msra.mxu0 %v426_v9  ;;  %v840_v22 = vld [vmem:[#allocation6 + $0xb8] sm:$0xff]  ;;  %v11508_v23 = vld [vmem:[%s11456_s13 + $0x20] sm:$0xff] }
  0x61   : > { %347 = vst [vmem:[#allocation2 + $0x138] sm:$0xff] %v11280_v0  ;;  %350 = vst [vmem:[#allocation2 + $0x150] sm:$0xff] %v11280_v0  ;;  %9286 = vmatpush3.msra.mxu1 %v844_v10  ;;  %9183 = vmatprep.subr.mxu0 %v425_v11  ;;  %v11511_v24 = vld [vmem:[%s11456_s13 + $0x28] sm:$0xff]  ;;  %v421_v25 = vld [vmem:[#allocation6 + $0x30] sm:$0xff] }
  0x62   : > { %353 = vst [vmem:[#allocation2 + $0x168] sm:$0xff] %v11280_v0  ;;  %356 = vst [vmem:[#allocation2 + $0x180] sm:$0xff] %v11280_v0  ;;  %9287 = vmatprep.subr.mxu1 %v843_v12  ;;  %9184 = vmatpush3.msra.mxu0 %v425_v11  ;;  %v11516_v26 = vld [vmem:[%s11456_s13 + $0x30] sm:$0xff]  ;;  %v11519_v27 = vld [vmem:[%s11456_s13 + $0x38] sm:$0xff] }
  0x63   : > { %359 = vst [vmem:[#allocation2 + $0x198] sm:$0xff] %v11280_v0  ;;  %9288 = vmatpush3.msra.mxu1 %v843_v12  ;;  %9185 = vmatprep.subr.mxu0 %v424_v13  ;;  %312 = vst [vmem:[#allocation2 + $0x20] sm:$0xff] %v11492_v17  ;;  %v839_v28 = vld [vmem:[#allocation6 + $0xb0] sm:$0xff]  ;;  %v11524_v29 = vld [vmem:[%s11456_s13 + $0x40] sm:$0xff] }
  0x64   : > { %9289 = vmatprep.subr.mxu1 %v842_v14  ;;  %313 = vst [vmem:[#allocation2 + $0x28] sm:$0xff] %v11495_v18  ;;  %9186 = vmatpush3.msra.mxu0 %v424_v13  ;;  %315 = vst [vmem:[#allocation2 + $0x38] sm:$0xff] %v11500_v20  ;;  %v11527_v30 = vld [vmem:[%s11456_s13 + $0x48] sm:$0xff]  ;;  %v11532_v32 = vld [vmem:[%s11456_s13 + $0x50] sm:$0xff] }
  0x65   : > { %9290 = vmatpush3.msra.mxu1 %v842_v14  ;;  %316 = vst [vmem:[#allocation2 + $0x40] sm:$0xff] %v11503_v21  ;;  %9187 = vmatprep.subr.mxu0 %v423_v15  ;;  %318 = vst [vmem:[#allocation2 + $0x50] sm:$0xff] %v11508_v23  ;;  %v420_v31 = vld [vmem:[#allocation6 + $0x28] sm:$0xff]  ;;  %v11535_v33 = vld [vmem:[%s11456_s13 + $0x58] sm:$0xff] }
  0x66   : > { %9291 = vmatprep.subr.mxu1 %v841_v16  ;;  %319 = vst [vmem:[#allocation2 + $0x58] sm:$0xff] %v11511_v24  ;;  %9188 = vmatpush3.msra.mxu0 %v423_v15  ;;  %321 = vst [vmem:[#allocation2 + $0x68] sm:$0xff] %v11516_v26  ;;  %v838_v34 = vld [vmem:[#allocation6 + $0xa8] sm:$0xff]  ;;  %v11540_v35 = vld [vmem:[%s11456_s13 + $0x60] sm:$0xff] }
  0x67   : > { %9292 = vmatpush3.msra.mxu1 %v841_v16  ;;  %322 = vst [vmem:[#allocation2 + $0x70] sm:$0xff] %v11519_v27  ;;  %9189 = vmatprep.subr.mxu0 %v422_v19  ;;  %324 = vst [vmem:[#allocation2 + $0x80] sm:$0xff] %v11524_v29  ;;  %v11543_v36 = vld [vmem:[%s11456_s13 + $0x68] sm:$0xff]  ;;  %v11548_v37 = vld [vmem:[%s11456_s13 + $0x70] sm:$0xff] }
  0x68   : > { %9293 = vmatprep.subr.mxu1 %v840_v22  ;;  %325 = vst [vmem:[#allocation2 + $0x88] sm:$0xff] %v11527_v30  ;;  %9190 = vmatpush3.msra.mxu0 %v422_v19  ;;  %327 = vst [vmem:[#allocation2 + $0x98] sm:$0xff] %v11532_v32  ;;  %v11551_v38 = vld [vmem:[%s11456_s13 + $0x78] sm:$0xff]  ;;  %v419_v39 = vld [vmem:[#allocation6 + $0x20] sm:$0xff] }
  0x69   : > { %9294 = vmatpush3.msra.mxu1 %v840_v22  ;;  %328 = vst [vmem:[#allocation2 + $0xa0] sm:$0xff] %v11535_v33  ;;  %9191 = vmatprep.subr.mxu0 %v421_v25  ;;  %330 = vst [vmem:[#allocation2 + $0xb0] sm:$0xff] %v11540_v35  ;;  %v837_v40 = vld [vmem:[#allocation6 + $0xa0] sm:$0xff]  ;;  %v418_v41 = vld [vmem:[#allocation6 + $0x18] sm:$0xff] }
  0x6a   : > { %9295 = vmatprep.subr.mxu1 %v839_v28  ;;  %331 = vst [vmem:[#allocation2 + $0xb8] sm:$0xff] %v11543_v36  ;;  %9192 = vmatpush3.msra.mxu0 %v421_v25  ;;  %333 = vst [vmem:[#allocation2 + $0xc8] sm:$0xff] %v11548_v37  ;;  %v836_v42 = vld [vmem:[#allocation6 + $0x98] sm:$0xff]  ;;  %v417_v43 = vld [vmem:[#allocation6 + $0x10] sm:$0xff] }
  0x6b   : > { %9296 = vmatpush3.msra.mxu1 %v839_v28  ;;  %334 = vst [vmem:[#allocation2 + $0xd0] sm:$0xff] %v11551_v38  ;;  %9193 = vmatprep.subr.mxu0 %v420_v31  ;;  %v835_v44 = vld [vmem:[#allocation6 + $0x90] sm:$0xff]  ;;  %v416_v45 = vld [vmem:[#allocation6 + $0x8] sm:$0xff]  ;;  %v415_v48 = vld [vmem:[#allocation6] sm:$0xff] }
  0x6c   : > { %9297 = vmatprep.subr.mxu1 %v838_v34  ;;  %9194 = vmatpush3.msra.mxu0 %v420_v31  ;;  %v834_v46 = vld [vmem:[#allocation6 + $0x88] sm:$0xff]  ;;  %v11556_v49 = vld [vmem:[%s11456_s13 + $0x80] sm:$0xff]  ;;  %v11564_v52 = vld [vmem:[%s11456_s13 + $0x90] sm:$0xff] }
  0x6d   : > { %9298 = vmatpush3.msra.mxu1 %v838_v34  ;;  %9195 = vmatprep.subr.mxu0 %v419_v39  ;;  %v367_v47 = vld [vmem:[#allocation2 + $0x7] sm:$0xff]  ;;  %336 = vst [vmem:[#allocation2 + $0xe0] sm:$0xff] %v11556_v49  ;;  %v11567_v53 = vld [vmem:[%s11456_s13 + $0x98] sm:$0xff]  ;;  %v368_v54 = vld [vmem:[#allocation2 + $0xf] sm:$0xff] }
  0x6e   : > { %9299 = vmatprep.subr.mxu1 %v837_v40  ;;  %9196 = vmatpush3.msra.mxu0 %v419_v39  ;;  %v11559_v50 = vld [vmem:[%s11456_s13 + $0x88] sm:$0xff]  ;;  %v833_v51 = vld [vmem:[#allocation6 + $0x80] sm:$0xff]  ;;  %v1266_v55 = vld [vmem:[#allocation6 + $0x178] sm:$0xff]  ;;  %339 = vst [vmem:[#allocation2 + $0xf8] sm:$0xff] %v11564_v52 }
  0x6f   : > { %9300 = vmatpush3.msra.mxu1 %v837_v40  ;;  %9197 = vmatprep.subr.mxu0 %v418_v41  ;;  %337 = vst [vmem:[#allocation2 + $0xe8] sm:$0xff] %v11559_v50  ;;  %340 = vst [vmem:[#allocation2 + $0x100] sm:$0xff] %v11567_v53  ;;  %v11572_v56 = vld [vmem:[%s11456_s13 + $0xa0] sm:$0xff]  ;;  %v11576_v57 = vld [vmem:[%s11456_s13 + $0xa8] sm:$0xff] }
  0x70   : > { %9301 = vmatprep.subr.mxu1 %v836_v42  ;;  %9198 = vmatpush3.msra.mxu0 %v418_v41  ;;  %342 = vst [vmem:[#allocation2 + $0x110] sm:$0xff] %v11572_v56  ;;  %v369_v58 = vld [vmem:[#allocation2 + $0x17] sm:$0xff]  ;;  %343 = vst [vmem:[#allocation2 + $0x118] sm:$0xff] %v11576_v57  ;;  %v11588_v62 = vld [vmem:[%s11456_s13 + $0xc0] sm:$0xff] }
  0x71   : > { %9302 = vmatpush3.msra.mxu1 %v836_v42  ;;  %9199 = vmatprep.subr.mxu0 %v417_v43  ;;  %v11580_v59 = vld [vmem:[%s11456_s13 + $0xb0] sm:$0xff]  ;;  %v11583_v60 = vld [vmem:[%s11456_s13 + $0xb8] sm:$0xff]  ;;  %348 = vst [vmem:[#allocation2 + $0x140] sm:$0xff] %v11588_v62  ;;  %v11596_v2 = vld [vmem:[#allocation2 + $0x27] sm:$0xff] }
  0x72   : > { %9303 = vmatprep.subr.mxu1 %v835_v44  ;;  %9200 = vmatpush3.msra.mxu0 %v417_v43  ;;  %v1265_v61 = vld [vmem:[#allocation6 + $0x170] sm:$0xff]  ;;  %345 = vst [vmem:[#allocation2 + $0x128] sm:$0xff] %v11580_v59  ;;  %346 = vst [vmem:[#allocation2 + $0x130] sm:$0xff] %v11583_v60  ;;  %v11590_v63 = vld [vmem:[#allocation2 + $0x1f] sm:$0xff] }
  0x73   : > { %9304 = vmatpush3.msra.mxu1 %v835_v44  ;;  %9201 = vmatprep.subr.mxu0 %v416_v45  ;;  %v11592_v1 = vld [vmem:[#allocation6 + $0x1f8] sm:$0xff]  ;;  %v11599_v3 = vld [vmem:[%s11456_s13 + $0xc8] sm:$0xff]  ;;  %v1263_v5 = vld [vmem:[#allocation6 + $0x160] sm:$0xff] }
  0x74   : > { %9305 = vmatprep.subr.mxu1 %v834_v46  ;;  %9202 = vmatpush3.msra.mxu0 %v416_v45  ;;  %v1264_v4 = vld [vmem:[#allocation6 + $0x168] sm:$0xff]  ;;  %349 = vst [vmem:[#allocation2 + $0x148] sm:$0xff] %v11599_v3  ;;  %v11609_v7 = vld [vmem:[%s11456_s13 + $0xd0] sm:$0xff]  ;;  %v11612_v8 = vld [vmem:[%s11456_s13 + $0xd8] sm:$0xff] }
  0x75   : > { %9205 = vmatprep.mubr.f32.mxu0 %v367_v47  ;;  %9203 = vmatprep.subr.mxu0 %v415_v48  ;;  %v11606_v6 = vld [vmem:[#allocation2 + $0x2f] sm:$0xff]  ;;  %v11615_v9 = vld [vmem:[#allocation2 + $0x37] sm:$0xff]  ;;  %351 = vst [vmem:[#allocation2 + $0x158] sm:$0xff] %v11609_v7  ;;  %352 = vst [vmem:[#allocation2 + $0x160] sm:$0xff] %v11612_v8 }
  0x76   : > { %9306 = vmatpush3.msra.mxu1 %v834_v46  ;;  %9204 = vmatpush3.msra.mxu0 %v415_v48  ;;  %v1262_v10 = vld [vmem:[#allocation6 + $0x158] sm:$0xff]  ;;  %v1261_v12 = vld [vmem:[#allocation6 + $0x150] sm:$0xff]  ;;  %v11625_v13 = vld [vmem:[%s11456_s13 + $0xe0] sm:$0xff] }
  0x77   : > { %9307 = vmatprep.subr.mxu1 %v833_v51  ;;  %9206 = vmatmul.mubr.f32.vlgmr.msra.gmra.mxu0 %v368_v54  ;;  %v11622_v11 = vld [vmem:[#allocation2 + $0x3f] sm:$0xff]  ;;  %v11628_v14 = vld [vmem:[#allocation2 + $0x47] sm:$0xff]  ;;  %354 = vst [vmem:[#allocation2 + $0x170] sm:$0xff] %v11625_v13  ;;  %v11641_v19 = vld [vmem:[#allocation2 + $0x57] sm:$0xff] }
  0x78   : > { %9381 = vmatprep.subr.mxu0 %v1266_v55  ;;  %9308 = vmatpush3.msra.mxu1 %v833_v51  ;;  %v1260_v15 = vld [vmem:[#allocation6 + $0x148] sm:$0xff]  ;;  %v11646_v22 = vld [vmem:[#allocation2 + $0x5f] sm:$0xff]  ;;  %v1257_v25 = vld [vmem:[#allocation6 + $0x130] sm:$0xff] }
  0x79   : > { %9382 = vmatpush3.msra.mxu0 %v1266_v55  ;;  %9310 = vmatmul.mubr.f32.vlgmr.msra.gmra.mxu1 %v11280_v0  ;;  %v11633_v16 = vld [vmem:[%s11456_s13 + $0xe8] sm:$0xff]  ;;  %v1255_v34 = vld [vmem:[#allocation6 + $0x120] sm:$0xff]  ;;  %v11657_v39 = vld [vmem:[#allocation2 + $0x77] sm:$0xff] }
  0x7a   : > { %9208 = vmatprep.mubr.f32.mxu0 %v369_v58  ;;  %9312 = vmatprep.mubr.f32.mxu1 %v11280_v0  ;;  %355 = vst [vmem:[#allocation2 + $0x178] sm:$0xff] %v11633_v16  ;;  %v11649_v28 = vld [vmem:[#allocation2 + $0x67] sm:$0xff]  ;;  %v11654_v31 = vld [vmem:[#allocation2 + $0x6f] sm:$0xff]  ;;  %v11679_v45 = vld [vmem:[#allocation2 + $0x9f] sm:$0xff] }
  0x7b   : > { %9383 = vmatprep.subr.mxu0 %v1265_v61  ;;  %9209 = vmatmul.mubr.f32.gmra.mxu0 %v11590_v63  ;;  %v1683_v40 = vld [vmem:[#allocation6 + $0x1f0] sm:$0xff]  ;;  %v11665_v41 = vld [vmem:[#allocation2 + $0x87] sm:$0xff]  ;;  %v1680_v46 = vld [vmem:[#allocation6 + $0x1d8] sm:$0xff] }
  0x7c   : > { %9485 = vmatprep.subr.mxu1 %v11592_v1  ;;  %9211 = vmatprep.mubr.f32.mxu0 %v11596_v2  ;;  %v11671_v42 = vld [vmem:[#allocation2 + $0x8f] sm:$0xff]  ;;  %v1681_v43 = vld [vmem:[#allocation6 + $0x1e0] sm:$0xff]  ;;  %v11690_v51 = vld [vmem:[#allocation2 + $0xb7] sm:$0xff] }
  0x7d   : > { %9384 = vmatpush3.msra.mxu0 %v1265_v61  ;;  %9313 = vmatmul.mubr.f32.gmra.mxu1 %v11492_v17  ;;  %v11638_v17 = vld [vmem:[#allocation2 + $0x4f] sm:$0xff]  ;;  %v11682_v47 = vld [vmem:[#allocation2 + $0xa7] sm:$0xff]  ;;  %v11695_v54 = vld [vmem:[#allocation2 + $0xbf] sm:$0xff] }
  0x7e   : > { %9385 = vmatprep.subr.mxu0 %v1264_v4  ;;  %9315 = vmatprep.mubr.f32.mxu1 %v11495_v18  ;;  %v1259_v18 = vld [vmem:[#allocation6 + $0x140] sm:$0xff]  ;;  %v1253_v44 = vld [vmem:[#allocation6 + $0x110] sm:$0xff]  ;;  %v1678_v48 = vld [vmem:[#allocation6 + $0x1c8] sm:$0xff] }
  0x7f   : > { %9386 = vmatpush3.msra.mxu0 %v1264_v4  ;;  %9486 = vmatpush3.msra.mxu1 %v11592_v1  ;;  %v1677_v55 = vld [vmem:[#allocation6 + $0x1c0] sm:$0xff]  ;;  %v11703_v61 = vld [vmem:[#allocation2 + $0xcf] sm:$0xff] }
  0x80   : > { %9212 = vmatmul.mubr.f32.gmra.mxu0 %v11606_v6  ;;  %9387 = vmatprep.subr.mxu0 %v1263_v5  ;;  %v11698_v58 = vld [vmem:[#allocation2 + $0xc7] sm:$0xff]  ;;  %v1675_v1 = vld [vmem:[#allocation6 + $0x1b0] sm:$0xff]  ;;  %v11711_v4 = vld [vmem:[#allocation2 + $0xdf] sm:$0xff] }
  0x81   : > { %9214 = vmatprep.mubr.f32.mxu0 %v11615_v9  ;;  %9388 = vmatpush3.msra.mxu0 %v1263_v5  ;;  %v1674_v5 = vld [vmem:[#allocation6 + $0x1a8] sm:$0xff] }
  0x82   : > { %9316 = vmatmul.mubr.f32.gmra.mxu1 %v11280_v0  ;;  %9389 = vmatprep.subr.mxu0 %v1262_v10 }
  0x83   : > { %9318 = vmatprep.mubr.f32.mxu1 %v11500_v20  ;;  %9390 = vmatpush3.msra.mxu0 %v1262_v10  ;;  %v1258_v20 = vld [vmem:[#allocation6 + $0x138] sm:$0xff]  ;;  %v310_v10 = vld [vmem:[%s11456_s13 + $0xf0] sm:$0xff] }
  0x84   : > { %9215 = vmatmul.mubr.f32.gmra.mxu0 %v11622_v11  ;;  %9391 = vmatprep.subr.mxu0 %v1261_v12  ;;  %357 = vst [vmem:[#allocation2 + $0x188] sm:$0xff] %v310_v10  ;;  %v2096_v10 = vld [vmem:[#allocation6 + $0x248] sm:$0xff] }
  0x85   : > { %9217 = vmatprep.mubr.f32.mxu0 %v11628_v14  ;;  %9392 = vmatpush3.msra.mxu0 %v1261_v12  ;;  %v11715_v12 = vld [vmem:[#allocation2 + $0xe7] sm:$0xff] }
  0x86   : > { %9319 = vmatmul.mubr.f32.gmra.mxu1 %v11503_v21  ;;  %9393 = vmatprep.subr.mxu0 %v1260_v15  ;;  %v1256_v21 = vld [vmem:[#allocation6 + $0x128] sm:$0xff] }
  0x87   : > { %9321 = vmatprep.mubr.f32.mxu1 %v11280_v0  ;;  %9394 = vmatpush3.msra.mxu0 %v1260_v15  ;;  %v311_v15 = vld [vmem:[%s11456_s13 + $0xf8] sm:$0xff] }
  0x88   : > { %9218 = vmatmul.mubr.f32.gmra.mxu0 %v11638_v17  ;;  %9395 = vmatprep.subr.mxu0 %v1259_v18  ;;  %358 = vst [vmem:[#allocation2 + $0x190] sm:$0xff] %v311_v15  ;;  %v2094_v15 = vld [vmem:[#allocation6 + $0x238] sm:$0xff] }
  0x89   : > { %9220 = vmatprep.mubr.f32.mxu0 %v11641_v19  ;;  %9396 = vmatpush3.msra.mxu0 %v1259_v18  ;;  %v11721_v18 = vld [vmem:[#allocation2 + $0xef] sm:$0xff] }
  0x8a   : > { %9322 = vmatmul.mubr.f32.gmra.mxu1 %v11508_v23  ;;  %9397 = vmatprep.subr.mxu0 %v1258_v20  ;;  %v1254_v23 = vld [vmem:[#allocation6 + $0x118] sm:$0xff] }
  0x8b   : > { %9324 = vmatprep.mubr.f32.mxu1 %v11511_v24  ;;  %9398 = vmatpush3.msra.mxu0 %v1258_v20  ;;  %v11662_v24 = vld [vmem:[#allocation2 + $0x7f] sm:$0xff] }
  0x8c   : > { %9221 = vmatmul.mubr.f32.gmra.mxu0 %v11646_v22  ;;  %9399 = vmatprep.subr.mxu0 %v1257_v25  ;;  %v1672_v20 = vld [vmem:[#allocation6 + $0x198] sm:$0xff] }
  0x8d   : > { %9223 = vmatprep.mubr.f32.mxu0 %v11649_v28  ;;  %9400 = vmatpush3.msra.mxu0 %v1257_v25  ;;  %v11727_v25 = vld [vmem:[#allocation6 + $0x278] sm:$0xff] }
  0x8e   : > { %9325 = vmatmul.mubr.f32.gmra.mxu1 %v11280_v0  ;;  %9401 = vmatprep.subr.mxu0 %v1256_v21 }
  0x8f   : > { %9327 = vmatprep.mubr.f32.mxu1 %v11516_v26  ;;  %9402 = vmatpush3.msra.mxu0 %v1256_v21  ;;  %v1682_v26 = vld [vmem:[#allocation6 + $0x1e8] sm:$0xff]  ;;  %v11731_v21 = vld [vmem:[#allocation2 + $0xff] sm:$0xff] }
  0x90   : > { %9224 = vmatmul.mubr.f32.gmra.mxu0 %v11654_v31  ;;  %9403 = vmatprep.subr.mxu0 %v1255_v34 }
  0x91   : > { %9226 = vmatprep.mubr.f32.mxu0 %v11657_v39  ;;  %9404 = vmatpush3.msra.mxu0 %v1255_v34  ;;  %v1671_v34 = vld [vmem:[#allocation6 + $0x190] sm:$0xff] }
  0x92   : > { %9328 = vmatmul.mubr.f32.gmra.mxu1 %v11519_v27  ;;  %9405 = vmatprep.subr.mxu0 %v1254_v23  ;;  %v11674_v27 = vld [vmem:[#allocation2 + $0x97] sm:$0xff] }
  0x93   : > { %9330 = vmatprep.mubr.f32.mxu1 %v11280_v0  ;;  %9487 = vmatprep.subr.mxu1 %v1683_v40 }
  0x94   : > { %9227 = vmatmul.mubr.f32.gmra.mxu0 %v11662_v24  ;;  %9488 = vmatpush3.msra.mxu1 %v1683_v40  ;;  %v1669_v40 = vld [vmem:[#allocation6 + $0x180] sm:$0xff] }
  0x95   : > { %9229 = vmatprep.mubr.f32.mxu0 %v11665_v41  ;;  %9489 = vmatprep.subr.mxu1 %v1682_v26 }
  0x96   : > { %9331 = vmatmul.mubr.f32.gmra.mxu1 %v11524_v29  ;;  %9406 = vmatpush3.msra.mxu0 %v1254_v23  ;;  %v1679_v29 = vld [vmem:[#allocation6 + $0x1d0] sm:$0xff] }
  0x97   : > { %9333 = vmatprep.mubr.f32.mxu1 %v11527_v30  ;;  %9490 = vmatpush3.msra.mxu1 %v1682_v26  ;;  %v11687_v30 = vld [vmem:[#allocation2 + $0xaf] sm:$0xff]  ;;  %v11743_v26 = vld [vmem:[#allocation2 + $0x117] sm:$0xff] }
  0x98   : > { %9230 = vmatmul.mubr.f32.gmra.mxu0 %v11671_v42  ;;  %9491 = vmatprep.subr.mxu1 %v1681_v43  ;;  %v11740_v23 = vld [vmem:[#allocation2 + $0x10f] sm:$0xff] }
  0x99   : > { %9232 = vmatprep.mubr.f32.mxu0 %v11674_v27  ;;  %9407 = vmatprep.subr.mxu0 %v1253_v44 }
  0x9a   : > { %9334 = vmatmul.mubr.f32.gmra.mxu1 %v11280_v0  ;;  %9408 = vmatpush3.msra.mxu0 %v1253_v44  ;;  %v11753_v44 = vld [vmem:[#allocation2 + $0x127] sm:$0xff] }
  0x9b   : > { %9336 = vmatprep.mubr.f32.mxu1 %v11532_v32  ;;  %9492 = vmatpush3.msra.mxu1 %v1681_v43  ;;  %v1252_v32 = vld [vmem:[#allocation6 + $0x108] sm:$0xff]  ;;  %v11750_v43 = vld [vmem:[#allocation2 + $0x11f] sm:$0xff] }
  0x9c   : > { %9233 = vmatmul.mubr.f32.gmra.mxu0 %v11679_v45  ;;  %9493 = vmatprep.subr.mxu1 %v1680_v46 }
  0x9d   : > { %9235 = vmatprep.mubr.f32.mxu0 %v11682_v47  ;;  %9494 = vmatpush3.msra.mxu1 %v1680_v46  ;;  %v11762_v46 = vld [vmem:[#allocation2 + $0x137] sm:$0xff] }
  0x9e   : > { %9337 = vmatmul.mubr.f32.gmra.mxu1 %v11535_v33  ;;  %9495 = vmatprep.subr.mxu1 %v1679_v29  ;;  %v1676_v33 = vld [vmem:[#allocation6 + $0x1b8] sm:$0xff] }
  0x9f   : > { %9339 = vmatprep.mubr.f32.mxu1 %v11280_v0  ;;  %9496 = vmatpush3.msra.mxu1 %v1679_v29  ;;  %v11775_v29 = vld [vmem:[#allocation2 + $0x14f] sm:$0xff] }
  0xa0   : > { %9236 = vmatmul.mubr.f32.gmra.mxu0 %v11687_v30  ;;  %9497 = vmatprep.subr.mxu1 %v1678_v48 }
  0xa1   : > { %9238 = vmatprep.mubr.f32.mxu0 %v11690_v51  ;;  %9409 = vmatprep.subr.mxu0 %v1252_v32 }
  0xa2   : > { %9340 = vmatmul.mubr.f32.gmra.mxu1 %v11540_v35  ;;  %v11706_v35 = vld [vmem:[#allocation2 + $0xd7] sm:$0xff]  ;;  %9410 = vmatpush3.msra.mxu0 %v1252_v32  ;;  %v11799_v32 = vld [vmem:[#allocation2 + $0x17f] sm:$0xff] }
  0xa3   : > { %9342 = vmatprep.mubr.f32.mxu1 %v11543_v36  ;;  %9498 = vmatpush3.msra.mxu1 %v1678_v48  ;;  %v1251_v36 = vld [vmem:[#allocation6 + $0x100] sm:$0xff] }
  0xa4   : > { %9239 = vmatmul.mubr.f32.gmra.mxu0 %v11695_v54  ;;  %9499 = vmatprep.subr.mxu1 %v1677_v55  ;;  %v11786_v48 = vld [vmem:[#allocation2 + $0x167] sm:$0xff] }
  0xa5   : > { %9241 = vmatprep.mubr.f32.mxu0 %v11698_v58  ;;  %9500 = vmatpush3.msra.mxu1 %v1677_v55  ;;  %v1203_v55 = vld [vmem:[#allocation2 + $0x11] sm:$0xff] }
  0xa6   : > { %9343 = vmatmul.mubr.f32.gmra.mxu1 %v11280_v0  ;;  %9501 = vmatprep.subr.mxu1 %v1676_v33 }
  0xa7   : > { %9345 = vmatprep.mubr.f32.mxu1 %v11548_v37  ;;  %9502 = vmatpush3.msra.mxu1 %v1676_v33  ;;  %v1673_v37 = vld [vmem:[#allocation6 + $0x1a0] sm:$0xff]  ;;  %v2101_v33 = vld [vmem:[#allocation6 + $0x270] sm:$0xff] }
  0xa8   : > { %9242 = vmatmul.mubr.f32.gmra.mxu0 %v11703_v61  ;;  %9503 = vmatprep.subr.mxu1 %v1675_v1 }
  0xa9   : > { %9244 = vmatprep.mubr.f32.mxu0 %v11706_v35  ;;  %9411 = vmatprep.subr.mxu0 %v1251_v36 }
  0xaa   : > { %9346 = vmatmul.mubr.f32.gmra.mxu1 %v11551_v38  ;;  %v11724_v38 = vld [vmem:[#allocation2 + $0xf7] sm:$0xff]  ;;  %9412 = vmatpush3.msra.mxu0 %v1251_v36 }
  0xab   : > { %9348 = vmatprep.mubr.f32.mxu1 %v11280_v0  ;;  %9504 = vmatpush3.msra.mxu1 %v1675_v1  ;;  %v11807_v1 = vld [vmem:[#allocation2 + $0x21] sm:$0xff]  ;;  %v2098_v36 = vld [vmem:[#allocation6 + $0x258] sm:$0xff] }
  0xac   : > { %9245 = vmatmul.mubr.f32.gmra.mxu0 %v11711_v4  ;;  %9505 = vmatprep.subr.mxu1 %v1674_v5 }
  0xad   : > { %9247 = vmatprep.mubr.f32.mxu0 %v11715_v12  ;;  %9506 = vmatpush3.msra.mxu1 %v1674_v5  ;;  %v11818_v5 = vld [vmem:[#allocation2 + $0x39] sm:$0xff] }
  0xae   : > { %9349 = vmatmul.mubr.f32.gmra.mxu1 %v11556_v49  ;;  %9507 = vmatprep.subr.mxu1 %v1673_v37  ;;  %v11734_v49 = vld [vmem:[#allocation2 + $0x107] sm:$0xff] }
  0xaf   : > { %9351 = vmatprep.mubr.f32.mxu1 %v11559_v50  ;;  %9508 = vmatpush3.msra.mxu1 %v1673_v37  ;;  %v1670_v50 = vld [vmem:[#allocation6 + $0x188] sm:$0xff] }
  0xb0   : > { %9248 = vmatmul.mubr.f32.gmra.mxu0 %v11721_v18  ;;  %9509 = vmatprep.subr.mxu1 %v1672_v20  ;;  %v11826_v37 = vld [vmem:[#allocation2 + $0x49] sm:$0xff] }
  0xb1   : > { %9250 = vmatprep.mubr.f32.mxu0 %v11724_v38  ;;  %9589 = vmatprep.subr.mxu0 %v11727_v25 }
  0xb2   : > { %9352 = vmatmul.mubr.f32.gmra.mxu1 %v11280_v0 }
  0xb3   : > { %9354 = vmatprep.mubr.f32.mxu1 %v11564_v52  ;;  %9510 = vmatpush3.msra.mxu1 %v1672_v20  ;;  %v11746_v52 = vld [vmem:[#allocation6 + $0x2f8] sm:$0xff] }
  0xb4   : > { %9251 = vmatmul.mubr.f32.gmra.mxu0 %v11731_v21  ;;  %9511 = vmatprep.subr.mxu1 %v1671_v34  ;;  %v11834_v20 = vld [vmem:[#allocation2 + $0x59] sm:$0xff] }
  0xb5   : > { %9253 = vmatprep.mubr.f32.mxu0 %v11734_v49  ;;  %9512 = vmatpush3.msra.mxu1 %v1671_v34  ;;  %v11842_v34 = vld [vmem:[#allocation2 + $0x69] sm:$0xff] }
  0xb6   : > { %9355 = vmatmul.mubr.f32.gmra.mxu1 %v11567_v53  ;;  %9513 = vmatprep.subr.mxu1 %v1670_v50  ;;  %v11759_v53 = vld [vmem:[#allocation2 + $0x12f] sm:$0xff] }
  0xb7   : > { %9357 = vmatprep.mubr.f32.mxu1 %v11280_v0  ;;  %9514 = vmatpush3.msra.mxu1 %v1670_v50  ;;  %v11850_v50 = vld [vmem:[#allocation2 + $0x79] sm:$0xff] }
  0xb8   : > { %9254 = vmatmul.mubr.f32.gmra.mxu0 %v11740_v23  ;;  %9515 = vmatprep.subr.mxu1 %v1669_v40 }
  0xb9   : > { %9256 = vmatprep.mubr.f32.mxu0 %v11743_v26  ;;  %9516 = vmatpush3.msra.mxu1 %v1669_v40  ;;  %v11856_v40 = vld [vmem:[#allocation2 + $0x81] sm:$0xff] }
  0xba   : > { %9358 = vmatmul.mubr.f32.gmra.mxu1 %v11572_v56  ;;  %9693 = vmatprep.subr.mxu1 %v11746_v52  ;;  %v11767_v56 = vld [vmem:[#allocation2 + $0x13f] sm:$0xff] }
  0xbb   : > { %9360 = vmatprep.mubr.f32.mxu1 %v11576_v57  ;;  %v11770_v57 = vld [vmem:[#allocation2 + $0x147] sm:$0xff] }
  0xbc   : > { %9257 = vmatmul.mubr.f32.gmra.mxu0 %v11750_v43 }
  0xbd   : > { %9259 = vmatprep.mubr.f32.mxu0 %v11753_v44 }
  0xbe   : > { %9361 = vmatmul.mubr.f32.gmra.mxu1 %v11280_v0 }
  0xbf   : > { %9363 = vmatprep.mubr.f32.mxu1 %v11580_v59  ;;  %v11778_v59 = vld [vmem:[#allocation2 + $0x157] sm:$0xff] }
  0xc0   : > { %9260 = vmatmul.mubr.f32.gmra.mxu0 %v11759_v53 }
  0xc1   : > { %9262 = vmatprep.mubr.f32.mxu0 %v11762_v46 }
  0xc2   : > { %9364 = vmatmul.mubr.f32.gmra.mxu1 %v11583_v60  ;;  %v11783_v60 = vld [vmem:[#allocation2 + $0x15f] sm:$0xff] }
  0xc3   : > { %9366 = vmatprep.mubr.f32.mxu1 %v11280_v0 }
  0xc4   : > { %9263 = vmatmul.mubr.f32.gmra.mxu0 %v11767_v56 }
  0xc5   : > { %9265 = vmatprep.mubr.f32.mxu0 %v11770_v57 }
  0xc6   : > { %9367 = vmatmul.mubr.f32.gmra.mxu1 %v11588_v62  ;;  %v11791_v62 = vld [vmem:[#allocation2 + $0x16f] sm:$0xff] }
  0xc7   : > { %9369 = vmatprep.mubr.f32.mxu1 %v11599_v3  ;;  %v11794_v3 = vld [vmem:[#allocation2 + $0x177] sm:$0xff] }
  0xc8   : > { %9266 = vmatmul.mubr.f32.gmra.mxu0 %v11775_v29 }
  0xc9   : > { %9268 = vmatprep.mubr.f32.mxu0 %v11778_v59 }
  0xca   : > { %9370 = vmatmul.mubr.f32.gmra.mxu1 %v11280_v0 }
  0xcb   : > { %9372 = vmatprep.mubr.f32.mxu1 %v11609_v7  ;;  %v1202_v7 = vld [vmem:[#allocation2 + $0x9] sm:$0xff] }
  0xcc   : > { %9269 = vmatmul.mubr.f32.gmra.mxu0 %v11783_v60 }
  0xcd   : > { %9271 = vmatprep.mubr.f32.mxu0 %v11786_v48 }
  0xce   : > { %9373 = vmatmul.mubr.f32.gmra.mxu1 %v11612_v8  ;;  %v1204_v8 = vld [vmem:[#allocation2 + $0x19] sm:$0xff] }
  0xcf   : > { %9375 = vmatprep.mubr.f32.mxu1 %v11280_v0 }
  0xd0   : > { %9272 = vmatmul.mubr.f32.gmra.mxu0 %v11791_v62 }
  0xd1   : > { %9274 = vmatprep.mubr.f32.mxu0 %v11794_v3 }
  0xd2   : > { %9376 = vmatmul.mubr.f32.gmra.mxu1 %v11625_v13  ;;  %v2100_v13 = vld [vmem:[#allocation6 + $0x268] sm:$0xff] }
  0xd3   : > { %9378 = vmatprep.mubr.f32.mxu1 %v11633_v16  ;;  %v11810_v16 = vld [vmem:[#allocation2 + $0x29] sm:$0xff] }
  0xd4   : > { %9275 = vmatmul.mubr.f32.gmra.mxu0 %v11799_v32 }
  0xd5   : > { %9413 = vmatprep.mubr.f32.mxu0 %v1202_v7  ;;  %v2518_v7 = vld [vmem:[#allocation6 + $0x2e8] sm:$0xff] }
  0xd6   : > { %9379 = vmatmul.mubr.f32.gmra.mxu1 %v11280_v0  ;;  %v2099_v0 = vld [vmem:[#allocation6 + $0x260] sm:$0xff] }
  0xd7   : > { %9517 = vmatprep.mubr.f32.mxu1 %v11590_v63  ;;  %v11815_v63 = vld [vmem:[#allocation2 + $0x31] sm:$0xff] }
  0xd8   : > { %9414 = vmatmul.mubr.f32.vlgmr.msra.gmra.mxu0 %v1203_v55  ;;  %v11867_v55 = vld [vmem:[#allocation2 + $0x99] sm:$0xff] }
  0xd9   : > { %9590 = vmatpush3.msra.mxu0 %v11727_v25  ;;  %9416 = vmatprep.mubr.f32.mxu0 %v1204_v8  ;;  %v2092_v25 = vld [vmem:[#allocation6 + $0x228] sm:$0xff] }
  0xda   : > { %9518 = vmatmul.mubr.f32.vlgmr.msra.gmra.mxu1 %v11596_v2  ;;  %9591 = vmatprep.subr.mxu0 %v2101_v33  ;;  %v2097_v2 = vld [vmem:[#allocation6 + $0x250] sm:$0xff]  ;;  %v11872_v8 = vld [vmem:[#allocation2 + $0xa1] sm:$0xff] }
  0xdb   : > { %9520 = vmatprep.mubr.f32.mxu1 %v11606_v6  ;;  %9592 = vmatpush3.msra.mxu0 %v2101_v33  ;;  %v11823_v6 = vld [vmem:[#allocation2 + $0x41] sm:$0xff]  ;;  %v2515_v33 = vld [vmem:[#allocation6 + $0x2d0] sm:$0xff] }
  0xdc   : > { %9417 = vmatmul.mubr.f32.gmra.mxu0 %v11807_v1  ;;  %9593 = vmatprep.subr.mxu0 %v2100_v13 }
  0xdd   : > { %9419 = vmatprep.mubr.f32.mxu0 %v11810_v16  ;;  %9594 = vmatpush3.msra.mxu0 %v2100_v13  ;;  %v11880_v13 = vld [vmem:[#allocation2 + $0xb1] sm:$0xff] }
  0xde   : > { %9521 = vmatmul.mubr.f32.gmra.mxu1 %v11615_v9  ;;  %9595 = vmatprep.subr.mxu0 %v2099_v0  ;;  %v2095_v9 = vld [vmem:[#allocation6 + $0x240] sm:$0xff] }
  0xdf   : > { %9523 = vmatprep.mubr.f32.mxu1 %v11622_v11  ;;  %9596 = vmatpush3.msra.mxu0 %v2099_v0  ;;  %v11831_v11 = vld [vmem:[#allocation2 + $0x51] sm:$0xff]  ;;  %v11883_v0 = vld [vmem:[#allocation2 + $0xb9] sm:$0xff] }
  0xe0   : > { %9420 = vmatmul.mubr.f32.gmra.mxu0 %v11815_v63  ;;  %9597 = vmatprep.subr.mxu0 %v2098_v36 }
  0xe1   : > { %9422 = vmatprep.mubr.f32.mxu0 %v11818_v5  ;;  %9598 = vmatpush3.msra.mxu0 %v2098_v36  ;;  %v11888_v36 = vld [vmem:[#allocation2 + $0xc1] sm:$0xff] }
  0xe2   : > { %9524 = vmatmul.mubr.f32.gmra.mxu1 %v11628_v14  ;;  %9599 = vmatprep.subr.mxu0 %v2097_v2  ;;  %v2093_v14 = vld [vmem:[#allocation6 + $0x230] sm:$0xff] }
  0xe3   : > { %9526 = vmatprep.mubr.f32.mxu1 %v11638_v17  ;;  %9600 = vmatpush3.msra.mxu0 %v2097_v2  ;;  %v11839_v17 = vld [vmem:[#allocation2 + $0x61] sm:$0xff]  ;;  %v2512_v2 = vld [vmem:[#allocation6 + $0x2b8] sm:$0xff] }
  0xe4   : > { %9423 = vmatmul.mubr.f32.gmra.mxu0 %v11823_v6  ;;  %9601 = vmatprep.subr.mxu0 %v2096_v10 }
  0xe5   : > { %9425 = vmatprep.mubr.f32.mxu0 %v11826_v37  ;;  %9602 = vmatpush3.msra.mxu0 %v2096_v10  ;;  %v11896_v10 = vld [vmem:[#allocation2 + $0xd1] sm:$0xff] }
  0xe6   : > { %9527 = vmatmul.mubr.f32.gmra.mxu1 %v11641_v19  ;;  %9603 = vmatprep.subr.mxu0 %v2095_v9  ;;  %v2091_v19 = vld [vmem:[#allocation6 + $0x220] sm:$0xff] }
  0xe7   : > { %9529 = vmatprep.mubr.f32.mxu1 %v11646_v22  ;;  %9604 = vmatpush3.msra.mxu0 %v2095_v9  ;;  %v11847_v22 = vld [vmem:[#allocation2 + $0x71] sm:$0xff]  ;;  %v11899_v9 = vld [vmem:[#allocation2 + $0xd9] sm:$0xff] }
  0xe8   : > { %9426 = vmatmul.mubr.f32.gmra.mxu0 %v11831_v11  ;;  %9605 = vmatprep.subr.mxu0 %v2094_v15 }
  0xe9   : > { %9428 = vmatprep.mubr.f32.mxu0 %v11834_v20  ;;  %9606 = vmatpush3.msra.mxu0 %v2094_v15  ;;  %v11904_v15 = vld [vmem:[#allocation2 + $0xe1] sm:$0xff] }
  0xea   : > { %9530 = vmatmul.mubr.f32.gmra.mxu1 %v11649_v28  ;;  %9607 = vmatprep.subr.mxu0 %v2093_v14  ;;  %v2519_v28 = vld [vmem:[#allocation6 + $0x2f0] sm:$0xff] }
  0xeb   : > { %9532 = vmatprep.mubr.f32.mxu1 %v11654_v31  ;;  %9608 = vmatpush3.msra.mxu0 %v2093_v14  ;;  %v2090_v31 = vld [vmem:[#allocation6 + $0x218] sm:$0xff]  ;;  %v2509_v14 = vld [vmem:[#allocation6 + $0x2a0] sm:$0xff] }
  0xec   : > { %9429 = vmatmul.mubr.f32.gmra.mxu0 %v11839_v17  ;;  %9609 = vmatprep.subr.mxu0 %v2092_v25 }
  0xed   : > { %9431 = vmatprep.mubr.f32.mxu0 %v11842_v34  ;;  %9610 = vmatpush3.msra.mxu0 %v2092_v25  ;;  %v11912_v25 = vld [vmem:[#allocation2 + $0xf1] sm:$0xff] }
  0xee   : > { %9533 = vmatmul.mubr.f32.gmra.mxu1 %v11657_v39  ;;  %9611 = vmatprep.subr.mxu0 %v2091_v19  ;;  %v11859_v39 = vld [vmem:[#allocation2 + $0x89] sm:$0xff] }
  0xef   : > { %9535 = vmatprep.mubr.f32.mxu1 %v11662_v24  ;;  %9612 = vmatpush3.msra.mxu0 %v2091_v19  ;;  %v2517_v24 = vld [vmem:[#allocation6 + $0x2e0] sm:$0xff] }
  0xf0   : > { %9432 = vmatmul.mubr.f32.gmra.mxu0 %v11847_v22  ;;  %9694 = vmatpush3.msra.mxu1 %v11746_v52  ;;  %v11864_v52 = vld [vmem:[#allocation2 + $0x91] sm:$0xff]  ;;  %v11915_v19 = vld [vmem:[#allocation2 + $0xf9] sm:$0xff] }
  0xf1   : > { %9434 = vmatprep.mubr.f32.mxu0 %v11850_v50  ;;  %9695 = vmatprep.subr.mxu1 %v2519_v28 }
  0xf2   : > { %9536 = vmatmul.mubr.f32.gmra.mxu1 %v11665_v41  ;;  %9613 = vmatprep.subr.mxu0 %v2090_v31  ;;  %v2516_v41 = vld [vmem:[#allocation6 + $0x2d8] sm:$0xff] }
  0xf3   : > { %9538 = vmatprep.mubr.f32.mxu1 %v11671_v42  ;;  %9696 = vmatpush3.msra.mxu1 %v2519_v28  ;;  %v2089_v42 = vld [vmem:[#allocation6 + $0x210] sm:$0xff]  ;;  %v11922_v28 = vld [vmem:[#allocation2 + $0x101] sm:$0xff] }
  0xf4   : > { %9435 = vmatmul.mubr.f32.gmra.mxu0 %v11856_v40  ;;  %9697 = vmatprep.subr.mxu1 %v2518_v7 }
  0xf5   : > { %9437 = vmatprep.mubr.f32.mxu0 %v11859_v39  ;;  %9698 = vmatpush3.msra.mxu1 %v2518_v7  ;;  %v11931_v7 = vld [vmem:[#allocation2 + $0x111] sm:$0xff] }
  0xf6   : > { %9539 = vmatmul.mubr.f32.gmra.mxu1 %v11674_v27  ;;  %9699 = vmatprep.subr.mxu1 %v2517_v24  ;;  %v11875_v27 = vld [vmem:[#allocation2 + $0xa9] sm:$0xff] }
  0xf7   : > { %9541 = vmatprep.mubr.f32.mxu1 %v11679_v45  ;;  %9614 = vmatpush3.msra.mxu0 %v2090_v31  ;;  %v2514_v45 = vld [vmem:[#allocation6 + $0x2c8] sm:$0xff] }
  0xf8   : > { %9438 = vmatmul.mubr.f32.gmra.mxu0 %v11864_v52  ;;  %9700 = vmatpush3.msra.mxu1 %v2517_v24  ;;  %v2506_v31 = vld [vmem:[#allocation6 + $0x288] sm:$0xff]  ;;  %v11933_v24 = vld [vmem:[#allocation6 + $0x3f8] sm:$0xff] }
  0xf9   : > { %9440 = vmatprep.mubr.f32.mxu0 %v11867_v55  ;;  %9701 = vmatprep.subr.mxu1 %v2516_v41 }
  0xfa   : > { %9542 = vmatmul.mubr.f32.gmra.mxu1 %v11682_v47  ;;  %9615 = vmatprep.subr.mxu0 %v2089_v42  ;;  %v2513_v47 = vld [vmem:[#allocation6 + $0x2c0] sm:$0xff] }
  0xfb   : > { %9544 = vmatprep.mubr.f32.mxu1 %v11687_v30  ;;  %9702 = vmatpush3.msra.mxu1 %v2516_v41  ;;  %v2088_v30 = vld [vmem:[#allocation6 + $0x208] sm:$0xff]  ;;  %v11938_v41 = vld [vmem:[#allocation2 + $0x37] sm:$0xff] }
  0xfc   : > { %9441 = vmatmul.mubr.f32.gmra.mxu0 %v11872_v8  ;;  %9703 = vmatprep.subr.mxu1 %v2515_v33 }
  0xfd   : > { %9443 = vmatprep.mubr.f32.mxu0 %v11875_v27  ;;  %9704 = vmatpush3.msra.mxu1 %v2515_v33  ;;  %v11958_v33 = vld [vmem:[#allocation2 + $0x139] sm:$0xff] }
  0xfe   : > { %9545 = vmatmul.mubr.f32.gmra.mxu1 %v11690_v51  ;;  %9705 = vmatprep.subr.mxu1 %v2514_v45  ;;  %v11891_v51 = vld [vmem:[#allocation2 + $0xc9] sm:$0xff] }
  0xff   : > { %9547 = vmatprep.mubr.f32.mxu1 %v11695_v54  ;;  %9616 = vmatpush3.msra.mxu0 %v2089_v42  ;;  %v2511_v54 = vld [vmem:[#allocation6 + $0x2b0] sm:$0xff]  ;;  %v11947_v42 = vld [vmem:[#allocation2 + $0x121] sm:$0xff] }
 0x100   : > { %9444 = vmatmul.mubr.f32.gmra.mxu0 %v11880_v13  ;;  %9706 = vmatpush3.msra.mxu1 %v2514_v45  ;;  %v1665_v45 = vld [vmem:[#allocation2 + $0x187] sm:$0xff] }
 0x101   : > { %9446 = vmatprep.mubr.f32.mxu0 %v11883_v0  ;;  %9707 = vmatprep.subr.mxu1 %v2513_v47 }
 0x102   : > { %9548 = vmatmul.mubr.f32.gmra.mxu1 %v11698_v58  ;;  %9617 = vmatprep.subr.mxu0 %v2088_v30  ;;  %v2510_v58 = vld [vmem:[#allocation6 + $0x2a8] sm:$0xff] }
 0x103   : > { %9550 = vmatprep.mubr.f32.mxu1 %v11703_v61  ;;  %9708 = vmatpush3.msra.mxu1 %v2513_v47  ;;  %v2087_v61 = vld [vmem:[#allocation6 + $0x200] sm:$0xff] }
 0x104   : > { %9447 = vmatmul.mubr.f32.gmra.mxu0 %v11888_v36  ;;  %9709 = vmatprep.subr.mxu1 %v2512_v2  ;;  %v11995_v47 = vld [vmem:[#allocation2 + $0x181] sm:$0xff] }
 0x105   : > { %9449 = vmatprep.mubr.f32.mxu0 %v11891_v51  ;;  %9710 = vmatpush3.msra.mxu1 %v2512_v2  ;;  %v2937_v2 = vld [vmem:[#allocation6 + $0x370] sm:$0xff] }
 0x106   : > { %9551 = vmatmul.mubr.f32.gmra.mxu1 %v11706_v35  ;;  %9711 = vmatprep.subr.mxu1 %v2511_v54  ;;  %v11907_v35 = vld [vmem:[#allocation2 + $0xe9] sm:$0xff] }
 0x107   : > { %9553 = vmatprep.mubr.f32.mxu1 %v11711_v4  ;;  %9618 = vmatpush3.msra.mxu0 %v2088_v30  ;;  %v2508_v4 = vld [vmem:[#allocation6 + $0x298] sm:$0xff] }
 0x108   : > { %9450 = vmatmul.mubr.f32.gmra.mxu0 %v11896_v10  ;;  %9712 = vmatpush3.msra.mxu1 %v2511_v54  ;;  %v1667_v30 = vld [vmem:[#allocation2 + $0x197] sm:$0xff] }
 0x109   : > { %9452 = vmatprep.mubr.f32.mxu0 %v11899_v9  ;;  %9713 = vmatprep.subr.mxu1 %v2510_v58 }
 0x10a   : > { %9554 = vmatmul.mubr.f32.gmra.mxu1 %v11715_v12  ;;  %9619 = vmatprep.subr.mxu0 %v2087_v61  ;;  %v2507_v12 = vld [vmem:[#allocation6 + $0x290] sm:$0xff] }
 0x10b   : > { %9556 = vmatprep.mubr.f32.mxu1 %v11721_v18  ;;  %9714 = vmatpush3.msra.mxu1 %v2510_v58  ;;  %v11918_v18 = vld [vmem:[#allocation6 + $0x378] sm:$0xff] }
 0x10c   : > { %9453 = vmatmul.mubr.f32.gmra.mxu0 %v11904_v15  ;;  %9715 = vmatprep.subr.mxu1 %v2509_v14 }
 0x10d   : > { %9455 = vmatprep.mubr.f32.mxu0 %v11907_v35  ;;  %9716 = vmatpush3.msra.mxu1 %v2509_v14  ;;  %v2936_v14 = vld [vmem:[#allocation6 + $0x368] sm:$0xff] }
 0x10e   : > { %9557 = vmatmul.mubr.f32.gmra.mxu1 %v11724_v38  ;;  %9717 = vmatprep.subr.mxu1 %v2508_v4  ;;  %v11925_v38 = vld [vmem:[#allocation2 + $0x109] sm:$0xff] }
 0x10f   : > { %9559 = vmatprep.mubr.f32.mxu1 %v11731_v21  ;;  %9620 = vmatpush3.msra.mxu0 %v2087_v61  ;;  %v2505_v21 = vld [vmem:[#allocation6 + $0x280] sm:$0xff]  ;;  %v12007_v61 = vld [vmem:[#allocation2 + $0x38] sm:$0xff] }
 0x110   : > { %9456 = vmatmul.mubr.f32.gmra.mxu0 %v11912_v25  ;;  %9718 = vmatpush3.msra.mxu1 %v2508_v4 }
 0x111   : > { %9458 = vmatprep.mubr.f32.mxu0 %v11915_v19  ;;  %9719 = vmatprep.subr.mxu1 %v2507_v12 }
 0x112   : > { %9560 = vmatmul.mubr.f32.gmra.mxu1 %v11734_v49  ;;  %9797 = vmatprep.subr.mxu0 %v11918_v18  ;;  %v11936_v49 = vld [vmem:[#allocation2 + $0x119] sm:$0xff] }
 0x113   : > { %9562 = vmatprep.mubr.f32.mxu1 %v11740_v23  ;;  %9720 = vmatpush3.msra.mxu1 %v2507_v12  ;;  %v11941_v23 = vld [vmem:[#allocation2] sm:$0xff] }
 0x114   : > { %9459 = vmatmul.mubr.f32.gmra.mxu0 %v11922_v28  ;;  %9721 = vmatprep.subr.mxu1 %v2506_v31  ;;  %4239 = vst [vmem:[#allocation2 + $0x30] sm:$0xff] %v11941_v23 }
 0x115   : > { %9461 = vmatprep.mubr.f32.mxu0 %v11925_v38  ;;  %9722 = vmatpush3.msra.mxu1 %v2506_v31  ;;  %v12010_v31 = vld [vmem:[#allocation2 + $0x40] sm:$0xff] }
 0x116   : > { %9563 = vmatmul.mubr.f32.gmra.mxu1 %v11743_v26  ;;  %9723 = vmatprep.subr.mxu1 %v2505_v21  ;;  %v11950_v26 = vld [vmem:[#allocation2 + $0x129] sm:$0xff] }
 0x117   : > { %9565 = vmatprep.mubr.f32.mxu1 %v11750_v43  ;;  %9724 = vmatpush3.msra.mxu1 %v2505_v21  ;;  %v11955_v43 = vld [vmem:[#allocation2 + $0x131] sm:$0xff] }
 0x118   : > { %9462 = vmatmul.mubr.f32.gmra.mxu0 %v11931_v7  ;;  %9901 = vmatprep.subr.mxu1 %v11933_v24 }
 0x119   : > { %9464 = vmatprep.mubr.f32.mxu0 %v11936_v49 }
 0x11a   : > { %9566 = vmatmul.mubr.f32.gmra.mxu1 %v11753_v44  ;;  %v11963_v44 = vld [vmem:[#allocation2 + $0x141] sm:$0xff] }
 0x11b   : > { %9568 = vmatprep.mubr.f32.mxu1 %v11759_v53  ;;  %v11966_v53 = vld [vmem:[#allocation2 + $0x149] sm:$0xff] }
 0x11c   : > { %9465 = vmatmul.mubr.f32.gmra.mxu0 %v11947_v42 }
 0x11d   : > { %9467 = vmatprep.mubr.f32.mxu0 %v11950_v26 }
 0x11e   : > { %9569 = vmatmul.mubr.f32.gmra.mxu1 %v11762_v46  ;;  %v11971_v46 = vld [vmem:[#allocation2 + $0x151] sm:$0xff] }
 0x11f   : > { %9571 = vmatprep.mubr.f32.mxu1 %v11767_v56  ;;  %v11974_v56 = vld [vmem:[#allocation2 + $0x159] sm:$0xff] }
 0x120   : > { %9468 = vmatmul.mubr.f32.gmra.mxu0 %v11955_v43 }
 0x121   : > { %9470 = vmatprep.mubr.f32.mxu0 %v11958_v33 }
 0x122   : > { %9572 = vmatmul.mubr.f32.gmra.mxu1 %v11770_v57  ;;  %v11979_v57 = vld [vmem:[#allocation2 + $0x161] sm:$0xff] }
 0x123   : > { %9574 = vmatprep.mubr.f32.mxu1 %v11775_v29  ;;  %v11982_v29 = vld [vmem:[#allocation2 + $0x169] sm:$0xff] }
 0x124   : > { %9471 = vmatmul.mubr.f32.gmra.mxu0 %v11963_v44 }
 0x125   : > { %9473 = vmatprep.mubr.f32.mxu0 %v11966_v53 }
 0x126   : > { %9575 = vmatmul.mubr.f32.gmra.mxu1 %v11778_v59  ;;  %v11987_v59 = vld [vmem:[#allocation2 + $0x171] sm:$0xff] }
 0x127   : > { %9577 = vmatprep.mubr.f32.mxu1 %v11783_v60  ;;  %v11990_v60 = vld [vmem:[#allocation2 + $0x179] sm:$0xff] }
 0x128   : > { %9474 = vmatmul.mubr.f32.gmra.mxu0 %v11971_v46 }
 0x129   : > { %9476 = vmatprep.mubr.f32.mxu0 %v11974_v56 }
 0x12a   : > { %9578 = vmatmul.mubr.f32.gmra.mxu1 %v11786_v48  ;;  %v1666_v48 = vld [vmem:[#allocation2 + $0x18f] sm:$0xff] }
 0x12b   : > { %9580 = vmatprep.mubr.f32.mxu1 %v11791_v62  ;;  %v2038_v62 = vld [vmem:[#allocation2 + $0x20] sm:$0xff] }
 0x12c   : > { %9477 = vmatmul.mubr.f32.gmra.mxu0 %v11979_v57 }
 0x12d   : > { %9479 = vmatprep.mubr.f32.mxu0 %v11982_v29 }
 0x12e   : > { %9581 = vmatmul.mubr.f32.gmra.mxu1 %v11794_v3  ;;  %v2039_v3 = vld [vmem:[#allocation2 + $0x28] sm:$0xff] }
 0x12f   : > { %9583 = vmatprep.mubr.f32.mxu1 %v11799_v32  ;;  %v12001_v32 = vld [vmem:[%s14026_s3] ss:$0 sm:$0xff] }
 0x130   : > { %9480 = vmatmul.mubr.f32.gmra.mxu0 %v11987_v59 }
 0x131   : > { %9482 = vmatprep.mubr.f32.mxu0 %v11990_v60 }
 0x132   : > { %9584 = vmatmul.mubr.f32.gmra.mxu1 %v1665_v45 }
 0x133   : > { %9586 = vmatprep.mubr.f32.mxu1 %v1666_v48 }
 0x134   : > { %9483 = vmatmul.mubr.f32.gmra.mxu0 %v11995_v47 }
 0x135   : > { %9621 = vmatprep.mubr.f32.mxu0 %v2038_v62 }
 0x136   : > { %9587 = vmatmul.mubr.f32.gmra.mxu1 %v1667_v30 }
 0x137   : > { %9725 = vmatprep.mubr.f32.mxu1 %v11807_v1  ;;  %v9207_v54 = vpop.f32.mrf.mxu0 }
 0x138   : > { %9622 = vmatmul.mubr.f32.vlgmr.msra.gmra.mxu0 %v2039_v3  ;;  %v737_v58 = vadd.f32 %v9207_v54, %v12001_v32 }
 0x139   : > { %9798 = vmatpush3.msra.mxu0 %v11918_v18  ;;  %9624 = vmatprep.mubr.f32.mxu0 %v11941_v23  ;;  %v497_v4 = vpop.f32.mrf.mxu0  ;;  %v9311_v12 = vpop.f32.mrf.mxu1  ;;  %v2935_v18 = vld [vmem:[#allocation6 + $0x360] sm:$0xff] }
 0x13a   : > { %9726 = vmatmul.mubr.f32.vlgmr.msra.gmra.mxu1 %v11810_v16  ;;  %9799 = vmatprep.subr.mxu0 %v2937_v2  ;;  %v736_v1 = vadd.f32 %v12001_v32, %v497_v4  ;;  %v12013_v21 = vadd.f32 %v9311_v12, %v737_v58  ;;  %v2934_v16 = vld [vmem:[#allocation6 + $0x358] sm:$0xff]  ;;  %v2933_v58 = vld [vmem:[#allocation6 + $0x350] sm:$0xff] }
 0x13b   : > { %9728 = vmatprep.mubr.f32.mxu1 %v11815_v63  ;;  %9800 = vmatpush3.msra.mxu0 %v2937_v2  ;;  %v9210_v45 = vpop.f32.mrf.mxu0  ;;  %v915_v48 = vpop.f32.mrf.mxu1  ;;  %v12022_v63 = vld [vmem:[#allocation2 + $0x50] sm:$0xff] }
 0x13c   : > { %9625 = vmatmul.mubr.f32.gmra.mxu0 %v12007_v61  ;;  %9801 = vmatprep.subr.mxu0 %v2936_v14  ;;  %v739_v62 = vadd.f32 %v9210_v45, %v12001_v32  ;;  %v12018_v30 = vadd.f32 %v915_v48, %v736_v1 }
 0x13d   : > { %9627 = vmatprep.mubr.f32.mxu0 %v12010_v31  ;;  %9802 = vmatpush3.msra.mxu0 %v2936_v14  ;;  %v507_v3 = vpop.f32.mrf.mxu0  ;;  %v9314_v54 = vpop.f32.mrf.mxu1  ;;  %v12029_v14 = vld [vmem:[#allocation2 + $0x58] sm:$0xff] }
 0x13e   : > { %9729 = vmatmul.mubr.f32.gmra.mxu1 %v11818_v5  ;;  %9803 = vmatprep.subr.mxu0 %v2935_v18  ;;  %v12024_v2 = vadd.f32 %v9314_v54, %v739_v62  ;;  %v2932_v5 = vld [vmem:[#allocation6 + $0x348] sm:$0xff] }
 0x13f   : > { %9731 = vmatprep.mubr.f32.mxu1 %v11823_v6  ;;  %9804 = vmatpush3.msra.mxu0 %v2935_v18  ;;  %v925_v12 = vpop.f32.mrf.mxu1  ;;  %v2931_v18 = vld [vmem:[#allocation6 + $0x340] sm:$0xff]  ;;  %v12039_v54 = vld [vmem:[#allocation2 + $0x68] sm:$0xff] }
 0x140   : > { %v9213_v4 = vpop.f32.mrf.mxu0  ;;  %9628 = vmatmul.mubr.f32.gmra.mxu0 %v11941_v23  ;;  %9805 = vmatprep.subr.mxu0 %v2934_v16 }
 0x141   : > { %9630 = vmatprep.mubr.f32.mxu0 %v12022_v63  ;;  %9806 = vmatpush3.msra.mxu0 %v2934_v16 }
 0x142   : > { %v517_v1 = vpop.f32.mrf.mxu0  ;;  %v9317_v45 = vpop.f32.mrf.mxu1  ;;  %9732 = vmatmul.mubr.f32.gmra.mxu1 %v11826_v37  ;;  %9807 = vmatprep.subr.mxu0 %v2933_v58  ;;  %v2930_v37 = vld [vmem:[#allocation6 + $0x338] sm:$0xff] }
 0x143   : > { %v740_v6 = vadd.f32 %v12001_v32, %v517_v1  ;;  %9734 = vmatprep.mubr.f32.mxu1 %v11831_v11  ;;  %9808 = vmatpush3.msra.mxu0 %v2933_v58  ;;  %v12042_v11 = vld [vmem:[#allocation2 + $0x70] sm:$0xff] }
 0x144   : > { %v9216_v48 = vpop.f32.mrf.mxu0  ;;  %v935_v62 = vpop.f32.mrf.mxu1  ;;  %9631 = vmatmul.mubr.f32.gmra.mxu0 %v12029_v14  ;;  %9809 = vmatprep.subr.mxu0 %v2932_v5  ;;  %v2929_v45 = vld [vmem:[#allocation6 + $0x330] sm:$0xff] }
 0x145   : > { %v743_v3 = vadd.f32 %v9216_v48, %v12001_v32  ;;  %v12036_v16 = vadd.f32 %v935_v62, %v740_v6  ;;  %9633 = vmatprep.mubr.f32.mxu0 %v11941_v23  ;;  %9810 = vmatpush3.msra.mxu0 %v2932_v5 }
 0x146   : > { %v527_v4 = vpop.f32.mrf.mxu0  ;;  %v9320_v12 = vpop.f32.mrf.mxu1  ;;  %9735 = vmatmul.mubr.f32.gmra.mxu1 %v11834_v20  ;;  %9811 = vmatprep.subr.mxu0 %v2931_v18  ;;  %v2928_v20 = vld [vmem:[#allocation6 + $0x328] sm:$0xff] }
 0x147   : > { %v742_v58 = vadd.f32 %v12001_v32, %v527_v4  ;;  %v12045_v1 = vadd.f32 %v9320_v12, %v743_v3  ;;  %9737 = vmatprep.mubr.f32.mxu1 %v11839_v17  ;;  %9812 = vmatpush3.msra.mxu0 %v2931_v18  ;;  %v12054_v17 = vld [vmem:[#allocation2 + $0x80] sm:$0xff] }
 0x148   : > { %v9219_v6 = vpop.f32.mrf.mxu0  ;;  %v945_v48 = vpop.f32.mrf.mxu1  ;;  %9634 = vmatmul.mubr.f32.gmra.mxu0 %v12039_v54  ;;  %9813 = vmatprep.subr.mxu0 %v2930_v37  ;;  %v2927_v12 = vld [vmem:[#allocation6 + $0x320] sm:$0xff] }
 0x149   : > { %v745_v5 = vadd.f32 %v9219_v6, %v12001_v32  ;;  %v12050_v62 = vadd.f32 %v945_v48, %v742_v58  ;;  %9636 = vmatprep.mubr.f32.mxu0 %v12042_v11  ;;  %9814 = vmatpush3.msra.mxu0 %v2930_v37  ;;  %v12061_v37 = vld [vmem:[#allocation2 + $0x88] sm:$0xff] }
 0x14a   : > { %v537_v4 = vpop.f32.mrf.mxu0  ;;  %v9323_v3 = vpop.f32.mrf.mxu1  ;;  %9738 = vmatmul.mubr.f32.gmra.mxu1 %v11842_v34  ;;  %9815 = vmatprep.subr.mxu0 %v2929_v45  ;;  %14055 = vst [vmem:[#allocation13_spill] sm:$0xff] %v12061_v37 }
 0x14b   : > { %v12056_v18 = vadd.f32 %v9323_v3, %v745_v5  ;;  %9740 = vmatprep.mubr.f32.mxu1 %v11847_v22  ;;  %9816 = vmatpush3.msra.mxu0 %v2929_v45  ;;  %v3355_v5 = vld [vmem:[#allocation6 + $0x3f0] sm:$0xff]  ;;  %v2926_v45 = vld [vmem:[#allocation6 + $0x318] sm:$0xff] }
 0x14c   : > { %v9222_v6 = vpop.f32.mrf.mxu0  ;;  %v955_v58 = vpop.f32.mrf.mxu1  ;;  %9637 = vmatmul.mubr.f32.gmra.mxu0 %v11941_v23  ;;  %9817 = vmatprep.subr.mxu0 %v2928_v20 }
 0x14d   : > { %9639 = vmatprep.mubr.f32.mxu0 %v12054_v17  ;;  %9818 = vmatpush3.msra.mxu0 %v2928_v20  ;;  %v3354_v58 = vld [vmem:[#allocation6 + $0x3e8] sm:$0xff] }
 0x14e   : > { %v547_v34 = vpop.f32.mrf.mxu0  ;;  %v9326_v48 = vpop.f32.mrf.mxu1  ;;  %9741 = vmatmul.mubr.f32.gmra.mxu1 %v11850_v50  ;;  %9819 = vmatprep.subr.mxu0 %v2927_v12  ;;  %v12072_v50 = vld [vmem:[#allocation2 + $0x98] sm:$0xff] }
 0x14f   : > { %v746_v22 = vadd.f32 %v12001_v32, %v547_v34  ;;  %9743 = vmatprep.mubr.f32.mxu1 %v11856_v40  ;;  %9820 = vmatpush3.msra.mxu0 %v2927_v12  ;;  %v12075_v12 = vld [vmem:[#allocation2 + $0xa0] sm:$0xff] }
 0x150   : > { %v9225_v4 = vpop.f32.mrf.mxu0  ;;  %v965_v3 = vpop.f32.mrf.mxu1  ;;  %9640 = vmatmul.mubr.f32.gmra.mxu0 %v12061_v37  ;;  %9902 = vmatpush3.msra.mxu1 %v11933_v24 }
 0x151   : > { %v749_v20 = vadd.f32 %v9225_v4, %v12001_v32  ;;  %v12069_v6 = vadd.f32 %v965_v3, %v746_v22  ;;  %9642 = vmatprep.mubr.f32.mxu0 %v11941_v23  ;;  %9903 = vmatprep.subr.mxu1 %v3355_v5  ;;  %v3353_v22 = vld [vmem:[#allocation6 + $0x3e0] sm:$0xff] }
 0x152   : > { %v557_v34 = vpop.f32.mrf.mxu0  ;;  %v9329_v40 = vpop.f32.mrf.mxu1  ;;  %9744 = vmatmul.mubr.f32.gmra.mxu1 %v11859_v39  ;;  %9821 = vmatprep.subr.mxu0 %v2926_v45 }
 0x153   : > { %14056 = vst [vmem:[#allocation14_spill] sm:$0xff] %v12069_v6  ;;  %v748_v48 = vadd.f32 %v12001_v32, %v557_v34  ;;  %v12078_v24 = vadd.f32 %v9329_v40, %v749_v20  ;;  %9746 = vmatprep.mubr.f32.mxu1 %v11864_v52  ;;  %9904 = vmatpush3.msra.mxu1 %v3355_v5  ;;  %v12087_v20 = vld [vmem:[#allocation2 + $0xb0] sm:$0xff]  ;;  %v3352_v52 = vld [vmem:[#allocation6 + $0x3d8] sm:$0xff] }
 0x154   : > { %v9228_v4 = vpop.f32.mrf.mxu0  ;;  %v975_v3 = vpop.f32.mrf.mxu1  ;;  %9643 = vmatmul.mubr.f32.gmra.mxu0 %v12072_v50  ;;  %9905 = vmatprep.subr.mxu1 %v3354_v58  ;;  %v2925_v40 = vld [vmem:[#allocation6 + $0x310] sm:$0xff] }
 0x155   : > { %v751_v6 = vadd.f32 %v9228_v4, %v12001_v32  ;;  %v12083_v37 = vadd.f32 %v975_v3, %v748_v48  ;;  %9645 = vmatprep.mubr.f32.mxu0 %v12075_v12  ;;  %9906 = vmatpush3.msra.mxu1 %v3354_v58  ;;  %v12094_v58 = vld [vmem:[#allocation2 + $0xb8] sm:$0xff] }
 0x156   : > { %v567_v39 = vpop.f32.mrf.mxu0  ;;  %v9332_v34 = vpop.f32.mrf.mxu1  ;;  %9747 = vmatmul.mubr.f32.gmra.mxu1 %v11867_v55  ;;  %9907 = vmatprep.subr.mxu1 %v3353_v22  ;;  %14057 = vst [vmem:[#allocation15_spill] sm:$0xff] %v12094_v58  ;;  %v3351_v55 = vld [vmem:[#allocation6 + $0x3d0] sm:$0xff] }
 0x157   : > { %v12089_v5 = vadd.f32 %v9332_v34, %v751_v6  ;;  %9749 = vmatprep.mubr.f32.mxu1 %v11872_v8  ;;  %9822 = vmatpush3.msra.mxu0 %v2926_v45  ;;  %v3350_v45 = vld [vmem:[#allocation6 + $0x3c8] sm:$0xff] }
 0x158   : > { %v9231_v4 = vpop.f32.mrf.mxu0  ;;  %v985_v48 = vpop.f32.mrf.mxu1  ;;  %9646 = vmatmul.mubr.f32.gmra.mxu0 %v11941_v23  ;;  %9908 = vmatpush3.msra.mxu1 %v3353_v22 }
 0x159   : > { %9648 = vmatprep.mubr.f32.mxu0 %v12087_v20  ;;  %9909 = vmatprep.subr.mxu1 %v3352_v52  ;;  %v12104_v48 = vld [vmem:[#allocation2 + $0xc8] sm:$0xff] }
 0x15a   : > { %v577_v3 = vpop.f32.mrf.mxu0  ;;  %v9335_v39 = vpop.f32.mrf.mxu1  ;;  %9750 = vmatmul.mubr.f32.gmra.mxu1 %v11875_v27  ;;  %9823 = vmatprep.subr.mxu0 %v2925_v40 }
 0x15b   : > { %v752_v8 = vadd.f32 %v12001_v32, %v577_v3  ;;  %9752 = vmatprep.mubr.f32.mxu1 %v11880_v13  ;;  %9910 = vmatpush3.msra.mxu1 %v3352_v52  ;;  %v12107_v13 = vld [vmem:[#allocation2 + $0xd0] sm:$0xff]  ;;  %v3349_v52 = vld [vmem:[#allocation6 + $0x3c0] sm:$0xff] }
 0x15c   : > { %v9234_v6 = vpop.f32.mrf.mxu0  ;;  %v995_v34 = vpop.f32.mrf.mxu1  ;;  %9649 = vmatmul.mubr.f32.gmra.mxu0 %v12094_v58  ;;  %9911 = vmatprep.subr.mxu1 %v3351_v55 }
 0x15d   : > { %v755_v22 = vadd.f32 %v9234_v6, %v12001_v32  ;;  %v12101_v4 = vadd.f32 %v995_v34, %v752_v8  ;;  %9651 = vmatprep.mubr.f32.mxu0 %v11941_v23  ;;  %9912 = vmatpush3.msra.mxu1 %v3351_v55  ;;  %v2924_v8 = vld [vmem:[#allocation6 + $0x308] sm:$0xff] }
 0x15e   : > { %v587_v27 = vpop.f32.mrf.mxu0  ;;  %v9338_v3 = vpop.f32.mrf.mxu1  ;;  %9753 = vmatmul.mubr.f32.gmra.mxu1 %v11883_v0  ;;  %9913 = vmatprep.subr.mxu1 %v3350_v45 }
 0x15f   : > { %14058 = vst [vmem:[#allocation16_spill] sm:$0xff] %v12101_v4  ;;  %v754_v39 = vadd.f32 %v12001_v32, %v587_v27  ;;  %v12110_v58 = vadd.f32 %v9338_v3, %v755_v22  ;;  %9755 = vmatprep.mubr.f32.mxu1 %v11888_v36  ;;  %9824 = vmatpush3.msra.mxu0 %v2925_v40  ;;  %v3348_v4 = vld [vmem:[#allocation6 + $0x3b8] sm:$0xff]  ;;  %v12119_v36 = vld [vmem:[#allocation2 + $0xe0] sm:$0xff] }
 0x160   : > { %v9237_v6 = vpop.f32.mrf.mxu0  ;;  %v1005_v34 = vpop.f32.mrf.mxu1  ;;  %9652 = vmatmul.mubr.f32.gmra.mxu0 %v12104_v48  ;;  %9914 = vmatpush3.msra.mxu1 %v3350_v45  ;;  %v3347_v45 = vld [vmem:[#allocation6 + $0x3b0] sm:$0xff] }
 0x161   : > { %v757_v55 = vadd.f32 %v9237_v6, %v12001_v32  ;;  %v12115_v0 = vadd.f32 %v1005_v34, %v754_v39  ;;  %9654 = vmatprep.mubr.f32.mxu0 %v12107_v13  ;;  %9915 = vmatprep.subr.mxu1 %v3349_v52  ;;  %v12126_v6 = vld [vmem:[#allocation2 + $0xe8] sm:$0xff] }
 0x162   : > { %v597_v27 = vpop.f32.mrf.mxu0  ;;  %v9341_v22 = vpop.f32.mrf.mxu1  ;;  %9756 = vmatmul.mubr.f32.gmra.mxu1 %v11891_v51  ;;  %9825 = vmatprep.subr.mxu0 %v2924_v8  ;;  %14059 = vst [vmem:[#allocation17_spill] sm:$0xff] %v12126_v6 }
 0x163   : > { %v12121_v40 = vadd.f32 %v9341_v22, %v757_v55  ;;  %9758 = vmatprep.mubr.f32.mxu1 %v11896_v10  ;;  %9916 = vmatpush3.msra.mxu1 %v3349_v52  ;;  %v3346_v55 = vld [vmem:[#allocation6 + $0x3a8] sm:$0xff]  ;;  %v2923_v52 = vld [vmem:[#allocation6 + $0x300] sm:$0xff] }
 0x164   : > { %v9240_v3 = vpop.f32.mrf.mxu0  ;;  %v1015_v39 = vpop.f32.mrf.mxu1  ;;  %9655 = vmatmul.mubr.f32.gmra.mxu0 %v11941_v23  ;;  %9917 = vmatprep.subr.mxu1 %v3348_v4 }
 0x165   : > { %9657 = vmatprep.mubr.f32.mxu0 %v12119_v36  ;;  %9918 = vmatpush3.msra.mxu1 %v3348_v4  ;;  %v3345_v39 = vld [vmem:[#allocation6 + $0x3a0] sm:$0xff] }
 0x166   : > { %v607_v51 = vpop.f32.mrf.mxu0  ;;  %v9344_v34 = vpop.f32.mrf.mxu1  ;;  %9759 = vmatmul.mubr.f32.gmra.mxu1 %v11899_v9  ;;  %9919 = vmatprep.subr.mxu1 %v3347_v45  ;;  %v12136_v9 = vld [vmem:[#allocation2 + $0xf8] sm:$0xff] }
 0x167   : > { %v758_v10 = vadd.f32 %v12001_v32, %v607_v51  ;;  %9761 = vmatprep.mubr.f32.mxu1 %v11904_v15  ;;  %9826 = vmatpush3.msra.mxu0 %v2924_v8  ;;  %v12139_v15 = vld [vmem:[#allocation2 + $0x100] sm:$0xff] }
 0x168   : > { %v9243_v27 = vpop.f32.mrf.mxu0  ;;  %v1025_v22 = vpop.f32.mrf.mxu1  ;;  %9658 = vmatmul.mubr.f32.gmra.mxu0 %v12126_v6  ;;  %9920 = vmatpush3.msra.mxu1 %v3347_v45 }
 0x169   : > { %v761_v3 = vadd.f32 %v9243_v27, %v12001_v32  ;;  %v12133_v4 = vadd.f32 %v1025_v22, %v758_v10  ;;  %9660 = vmatprep.mubr.f32.mxu0 %v11941_v23  ;;  %9921 = vmatprep.subr.mxu1 %v3346_v55  ;;  %v3344_v10 = vld [vmem:[#allocation6 + $0x398] sm:$0xff] }
 0x16a   : > { %v617_v51 = vpop.f32.mrf.mxu0  ;;  %v9347_v34 = vpop.f32.mrf.mxu1  ;;  %9762 = vmatmul.mubr.f32.gmra.mxu1 %v11907_v35  ;;  %9827 = vmatprep.subr.mxu0 %v2923_v52 }
 0x16b   : > { %14060 = vst [vmem:[#allocation18_spill] sm:$0xff] %v12133_v4  ;;  %v760_v8 = vadd.f32 %v12001_v32, %v617_v51  ;;  %v12142_v45 = vadd.f32 %v9347_v34, %v761_v3  ;;  %9764 = vmatprep.mubr.f32.mxu1 %v11912_v25  ;;  %9922 = vmatpush3.msra.mxu1 %v3346_v55  ;;  %v12151_v3 = vld [vmem:[#allocation2 + $0x110] sm:$0xff]  ;;  %v12156_v34 = vld [vmem:[#allocation6 + $0x478] sm:$0xff] }
 0x16c   : > { %v9246_v27 = vpop.f32.mrf.mxu0  ;;  %v1035_v22 = vpop.f32.mrf.mxu1  ;;  %9661 = vmatmul.mubr.f32.gmra.mxu0 %v12136_v9  ;;  %9923 = vmatprep.subr.mxu1 %v3345_v39  ;;  %v3343_v25 = vld [vmem:[#allocation6 + $0x390] sm:$0xff] }
 0x16d   : > { %v763_v4 = vadd.f32 %v9246_v27, %v12001_v32  ;;  %v12147_v6 = vadd.f32 %v1035_v22, %v760_v8  ;;  %9663 = vmatprep.mubr.f32.mxu0 %v12139_v15  ;;  %9924 = vmatpush3.msra.mxu1 %v3345_v39  ;;  %v12160_v39 = vld [vmem:[#allocation2 + $0x118] sm:$0xff] }
 0x16e   : > { %v627_v35 = vpop.f32.mrf.mxu0  ;;  %v9350_v51 = vpop.f32.mrf.mxu1  ;;  %9765 = vmatmul.mubr.f32.gmra.mxu1 %v11915_v19  ;;  %9925 = vmatprep.subr.mxu1 %v3344_v10  ;;  %v3342_v19 = vld [vmem:[#allocation6 + $0x388] sm:$0xff] }
 0x16f   : > { %v12153_v55 = vadd.f32 %v9350_v51, %v763_v4  ;;  %9767 = vmatprep.mubr.f32.mxu1 %v11922_v28  ;;  %9828 = vmatpush3.msra.mxu0 %v2923_v52  ;;  %v3341_v52 = vld [vmem:[#allocation6 + $0x380] sm:$0xff] }
 0x170   : > { %v9249_v8 = vpop.f32.mrf.mxu0  ;;  %v1045_v27 = vpop.f32.mrf.mxu1  ;;  %9664 = vmatmul.mubr.f32.gmra.mxu0 %v11941_v23  ;;  %9926 = vmatpush3.msra.mxu1 %v3344_v10 }
 0x171   : > { %9666 = vmatprep.mubr.f32.mxu0 %v12151_v3  ;;  %9927 = vmatprep.subr.mxu1 %v3343_v25 }
 0x172   : > { %v637_v22 = vpop.f32.mrf.mxu0  ;;  %v9353_v35 = vpop.f32.mrf.mxu1  ;;  %9768 = vmatmul.mubr.f32.gmra.mxu1 %v11925_v38  ;;  %10005 = vmatprep.subr.mxu0 %v12156_v34  ;;  %v12171_v38 = vld [vmem:[#allocation2 + $0x128] sm:$0xff] }
 0x173   : > { %v764_v28 = vadd.f32 %v12001_v32, %v637_v22  ;;  %9770 = vmatprep.mubr.f32.mxu1 %v11931_v7  ;;  %9928 = vmatpush3.msra.mxu1 %v3343_v25  ;;  %v12174_v7 = vld [vmem:[#allocation2 + $0x130] sm:$0xff] }
 0x174   : > { %v9252_v4 = vpop.f32.mrf.mxu0  ;;  %v1055_v10 = vpop.f32.mrf.mxu1  ;;  %9667 = vmatmul.mubr.f32.gmra.mxu0 %v12160_v39  ;;  %9929 = vmatprep.subr.mxu1 %v3342_v19 }
 0x175   : > { %v767_v51 = vadd.f32 %v9252_v4, %v12001_v32  ;;  %v12168_v8 = vadd.f32 %v1055_v10, %v764_v28  ;;  %9669 = vmatprep.mubr.f32.mxu0 %v11941_v23  ;;  %9930 = vmatpush3.msra.mxu1 %v3342_v19 }
 0x176   : > { %v647_v27 = vpop.f32.mrf.mxu0  ;;  %v9356_v22 = vpop.f32.mrf.mxu1  ;;  %9771 = vmatmul.mubr.f32.gmra.mxu1 %v11936_v49  ;;  %9931 = vmatprep.subr.mxu1 %v3341_v52  ;;  %v12185_v49 = vld [vmem:[#allocation2 + $0x140] sm:$0xff] }
 0x177   : > { %14061 = vst [vmem:[#allocation19_spill] sm:$0xff] %v12168_v8  ;;  %v766_v25 = vadd.f32 %v12001_v32, %v647_v27  ;;  %v12177_v35 = vadd.f32 %v9356_v22, %v767_v51  ;;  %9773 = vmatprep.mubr.f32.mxu1 %v11947_v42  ;;  %9932 = vmatpush3.msra.mxu1 %v3341_v52  ;;  %14064 = vst [vmem:[#allocation22_spill] sm:$0xff] %v12185_v49  ;;  %v12187_v8 = vld [vmem:[#allocation2 + $0x47] sm:$0xff]  ;;  %v12190_v42 = vld [vmem:[#allocation2 + $0x4f] sm:$0xff] }
 0x178   : > { %v9255_v28 = vpop.f32.mrf.mxu0  ;;  %v1065_v4 = vpop.f32.mrf.mxu1  ;;  %9670 = vmatmul.mubr.f32.gmra.mxu0 %v12171_v38  ;;  %v12192_v52 = vld [vmem:[#allocation2 + $0x41] sm:$0xff]  ;;  %v12194_v22 = vld [vmem:[#allocation2 + $0x49] sm:$0xff] }
 0x179   : > { %14062 = vst [vmem:[#allocation20_spill] sm:$0xff] %v12177_v35  ;;  %v769_v19 = vadd.f32 %v9255_v28, %v12001_v32  ;;  %v12182_v10 = vadd.f32 %v1065_v4, %v766_v25  ;;  %9672 = vmatprep.mubr.f32.mxu0 %v12174_v7  ;;  %14065 = vst [vmem:[#allocation23_spill] sm:$0xff] %v12192_v52  ;;  %v12202_v4 = vld [vmem:[#allocation2 + $0x148] sm:$0xff]  ;;  %v12205_v52 = vld [vmem:[#allocation2 + $0x5f] sm:$0xff] }
 0x17a   : > { %v657_v27 = vpop.f32.mrf.mxu0  ;;  %v9359_v51 = vpop.f32.mrf.mxu1  ;;  %9774 = vmatmul.mubr.f32.gmra.mxu1 %v11950_v26  ;;  %14066 = vst [vmem:[#allocation24_spill] sm:$0xff] %v12194_v22  ;;  %4242 = vst [vmem:[#allocation2 + $0x48] sm:$0xff] %v11941_v23 }
 0x17b   : > { %14063 = vst [vmem:[#allocation21_spill] sm:$0xff] %v12182_v10  ;;  %v12196_v35 = vadd.f32 %v9359_v51, %v769_v19  ;;  %9776 = vmatprep.mubr.f32.mxu1 %v11955_v43  ;;  %14068 = vst [vmem:[#allocation26_spill] sm:$0xff] %v12202_v4  ;;  %v12209_v43 = vld [vmem:[#allocation2 + $0x67] sm:$0xff]  ;;  %v12211_v51 = vld [vmem:[#allocation2 + $0x59] sm:$0xff] }
 0x17c   : > { %v9258_v25 = vpop.f32.mrf.mxu0  ;;  %v1075_v28 = vpop.f32.mrf.mxu1  ;;  %9673 = vmatmul.mubr.f32.gmra.mxu0 %v11941_v23  ;;  %14069 = vst [vmem:[#allocation27_spill] sm:$0xff] %v12211_v51  ;;  %v12224_v51 = vld [vmem:[#allocation2 + $0x160] sm:$0xff] }
 0x17d   : > { %14067 = vst [vmem:[#allocation25_spill] sm:$0xff] %v12196_v35  ;;  %9675 = vmatprep.mubr.f32.mxu0 %v12185_v49  ;;  %v12213_v25 = vld [vmem:[#allocation2 + $0x61] sm:$0xff]  ;;  %14072 = vst [vmem:[#allocation30_spill] sm:$0xff] %v12224_v51 }
 0x17e   : > { %v667_v26 = vpop.f32.mrf.mxu0  ;;  %v9362_v27 = vpop.f32.mrf.mxu1  ;;  %9777 = vmatmul.mubr.f32.gmra.mxu1 %v11958_v33  ;;  %14070 = vst [vmem:[#allocation28_spill] sm:$0xff] %v12213_v25  ;;  %4245 = vst [vmem:[#allocation2 + $0x60] sm:$0xff] %v11941_v23 }
 0x17f   : > { %v770_v19 = vadd.f32 %v12001_v32, %v667_v26  ;;  %9779 = vmatprep.mubr.f32.mxu1 %v11963_v44  ;;  %v12221_v26 = vld [vmem:[#allocation2 + $0x158] sm:$0xff] }
 0x180   : > { %v9261_v28 = vpop.f32.mrf.mxu0  ;;  %v1085_v22 = vpop.f32.mrf.mxu1  ;;  %9676 = vmatmul.mubr.f32.gmra.mxu0 %v12202_v4 }
 0x181   : > { %v773_v33 = vadd.f32 %v9261_v28, %v12001_v32  ;;  %v12218_v27 = vadd.f32 %v1085_v22, %v770_v19  ;;  %9678 = vmatprep.mubr.f32.mxu0 %v11941_v23 }
 0x182   : > { %v677_v44 = vpop.f32.mrf.mxu0  ;;  %v9365_v49 = vpop.f32.mrf.mxu1  ;;  %9780 = vmatmul.mubr.f32.gmra.mxu1 %v11966_v53  ;;  %v12237_v53 = vld [vmem:[#allocation2 + $0x77] sm:$0xff] }
 0x183   : > { %14071 = vst [vmem:[#allocation29_spill] sm:$0xff] %v12218_v27  ;;  %v772_v25 = vadd.f32 %v12001_v32, %v677_v44  ;;  %v12227_v35 = vadd.f32 %v9365_v49, %v773_v33  ;;  %9782 = vmatprep.mubr.f32.mxu1 %v11971_v46  ;;  %v12235_v27 = vld [vmem:[#allocation2 + $0x170] sm:$0xff]  ;;  %v12240_v49 = vld [vmem:[#allocation2 + $0x7f] sm:$0xff] }
 0x184   : > { %v9264_v4 = vpop.f32.mrf.mxu0  ;;  %v1095_v28 = vpop.f32.mrf.mxu1  ;;  %9679 = vmatmul.mubr.f32.gmra.mxu0 %v12221_v26  ;;  %14075 = vst [vmem:[#allocation33_spill] sm:$0xff] %v12235_v27  ;;  %v12242_v46 = vld [vmem:[#allocation2 + $0x71] sm:$0xff]  ;;  %v12244_v33 = vld [vmem:[#allocation2 + $0x79] sm:$0xff] }
 0x185   : > { %14073 = vst [vmem:[#allocation31_spill] sm:$0xff] %v12227_v35  ;;  %v775_v22 = vadd.f32 %v9264_v4, %v12001_v32  ;;  %v12232_v19 = vadd.f32 %v1095_v28, %v772_v25  ;;  %9681 = vmatprep.mubr.f32.mxu0 %v12224_v51  ;;  %14076 = vst [vmem:[#allocation34_spill] sm:$0xff] %v12242_v46  ;;  %v12255_v46 = vld [vmem:[#allocation2 + $0x8f] sm:$0xff]  ;;  %v12279_v51 = vld [vmem:[#allocation2 + $0xa7] sm:$0xff] }
 0x186   : > { %v687_v10 = vpop.f32.mrf.mxu0  ;;  %v9368_v44 = vpop.f32.mrf.mxu1  ;;  %9783 = vmatmul.mubr.f32.gmra.mxu1 %v11974_v56  ;;  %14077 = vst [vmem:[#allocation35_spill] sm:$0xff] %v12244_v33  ;;  %4248 = vst [vmem:[#allocation2 + $0x78] sm:$0xff] %v11941_v23 }
 0x187   : > { %14074 = vst [vmem:[#allocation32_spill] sm:$0xff] %v12232_v19  ;;  %v12246_v35 = vadd.f32 %v9368_v44, %v775_v22  ;;  %9785 = vmatprep.mubr.f32.mxu1 %v11979_v57  ;;  %v12252_v10 = vld [vmem:[#allocation2 + $0x178] sm:$0xff]  ;;  %v12261_v44 = vld [vmem:[#allocation2 + $0x89] sm:$0xff] }
 0x188   : > { %v9267_v4 = vpop.f32.mrf.mxu0  ;;  %v1105_v25 = vpop.f32.mrf.mxu1  ;;  %9682 = vmatmul.mubr.f32.gmra.mxu0 %v11941_v23  ;;  %14079 = vst [vmem:[#allocation37_spill] sm:$0xff] %v12252_v10  ;;  %v12259_v57 = vld [vmem:[#allocation2 + $0x97] sm:$0xff]  ;;  %14080 = vst [vmem:[#allocation38_spill] sm:$0xff] %v12261_v44  ;;  %v11118_v19 = vld [vmem:[#allocation2 + $0x188] sm:$0xff] }
 0x189   : > { %14078 = vst [vmem:[#allocation36_spill] sm:$0xff] %v12246_v35  ;;  %9684 = vmatprep.mubr.f32.mxu0 %v12235_v27  ;;  %v12263_v4 = vld [vmem:[#allocation2 + $0x91] sm:$0xff] }
 0x18a   : > { %v697_v56 = vpop.f32.mrf.mxu0  ;;  %v9371_v28 = vpop.f32.mrf.mxu1  ;;  %9786 = vmatmul.mubr.f32.gmra.mxu1 %v11982_v29  ;;  %14081 = vst [vmem:[#allocation39_spill] sm:$0xff] %v12263_v4  ;;  %4251 = vst [vmem:[#allocation2 + $0x90] sm:$0xff] %v11941_v23  ;;  %v2501_v4 = vld [vmem:[#allocation2 + $0x189] sm:$0xff] }
 0x18b   : > { %v776_v22 = vadd.f32 %v12001_v32, %v697_v56  ;;  %9788 = vmatprep.mubr.f32.mxu1 %v11987_v59 }
 0x18c   : > { %v9270_v25 = vpop.f32.mrf.mxu0  ;;  %v1115_v33 = vpop.f32.mrf.mxu1  ;;  %9685 = vmatmul.mubr.f32.gmra.mxu0 %v12252_v10 }
 0x18d   : > { %v779_v29 = vadd.f32 %v9270_v25, %v12001_v32  ;;  %v12268_v28 = vadd.f32 %v1115_v33, %v776_v22  ;;  %9687 = vmatprep.mubr.f32.mxu0 %v11941_v23  ;;  %v2502_v25 = vld [vmem:[#allocation2 + $0x191] sm:$0xff] }
 0x18e   : > { %v707_v56 = vpop.f32.mrf.mxu0  ;;  %v9374_v59 = vpop.f32.mrf.mxu1  ;;  %9789 = vmatmul.mubr.f32.gmra.mxu1 %v11990_v60 }
 0x18f   : > { %14082 = vst [vmem:[#allocation40_spill] sm:$0xff] %v12268_v28  ;;  %v778_v44 = vadd.f32 %v12001_v32, %v707_v56  ;;  %v12273_v27 = vadd.f32 %v9374_v59, %v779_v29  ;;  %9791 = vmatprep.mubr.f32.mxu1 %v11995_v47  ;;  %v11119_v28 = vld [vmem:[#allocation2 + $0x190] sm:$0xff]  ;;  %v12283_v47 = vld [vmem:[#allocation2 + $0xa1] sm:$0xff] }
 0x190   : > { %v9273_v10 = vpop.f32.mrf.mxu0  ;;  %v1125_v35 = vpop.f32.mrf.mxu1  ;;  %9688 = vmatmul.mubr.f32.gmra.mxu0 %v11118_v19  ;;  %v12281_v29 = vld [vmem:[#allocation2 + $0xaf] sm:$0xff]  ;;  %14084 = vst [vmem:[#allocation42_spill] sm:$0xff] %v12283_v47  ;;  %v2503_v19 = vld [vmem:[#allocation2 + $0x199] sm:$0xff] }
 0x191   : > { %14083 = vst [vmem:[#allocation41_spill] sm:$0xff] %v12273_v27  ;;  %v781_v33 = vadd.f32 %v9273_v10, %v12001_v32  ;;  %v12277_v22 = vadd.f32 %v1125_v35, %v778_v44  ;;  %9690 = vmatprep.mubr.f32.mxu0 %v11119_v28  ;;  %v12285_v59 = vld [vmem:[#allocation2 + $0xa9] sm:$0xff]  ;;  %v2875_v44 = vld [vmem:[#allocation2 + $0x3f] sm:$0xff] }
 0x192   : > { %v717_v60 = vpop.f32.mrf.mxu0  ;;  %v9377_v56 = vpop.f32.mrf.mxu1  ;;  %9792 = vmatmul.mubr.f32.gmra.mxu1 %v2501_v4  ;;  %14085 = vst [vmem:[#allocation43_spill] sm:$0xff] %v12285_v59  ;;  %4254 = vst [vmem:[#allocation2 + $0xa8] sm:$0xff] %v11941_v23  ;;  %v12292_v47 = vld [vmem:[#allocation2 + $0xbf] sm:$0xff] }
 0x193   : > { %v12287_v27 = vadd.f32 %v9377_v56, %v781_v33  ;;  %9794 = vmatprep.mubr.f32.mxu1 %v2502_v25  ;;  %v3773_v60 = vld [vmem:[#allocation6 + $0x470] sm:$0xff]  ;;  %v12296_v25 = vld [vmem:[#allocation2 + $0xc7] sm:$0xff]  ;;  %v12298_v56 = vld [vmem:[#allocation2 + $0xb9] sm:$0xff] }
 0x194   : > { %v9276_v35 = vpop.f32.mrf.mxu0  ;;  %v1135_v10 = vpop.f32.mrf.mxu1  ;;  %9691 = vmatmul.mubr.f32.gmra.mxu0 %v11941_v23 }
 0x195   : > { %9829 = vmatprep.mubr.f32.mxu0 %v11938_v41  ;;  %v12300_v35 = vld [vmem:[#allocation2 + $0xc1] sm:$0xff] }
 0x196   : > { %v727_v4 = vpop.f32.mrf.mxu0  ;;  %v9380_v28 = vpop.f32.mrf.mxu1  ;;  %9795 = vmatmul.mubr.f32.gmra.mxu1 %v2503_v19  ;;  %14086 = vst [vmem:[#allocation44_spill] sm:$0xff] %v12300_v35  ;;  %4257 = vst [vmem:[#allocation2 + $0xc0] sm:$0xff] %v11941_v23 }
 0x197   : > { %v782_v33 = vadd.f32 %v12001_v32, %v727_v4  ;;  %9933 = vmatprep.mubr.f32.mxu1 %v12007_v61  ;;  %v3772_v32 = vld [vmem:[#allocation6 + $0x468] sm:$0xff]  ;;  %v2878_v28 = vld [vmem:[#allocation2 + $0x57] sm:$0xff] }
 0x198   : > { %v1145_v10 = vpop.f32.mrf.mxu1  ;;  %v9415_v59 = vpop.f32.mrf.mxu0  ;;  %9830 = vmatmul.mubr.f32.vlgmr.msra.gmra.mxu0 %v2875_v44 }
 0x199   : > { %v12303_v41 = vadd.f32 %v1145_v10, %v782_v33  ;;  %v1573_v19 = vadd.f32 %v9415_v59, %v12013_v21  ;;  %10006 = vmatpush3.msra.mxu0 %v12156_v34  ;;  %9832 = vmatprep.mubr.f32.mxu0 %v12187_v8  ;;  %v3771_v33 = vld [vmem:[#allocation6 + $0x460] sm:$0xff]  ;;  %v12317_v10 = vld [vmem:[#allocation2 + $0xd7] sm:$0xff] }
 0x19a   : > { %v1333_v61 = vpop.f32.mrf.mxu0  ;;  %v9519_v4 = vpop.f32.mrf.mxu1  ;;  %9934 = vmatmul.mubr.f32.vlgmr.msra.gmra.mxu1 %v12010_v31  ;;  %10007 = vmatprep.subr.mxu0 %v3773_v60  ;;  %v3770_v31 = vld [vmem:[#allocation6 + $0x458] sm:$0xff] }
 0x19b   : > { %v1572_v35 = vadd.f32 %v1333_v61, %v12018_v30  ;;  %v12310_v44 = vadd.f32 %v9519_v4, %v1573_v19  ;;  %9936 = vmatprep.mubr.f32.mxu1 %v11941_v23  ;;  %10008 = vmatpush3.msra.mxu0 %v3773_v60  ;;  %v12320_v60 = vld [vmem:[#allocation2 + $0xdf] sm:$0xff]  ;;  %v12322_v61 = vld [vmem:[#allocation2 + $0xd1] sm:$0xff] }
 0x19c   : > { %v9418_v21 = vpop.f32.mrf.mxu0  ;;  %v1751_v59 = vpop.f32.mrf.mxu1  ;;  %9833 = vmatmul.mubr.f32.gmra.mxu0 %v12190_v42  ;;  %10009 = vmatprep.subr.mxu0 %v3772_v32  ;;  %v12324_v42 = vld [vmem:[#allocation2 + $0xd9] sm:$0xff] }
 0x19d   : > { %v1575_v34 = vadd.f32 %v9418_v21, %v12024_v2  ;;  %v12315_v8 = vadd.f32 %v1751_v59, %v1572_v35  ;;  %9835 = vmatprep.mubr.f32.mxu0 %v2878_v28  ;;  %10010 = vmatpush3.msra.mxu0 %v3772_v32  ;;  %v3769_v2 = vld [vmem:[#allocation6 + $0x450] sm:$0xff]  ;;  %4260 = vst [vmem:[#allocation2 + $0xd8] sm:$0xff] %v11941_v23  ;;  %v3768_v28 = vld [vmem:[#allocation6 + $0x448] sm:$0xff] }
 0x19e   : > { %v1343_v30 = vpop.f32.mrf.mxu0  ;;  %v9522_v19 = vpop.f32.mrf.mxu1  ;;  %9937 = vmatmul.mubr.f32.gmra.mxu1 %v12022_v63  ;;  %10011 = vmatprep.subr.mxu0 %v3771_v33  ;;  %v2881_v63 = vld [vmem:[#allocation2 + $0x6f] sm:$0xff] }
 0x19f   : > { %v12326_v4 = vadd.f32 %v9522_v19, %v1575_v34  ;;  %9939 = vmatprep.mubr.f32.mxu1 %v12029_v14  ;;  %10012 = vmatpush3.msra.mxu0 %v3771_v33  ;;  %v12332_v34 = vld [vmem:[#allocation2] sm:$0xff]  ;;  %v12335_v33 = vld [vmem:[#allocation2 + $0xef] sm:$0xff] }
 0x1a0   : > { %v9421_v35 = vpop.f32.mrf.mxu0  ;;  %v1761_v32 = vpop.f32.mrf.mxu1  ;;  %9836 = vmatmul.mubr.f32.gmra.mxu0 %v12205_v52  ;;  %10013 = vmatprep.subr.mxu0 %v3770_v31  ;;  %v3767_v14 = vld [vmem:[#allocation6 + $0x440] sm:$0xff]  ;;  %v12339_v52 = vld [vmem:[#allocation2 + $0xf7] sm:$0xff] }
 0x1a1   : > { %9838 = vmatprep.mubr.f32.mxu0 %v12209_v43  ;;  %10014 = vmatpush3.msra.mxu0 %v3770_v31  ;;  %v12341_v43 = vld [vmem:[#allocation2 + $0xe9] sm:$0xff]  ;;  %v12343_v31 = vld [vmem:[#allocation2 + $0xf1] sm:$0xff] }
 0x1a2   : > { %v1353_v21 = vpop.f32.mrf.mxu0  ;;  %v9525_v59 = vpop.f32.mrf.mxu1  ;;  %9940 = vmatmul.mubr.f32.gmra.mxu1 %v12332_v34  ;;  %10015 = vmatprep.subr.mxu0 %v3769_v2  ;;  %4263 = vst [vmem:[#allocation2 + $0xf0] sm:$0xff] %v12332_v34 }
 0x1a3   : > { %v1576_v23 = vadd.f32 %v1353_v21, %v12036_v16  ;;  %9942 = vmatprep.mubr.f32.mxu1 %v12039_v54  ;;  %10016 = vmatpush3.msra.mxu0 %v3769_v2  ;;  %v3766_v16 = vld [vmem:[#allocation6 + $0x438] sm:$0xff]  ;;  %v2884_v21 = vld [vmem:[#allocation2 + $0x87] sm:$0xff] }
 0x1a4   : > { %v9424_v30 = vpop.f32.mrf.mxu0  ;;  %v1771_v19 = vpop.f32.mrf.mxu1  ;;  %9839 = vmatmul.mubr.f32.gmra.mxu0 %v2881_v63  ;;  %10017 = vmatprep.subr.mxu0 %v3768_v28 }
 0x1a5   : > { %v1579_v35 = vadd.f32 %v9424_v30, %v12045_v1  ;;  %v12347_v32 = vadd.f32 %v1771_v19, %v1576_v23  ;;  %9841 = vmatprep.mubr.f32.mxu0 %v12237_v53  ;;  %10018 = vmatpush3.msra.mxu0 %v3768_v28  ;;  %v3765_v1 = vld [vmem:[#allocation6 + $0x430] sm:$0xff] }
 0x1a6   : > { %v1363_v54 = vpop.f32.mrf.mxu0  ;;  %v9528_v2 = vpop.f32.mrf.mxu1  ;;  %9943 = vmatmul.mubr.f32.gmra.mxu1 %v12042_v11  ;;  %10019 = vmatprep.subr.mxu0 %v3767_v14  ;;  %v12359_v11 = vld [vmem:[#allocation2 + $0x107] sm:$0xff] }
 0x1a7   : > { %v1578_v59 = vadd.f32 %v1363_v54, %v12050_v62  ;;  %v12352_v63 = vadd.f32 %v9528_v2, %v1579_v35  ;;  %9945 = vmatprep.mubr.f32.mxu1 %v12332_v34  ;;  %10020 = vmatpush3.msra.mxu0 %v3767_v14  ;;  %v3764_v62 = vld [vmem:[#allocation6 + $0x428] sm:$0xff] }
 0x1a8   : > { %v9427_v23 = vpop.f32.mrf.mxu0  ;;  %v1781_v30 = vpop.f32.mrf.mxu1  ;;  %9842 = vmatmul.mubr.f32.gmra.mxu0 %v12240_v49  ;;  %10021 = vmatprep.subr.mxu0 %v3766_v16  ;;  %v12362_v14 = vld [vmem:[#allocation2 + $0x10f] sm:$0xff]  ;;  %v12364_v54 = vld [vmem:[#allocation2 + $0x101] sm:$0xff] }
 0x1a9   : > { %v1581_v53 = vadd.f32 %v9427_v23, %v12056_v18  ;;  %v12357_v28 = vadd.f32 %v1781_v30, %v1578_v59  ;;  %9844 = vmatprep.mubr.f32.mxu0 %v2884_v21  ;;  %10022 = vmatpush3.msra.mxu0 %v3766_v16  ;;  %v12366_v49 = vld [vmem:[#allocation2 + $0x109] sm:$0xff]  ;;  %v14088_v18 = vld [vmem:[#allocation13_spill] sm:$0xff]  ;;  %v3762_v23 = vld [vmem:[#allocation6 + $0x418] sm:$0xff] }
 0x1aa   : > { %v1373_v19 = vpop.f32.mrf.mxu0  ;;  %v9531_v35 = vpop.f32.mrf.mxu1  ;;  %9946 = vmatmul.mubr.f32.gmra.mxu1 %v12054_v17  ;;  %10023 = vmatprep.subr.mxu0 %v3765_v1  ;;  %14087 = vst [vmem:[#allocation45_spill] sm:$0xff] %v12366_v49  ;;  %v3763_v16 = vld [vmem:[#allocation6 + $0x420] sm:$0xff]  ;;  %4266 = vst [vmem:[#allocation2 + $0x108] sm:$0xff] %v12332_v34 }
 0x1ab   : > { %v12368_v2 = vadd.f32 %v9531_v35, %v1581_v53  ;;  %9948 = vmatprep.mubr.f32.mxu1 %v14088_v18  ;;  %10024 = vmatpush3.msra.mxu0 %v3765_v1  ;;  %v2887_v17 = vld [vmem:[#allocation2 + $0x9f] sm:$0xff]  ;;  %v12377_v1 = vld [vmem:[#allocation2 + $0x127] sm:$0xff] }
 0x1ac   : > { %v9430_v21 = vpop.f32.mrf.mxu0  ;;  %v1791_v59 = vpop.f32.mrf.mxu1  ;;  %9845 = vmatmul.mubr.f32.gmra.mxu0 %v12255_v46  ;;  %10025 = vmatprep.subr.mxu0 %v3764_v62  ;;  %v12375_v53 = vld [vmem:[#allocation2 + $0x11f] sm:$0xff]  ;;  %v14089_v35 = vld [vmem:[#allocation14_spill] sm:$0xff]  ;;  %v3761_v46 = vld [vmem:[#allocation6 + $0x410] sm:$0xff] }
 0x1ad   : > { %9847 = vmatprep.mubr.f32.mxu0 %v12259_v57  ;;  %10026 = vmatpush3.msra.mxu0 %v3764_v62  ;;  %v12381_v21 = vld [vmem:[#allocation2 + $0x119] sm:$0xff]  ;;  %v12383_v57 = vld [vmem:[#allocation2 + $0x121] sm:$0xff] }
 0x1ae   : > { %v1383_v30 = vpop.f32.mrf.mxu0  ;;  %v9534_v19 = vpop.f32.mrf.mxu1  ;;  %9949 = vmatmul.mubr.f32.gmra.mxu1 %v12332_v34  ;;  %10027 = vmatprep.subr.mxu0 %v3763_v16  ;;  %14090 = vst [vmem:[#allocation13_spill] sm:$0xff] %v12383_v57  ;;  %4269 = vst [vmem:[#allocation2 + $0x120] sm:$0xff] %v12332_v34 }
 0x1af   : > { %v1582_v18 = vadd.f32 %v1383_v30, %v14089_v35  ;;  %9951 = vmatprep.mubr.f32.mxu1 %v12072_v50  ;;  %10028 = vmatpush3.msra.mxu0 %v3763_v16  ;;  %v3760_v50 = vld [vmem:[#allocation6 + $0x408] sm:$0xff]  ;;  %v2890_v35 = vld [vmem:[#allocation2 + $0xb7] sm:$0xff] }
 0x1b0   : > { %v9433_v62 = vpop.f32.mrf.mxu0  ;;  %v1801_v59 = vpop.f32.mrf.mxu1  ;;  %9848 = vmatmul.mubr.f32.gmra.mxu0 %v2887_v17  ;;  %10029 = vmatprep.subr.mxu0 %v3762_v23 }
 0x1b1   : > { %v1585_v19 = vadd.f32 %v9433_v62, %v12078_v24  ;;  %v12387_v49 = vadd.f32 %v1801_v59, %v1582_v18  ;;  %9850 = vmatprep.mubr.f32.mxu0 %v12279_v51  ;;  %10030 = vmatpush3.msra.mxu0 %v3762_v23  ;;  %v3759_v24 = vld [vmem:[#allocation6 + $0x400] sm:$0xff] }
 0x1b2   : > { %v1393_v16 = vpop.f32.mrf.mxu0  ;;  %v9537_v30 = vpop.f32.mrf.mxu1  ;;  %9952 = vmatmul.mubr.f32.gmra.mxu1 %v12075_v12  ;;  %10031 = vmatprep.subr.mxu0 %v3761_v46  ;;  %v12399_v12 = vld [vmem:[#allocation2 + $0x137] sm:$0xff] }
 0x1b3   : > { %v1584_v57 = vadd.f32 %v1393_v16, %v12083_v37  ;;  %v12392_v17 = vadd.f32 %v9537_v30, %v1585_v19  ;;  %9954 = vmatprep.mubr.f32.mxu1 %v12332_v34  ;;  %10032 = vmatpush3.msra.mxu0 %v3761_v46  ;;  %v12402_v19 = vld [vmem:[#allocation2 + $0x13f] sm:$0xff]  ;;  %v12404_v46 = vld [vmem:[#allocation2 + $0x131] sm:$0xff] }
 0x1b4   : > { %v9436_v18 = vpop.f32.mrf.mxu0  ;;  %v1811_v62 = vpop.f32.mrf.mxu1  ;;  %9851 = vmatmul.mubr.f32.gmra.mxu0 %v12281_v29  ;;  %10033 = vmatprep.subr.mxu0 %v3760_v50  ;;  %v12406_v16 = vld [vmem:[#allocation2 + $0x139] sm:$0xff] }
 0x1b5   : > { %v1587_v51 = vadd.f32 %v9436_v18, %v12089_v5  ;;  %v12397_v23 = vadd.f32 %v1811_v62, %v1584_v57  ;;  %9853 = vmatprep.mubr.f32.mxu0 %v2890_v35  ;;  %10034 = vmatpush3.msra.mxu0 %v3760_v50  ;;  %v14091_v5 = vld [vmem:[#allocation15_spill] sm:$0xff]  ;;  %4272 = vst [vmem:[#allocation2 + $0x138] sm:$0xff] %v12332_v34  ;;  %v14092_v62 = vld [vmem:[#allocation16_spill] sm:$0xff] }
 0x1b6   : > { %v1403_v37 = vpop.f32.mrf.mxu0  ;;  %v9540_v59 = vpop.f32.mrf.mxu1  ;;  %9955 = vmatmul.mubr.f32.gmra.mxu1 %v12087_v20  ;;  %10035 = vmatprep.subr.mxu0 %v3759_v24  ;;  %v2893_v20 = vld [vmem:[#allocation2 + $0xcf] sm:$0xff] }
 0x1b7   : > { %v12408_v29 = vadd.f32 %v9540_v59, %v1587_v51  ;;  %9957 = vmatprep.mubr.f32.mxu1 %v14091_v5  ;;  %10036 = vmatpush3.msra.mxu0 %v3759_v24  ;;  %v12415_v18 = vld [vmem:[#allocation2 + $0x14f] sm:$0xff]  ;;  %v12419_v24 = vld [vmem:[#allocation2 + $0x157] sm:$0xff] }
 0x1b8   : > { %v9439_v57 = vpop.f32.mrf.mxu0  ;;  %v1821_v50 = vpop.f32.mrf.mxu1  ;;  %9854 = vmatmul.mubr.f32.gmra.mxu0 %v12292_v47  ;;  %v12421_v37 = vld [vmem:[#allocation2 + $0x149] sm:$0xff]  ;;  %v12423_v59 = vld [vmem:[#allocation2 + $0x151] sm:$0xff] }
 0x1b9   : > { %9856 = vmatprep.mubr.f32.mxu0 %v12296_v25  ;;  %14093 = vst [vmem:[#allocation14_spill] sm:$0xff] %v12423_v59  ;;  %4275 = vst [vmem:[#allocation2 + $0x150] sm:$0xff] %v12332_v34 }
 0x1ba   : > { %v1413_v30 = vpop.f32.mrf.mxu0  ;;  %v9543_v35 = vpop.f32.mrf.mxu1  ;;  %9958 = vmatmul.mubr.f32.gmra.mxu1 %v12332_v34 }
 0x1bb   : > { %v1588_v51 = vadd.f32 %v1413_v30, %v14092_v62  ;;  %9960 = vmatprep.mubr.f32.mxu1 %v12104_v48  ;;  %v2896_v48 = vld [vmem:[#allocation2 + $0xe7] sm:$0xff] }
 0x1bc   : > { %v9442_v47 = vpop.f32.mrf.mxu0  ;;  %v1831_v5 = vpop.f32.mrf.mxu1  ;;  %9857 = vmatmul.mubr.f32.gmra.mxu0 %v2893_v20 }
 0x1bd   : > { %v1591_v25 = vadd.f32 %v9442_v47, %v12110_v58  ;;  %v12427_v57 = vadd.f32 %v1831_v5, %v1588_v51  ;;  %9859 = vmatprep.mubr.f32.mxu0 %v12317_v10  ;;  %v12439_v10 = vld [vmem:[#allocation2 + $0x167] sm:$0xff] }
 0x1be   : > { %v1423_v50 = vpop.f32.mrf.mxu0  ;;  %v9546_v30 = vpop.f32.mrf.mxu1  ;;  %9961 = vmatmul.mubr.f32.gmra.mxu1 %v12107_v13  ;;  %v12444_v5 = vld [vmem:[#allocation2 + $0x161] sm:$0xff] }
 0x1bf   : > { %v1590_v35 = vadd.f32 %v1423_v50, %v12115_v0  ;;  %v12432_v62 = vadd.f32 %v9546_v30, %v1591_v25  ;;  %9963 = vmatprep.mubr.f32.mxu1 %v12332_v34  ;;  %v12442_v0 = vld [vmem:[#allocation2 + $0x16f] sm:$0xff]  ;;  %v2899_v30 = vld [vmem:[#allocation2 + $0xff] sm:$0xff] }
 0x1c0   : > { %v9445_v20 = vpop.f32.mrf.mxu0  ;;  %v1841_v59 = vpop.f32.mrf.mxu1  ;;  %9860 = vmatmul.mubr.f32.gmra.mxu0 %v12320_v60  ;;  %v12446_v25 = vld [vmem:[#allocation2 + $0x169] sm:$0xff]  ;;  %v14094_v60 = vld [vmem:[#allocation17_spill] sm:$0xff] }
 0x1c1   : > { %v1593_v58 = vadd.f32 %v9445_v20, %v12121_v40  ;;  %v12437_v51 = vadd.f32 %v1841_v59, %v1590_v35  ;;  %9862 = vmatprep.mubr.f32.mxu0 %v2896_v48  ;;  %4278 = vst [vmem:[#allocation2 + $0x168] sm:$0xff] %v12332_v34  ;;  %v12455_v35 = vld [vmem:[#allocation2 + $0x17f] sm:$0xff]  ;;  %v14095_v20 = vld [vmem:[#allocation18_spill] sm:$0xff] }
 0x1c2   : > { %v1433_v47 = vpop.f32.mrf.mxu0  ;;  %v9549_v13 = vpop.f32.mrf.mxu1  ;;  %9964 = vmatmul.mubr.f32.gmra.mxu1 %v12119_v36 }
 0x1c3   : > { %v12448_v50 = vadd.f32 %v9549_v13, %v1593_v58  ;;  %9966 = vmatprep.mubr.f32.mxu1 %v14094_v60  ;;  %v12459_v47 = vld [vmem:[#allocation2 + $0x187] sm:$0xff]  ;;  %v12461_v13 = vld [vmem:[#allocation2 + $0x179] sm:$0xff] }
 0x1c4   : > { %v9448_v40 = vpop.f32.mrf.mxu0  ;;  %v1851_v59 = vpop.f32.mrf.mxu1  ;;  %9863 = vmatmul.mubr.f32.gmra.mxu0 %v12335_v33  ;;  %14096 = vst [vmem:[#allocation15_spill] sm:$0xff] %v12461_v13  ;;  %v12463_v60 = vld [vmem:[#allocation2 + $0x181] sm:$0xff] }
 0x1c5   : > { %9865 = vmatprep.mubr.f32.mxu0 %v12339_v52  ;;  %14097 = vst [vmem:[#allocation16_spill] sm:$0xff] %v12463_v60  ;;  %4281 = vst [vmem:[#allocation2 + $0x180] sm:$0xff] %v12332_v34 }
 0x1c6   : > { %v1443_v36 = vpop.f32.mrf.mxu0  ;;  %v9552_v48 = vpop.f32.mrf.mxu1  ;;  %9967 = vmatmul.mubr.f32.gmra.mxu1 %v12332_v34 }
 0x1c7   : > { %v1594_v58 = vadd.f32 %v1443_v36, %v14095_v20  ;;  %9969 = vmatprep.mubr.f32.mxu1 %v12136_v9  ;;  %v2902_v9 = vld [vmem:[#allocation2 + $0x117] sm:$0xff] }
 0x1c8   : > { %v9451_v33 = vpop.f32.mrf.mxu0  ;;  %v1861_v40 = vpop.f32.mrf.mxu1  ;;  %9866 = vmatmul.mubr.f32.gmra.mxu0 %v2899_v30 }
 0x1c9   : > { %v1597_v52 = vadd.f32 %v9451_v33, %v12142_v45  ;;  %v12467_v59 = vadd.f32 %v1861_v40, %v1594_v58  ;;  %9868 = vmatprep.mubr.f32.mxu0 %v12359_v11  ;;  %v12479_v11 = vld [vmem:[#allocation2 + $0x197] sm:$0xff] }
 0x1ca   : > { %v1453_v36 = vpop.f32.mrf.mxu0  ;;  %v9555_v48 = vpop.f32.mrf.mxu1  ;;  %9970 = vmatmul.mubr.f32.gmra.mxu1 %v12139_v15  ;;  %v12484_v40 = vld [vmem:[#allocation2 + $0x191] sm:$0xff] }
 0x1cb   : > { %v1596_v20 = vadd.f32 %v1453_v36, %v12147_v6  ;;  %v12472_v13 = vadd.f32 %v9555_v48, %v1597_v52  ;;  %9972 = vmatprep.mubr.f32.mxu1 %v12332_v34  ;;  %v12482_v6 = vld [vmem:[#allocation2 + $0x19f] sm:$0xff] }
 0x1cc   : > { %v9454_v30 = vpop.f32.mrf.mxu0  ;;  %v1871_v60 = vpop.f32.mrf.mxu1  ;;  %9869 = vmatmul.mubr.f32.gmra.mxu0 %v12362_v14  ;;  %v12486_v52 = vld [vmem:[#allocation2 + $0x199] sm:$0xff] }
 0x1cd   : > { %v1599_v45 = vadd.f32 %v9454_v30, %v12153_v55  ;;  %v12477_v58 = vadd.f32 %v1871_v60, %v1596_v20  ;;  %9871 = vmatprep.mubr.f32.mxu0 %v2902_v9  ;;  %14098 = vst [vmem:[#allocation17_spill] sm:$0xff] %v12486_v52  ;;  %4284 = vst [vmem:[#allocation2 + $0x198] sm:$0xff] %v12332_v34  ;;  %v2905_v60 = vld [vmem:[#allocation2 + $0x12f] sm:$0xff] }
 0x1ce   : > { %v1463_v33 = vpop.f32.mrf.mxu0  ;;  %v9558_v15 = vpop.f32.mrf.mxu1  ;;  %9973 = vmatmul.mubr.f32.gmra.mxu1 %v12151_v3  ;;  %v14099_v9 = vld [vmem:[#allocation19_spill] sm:$0xff] }
 0x1cf   : > { %v12488_v36 = vadd.f32 %v9558_v15, %v1599_v45  ;;  %9975 = vmatprep.mubr.f32.mxu1 %v12160_v39  ;;  %v14100_v39 = vld [vmem:[#allocation20_spill] sm:$0xff] }
 0x1d0   : > { %v9457_v55 = vpop.f32.mrf.mxu0  ;;  %v1881_v14 = vpop.f32.mrf.mxu1  ;;  %9872 = vmatmul.mubr.f32.gmra.mxu0 %v12375_v53 }
 0x1d1   : > { %9874 = vmatprep.mubr.f32.mxu0 %v12377_v1  ;;  %v2908_v55 = vld [vmem:[#allocation2 + $0x147] sm:$0xff] }
 0x1d2   : > { %v1473_v3 = vpop.f32.mrf.mxu0  ;;  %v9561_v48 = vpop.f32.mrf.mxu1  ;;  %9976 = vmatmul.mubr.f32.gmra.mxu1 %v12332_v34  ;;  %v14101_v14 = vld [vmem:[#allocation21_spill] sm:$0xff] }
 0x1d3   : > { %v1600_v20 = vadd.f32 %v1473_v3, %v14099_v9  ;;  %9978 = vmatprep.mubr.f32.mxu1 %v12171_v38 }
 0x1d4   : > { %v9460_v30 = vpop.f32.mrf.mxu0  ;;  %v1891_v45 = vpop.f32.mrf.mxu1  ;;  %9875 = vmatmul.mubr.f32.gmra.mxu0 %v2905_v60  ;;  %v14102_v60 = vld [vmem:[#allocation25_spill] sm:$0xff] }
 0x1d5   : > { %v1603_v33 = vadd.f32 %v9460_v30, %v14100_v39  ;;  %v12498_v15 = vadd.f32 %v1891_v45, %v1600_v20  ;;  %9877 = vmatprep.mubr.f32.mxu0 %v12399_v12  ;;  %v14103_v45 = vld [vmem:[#allocation22_spill] sm:$0xff] }
 0x1d6   : > { %v1483_v53 = vpop.f32.mrf.mxu0  ;;  %v9564_v1 = vpop.f32.mrf.mxu1  ;;  %9979 = vmatmul.mubr.f32.gmra.mxu1 %v12174_v7  ;;  %v14104_v39 = vld [vmem:[#allocation26_spill] sm:$0xff] }
 0x1d7   : > { %v1602_v48 = vadd.f32 %v1483_v53, %v14101_v14  ;;  %v12503_v52 = vadd.f32 %v9564_v1, %v1603_v33  ;;  %9981 = vmatprep.mubr.f32.mxu1 %v12332_v34 }
 0x1d8   : > { %v9463_v38 = vpop.f32.mrf.mxu0  ;;  %v1901_v3 = vpop.f32.mrf.mxu1  ;;  %9878 = vmatmul.mubr.f32.gmra.mxu0 %v12402_v19  ;;  %v2911_v19 = vld [vmem:[#allocation2 + $0x15f] sm:$0xff] }
 0x1d9   : > { %v1605_v9 = vadd.f32 %v9463_v38, %v14102_v60  ;;  %v12508_v20 = vadd.f32 %v1901_v3, %v1602_v48  ;;  %9880 = vmatprep.mubr.f32.mxu0 %v2908_v55  ;;  %v14105_v55 = vld [vmem:[#allocation29_spill] sm:$0xff]  ;;  %v14108_v60 = vld [vmem:[#allocation31_spill] sm:$0xff] }
 0x1da   : > { %v1493_v12 = vpop.f32.mrf.mxu0  ;;  %v9567_v30 = vpop.f32.mrf.mxu1  ;;  %9982 = vmatmul.mubr.f32.gmra.mxu1 %v14103_v45  ;;  %v14110_v45 = vld [vmem:[#allocation32_spill] sm:$0xff] }
 0x1db   : > { %v12511_v7 = vadd.f32 %v9567_v30, %v1605_v9  ;;  %9984 = vmatprep.mubr.f32.mxu1 %v14104_v39  ;;  %v14109_v12 = vld [vmem:[#allocation30_spill] sm:$0xff]  ;;  %v2914_v30 = vld [vmem:[#allocation2 + $0x177] sm:$0xff] }
 0x1dc   : > { %v9466_v33 = vpop.f32.mrf.mxu0  ;;  %v1911_v53 = vpop.f32.mrf.mxu1  ;;  %9881 = vmatmul.mubr.f32.gmra.mxu0 %v12415_v18 }
 0x1dd   : > { %9883 = vmatprep.mubr.f32.mxu0 %v12419_v24 }
 0x1de   : > { %v1503_v1 = vpop.f32.mrf.mxu0  ;;  %v9570_v14 = vpop.f32.mrf.mxu1  ;;  %9985 = vmatmul.mubr.f32.gmra.mxu1 %v12332_v34 }
 0x1df   : > { %v12518_v48 = vadd.f32 %v1503_v1, %v14105_v55  ;;  %9987 = vmatprep.mubr.f32.mxu1 %v12221_v26  ;;  %v4355_v26 = vld [vmem:[#allocation8 + $0x78] sm:$0xff] }
 0x1e0   : > { %v9469_v38 = vpop.f32.mrf.mxu0  ;;  %v12521_v3 = vpop.f32.mrf.mxu1  ;;  %9884 = vmatmul.mubr.f32.gmra.mxu0 %v2911_v19  ;;  %10109 = vmatprep.subr.mxu1 %v4355_v26 }
 0x1e1   : > { %14106 = vst [vmem:[#allocation18_spill] sm:$0xff] %v12518_v48  ;;  %14107 = vst [vmem:[#allocation19_spill] sm:$0xff] %v12521_v3  ;;  %v1609_v9 = vadd.f32 %v9469_v38, %v14108_v60  ;;  %9886 = vmatprep.mubr.f32.mxu0 %v12439_v10  ;;  %v14113_v10 = vld [vmem:[#allocation36_spill] sm:$0xff]  ;;  %10110 = vmatpush3.msra.mxu1 %v4355_v26  ;;  %v14114_v38 = vld [vmem:[#allocation33_spill] sm:$0xff] }
 0x1e2   : > { %v1513_v18 = vpop.f32.mrf.mxu0  ;;  %v9573_v24 = vpop.f32.mrf.mxu1  ;;  %9988 = vmatmul.mubr.f32.gmra.mxu1 %v14109_v12  ;;  %v3334_v12 = vld [vmem:[#allocation2 + $0x188] sm:$0xff]  ;;  %v14116_v26 = vld [vmem:[#allocation40_spill] sm:$0xff]  ;;  %v5512_v3 = vld [vmem:[#allocation8 + $0x1f0] sm:$0xff] }
 0x1e3   : > { %v12527_v39 = vadd.f32 %v1513_v18, %v14110_v45  ;;  %v12529_v33 = vadd.f32 %v9573_v24, %v1609_v9  ;;  %9990 = vmatprep.mubr.f32.mxu1 %v12332_v34  ;;  %v14115_v9 = vld [vmem:[#allocation37_spill] sm:$0xff]  ;;  %v4354_v45 = vld [vmem:[#allocation8 + $0x70] sm:$0xff]  ;;  %v5509_v48 = vld [vmem:[#allocation8 + $0x1d8] sm:$0xff] }
 0x1e4   : > { %v9472_v53 = vpop.f32.mrf.mxu0  ;;  %v12532_v1 = vpop.f32.mrf.mxu1  ;;  %9887 = vmatmul.mubr.f32.gmra.mxu0 %v12442_v0  ;;  %v2917_v0 = vld [vmem:[#allocation2 + $0x18f] sm:$0xff]  ;;  %10111 = vmatprep.subr.mxu1 %v4354_v45 }
 0x1e5   : > { %14111 = vst [vmem:[#allocation20_spill] sm:$0xff] %v12527_v39  ;;  %14112 = vst [vmem:[#allocation21_spill] sm:$0xff] %v12532_v1  ;;  %v1611_v19 = vadd.f32 %v9472_v53, %v14113_v10  ;;  %9889 = vmatprep.mubr.f32.mxu0 %v2914_v30  ;;  %10112 = vmatpush3.msra.mxu1 %v4354_v45 }
 0x1e6   : > { %v1523_v14 = vpop.f32.mrf.mxu0  ;;  %v9576_v55 = vpop.f32.mrf.mxu1  ;;  %9991 = vmatmul.mubr.f32.gmra.mxu1 %v14114_v38 }
 0x1e7   : > { %v12537_v60 = vadd.f32 %v9576_v55, %v1611_v19  ;;  %9993 = vmatprep.mubr.f32.mxu1 %v14115_v9  ;;  %v3335_v19 = vld [vmem:[#allocation2 + $0x190] sm:$0xff] }
 0x1e8   : > { %v9475_v18 = vpop.f32.mrf.mxu0  ;;  %v1941_v24 = vpop.f32.mrf.mxu1  ;;  %9890 = vmatmul.mubr.f32.gmra.mxu0 %v12455_v35  ;;  %v14119_v35 = vld [vmem:[#allocation41_spill] sm:$0xff] }
 0x1e9   : > { %9892 = vmatprep.mubr.f32.mxu0 %v12459_v47  ;;  %v2920_v18 = vld [vmem:[#allocation2 + $0x1a7] sm:$0xff] }
 0x1ea   : > { %v1533_v53 = vpop.f32.mrf.mxu0  ;;  %v9579_v30 = vpop.f32.mrf.mxu1  ;;  %9994 = vmatmul.mubr.f32.gmra.mxu1 %v12332_v34 }
 0x1eb   : > { %v12544_v10 = vadd.f32 %v1533_v53, %v14116_v26  ;;  %9996 = vmatprep.mubr.f32.mxu1 %v3334_v12  ;;  %v4353_v12 = vld [vmem:[#allocation8 + $0x68] sm:$0xff] }
 0x1ec   : > { %v9478_v14 = vpop.f32.mrf.mxu0  ;;  %v12546_v55 = vpop.f32.mrf.mxu1  ;;  %9893 = vmatmul.mubr.f32.gmra.mxu0 %v2917_v0  ;;  %10113 = vmatprep.subr.mxu1 %v4353_v12  ;;  %v2921_v0 = vld [vmem:[#allocation2 + $0x1af] sm:$0xff] }
 0x1ed   : > { %14117 = vst [vmem:[#allocation25_spill] sm:$0xff] %v12544_v10  ;;  %14118 = vst [vmem:[#allocation22_spill] sm:$0xff] %v12546_v55  ;;  %v1615_v38 = vadd.f32 %v9478_v14, %v14119_v35  ;;  %9895 = vmatprep.mubr.f32.mxu0 %v12479_v11  ;;  %10114 = vmatpush3.msra.mxu1 %v4353_v12 }
 0x1ee   : > { %v1543_v47 = vpop.f32.mrf.mxu0  ;;  %v9582_v9 = vpop.f32.mrf.mxu1  ;;  %9997 = vmatmul.mubr.f32.gmra.mxu1 %v3335_v19 }
 0x1ef   : > { %v12551_v24 = vadd.f32 %v1543_v47, %v12277_v22  ;;  %v12553_v53 = vadd.f32 %v9582_v9, %v1615_v38  ;;  %9999 = vmatprep.mubr.f32.mxu1 %v12332_v34  ;;  %v3710_v22 = vld [vmem:[#allocation2 + $0x39] sm:$0xff] }
 0x1f0   : > { %v9481_v45 = vpop.f32.mrf.mxu0  ;;  %v12556_v30 = vpop.f32.mrf.mxu1  ;;  %9896 = vmatmul.mubr.f32.gmra.mxu0 %v12482_v6  ;;  %v4352_v6 = vld [vmem:[#allocation8 + $0x60] sm:$0xff] }
 0x1f1   : > { %14120 = vst [vmem:[#allocation26_spill] sm:$0xff] %v12551_v24  ;;  %14121 = vst [vmem:[#allocation29_spill] sm:$0xff] %v12556_v30  ;;  %v1617_v11 = vadd.f32 %v9481_v45, %v12287_v27  ;;  %9898 = vmatprep.mubr.f32.mxu0 %v2920_v18  ;;  %10115 = vmatprep.subr.mxu1 %v4352_v6  ;;  %v14124_v45 = vld [vmem:[#allocation23_spill] sm:$0xff] }
 0x1f2   : > { %v1553_v26 = vpop.f32.mrf.mxu0  ;;  %v9585_v19 = vpop.f32.mrf.mxu1  ;;  %10000 = vmatmul.mubr.f32.gmra.mxu1 %v12332_v34 }
 0x1f3   : > { %v12561_v14 = vadd.f32 %v9585_v19, %v1617_v11  ;;  %10002 = vmatprep.mubr.f32.mxu1 %v12332_v34  ;;  %10116 = vmatpush3.msra.mxu1 %v4352_v6  ;;  %v14125_v26 = vld [vmem:[#allocation24_spill] sm:$0xff] }
 0x1f4   : > { %v9484_v35 = vpop.f32.mrf.mxu0  ;;  %v1971_v38 = vpop.f32.mrf.mxu1  ;;  %9899 = vmatmul.mubr.f32.gmra.mxu0 %v2921_v0  ;;  %v3713_v0 = vld [vmem:[#allocation2 + $0x51] sm:$0xff] }
 0x1f5   : > { %10037 = vmatprep.mubr.f32.mxu0 %v3710_v22 }
 0x1f6   : > { %v1563_v47 = vpop.f32.mrf.mxu0  ;;  %v9588_v9 = vpop.f32.mrf.mxu1  ;;  %10003 = vmatmul.mubr.f32.gmra.mxu1 %v12332_v34 }
 0x1f7   : > { %v12566_v27 = vadd.f32 %v1563_v47, %v12303_v41  ;;  %v4351_v41 = vld [vmem:[#allocation8 + $0x58] sm:$0xff]  ;;  %v14126_v9 = vld [vmem:[#allocation27_spill] sm:$0xff] }
 0x1f8   : > { %v12568_v18 = vpop.f32.mrf.mxu1  ;;  %v9623_v12 = vpop.f32.mrf.mxu0  ;;  %10038 = vmatmul.mubr.f32.vlgmr.msra.gmra.mxu0 %v14124_v45  ;;  %10117 = vmatprep.subr.mxu1 %v4351_v41  ;;  %v3716_v45 = vld [vmem:[#allocation2 + $0x69] sm:$0xff] }
 0x1f9   : > { %14122 = vst [vmem:[#allocation31_spill] sm:$0xff] %v12566_v27  ;;  %14123 = vst [vmem:[#allocation30_spill] sm:$0xff] %v12568_v18  ;;  %v2409_v11 = vadd.f32 %v9623_v12, %v12310_v44  ;;  %10040 = vmatprep.mubr.f32.mxu0 %v14125_v26  ;;  %10118 = vmatpush3.msra.mxu1 %v4351_v41 }
 0x1fa   : > { %v2169_v19 = vpop.f32.mrf.mxu0  ;;  %v9727_v22 = vpop.f32.mrf.mxu1 }
 0x1fb   : > { %v12574_v35 = vadd.f32 %v2169_v19, %v12315_v8  ;;  %v12576_v34 = vadd.f32 %v9727_v22, %v2409_v11  ;;  %v14127_v11 = vld [vmem:[#allocation28_spill] sm:$0xff]  ;;  %v4350_v22 = vld [vmem:[#allocation8 + $0x50] sm:$0xff] }
 0x1fc   : > { %v9626_v38 = vpop.f32.mrf.mxu0  ;;  %v12578_v6 = vpop.f32.mrf.mxu1  ;;  %10041 = vmatmul.mubr.f32.gmra.mxu0 %v3713_v0  ;;  %10119 = vmatprep.subr.mxu1 %v4350_v22 }
 0x1fd   : > { %v2411_v47 = vadd.f32 %v9626_v38, %v12326_v4  ;;  %10043 = vmatprep.mubr.f32.mxu0 %v14126_v9  ;;  %10120 = vmatpush3.msra.mxu1 %v4350_v22  ;;  %v14128_v38 = vld [vmem:[#allocation34_spill] sm:$0xff]  ;;  %v14129_v9 = vld [vmem:[#allocation35_spill] sm:$0xff] }
 0x1fe   : > { %v2179_v44 = vpop.f32.mrf.mxu0  ;;  %v9730_v12 = vpop.f32.mrf.mxu1  ;;  %v14130_v22 = vld [vmem:[#allocation38_spill] sm:$0xff] }
 0x1ff   : > { %v12582_v26 = vadd.f32 %v9730_v12, %v2411_v47  ;;  %v3719_v44 = vld [vmem:[#allocation2 + $0x81] sm:$0xff] }
 0x200   : > { %v9629_v8 = vpop.f32.mrf.mxu0  ;;  %v2597_v19 = vpop.f32.mrf.mxu1  ;;  %10044 = vmatmul.mubr.f32.gmra.mxu0 %v14127_v11 }
 0x201   : > { %10046 = vmatprep.mubr.f32.mxu0 %v3716_v45 }
 0x202   : > { %v2189_v18 = vpop.f32.mrf.mxu0  ;;  %v9733_v27 = vpop.f32.mrf.mxu1 }
 0x203   : > { %v12586_v0 = vadd.f32 %v2189_v18, %v12347_v32  ;;  %v4349_v32 = vld [vmem:[#allocation8 + $0x48] sm:$0xff] }
 0x204   : > { %v9632_v4 = vpop.f32.mrf.mxu0  ;;  %v12588_v41 = vpop.f32.mrf.mxu1  ;;  %10047 = vmatmul.mubr.f32.gmra.mxu0 %v14128_v38  ;;  %10121 = vmatprep.subr.mxu1 %v4349_v32  ;;  %v3722_v38 = vld [vmem:[#allocation2 + $0x99] sm:$0xff] }
 0x205   : > { %v2415_v47 = vadd.f32 %v9632_v4, %v12352_v63  ;;  %10049 = vmatprep.mubr.f32.mxu0 %v14129_v9  ;;  %10122 = vmatpush3.msra.mxu1 %v4349_v32 }
 0x206   : > { %v2199_v12 = vpop.f32.mrf.mxu0  ;;  %v9736_v45 = vpop.f32.mrf.mxu1 }
 0x207   : > { %v12594_v8 = vadd.f32 %v2199_v12, %v12357_v28  ;;  %v12596_v27 = vadd.f32 %v9736_v45, %v2415_v47  ;;  %v14131_v47 = vld [vmem:[#allocation39_spill] sm:$0xff]  ;;  %v4348_v45 = vld [vmem:[#allocation8 + $0x40] sm:$0xff] }
 0x208   : > { %v9635_v18 = vpop.f32.mrf.mxu0  ;;  %v12598_v19 = vpop.f32.mrf.mxu1  ;;  %10050 = vmatmul.mubr.f32.gmra.mxu0 %v3719_v44  ;;  %10123 = vmatprep.subr.mxu1 %v4348_v45 }
 0x209   : > { %v2417_v11 = vadd.f32 %v9635_v18, %v12368_v2  ;;  %10052 = vmatprep.mubr.f32.mxu0 %v14130_v22  ;;  %10124 = vmatpush3.msra.mxu1 %v4348_v45  ;;  %v14132_v18 = vld [vmem:[#allocation42_spill] sm:$0xff]  ;;  %v14133_v22 = vld [vmem:[#allocation43_spill] sm:$0xff] }
 0x20a   : > { %v2209_v63 = vpop.f32.mrf.mxu0  ;;  %v9739_v4 = vpop.f32.mrf.mxu1 }
 0x20b   : > { %v12602_v9 = vadd.f32 %v9739_v4, %v2417_v11  ;;  %v3725_v63 = vld [vmem:[#allocation2 + $0xb1] sm:$0xff] }
 0x20c   : > { %v9638_v28 = vpop.f32.mrf.mxu0  ;;  %v2627_v12 = vpop.f32.mrf.mxu1  ;;  %10053 = vmatmul.mubr.f32.gmra.mxu0 %v14131_v47 }
 0x20d   : > { %10055 = vmatprep.mubr.f32.mxu0 %v3722_v38 }
 0x20e   : > { %v2219_v30 = vpop.f32.mrf.mxu0  ;;  %v9742_v24 = vpop.f32.mrf.mxu1 }
 0x20f   : > { %v12606_v44 = vadd.f32 %v2219_v30, %v12387_v49  ;;  %v4347_v49 = vld [vmem:[#allocation8 + $0x38] sm:$0xff] }
 0x210   : > { %v9641_v2 = vpop.f32.mrf.mxu0  ;;  %v12608_v32 = vpop.f32.mrf.mxu1  ;;  %10056 = vmatmul.mubr.f32.gmra.mxu0 %v14132_v18  ;;  %10125 = vmatprep.subr.mxu1 %v4347_v49 }
 0x211   : > { %v2421_v11 = vadd.f32 %v9641_v2, %v12392_v17  ;;  %10058 = vmatprep.mubr.f32.mxu0 %v14133_v22  ;;  %10126 = vmatpush3.msra.mxu1 %v4347_v49  ;;  %v3728_v2 = vld [vmem:[#allocation2 + $0xc9] sm:$0xff] }
 0x212   : > { %v2229_v4 = vpop.f32.mrf.mxu0  ;;  %v9745_v38 = vpop.f32.mrf.mxu1 }
 0x213   : > { %v12614_v28 = vadd.f32 %v2229_v4, %v12397_v23  ;;  %v12616_v24 = vadd.f32 %v9745_v38, %v2421_v11  ;;  %v14134_v11 = vld [vmem:[#allocation44_spill] sm:$0xff]  ;;  %v4346_v4 = vld [vmem:[#allocation8 + $0x30] sm:$0xff] }
 0x214   : > { %v9644_v30 = vpop.f32.mrf.mxu0  ;;  %v12618_v12 = vpop.f32.mrf.mxu1  ;;  %10059 = vmatmul.mubr.f32.gmra.mxu0 %v3725_v63  ;;  %10127 = vmatprep.subr.mxu1 %v4346_v4  ;;  %v4741_v63 = vld [vmem:[#allocation8 + $0xf8] sm:$0xff] }
 0x215   : > { %v2423_v47 = vadd.f32 %v9644_v30, %v12408_v29  ;;  %10061 = vmatprep.mubr.f32.mxu0 %v12298_v56  ;;  %10128 = vmatpush3.msra.mxu1 %v4346_v4  ;;  %v4740_v30 = vld [vmem:[#allocation8 + $0xf0] sm:$0xff] }
 0x216   : > { %v2239_v17 = vpop.f32.mrf.mxu0  ;;  %v9748_v45 = vpop.f32.mrf.mxu1  ;;  %10213 = vmatprep.subr.mxu0 %v4741_v63 }
 0x217   : > { %v12622_v18 = vadd.f32 %v9748_v45, %v2423_v47  ;;  %v3731_v17 = vld [vmem:[#allocation2 + $0xe1] sm:$0xff]  ;;  %10214 = vmatpush3.msra.mxu0 %v4741_v63 }
 0x218   : > { %v9647_v23 = vpop.f32.mrf.mxu0  ;;  %v2657_v22 = vpop.f32.mrf.mxu1  ;;  %10062 = vmatmul.mubr.f32.gmra.mxu0 %v14134_v11  ;;  %10215 = vmatprep.subr.mxu0 %v4740_v30 }
 0x219   : > { %10064 = vmatprep.mubr.f32.mxu0 %v3728_v2  ;;  %v4345_v23 = vld [vmem:[#allocation8 + $0x28] sm:$0xff]  ;;  %10216 = vmatpush3.msra.mxu0 %v4740_v30 }
 0x21a   : > { %v2249_v38 = vpop.f32.mrf.mxu0  ;;  %v9751_v55 = vpop.f32.mrf.mxu1  ;;  %v4739_v22 = vld [vmem:[#allocation8 + $0xe8] sm:$0xff]  ;;  %10129 = vmatprep.subr.mxu1 %v4345_v23 }
 0x21b   : > { %v12626_v29 = vadd.f32 %v2249_v38, %v12427_v57  ;;  %10130 = vmatpush3.msra.mxu1 %v4345_v23  ;;  %10217 = vmatprep.subr.mxu0 %v4739_v22  ;;  %v4735_v23 = vld [vmem:[#allocation8 + $0xc8] sm:$0xff] }
 0x21c   : > { %v9650_v56 = vpop.f32.mrf.mxu0  ;;  %v12628_v49 = vpop.f32.mrf.mxu1  ;;  %10065 = vmatmul.mubr.f32.gmra.mxu0 %v12322_v61 }
 0x21d   : > { %v2427_v47 = vadd.f32 %v9650_v56, %v12432_v62  ;;  %10067 = vmatprep.mubr.f32.mxu0 %v12324_v42  ;;  %v4738_v62 = vld [vmem:[#allocation8 + $0xe0] sm:$0xff]  ;;  %10218 = vmatpush3.msra.mxu0 %v4739_v22  ;;  %v4737_v56 = vld [vmem:[#allocation8 + $0xd8] sm:$0xff] }
 0x21e   : > { %v2259_v55 = vpop.f32.mrf.mxu0  ;;  %v9754_v45 = vpop.f32.mrf.mxu1  ;;  %10219 = vmatprep.subr.mxu0 %v4738_v62 }
 0x21f   : > { %v12634_v57 = vadd.f32 %v2259_v55, %v12437_v51  ;;  %v12636_v2 = vadd.f32 %v9754_v45, %v2427_v47  ;;  %v3734_v51 = vld [vmem:[#allocation2 + $0xf9] sm:$0xff]  ;;  %10220 = vmatpush3.msra.mxu0 %v4738_v62  ;;  %v3737_v62 = vld [vmem:[#allocation2 + $0x111] sm:$0xff] }
 0x220   : > { %v9653_v11 = vpop.f32.mrf.mxu0  ;;  %v12638_v61 = vpop.f32.mrf.mxu1  ;;  %10068 = vmatmul.mubr.f32.gmra.mxu0 %v3731_v17  ;;  %v4344_v17 = vld [vmem:[#allocation8 + $0x20] sm:$0xff]  ;;  %10221 = vmatprep.subr.mxu0 %v4737_v56 }
 0x221   : > { %v2429_v42 = vadd.f32 %v9653_v11, %v12448_v50  ;;  %10070 = vmatprep.mubr.f32.mxu0 %v12341_v43  ;;  %v4736_v50 = vld [vmem:[#allocation8 + $0xd0] sm:$0xff]  ;;  %10131 = vmatprep.subr.mxu1 %v4344_v17 }
 0x222   : > { %v2269_v4 = vpop.f32.mrf.mxu0  ;;  %v9757_v38 = vpop.f32.mrf.mxu1  ;;  %10132 = vmatpush3.msra.mxu1 %v4344_v17  ;;  %10222 = vmatpush3.msra.mxu0 %v4737_v56  ;;  %v4343_v56 = vld [vmem:[#allocation8 + $0x18] sm:$0xff] }
 0x223   : > { %v12642_v63 = vadd.f32 %v9757_v38, %v2429_v42  ;;  %10223 = vmatprep.subr.mxu0 %v4736_v50  ;;  %v14135_v42 = vld [vmem:[#allocation45_spill] sm:$0xff]  ;;  %10133 = vmatprep.subr.mxu1 %v4343_v56  ;;  %v4733_v17 = vld [vmem:[#allocation8 + $0xb8] sm:$0xff] }
 0x224   : > { %v9656_v30 = vpop.f32.mrf.mxu0  ;;  %v2687_v47 = vpop.f32.mrf.mxu1  ;;  %10071 = vmatmul.mubr.f32.gmra.mxu0 %v12343_v31  ;;  %10134 = vmatpush3.msra.mxu1 %v4343_v56  ;;  %v4730_v56 = vld [vmem:[#allocation8 + $0xa0] sm:$0xff] }
 0x225   : > { %10073 = vmatprep.mubr.f32.mxu0 %v3734_v51  ;;  %10224 = vmatpush3.msra.mxu0 %v4736_v50  ;;  %v4734_v30 = vld [vmem:[#allocation8 + $0xc0] sm:$0xff] }
 0x226   : > { %v2279_v43 = vpop.f32.mrf.mxu0  ;;  %v9760_v55 = vpop.f32.mrf.mxu1  ;;  %10225 = vmatprep.subr.mxu0 %v4735_v23 }
 0x227   : > { %v12646_v45 = vadd.f32 %v2279_v43, %v12467_v59  ;;  %10226 = vmatpush3.msra.mxu0 %v4735_v23  ;;  %v4732_v23 = vld [vmem:[#allocation8 + $0xb0] sm:$0xff] }
 0x228   : > { %v9659_v22 = vpop.f32.mrf.mxu0  ;;  %v12648_v11 = vpop.f32.mrf.mxu1  ;;  %10074 = vmatmul.mubr.f32.gmra.mxu0 %v12364_v54  ;;  %10227 = vmatprep.subr.mxu0 %v4734_v30 }
 0x229   : > { %v2433_v31 = vadd.f32 %v9659_v22, %v12472_v13  ;;  %10076 = vmatprep.mubr.f32.mxu0 %v14135_v42  ;;  %10228 = vmatpush3.msra.mxu0 %v4734_v30  ;;  %v14136_v42 = vld [vmem:[#allocation13_spill] sm:$0xff] }
 0x22a   : > { %v2289_v4 = vpop.f32.mrf.mxu0  ;;  %v9763_v38 = vpop.f32.mrf.mxu1  ;;  %10229 = vmatprep.subr.mxu0 %v4733_v17 }
 0x22b   : > { %v12654_v59 = vadd.f32 %v2289_v4, %v12477_v58  ;;  %v12656_v51 = vadd.f32 %v9763_v38, %v2433_v31  ;;  %v3740_v58 = vld [vmem:[#allocation2 + $0x129] sm:$0xff]  ;;  %10230 = vmatpush3.msra.mxu0 %v4733_v17  ;;  %v3743_v17 = vld [vmem:[#allocation2 + $0x141] sm:$0xff] }
 0x22c   : > { %v9662_v47 = vpop.f32.mrf.mxu0  ;;  %v12658_v54 = vpop.f32.mrf.mxu1  ;;  %10077 = vmatmul.mubr.f32.gmra.mxu0 %v3737_v62  ;;  %v4342_v62 = vld [vmem:[#allocation8 + $0x10] sm:$0xff]  ;;  %10231 = vmatprep.subr.mxu0 %v4732_v23 }
 0x22d   : > { %v2435_v13 = vadd.f32 %v9662_v47, %v12488_v36  ;;  %10079 = vmatprep.mubr.f32.mxu0 %v12381_v21  ;;  %v4731_v36 = vld [vmem:[#allocation8 + $0xa8] sm:$0xff]  ;;  %10135 = vmatprep.subr.mxu1 %v4342_v62 }
 0x22e   : > { %v2299_v50 = vpop.f32.mrf.mxu0  ;;  %v9766_v43 = vpop.f32.mrf.mxu1  ;;  %10136 = vmatpush3.msra.mxu1 %v4342_v62  ;;  %10232 = vmatpush3.msra.mxu0 %v4732_v23  ;;  %v4341_v23 = vld [vmem:[#allocation8 + $0x8] sm:$0xff] }
 0x22f   : > { %v12662_v55 = vadd.f32 %v9766_v43, %v2435_v13  ;;  %10233 = vmatprep.subr.mxu0 %v4731_v36  ;;  %10137 = vmatprep.subr.mxu1 %v4341_v23 }
 0x230   : > { %v9665_v22 = vpop.f32.mrf.mxu0  ;;  %v2717_v31 = vpop.f32.mrf.mxu1  ;;  %10080 = vmatmul.mubr.f32.gmra.mxu0 %v14136_v42  ;;  %10138 = vmatpush3.msra.mxu1 %v4341_v23 }
 0x231   : > { %10082 = vmatprep.mubr.f32.mxu0 %v3740_v58  ;;  %10234 = vmatpush3.msra.mxu0 %v4731_v36  ;;  %v4729_v22 = vld [vmem:[#allocation8 + $0x98] sm:$0xff] }
 0x232   : > { %v2309_v21 = vpop.f32.mrf.mxu0  ;;  %v9769_v4 = vpop.f32.mrf.mxu1  ;;  %10235 = vmatprep.subr.mxu0 %v4730_v56 }
 0x233   : > { %v12666_v38 = vadd.f32 %v2309_v21, %v12498_v15  ;;  %10236 = vmatpush3.msra.mxu0 %v4730_v56  ;;  %v4727_v21 = vld [vmem:[#allocation8 + $0x88] sm:$0xff] }
 0x234   : > { %v9668_v30 = vpop.f32.mrf.mxu0  ;;  %v12668_v47 = vpop.f32.mrf.mxu1  ;;  %10083 = vmatmul.mubr.f32.gmra.mxu0 %v12404_v46  ;;  %10237 = vmatprep.subr.mxu0 %v4729_v22 }
 0x235   : > { %14137 = vst [vmem:[#allocation32_spill] sm:$0xff] %v12666_v38  ;;  %14138 = vst [vmem:[#allocation36_spill] sm:$0xff] %v12668_v47  ;;  %v2439_v13 = vadd.f32 %v9668_v30, %v12503_v52  ;;  %10085 = vmatprep.mubr.f32.mxu0 %v12406_v16  ;;  %v4728_v52 = vld [vmem:[#allocation8 + $0x90] sm:$0xff]  ;;  %10238 = vmatpush3.msra.mxu0 %v4729_v22  ;;  %v14141_v30 = vld [vmem:[#allocation14_spill] sm:$0xff] }
 0x236   : > { %v2319_v50 = vpop.f32.mrf.mxu0  ;;  %v9772_v43 = vpop.f32.mrf.mxu1  ;;  %10239 = vmatprep.subr.mxu0 %v4728_v52  ;;  %v4293_v22 = vld [vmem:[#allocation2 + $0xf] sm:$0xff] }
 0x237   : > { %v12674_v15 = vadd.f32 %v2319_v50, %v12508_v20  ;;  %v12676_v58 = vadd.f32 %v9772_v43, %v2439_v13  ;;  %v3746_v20 = vld [vmem:[#allocation2 + $0x159] sm:$0xff]  ;;  %10240 = vmatpush3.msra.mxu0 %v4728_v52  ;;  %v5503_v38 = vld [vmem:[#allocation8 + $0x1a8] sm:$0xff] }
 0x238   : > { %v9671_v31 = vpop.f32.mrf.mxu0  ;;  %v12678_v46 = vpop.f32.mrf.mxu1  ;;  %10086 = vmatmul.mubr.f32.gmra.mxu0 %v3743_v17  ;;  %v4340_v13 = vld [vmem:[#allocation8] sm:$0xff]  ;;  %10241 = vmatprep.subr.mxu0 %v4727_v21 }
 0x239   : > { %14139 = vst [vmem:[#allocation33_spill] sm:$0xff] %v12674_v15  ;;  %14140 = vst [vmem:[#allocation37_spill] sm:$0xff] %v12678_v46  ;;  %v2441_v16 = vadd.f32 %v9671_v31, %v12511_v7  ;;  %10088 = vmatprep.mubr.f32.mxu0 %v12421_v37  ;;  %10139 = vmatprep.subr.mxu1 %v4340_v13  ;;  %v4292_v17 = vld [vmem:[#allocation2 + $0x7] sm:$0xff] }
 0x23a   : > { %v2329_v42 = vpop.f32.mrf.mxu0  ;;  %v9775_v62 = vpop.f32.mrf.mxu1  ;;  %10242 = vmatpush3.msra.mxu0 %v4727_v21  ;;  %v4726_v50 = vld [vmem:[#allocation8 + $0x80] sm:$0xff]  ;;  %10140 = vmatpush3.msra.mxu1 %v4340_v13  ;;  %v5127_v13 = vld [vmem:[#allocation8 + $0x178] sm:$0xff] }
 0x23b   : > { %v12682_v36 = vadd.f32 %v9775_v62, %v2441_v16  ;;  %v3749_v16 = vld [vmem:[#allocation2 + $0x171] sm:$0xff]  ;;  %10141 = vmatprep.mubr.f32.mxu1 %v4292_v17  ;;  %10243 = vmatprep.subr.mxu0 %v4726_v50 }
 0x23c   : > { %v9674_v4 = vpop.f32.mrf.mxu0  ;;  %v2747_v56 = vpop.f32.mrf.mxu1  ;;  %10089 = vmatmul.mubr.f32.gmra.mxu0 %v14141_v30  ;;  %10142 = vmatmul.mubr.f32.vlgmr.msra.gmra.mxu1 %v4293_v22  ;;  %v3752_v30 = vld [vmem:[#allocation2 + $0x189] sm:$0xff]  ;;  %v14147_v22 = vld [vmem:[#allocation16_spill] sm:$0xff] }
 0x23d   : > { %10091 = vmatprep.mubr.f32.mxu0 %v3746_v20  ;;  %10244 = vmatpush3.msra.mxu0 %v4726_v50  ;;  %v14146_v4 = vld [vmem:[#allocation15_spill] sm:$0xff] }
 0x23e   : > { %v12685_v7 = vpop.f32.mrf.mxu0  ;;  %v9778_v37 = vpop.f32.mrf.mxu1  ;;  %10317 = vmatprep.subr.mxu1 %v5127_v13 }
 0x23f   : > { %14142 = vst [vmem:[#allocation40_spill] sm:$0xff] %v12685_v7  ;;  %10318 = vmatpush3.msra.mxu1 %v5127_v13 }
 0x240   : > { %v9677_v43 = vpop.f32.mrf.mxu0  ;;  %v12687_v23 = vpop.f32.mrf.mxu1  ;;  %10092 = vmatmul.mubr.f32.gmra.mxu0 %v12444_v5 }
 0x241   : > { %14143 = vst [vmem:[#allocation41_spill] sm:$0xff] %v12687_v23  ;;  %v2445_v31 = vadd.f32 %v9677_v43, %v12529_v33  ;;  %10094 = vmatprep.mubr.f32.mxu0 %v12446_v25  ;;  %v4294_v33 = vld [vmem:[#allocation2 + $0x17] sm:$0xff]  ;;  %v5120_v23 = vld [vmem:[#allocation8 + $0x140] sm:$0xff] }
 0x242   : > { %v12692_v52 = vpop.f32.mrf.mxu0  ;;  %v9781_v42 = vpop.f32.mrf.mxu1  ;;  %10144 = vmatprep.mubr.f32.mxu1 %v4294_v33 }
 0x243   : > { %14144 = vst [vmem:[#allocation23_spill] sm:$0xff] %v12692_v52  ;;  %v12694_v62 = vadd.f32 %v9781_v42, %v2445_v31 }
 0x244   : > { %v9680_v20 = vpop.f32.mrf.mxu0  ;;  %v12696_v21 = vpop.f32.mrf.mxu1  ;;  %10095 = vmatmul.mubr.f32.gmra.mxu0 %v3749_v16 }
 0x245   : > { %14145 = vst [vmem:[#allocation24_spill] sm:$0xff] %v12696_v21  ;;  %v2447_v5 = vadd.f32 %v9680_v20, %v12537_v60  ;;  %10097 = vmatprep.mubr.f32.mxu0 %v14146_v4  ;;  %v14150_v20 = vld [vmem:[#allocation17_spill] sm:$0xff]  ;;  %v5126_v4 = vld [vmem:[#allocation8 + $0x170] sm:$0xff] }
 0x246   : > { %v2359_v25 = vpop.f32.mrf.mxu0  ;;  %v9784_v56 = vpop.f32.mrf.mxu1  ;;  %10319 = vmatprep.subr.mxu1 %v5126_v4 }
 0x247   : > { %v12700_v37 = vadd.f32 %v9784_v56, %v2447_v5  ;;  %v3755_v5 = vld [vmem:[#allocation2 + $0x1a1] sm:$0xff]  ;;  %v3756_v56 = vld [vmem:[#allocation2 + $0x1a9] sm:$0xff]  ;;  %10320 = vmatpush3.msra.mxu1 %v5126_v4 }
 0x248   : > { %v9683_v17 = vpop.f32.mrf.mxu0  ;;  %v2777_v43 = vpop.f32.mrf.mxu1  ;;  %10098 = vmatmul.mubr.f32.gmra.mxu0 %v14147_v22 }
 0x249   : > { %10100 = vmatprep.mubr.f32.mxu0 %v3752_v30 }
 0x24a   : > { %v12703_v50 = vpop.f32.mrf.mxu0  ;;  %v9787_v60 = vpop.f32.mrf.mxu1 }
 0x24b   : > { %14148 = vst [vmem:[#allocation27_spill] sm:$0xff] %v12703_v50  ;;  %v5122_v50 = vld [vmem:[#allocation8 + $0x150] sm:$0xff] }
 0x24c   : > { %v9686_v31 = vpop.f32.mrf.mxu0  ;;  %v12705_v16 = vpop.f32.mrf.mxu1  ;;  %10101 = vmatmul.mubr.f32.gmra.mxu0 %v12484_v40 }
 0x24d   : > { %14149 = vst [vmem:[#allocation28_spill] sm:$0xff] %v12705_v16  ;;  %v2451_v42 = vadd.f32 %v9686_v31, %v12553_v53  ;;  %10103 = vmatprep.mubr.f32.mxu0 %v14150_v20  ;;  %v3757_v53 = vld [vmem:[#allocation2 + $0x1b1] sm:$0xff]  ;;  %v5125_v31 = vld [vmem:[#allocation8 + $0x168] sm:$0xff] }
 0x24e   : > { %v12710_v33 = vpop.f32.mrf.mxu0  ;;  %v9790_v25 = vpop.f32.mrf.mxu1  ;;  %10321 = vmatprep.subr.mxu1 %v5125_v31 }
 0x24f   : > { %14151 = vst [vmem:[#allocation34_spill] sm:$0xff] %v12710_v33  ;;  %v12712_v30 = vadd.f32 %v9790_v25, %v2451_v42  ;;  %v12719_v42 = vld [vmem:[#allocation2] sm:$0xff]  ;;  %10322 = vmatpush3.msra.mxu1 %v5125_v31 }
 0x250   : > { %v9689_v13 = vpop.f32.mrf.mxu0  ;;  %v12714_v17 = vpop.f32.mrf.mxu1  ;;  %10104 = vmatmul.mubr.f32.gmra.mxu0 %v3755_v5 }
 0x251   : > { %14152 = vst [vmem:[#allocation35_spill] sm:$0xff] %v12714_v17  ;;  %v2453_v40 = vadd.f32 %v9689_v13, %v12561_v14  ;;  %10106 = vmatprep.mubr.f32.mxu0 %v3756_v56 }
 0x252   : > { %v2389_v43 = vpop.f32.mrf.mxu0  ;;  %v9793_v22 = vpop.f32.mrf.mxu1 }
 0x253   : > { %v12717_v60 = vadd.f32 %v9793_v22, %v2453_v40 }
 0x254   : > { %v9692_v20 = vpop.f32.mrf.mxu0  ;;  %v2807_v33 = vpop.f32.mrf.mxu1  ;;  %10107 = vmatmul.mubr.f32.gmra.mxu0 %v3757_v53 }
 0x255   : > { %10245 = vmatprep.mubr.f32.mxu0 %v12719_v42  ;;  %v5124_v33 = vld [vmem:[#allocation8 + $0x160] sm:$0xff] }
 0x256   : > { %v12722_v4 = vpop.f32.mrf.mxu0  ;;  %v9796_v5 = vpop.f32.mrf.mxu1  ;;  %10323 = vmatprep.subr.mxu1 %v5124_v33 }
 0x257   : > { %14153 = vst [vmem:[#allocation38_spill] sm:$0xff] %v12722_v4  ;;  %10324 = vmatpush3.msra.mxu1 %v5124_v33 }
 0x258   : > { %v12724_v14 = vpop.f32.mrf.mxu1  ;;  %v9831_v25 = vpop.f32.mrf.mxu0  ;;  %10246 = vmatmul.mubr.f32.vlgmr.msra.gmra.mxu0 %v12719_v42 }
 0x259   : > { %14154 = vst [vmem:[#allocation39_spill] sm:$0xff] %v12724_v14  ;;  %v3245_v56 = vadd.f32 %v9831_v25, %v12576_v34  ;;  %10248 = vmatprep.mubr.f32.mxu0 %v12719_v42  ;;  %v5123_v34 = vld [vmem:[#allocation8 + $0x158] sm:$0xff] }
 0x25a   : > { %v12729_v13 = vpop.f32.mrf.mxu0  ;;  %v9935_v40 = vpop.f32.mrf.mxu1  ;;  %10325 = vmatprep.subr.mxu1 %v5123_v34 }
 0x25b   : > { %v12731_v53 = vadd.f32 %v9935_v40, %v3245_v56  ;;  %10326 = vmatpush3.msra.mxu1 %v5123_v34 }
 0x25c   : > { %v9834_v43 = vpop.f32.mrf.mxu0  ;;  %v12733_v22 = vpop.f32.mrf.mxu1  ;;  %10327 = vmatprep.subr.mxu1 %v5122_v50 }
 0x25d   : > { %v3247_v31 = vadd.f32 %v9834_v43, %v12582_v26  ;;  %10328 = vmatpush3.msra.mxu1 %v5122_v50 }
 0x25e   : > { %v3015_v20 = vpop.f32.mrf.mxu0  ;;  %v9938_v5 = vpop.f32.mrf.mxu1 }
 0x25f   : > { %v12736_v14 = vadd.f32 %v9938_v5, %v3247_v31 }
 0x260   : > { %v9837_v25 = vpop.f32.mrf.mxu0  ;;  %v3433_v4 = vpop.f32.mrf.mxu1 }
 0x261   : > { %v5121_v25 = vld [vmem:[#allocation8 + $0x148] sm:$0xff] }
 0x262   : > { %v12738_v17 = vpop.f32.mrf.mxu0  ;;  %v9941_v16 = vpop.f32.mrf.mxu1  ;;  %10329 = vmatprep.subr.mxu1 %v5121_v25 }
 0x263   : > { %10330 = vmatpush3.msra.mxu1 %v5121_v25 }
 0x264   : > { %v9840_v56 = vpop.f32.mrf.mxu0  ;;  %v12740_v40 = vpop.f32.mrf.mxu1  ;;  %10331 = vmatprep.subr.mxu1 %v5120_v23 }
 0x265   : > { %v3251_v33 = vadd.f32 %v9840_v56, %v12596_v27  ;;  %10332 = vmatpush3.msra.mxu1 %v5120_v23 }
 0x266   : > { %v12743_v10 = vpop.f32.mrf.mxu0  ;;  %v9944_v26 = vpop.f32.mrf.mxu1 }
 0x267   : > { %v12745_v43 = vadd.f32 %v9944_v26, %v3251_v33 }
 0x268   : > { %v9843_v31 = vpop.f32.mrf.mxu0  ;;  %v12747_v4 = vpop.f32.mrf.mxu1 }
 0x269   : > { %v3253_v20 = vadd.f32 %v9843_v31, %v12602_v9 }
 0x26a   : > { %v3045_v5 = vpop.f32.mrf.mxu0  ;;  %v9947_v16 = vpop.f32.mrf.mxu1 }
 0x26b   : > { %v12750_v34 = vadd.f32 %v9947_v16, %v3253_v20 }
 0x26c   : > { %v9846_v21 = vpop.f32.mrf.mxu0  ;;  %v3463_v27 = vpop.f32.mrf.mxu1 }
 0x26d   : > { %v5119_v27 = vld [vmem:[#allocation8 + $0x138] sm:$0xff] }
 0x26e   : > { %v12752_v56 = vpop.f32.mrf.mxu0  ;;  %v9950_v52 = vpop.f32.mrf.mxu1  ;;  %10333 = vmatprep.subr.mxu1 %v5119_v27 }
 0x26f   : > { %10334 = vmatpush3.msra.mxu1 %v5119_v27 }
 0x270   : > { %v9849_v33 = vpop.f32.mrf.mxu0  ;;  %v12754_v26 = vpop.f32.mrf.mxu1 }
 0x271   : > { %v3257_v50 = vadd.f32 %v9849_v33, %v12616_v24 }
 0x272   : > { %v12757_v1 = vpop.f32.mrf.mxu0  ;;  %v9953_v9 = vpop.f32.mrf.mxu1 }
 0x273   : > { %v12759_v31 = vadd.f32 %v9953_v9, %v3257_v50  ;;  %v5513_v50 = vld [vmem:[#allocation8 + $0x1f8] sm:$0xff] }
 0x274   : > { %v9852_v21 = vpop.f32.mrf.mxu0  ;;  %v12761_v20 = vpop.f32.mrf.mxu1  ;;  %10421 = vmatprep.subr.mxu0 %v5513_v50 }
 0x275   : > { %v3259_v5 = vadd.f32 %v9852_v21, %v12622_v18  ;;  %10422 = vmatpush3.msra.mxu0 %v5513_v50  ;;  %v5118_v21 = vld [vmem:[#allocation8 + $0x130] sm:$0xff] }
 0x276   : > { %v3075_v16 = vpop.f32.mrf.mxu0  ;;  %v9956_v52 = vpop.f32.mrf.mxu1  ;;  %10423 = vmatprep.subr.mxu0 %v5512_v3  ;;  %10335 = vmatprep.subr.mxu1 %v5118_v21 }
 0x277   : > { %v12764_v25 = vadd.f32 %v9956_v52, %v3259_v5  ;;  %10424 = vmatpush3.msra.mxu0 %v5512_v3  ;;  %v5511_v16 = vld [vmem:[#allocation8 + $0x1e8] sm:$0xff]  ;;  %10336 = vmatpush3.msra.mxu1 %v5118_v21  ;;  %v5508_v21 = vld [vmem:[#allocation8 + $0x1d0] sm:$0xff] }
 0x278   : > { %v9855_v39 = vpop.f32.mrf.mxu0  ;;  %v3493_v24 = vpop.f32.mrf.mxu1  ;;  %10425 = vmatprep.subr.mxu0 %v5511_v16  ;;  %v5117_v3 = vld [vmem:[#allocation8 + $0x128] sm:$0xff] }
 0x279   : > { %10426 = vmatpush3.msra.mxu0 %v5511_v16  ;;  %v5510_v24 = vld [vmem:[#allocation8 + $0x1e0] sm:$0xff]  ;;  %10337 = vmatprep.subr.mxu1 %v5117_v3 }
 0x27a   : > { %v12766_v33 = vpop.f32.mrf.mxu0  ;;  %v9959_v7 = vpop.f32.mrf.mxu1  ;;  %10427 = vmatprep.subr.mxu0 %v5510_v24  ;;  %10338 = vmatpush3.msra.mxu1 %v5117_v3  ;;  %v5505_v3 = vld [vmem:[#allocation8 + $0x1b8] sm:$0xff] }
 0x27b   : > { %10428 = vmatpush3.msra.mxu0 %v5510_v24 }
 0x27c   : > { %v9858_v23 = vpop.f32.mrf.mxu0  ;;  %v12768_v9 = vpop.f32.mrf.mxu1  ;;  %10429 = vmatprep.subr.mxu0 %v5509_v48 }
 0x27d   : > { %v3263_v18 = vadd.f32 %v9858_v23, %v12636_v2  ;;  %10430 = vmatpush3.msra.mxu0 %v5509_v48 }
 0x27e   : > { %v12771_v5 = vpop.f32.mrf.mxu0  ;;  %v9962_v39 = vpop.f32.mrf.mxu1  ;;  %10431 = vmatprep.subr.mxu0 %v5508_v21 }
 0x27f   : > { %v12773_v52 = vadd.f32 %v9962_v39, %v3263_v18  ;;  %10432 = vmatpush3.msra.mxu0 %v5508_v21 }
 0x280   : > { %v9861_v7 = vpop.f32.mrf.mxu0  ;;  %v12775_v27 = vpop.f32.mrf.mxu1 }
 0x281   : > { %v3265_v50 = vadd.f32 %v9861_v7, %v12642_v63  ;;  %v5507_v63 = vld [vmem:[#allocation8 + $0x1c8] sm:$0xff] }
 0x282   : > { %v3105_v2 = vpop.f32.mrf.mxu0  ;;  %v9965_v23 = vpop.f32.mrf.mxu1  ;;  %10433 = vmatprep.subr.mxu0 %v5507_v63 }
 0x283   : > { %v12778_v46 = vadd.f32 %v9965_v23, %v3265_v50  ;;  %10434 = vmatpush3.msra.mxu0 %v5507_v63  ;;  %v5506_v50 = vld [vmem:[#allocation8 + $0x1c0] sm:$0xff]  ;;  %v5504_v63 = vld [vmem:[#allocation8 + $0x1b0] sm:$0xff] }
 0x284   : > { %v9864_v18 = vpop.f32.mrf.mxu0  ;;  %v3523_v39 = vpop.f32.mrf.mxu1  ;;  %v5116_v23 = vld [vmem:[#allocation8 + $0x120] sm:$0xff]  ;;  %10435 = vmatprep.subr.mxu0 %v5506_v50 }
 0x285   : > { %10339 = vmatprep.subr.mxu1 %v5116_v23  ;;  %10436 = vmatpush3.msra.mxu0 %v5506_v50  ;;  %v5115_v50 = vld [vmem:[#allocation8 + $0x118] sm:$0xff] }
 0x286   : > { %v12780_v16 = vpop.f32.mrf.mxu0  ;;  %v9968_v15 = vpop.f32.mrf.mxu1  ;;  %10340 = vmatpush3.msra.mxu1 %v5116_v23  ;;  %10437 = vmatprep.subr.mxu0 %v5505_v3  ;;  %v5502_v23 = vld [vmem:[#allocation8 + $0x1a0] sm:$0xff] }
 0x287   : > { %10438 = vmatpush3.msra.mxu0 %v5505_v3  ;;  %10341 = vmatprep.subr.mxu1 %v5115_v50 }
 0x288   : > { %v9867_v7 = vpop.f32.mrf.mxu0  ;;  %v12782_v24 = vpop.f32.mrf.mxu1  ;;  %10439 = vmatprep.subr.mxu0 %v5504_v63  ;;  %10342 = vmatpush3.msra.mxu1 %v5115_v50  ;;  %v5499_v50 = vld [vmem:[#allocation8 + $0x188] sm:$0xff] }
 0x289   : > { %v3269_v2 = vadd.f32 %v9867_v7, %v12656_v51  ;;  %10440 = vmatpush3.msra.mxu0 %v5504_v63 }
 0x28a   : > { %v12785_v18 = vpop.f32.mrf.mxu0  ;;  %v9971_v48 = vpop.f32.mrf.mxu1  ;;  %10441 = vmatprep.subr.mxu0 %v5503_v38 }
 0x28b   : > { %14155 = vst [vmem:[#allocation42_spill] sm:$0xff] %v12785_v18  ;;  %v12787_v39 = vadd.f32 %v9971_v48, %v3269_v2  ;;  %10442 = vmatpush3.msra.mxu0 %v5503_v38 }
 0x28c   : > { %v9870_v15 = vpop.f32.mrf.mxu0  ;;  %v12789_v21 = vpop.f32.mrf.mxu1  ;;  %10443 = vmatprep.subr.mxu0 %v5502_v23 }
 0x28d   : > { %14156 = vst [vmem:[#allocation43_spill] sm:$0xff] %v12787_v39  ;;  %v3271_v47 = vadd.f32 %v9870_v15, %v12662_v55  ;;  %10444 = vmatpush3.msra.mxu0 %v5502_v23  ;;  %v5501_v55 = vld [vmem:[#allocation8 + $0x198] sm:$0xff] }
 0x28e   : > { %v3135_v51 = vpop.f32.mrf.mxu0  ;;  %v9974_v7 = vpop.f32.mrf.mxu1  ;;  %10445 = vmatprep.subr.mxu0 %v5501_v55 }
 0x28f   : > { %v12792_v18 = vadd.f32 %v9974_v7, %v3271_v47  ;;  %10446 = vmatpush3.msra.mxu0 %v5501_v55  ;;  %v5500_v47 = vld [vmem:[#allocation8 + $0x190] sm:$0xff]  ;;  %v5498_v55 = vld [vmem:[#allocation8 + $0x180] sm:$0xff] }
 0x290   : > { %v9873_v2 = vpop.f32.mrf.mxu0  ;;  %v3553_v48 = vpop.f32.mrf.mxu1  ;;  %v5114_v7 = vld [vmem:[#allocation8 + $0x110] sm:$0xff]  ;;  %10447 = vmatprep.subr.mxu0 %v5500_v47 }
 0x291   : > { %14157 = vst [vmem:[#allocation44_spill] sm:$0xff] %v12792_v18  ;;  %10343 = vmatprep.subr.mxu1 %v5114_v7  ;;  %10448 = vmatpush3.msra.mxu0 %v5500_v47  ;;  %v5113_v18 = vld [vmem:[#allocation8 + $0x108] sm:$0xff] }
 0x292   : > { %v12794_v3 = vpop.f32.mrf.mxu0  ;;  %v9977_v39 = vpop.f32.mrf.mxu1  ;;  %10344 = vmatpush3.msra.mxu1 %v5114_v7  ;;  %10449 = vmatprep.subr.mxu0 %v5499_v50 }
 0x293   : > { %14158 = vst [vmem:[#allocation45_spill] sm:$0xff] %v12794_v3  ;;  %10450 = vmatpush3.msra.mxu0 %v5499_v50  ;;  %10345 = vmatprep.subr.mxu1 %v5113_v18 }
 0x294   : > { %v9876_v15 = vpop.f32.mrf.mxu0  ;;  %v12796_v63 = vpop.f32.mrf.mxu1  ;;  %10451 = vmatprep.subr.mxu0 %v5498_v55  ;;  %10346 = vmatpush3.msra.mxu1 %v5113_v18 }
 0x295   : > { %14159 = vst [vmem:[#allocation13_spill] sm:$0xff] %v12796_v63  ;;  %v3275_v51 = vadd.f32 %v9876_v15, %v12676_v58  ;;  %10452 = vmatpush3.msra.mxu0 %v5498_v55 }
 0x296   : > { %v12799_v2 = vpop.f32.mrf.mxu0  ;;  %v9980_v38 = vpop.f32.mrf.mxu1 }
 0x297   : > { %14160 = vst [vmem:[#allocation14_spill] sm:$0xff] %v12799_v2  ;;  %v12801_v48 = vadd.f32 %v9980_v38, %v3275_v51  ;;  %v5112_v51 = vld [vmem:[#allocation8 + $0x100] sm:$0xff] }
 0x298   : > { %v9879_v39 = vpop.f32.mrf.mxu0  ;;  %v12803_v23 = vpop.f32.mrf.mxu1  ;;  %10347 = vmatprep.subr.mxu1 %v5112_v51 }
 0x299   : > { %14161 = vst [vmem:[#allocation15_spill] sm:$0xff] %v12801_v48  ;;  %v3277_v63 = vadd.f32 %v9879_v39, %v12682_v36  ;;  %10348 = vmatpush3.msra.mxu1 %v5112_v51 }
 0x29a   : > { %v3165_v58 = vpop.f32.mrf.mxu0  ;;  %v9983_v15 = vpop.f32.mrf.mxu1 }
 0x29b   : > { %v12806_v2 = vadd.f32 %v9983_v15, %v3277_v63  ;;  %v12817_v58 = vld [vmem:[#allocation8 + $0x278] sm:$0xff] }
 0x29c   : > { %v9882_v47 = vpop.f32.mrf.mxu0  ;;  %v3583_v3 = vpop.f32.mrf.mxu1  ;;  %14166 = vst [vmem:[#allocation48_spill] sm:$0xff] %v12817_v58  ;;  %10525 = vmatprep.subr.mxu1 %v12817_v58 }
 0x29d   : > { %14162 = vst [vmem:[#allocation16_spill] sm:$0xff] %v12806_v2 }
 0x29e   : > { %v12808_v7 = vpop.f32.mrf.mxu0  ;;  %v9986_v38 = vpop.f32.mrf.mxu1 }
 0x2a0   : > { %v9885_v50 = vpop.f32.mrf.mxu0  ;;  %v12810_v48 = vpop.f32.mrf.mxu1 }
 0x2a1   : > { %14163 = vst [vmem:[#allocation17_spill] sm:$0xff] %v12810_v48  ;;  %v3281_v36 = vadd.f32 %v9885_v50, %v12694_v62 }
 0x2a2   : > { %v12813_v39 = vpop.f32.mrf.mxu0  ;;  %v9989_v63 = vpop.f32.mrf.mxu1 }
 0x2a3   : > { %14164 = vst [vmem:[#allocation46_spill] sm:$0xff] %v12813_v39  ;;  %v12815_v55 = vadd.f32 %v9989_v63, %v3281_v36 }
 0x2a4   : > { %v9888_v3 = vpop.f32.mrf.mxu0  ;;  %v12819_v15 = vpop.f32.mrf.mxu1 }
 0x2a5   : > { %14165 = vst [vmem:[#allocation47_spill] sm:$0xff] %v12815_v55  ;;  %14167 = vst [vmem:[#allocation49_spill] sm:$0xff] %v12819_v15  ;;  %v3283_v18 = vadd.f32 %v9888_v3, %v12700_v37 }
 0x2a6   : > { %v3195_v47 = vpop.f32.mrf.mxu0  ;;  %v9992_v51 = vpop.f32.mrf.mxu1 }
 0x2a7   : > { %v12823_v38 = vadd.f32 %v9992_v51, %v3283_v18 }
 0x2a8   : > { %v9891_v48 = vpop.f32.mrf.mxu0  ;;  %v3613_v62 = vpop.f32.mrf.mxu1 }
 0x2aa   : > { %v12825_v50 = vpop.f32.mrf.mxu0  ;;  %v9995_v39 = vpop.f32.mrf.mxu1 }
 0x2ab   : > { %v2826_v39 = vadd.f32 %v12578_v6, %v12574_v35 }
 0x2ac   : > { %v9894_v36 = vpop.f32.mrf.mxu0  ;;  %v12827_v63 = vpop.f32.mrf.mxu1 }
 0x2ad   : > { %14168 = vst [vmem:[#allocation50_spill] sm:$0xff] %v12827_v63  ;;  %v3287_v55 = vadd.f32 %v9894_v36, %v12712_v30  ;;  %v3244_v30 = vadd.f32 %v12729_v13, %v2826_v39  ;;  %v2832_v39 = vadd.f32 %v12598_v19, %v12594_v8 }
 0x2ae   : > { %v12830_v2 = vpop.f32.mrf.mxu0  ;;  %v9998_v15 = vpop.f32.mrf.mxu1 }
 0x2af   : > { %v12832_v58 = vadd.f32 %v9998_v15, %v3287_v55 }
 0x2b0   : > { %v9897_v37 = vpop.f32.mrf.mxu0  ;;  %v12834_v3 = vpop.f32.mrf.mxu1 }
 0x2b1   : > { %14169 = vst [vmem:[#allocation51_spill] sm:$0xff] %v12832_v58  ;;  %14170 = vst [vmem:[#allocation52_spill] sm:$0xff] %v12834_v3  ;;  %v3289_v18 = vadd.f32 %v9897_v37, %v12717_v60  ;;  %v3662_v58 = vadd.f32 %v12733_v22, %v3244_v30  ;;  %v2830_v37 = vadd.f32 %v12588_v41, %v12586_v0 }
 0x2b2   : > { %v3225_v48 = vpop.f32.mrf.mxu0  ;;  %v10001_v47 = vpop.f32.mrf.mxu1  ;;  %v3250_v41 = vadd.f32 %v12743_v10, %v2832_v39  ;;  %v2836_v10 = vadd.f32 %v12608_v32, %v12606_v44  ;;  %v2838_v44 = vadd.f32 %v12618_v12, %v12614_v28 }
 0x2b3   : > { %v12839_v51 = vadd.f32 %v10001_v47, %v3289_v18  ;;  %v3248_v18 = vadd.f32 %v12738_v17, %v2830_v37 }
 0x2b4   : > { %v9900_v62 = vpop.f32.mrf.mxu0  ;;  %v3643_v63 = vpop.f32.mrf.mxu1 }
 0x2b5   : > { %v3666_v0 = vadd.f32 %v12740_v40, %v3248_v18 }
 0x2b6   : > { %v12842_v36 = vpop.f32.mrf.mxu0  ;;  %v10004_v55 = vpop.f32.mrf.mxu1 }
 0x2b8   : > { %v10039_v15 = vpop.f32.mrf.mxu0 }
 0x2b9   : > { %v4081_v3 = vadd.f32 %v10039_v15, %v12731_v53 }
 0x2ba   : > { %v3841_v60 = vpop.f32.mrf.mxu0 }
 0x2bb   : > { %v4136_v48 = vmax.f32 %v4081_v3, 0.0  ;;  %v4080_v35 = vadd.f32 %v3841_v60, %v3662_v58 }
 0x2bc   : > { %v10042_v6 = vpop.f32.mrf.mxu0 }
 0x2bd   : > { %4238 = vst [vmem:[#allocation2 + $0x28] sm:$0xff] %v4136_v48  ;;  %v4135_v63 = vmax.f32 %v4080_v35, 0.0  ;;  %v4083_v13 = vadd.f32 %v10042_v6, %v12736_v14  ;;  %v3668_v14 = vadd.f32 %v12747_v4, %v3250_v41  ;;  %v2842_v41 = vadd.f32 %v12628_v49, %v12626_v29 }
 0x2be   : > { %v3851_v47 = vpop.f32.mrf.mxu0  ;;  %v2844_v29 = vadd.f32 %v12638_v61, %v12634_v57 }
 0x2bf   : > { %4237 = vst [vmem:[#allocation2 + $0x20] sm:$0xff] %v4135_v63  ;;  %v4138_v22 = vmax.f32 %v4083_v13, 0.0  ;;  %10249 = vmatmul.mubr.f32.gmra.mxu0 %v4135_v63 }
 0x2c0   : > { %v10045_v53 = vpop.f32.mrf.mxu0  ;;  %10251 = vmatprep.mubr.f32.mxu0 %v4136_v48 }
 0x2c1   : > { %4240 = vst [vmem:[#allocation2 + $0x38] sm:$0xff] %v4138_v22 }
 0x2c2   : > { %v3861_v58 = vpop.f32.mrf.mxu0 }
 0x2c3   : > { %v4084_v17 = vadd.f32 %v3861_v58, %v3666_v0  ;;  %10252 = vmatmul.mubr.f32.gmra.mxu0 %v12719_v42 }
 0x2c4   : > { %v10048_v3 = vpop.f32.mrf.mxu0  ;;  %10254 = vmatprep.mubr.f32.mxu0 %v4138_v22  ;;  %v12868_v35 = vld [vmem:[#allocation2 + $0x2f] sm:$0xff] }
 0x2c5   : > { %v4139_v62 = vmax.f32 %v4084_v17, 0.0  ;;  %v4087_v8 = vadd.f32 %v10048_v3, %v12745_v43  ;;  %v3254_v43 = vadd.f32 %v12752_v56, %v2836_v10 }
 0x2c6   : > { %v3871_v19 = vpop.f32.mrf.mxu0  ;;  %v12857_v30 = vld [vmem:[#allocation2 + $0x1f] sm:$0xff]  ;;  %v12859_v55 = vld [vmem:[#allocation2 + $0x27] sm:$0xff] }
 0x2c7   : > { %4241 = vst [vmem:[#allocation2 + $0x40] sm:$0xff] %v4139_v62  ;;  %v4142_v40 = vmax.f32 %v4087_v8, 0.0  ;;  %v4086_v15 = vadd.f32 %v3871_v19, %v3668_v14  ;;  %10145 = vmatmul.mubr.f32.gmra.mxu1 %v12857_v30  ;;  %10255 = vmatmul.mubr.f32.gmra.mxu0 %v4139_v62  ;;  %v3672_v56 = vadd.f32 %v12754_v26, %v3254_v43 }
 0x2c8   : > { %v10051_v60 = vpop.f32.mrf.mxu0  ;;  %10147 = vmatprep.mubr.f32.mxu1 %v12859_v55  ;;  %10257 = vmatprep.mubr.f32.mxu0 %v12719_v42  ;;  %v12873_v6 = vld [vmem:[#allocation2 + $0x37] sm:$0xff] }
 0x2c9   : > { %4244 = vst [vmem:[#allocation2 + $0x58] sm:$0xff] %v4142_v40  ;;  %v4141_v4 = vmax.f32 %v4086_v15, 0.0  ;;  %v4089_v37 = vadd.f32 %v10051_v60, %v12750_v34  ;;  %v3256_v34 = vadd.f32 %v12757_v1, %v2838_v44  ;;  %v12914_v60 = vld [vmem:[#allocation8 + $0x2f8] sm:$0xff] }
 0x2ca   : > { %v3881_v48 = vpop.f32.mrf.mxu0  ;;  %10629 = vmatprep.subr.mxu0 %v12914_v60 }
 0x2cb   : > { %4243 = vst [vmem:[#allocation2 + $0x50] sm:$0xff] %v4141_v4  ;;  %v4144_v32 = vmax.f32 %v4089_v37, 0.0  ;;  %10148 = vmatmul.mubr.f32.gmra.mxu1 %v12868_v35  ;;  %10258 = vmatmul.mubr.f32.gmra.mxu0 %v4141_v4  ;;  %v3674_v39 = vadd.f32 %v12761_v20, %v3256_v34 }
 0x2cc   : > { %v10054_v18 = vpop.f32.mrf.mxu0  ;;  %10150 = vmatprep.mubr.f32.mxu1 %v12873_v6  ;;  %10260 = vmatprep.mubr.f32.mxu0 %v4142_v40 }
 0x2cd   : > { %4246 = vst [vmem:[#allocation2 + $0x68] sm:$0xff] %v4144_v32 }
 0x2ce   : > { %v3891_v63 = vpop.f32.mrf.mxu0  ;;  %v12878_v13 = vld [vmem:[#allocation2 + $0x3f] sm:$0xff]  ;;  %v12880_v28 = vld [vmem:[#allocation2 + $0x47] sm:$0xff] }
 0x2cf   : > { %v4090_v12 = vadd.f32 %v3891_v63, %v3672_v56  ;;  %10151 = vmatmul.mubr.f32.gmra.mxu1 %v12878_v13  ;;  %10261 = vmatmul.mubr.f32.gmra.mxu0 %v12719_v42 }
 0x2d0   : > { %v10057_v47 = vpop.f32.mrf.mxu0  ;;  %10153 = vmatprep.mubr.f32.mxu1 %v12880_v28  ;;  %10263 = vmatprep.mubr.f32.mxu0 %v4144_v32  ;;  %v12898_v8 = vld [vmem:[#allocation2 + $0x5f] sm:$0xff]  ;;  %v2848_v32 = vadd.f32 %v12648_v11, %v12646_v45  ;;  %v2850_v45 = vadd.f32 %v12658_v54, %v12654_v59 }
 0x2d1   : > { %v4145_v26 = vmax.f32 %v4090_v12, 0.0  ;;  %v4093_v1 = vadd.f32 %v10057_v47, %v12759_v31  ;;  %v3260_v31 = vadd.f32 %v12766_v33, %v2842_v41 }
 0x2d2   : > { %v3901_v22 = vpop.f32.mrf.mxu0  ;;  %v12887_v53 = vld [vmem:[#allocation2 + $0x4f] sm:$0xff]  ;;  %v12889_v0 = vld [vmem:[#allocation2 + $0x57] sm:$0xff] }
 0x2d3   : > { %4247 = vst [vmem:[#allocation2 + $0x70] sm:$0xff] %v4145_v26  ;;  %v4148_v58 = vmax.f32 %v4093_v1, 0.0  ;;  %v4092_v17 = vadd.f32 %v3901_v22, %v3674_v39  ;;  %10154 = vmatmul.mubr.f32.gmra.mxu1 %v12887_v53  ;;  %10264 = vmatmul.mubr.f32.gmra.mxu0 %v4145_v26  ;;  %v3678_v33 = vadd.f32 %v12768_v9, %v3260_v31 }
 0x2d4   : > { %v10060_v3 = vpop.f32.mrf.mxu0  ;;  %10156 = vmatprep.mubr.f32.mxu1 %v12889_v0  ;;  %10266 = vmatprep.mubr.f32.mxu0 %v12719_v42  ;;  %v12903_v19 = vld [vmem:[#allocation2 + $0x67] sm:$0xff] }
 0x2d5   : > { %4250 = vst [vmem:[#allocation2 + $0x88] sm:$0xff] %v4148_v58  ;;  %v4147_v20 = vmax.f32 %v4092_v17, 0.0  ;;  %v4095_v14 = vadd.f32 %v10060_v3, %v12764_v25  ;;  %v3262_v25 = vadd.f32 %v12771_v5, %v2844_v29  ;;  %v14172_v3 = vld [vmem:[#allocation43_spill] sm:$0xff]  ;;  %v14173_v29 = vld [vmem:[#allocation32_spill] sm:$0xff] }
 0x2d6   : > { %v3911_v62 = vpop.f32.mrf.mxu0 }
 0x2d7   : > { %4249 = vst [vmem:[#allocation2 + $0x80] sm:$0xff] %v4147_v20  ;;  %v4150_v49 = vmax.f32 %v4095_v14, 0.0  ;;  %10157 = vmatmul.mubr.f32.gmra.mxu1 %v12898_v8  ;;  %10267 = vmatmul.mubr.f32.gmra.mxu0 %v4147_v20  ;;  %v3680_v9 = vadd.f32 %v12775_v27, %v3262_v25 }
 0x2d8   : > { %v10063_v10 = vpop.f32.mrf.mxu0  ;;  %10159 = vmatprep.mubr.f32.mxu1 %v12903_v19  ;;  %10269 = vmatprep.mubr.f32.mxu0 %v4148_v58 }
 0x2d9   : > { %4252 = vst [vmem:[#allocation2 + $0x98] sm:$0xff] %v4150_v49 }
 0x2da   : > { %v3921_v40 = vpop.f32.mrf.mxu0  ;;  %v12908_v15 = vld [vmem:[#allocation2 + $0x6f] sm:$0xff]  ;;  %v12910_v57 = vld [vmem:[#allocation2 + $0x77] sm:$0xff] }
 0x2db   : > { %v4096_v61 = vadd.f32 %v3921_v40, %v3678_v33  ;;  %10160 = vmatmul.mubr.f32.gmra.mxu1 %v12908_v15  ;;  %10270 = vmatmul.mubr.f32.gmra.mxu0 %v12719_v42 }
 0x2dc   : > { %v10066_v43 = vpop.f32.mrf.mxu0  ;;  %10162 = vmatprep.mubr.f32.mxu1 %v12910_v57  ;;  %10272 = vmatprep.mubr.f32.mxu0 %v4150_v49  ;;  %v12931_v47 = vld [vmem:[#allocation2 + $0x8f] sm:$0xff]  ;;  %v14174_v49 = vld [vmem:[#allocation36_spill] sm:$0xff] }
 0x2dd   : > { %v4151_v5 = vmax.f32 %v4096_v61, 0.0  ;;  %v4099_v4 = vadd.f32 %v10066_v43, %v12773_v52  ;;  %v3266_v52 = vadd.f32 %v12780_v16, %v2848_v32  ;;  %v2854_v10 = vadd.f32 %v14174_v49, %v14173_v29  ;;  %v14177_v32 = vld [vmem:[#allocation33_spill] sm:$0xff] }
 0x2de   : > { %v3931_v37 = vpop.f32.mrf.mxu0  ;;  %v12920_v48 = vld [vmem:[#allocation2 + $0x7f] sm:$0xff]  ;;  %v12922_v44 = vld [vmem:[#allocation2 + $0x87] sm:$0xff] }
 0x2df   : > { %4253 = vst [vmem:[#allocation2 + $0xa0] sm:$0xff] %v4151_v5  ;;  %v4154_v18 = vmax.f32 %v4099_v4, 0.0  ;;  %v4098_v56 = vadd.f32 %v3931_v37, %v3680_v9  ;;  %10163 = vmatmul.mubr.f32.gmra.mxu1 %v12920_v48  ;;  %10273 = vmatmul.mubr.f32.gmra.mxu0 %v4151_v5  ;;  %v3684_v16 = vadd.f32 %v12782_v24, %v3266_v52  ;;  %v14176_v9 = vld [vmem:[#allocation44_spill] sm:$0xff] }
 0x2e0   : > { %v10069_v27 = vpop.f32.mrf.mxu0  ;;  %10165 = vmatprep.mubr.f32.mxu1 %v12922_v44  ;;  %10275 = vmatprep.mubr.f32.mxu0 %v12719_v42  ;;  %v12936_v39 = vld [vmem:[#allocation2 + $0x97] sm:$0xff] }
 0x2e1   : > { %4256 = vst [vmem:[#allocation2 + $0xb8] sm:$0xff] %v4154_v18  ;;  %v4153_v34 = vmax.f32 %v4098_v56, 0.0  ;;  %v4101_v63 = vadd.f32 %v10069_v27, %v12778_v46  ;;  %v14171_v46 = vld [vmem:[#allocation42_spill] sm:$0xff] }
 0x2e2   : > { %v3941_v12 = vpop.f32.mrf.mxu0  ;;  %v3268_v1 = vadd.f32 %v14171_v46, %v2850_v45 }
 0x2e3   : > { %4255 = vst [vmem:[#allocation2 + $0xb0] sm:$0xff] %v4153_v34  ;;  %v4156_v11 = vmax.f32 %v4101_v63, 0.0  ;;  %10166 = vmatmul.mubr.f32.gmra.mxu1 %v12931_v47  ;;  %10276 = vmatmul.mubr.f32.gmra.mxu0 %v4153_v34  ;;  %v14179_v63 = vld [vmem:[#allocation18_spill] sm:$0xff]  ;;  %v14180_v12 = vld [vmem:[#allocation19_spill] sm:$0xff] }
 0x2e4   : > { %v10072_v26 = vpop.f32.mrf.mxu0  ;;  %10168 = vmatprep.mubr.f32.mxu1 %v12936_v39  ;;  %10278 = vmatprep.mubr.f32.mxu0 %v4154_v18  ;;  %v3686_v17 = vadd.f32 %v12789_v21, %v3268_v1  ;;  %v14175_v21 = vld [vmem:[#allocation45_spill] sm:$0xff]  ;;  %v2024_v45 = vadd.f32 %v14180_v12, %v14179_v63 }
 0x2e5   : > { %4258 = vst [vmem:[#allocation2 + $0xc8] sm:$0xff] %v4156_v11  ;;  %v3272_v61 = vadd.f32 %v14175_v21, %v2854_v10  ;;  %v14178_v18 = vld [vmem:[#allocation37_spill] sm:$0xff] }
 0x2e6   : > { %v3951_v22 = vpop.f32.mrf.mxu0  ;;  %v12941_v41 = vld [vmem:[#allocation2 + $0x9f] sm:$0xff]  ;;  %v12943_v59 = vld [vmem:[#allocation2 + $0xa7] sm:$0xff]  ;;  %v2856_v56 = vadd.f32 %v14178_v18, %v14177_v32 }
 0x2e7   : > { %v4102_v54 = vadd.f32 %v3951_v22, %v3684_v16  ;;  %10169 = vmatmul.mubr.f32.gmra.mxu1 %v12941_v41  ;;  %10279 = vmatmul.mubr.f32.gmra.mxu0 %v12719_v42  ;;  %v14182_v16 = vld [vmem:[#allocation14_spill] sm:$0xff] }
 0x2e8   : > { %v10075_v58 = vpop.f32.mrf.mxu0  ;;  %10171 = vmatprep.mubr.f32.mxu1 %v12943_v59  ;;  %10281 = vmatprep.mubr.f32.mxu0 %v4156_v11  ;;  %v12961_v37 = vld [vmem:[#allocation2 + $0xbf] sm:$0xff]  ;;  %v3274_v46 = vadd.f32 %v14182_v16, %v2856_v56 }
 0x2e9   : > { %v4157_v24 = vmax.f32 %v4102_v54, 0.0  ;;  %v4105_v31 = vadd.f32 %v10075_v58, %v14172_v3  ;;  %v14181_v11 = vld [vmem:[#allocation13_spill] sm:$0xff]  ;;  %v14183_v58 = vld [vmem:[#allocation40_spill] sm:$0xff] }
 0x2ea   : > { %v3961_v20 = vpop.f32.mrf.mxu0  ;;  %v12950_v14 = vld [vmem:[#allocation2 + $0xaf] sm:$0xff]  ;;  %v12952_v62 = vld [vmem:[#allocation2 + $0xb7] sm:$0xff]  ;;  %v3690_v26 = vadd.f32 %v14181_v11, %v3272_v61  ;;  %v3692_v49 = vadd.f32 %v12803_v23, %v3274_v46 }
 0x2eb   : > { %4259 = vst [vmem:[#allocation2 + $0xd0] sm:$0xff] %v4157_v24  ;;  %v4160_v33 = vmax.f32 %v4105_v31, 0.0  ;;  %v4104_v25 = vadd.f32 %v3961_v20, %v3686_v17  ;;  %10172 = vmatmul.mubr.f32.gmra.mxu1 %v12950_v14  ;;  %10282 = vmatmul.mubr.f32.gmra.mxu0 %v4157_v24  ;;  %v2442_v17 = vadd.f32 %v14183_v58, %v2024_v45  ;;  %v14184_v31 = vld [vmem:[#allocation20_spill] sm:$0xff]  ;;  %v14185_v20 = vld [vmem:[#allocation21_spill] sm:$0xff]  ;;  %v14192_v58 = vld [vmem:[#allocation22_spill] sm:$0xff] }
 0x2ec   : > { %v10078_v40 = vpop.f32.mrf.mxu0  ;;  %10174 = vmatprep.mubr.f32.mxu1 %v12952_v62  ;;  %10284 = vmatprep.mubr.f32.mxu0 %v12719_v42  ;;  %v12966_v52 = vld [vmem:[#allocation2 + $0xc7] sm:$0xff]  ;;  %v2026_v29 = vadd.f32 %v14185_v20, %v14184_v31  ;;  %v14190_v11 = vld [vmem:[#allocation24_spill] sm:$0xff] }
 0x2ed   : > { %4262 = vst [vmem:[#allocation2 + $0xe8] sm:$0xff] %v4160_v33  ;;  %v4159_v43 = vmax.f32 %v4104_v25, 0.0  ;;  %v4107_v5 = vadd.f32 %v10078_v40, %v14176_v9  ;;  %v14194_v31 = vld [vmem:[#allocation46_spill] sm:$0xff] }
 0x2ee   : > { %v3971_v4 = vpop.f32.mrf.mxu0 }
 0x2ef   : > { %4261 = vst [vmem:[#allocation2 + $0xe0] sm:$0xff] %v4159_v43  ;;  %v4162_v27 = vmax.f32 %v4107_v5, 0.0  ;;  %10175 = vmatmul.mubr.f32.gmra.mxu1 %v12961_v37  ;;  %10285 = vmatmul.mubr.f32.gmra.mxu0 %v4159_v43  ;;  %v14187_v43 = vld [vmem:[#allocation41_spill] sm:$0xff]  ;;  %v14188_v5 = vld [vmem:[#allocation23_spill] sm:$0xff] }
 0x2f0   : > { %v10081_v34 = vpop.f32.mrf.mxu0  ;;  %10177 = vmatprep.mubr.f32.mxu1 %v12966_v52  ;;  %10287 = vmatprep.mubr.f32.mxu0 %v4160_v33  ;;  %v14186_v33 = vld [vmem:[#allocation15_spill] sm:$0xff]  ;;  %v2860_v9 = vadd.f32 %v14187_v43, %v2442_v17  ;;  %v2444_v4 = vadd.f32 %v14188_v5, %v2026_v29  ;;  %v14197_v5 = vld [vmem:[#allocation29_spill] sm:$0xff] }
 0x2f1   : > { %4264 = vst [vmem:[#allocation2 + $0xf8] sm:$0xff] %v4162_v27  ;;  %v14189_v34 = vld [vmem:[#allocation16_spill] sm:$0xff] }
 0x2f2   : > { %v3981_v1 = vpop.f32.mrf.mxu0  ;;  %v12973_v22 = vld [vmem:[#allocation2 + $0xcf] sm:$0xff]  ;;  %v12975_v54 = vld [vmem:[#allocation2 + $0xd7] sm:$0xff]  ;;  %v3278_v23 = vadd.f32 %v12808_v7, %v2860_v9  ;;  %v14191_v7 = vld [vmem:[#allocation25_spill] sm:$0xff] }
 0x2f3   : > { %v4108_v24 = vadd.f32 %v3981_v1, %v3690_v26  ;;  %10178 = vmatmul.mubr.f32.gmra.mxu1 %v12973_v22  ;;  %10288 = vmatmul.mubr.f32.gmra.mxu0 %v12719_v42  ;;  %v2862_v26 = vadd.f32 %v14190_v11, %v2444_v4  ;;  %v2030_v17 = vadd.f32 %v14192_v58, %v14191_v7  ;;  %v14196_v9 = vld [vmem:[#allocation26_spill] sm:$0xff]  ;;  %v14200_v11 = vld [vmem:[#allocation28_spill] sm:$0xff] }
 0x2f4   : > { %v10084_v3 = vpop.f32.mrf.mxu0  ;;  %10180 = vmatprep.mubr.f32.mxu1 %v12975_v54  ;;  %10290 = vmatprep.mubr.f32.mxu0 %v4162_v27  ;;  %v12996_v45 = vld [vmem:[#allocation2 + $0xef] sm:$0xff]  ;;  %v2032_v4 = vadd.f32 %v14197_v5, %v14196_v9 }
 0x2f5   : > { %v4163_v10 = vmax.f32 %v4108_v24, 0.0  ;;  %v4111_v25 = vadd.f32 %v10084_v3, %v14186_v33  ;;  %v14193_v24 = vld [vmem:[#allocation17_spill] sm:$0xff]  ;;  %v3280_v20 = vadd.f32 %v14194_v31, %v2862_v26  ;;  %v14195_v33 = vld [vmem:[#allocation27_spill] sm:$0xff] }
 0x2f6   : > { %v3991_v40 = vpop.f32.mrf.mxu0  ;;  %v12985_v21 = vld [vmem:[#allocation2 + $0xdf] sm:$0xff]  ;;  %v12987_v61 = vld [vmem:[#allocation2 + $0xe7] sm:$0xff]  ;;  %v3696_v3 = vadd.f32 %v14193_v24, %v3278_v23  ;;  %v14199_v23 = vld [vmem:[#allocation47_spill] sm:$0xff] }
 0x2f7   : > { %4265 = vst [vmem:[#allocation2 + $0x100] sm:$0xff] %v4163_v10  ;;  %v4166_v32 = vmax.f32 %v4111_v25, 0.0  ;;  %v4110_v18 = vadd.f32 %v3991_v40, %v3692_v49  ;;  %10181 = vmatmul.mubr.f32.gmra.mxu1 %v12985_v21  ;;  %10291 = vmatmul.mubr.f32.gmra.mxu0 %v4163_v10  ;;  %v2448_v25 = vadd.f32 %v14195_v33, %v2030_v17  ;;  %v14202_v33 = vld [vmem:[#allocation35_spill] sm:$0xff] }
 0x2f8   : > { %v10087_v56 = vpop.f32.mrf.mxu0  ;;  %10183 = vmatprep.mubr.f32.mxu1 %v12987_v61  ;;  %10293 = vmatprep.mubr.f32.mxu0 %v12719_v42  ;;  %v13000_v46 = vld [vmem:[#allocation2 + $0xf7] sm:$0xff] }
 0x2f9   : > { %4268 = vst [vmem:[#allocation2 + $0x118] sm:$0xff] %v4166_v32  ;;  %v4165_v27 = vmax.f32 %v4110_v18, 0.0  ;;  %v4113_v63 = vadd.f32 %v10087_v56, %v14189_v34  ;;  %v2866_v26 = vadd.f32 %v14200_v11, %v2448_v25 }
 0x2fa   : > { %v4001_v12 = vpop.f32.mrf.mxu0 }
 0x2fb   : > { %4267 = vst [vmem:[#allocation2 + $0x110] sm:$0xff] %v4165_v27  ;;  %v4168_v16 = vmax.f32 %v4113_v63, 0.0  ;;  %10184 = vmatmul.mubr.f32.gmra.mxu1 %v12996_v45  ;;  %10294 = vmatmul.mubr.f32.gmra.mxu0 %v4165_v27  ;;  %v3284_v24 = vadd.f32 %v12825_v50, %v2866_v26  ;;  %v14204_v50 = vld [vmem:[#allocation30_spill] sm:$0xff]  ;;  %v13047_v26 = vld [vmem:[#allocation2] sm:$0xff] }
 0x2fc   : > { %v10090_v1 = vpop.f32.mrf.mxu0  ;;  %10186 = vmatprep.mubr.f32.mxu1 %v13000_v46  ;;  %10296 = vmatprep.mubr.f32.mxu0 %v4166_v32  ;;  %v14198_v32 = vld [vmem:[#allocation49_spill] sm:$0xff] }
 0x2fd   : > { %4270 = vst [vmem:[#allocation2 + $0x128] sm:$0xff] %v4168_v16  ;;  %v3698_v18 = vadd.f32 %v14198_v32, %v3280_v20  ;;  %v14201_v1 = vld [vmem:[#allocation34_spill] sm:$0xff] }
 0x2fe   : > { %v4011_v29 = vpop.f32.mrf.mxu0  ;;  %v13007_v49 = vld [vmem:[#allocation2 + $0xff] sm:$0xff]  ;;  %v13009_v10 = vld [vmem:[#allocation2 + $0x107] sm:$0xff]  ;;  %v2450_v7 = vadd.f32 %v14201_v1, %v2032_v4 }
 0x2ff   : > { %v4114_v40 = vadd.f32 %v4011_v29, %v3696_v3  ;;  %10187 = vmatmul.mubr.f32.gmra.mxu1 %v13007_v49  ;;  %10297 = vmatmul.mubr.f32.gmra.mxu0 %v12719_v42 }
 0x300   : > { %v10093_v43 = vpop.f32.mrf.mxu0  ;;  %10189 = vmatprep.mubr.f32.mxu1 %v13009_v10  ;;  %10299 = vmatprep.mubr.f32.mxu0 %v4168_v16  ;;  %v13030_v29 = vld [vmem:[#allocation2 + $0x11f] sm:$0xff]  ;;  %v2868_v25 = vadd.f32 %v14202_v33, %v2450_v7 }
 0x301   : > { %v4169_v56 = vmax.f32 %v4114_v40, 0.0  ;;  %v4117_v27 = vadd.f32 %v10093_v43, %v14199_v23 }
 0x302   : > { %v4021_v34 = vpop.f32.mrf.mxu0  ;;  %v13019_v63 = vld [vmem:[#allocation2 + $0x10f] sm:$0xff]  ;;  %v13021_v12 = vld [vmem:[#allocation2 + $0x117] sm:$0xff]  ;;  %v3286_v32 = vadd.f32 %v12830_v2, %v2868_v25 }
 0x303   : > { %4271 = vst [vmem:[#allocation2 + $0x130] sm:$0xff] %v4169_v56  ;;  %v4172_v58 = vmax.f32 %v4117_v27, 0.0  ;;  %v4116_v16 = vadd.f32 %v4021_v34, %v3698_v18  ;;  %10190 = vmatmul.mubr.f32.gmra.mxu1 %v13019_v63  ;;  %10300 = vmatmul.mubr.f32.gmra.mxu0 %v4169_v56  ;;  %v14206_v27 = vld [vmem:[#allocation38_spill] sm:$0xff]  ;;  %v14207_v2 = vld [vmem:[#allocation52_spill] sm:$0xff] }
 0x304   : > { %v10096_v17 = vpop.f32.mrf.mxu0  ;;  %10192 = vmatprep.mubr.f32.mxu1 %v13021_v12  ;;  %10302 = vmatprep.mubr.f32.mxu0 %v12719_v42  ;;  %v13034_v43 = vld [vmem:[#allocation2 + $0x127] sm:$0xff]  ;;  %v14203_v42 = vld [vmem:[#allocation31_spill] sm:$0xff]  ;;  %v3704_v7 = vadd.f32 %v14207_v2, %v3286_v32 }
 0x305   : > { %4274 = vst [vmem:[#allocation2 + $0x148] sm:$0xff] %v4172_v58  ;;  %v4171_v3 = vmax.f32 %v4116_v16, 0.0  ;;  %v4119_v31 = vadd.f32 %v10096_v17, %v12823_v38  ;;  %v2036_v5 = vadd.f32 %v14204_v50, %v14203_v42  ;;  %v14205_v38 = vld [vmem:[#allocation50_spill] sm:$0xff]  ;;  %v14208_v16 = vld [vmem:[#allocation51_spill] sm:$0xff] }
 0x306   : > { %v4031_v20 = vpop.f32.mrf.mxu0  ;;  %v3702_v4 = vadd.f32 %v14205_v38, %v3284_v24  ;;  %v3653_v38 = vpop.f32.mrf.mxu1 }
 0x307   : > { %4273 = vst [vmem:[#allocation2 + $0x140] sm:$0xff] %v4171_v3  ;;  %v4174_v40 = vmax.f32 %v4119_v31, 0.0  ;;  %10193 = vmatmul.mubr.f32.gmra.mxu1 %v13030_v29  ;;  %10303 = vmatmul.mubr.f32.gmra.mxu0 %v4171_v3  ;;  %v2454_v34 = vadd.f32 %v14206_v27, %v2036_v5  ;;  %v14209_v20 = vld [vmem:[#allocation39_spill] sm:$0xff] }
 0x308   : > { %v10099_v9 = vpop.f32.mrf.mxu0  ;;  %10195 = vmatprep.mubr.f32.mxu1 %v13034_v43  ;;  %10305 = vmatprep.mubr.f32.mxu0 %v4172_v58 }
 0x309   : > { %4276 = vst [vmem:[#allocation2 + $0x158] sm:$0xff] %v4174_v40  ;;  %v2872_v33 = vadd.f32 %v14209_v20, %v2454_v34 }
 0x30a   : > { %v4041_v18 = vpop.f32.mrf.mxu0  ;;  %v13041_v56 = vld [vmem:[#allocation2 + $0x12f] sm:$0xff]  ;;  %v13043_v23 = vld [vmem:[#allocation2 + $0x137] sm:$0xff] }
 0x30b   : > { %v4120_v11 = vadd.f32 %v4041_v18, %v3702_v4  ;;  %10196 = vmatmul.mubr.f32.gmra.mxu1 %v13041_v56  ;;  %10306 = vmatmul.mubr.f32.gmra.mxu0 %v13047_v26  ;;  %v13068_v18 = vld [vmem:[%s14027_s4] ss:$0 sm:$0xff] }
 0x30c   : > { %v10102_v1 = vpop.f32.mrf.mxu0  ;;  %10198 = vmatprep.mubr.f32.mxu1 %v13043_v23  ;;  %10308 = vmatprep.mubr.f32.mxu0 %v4174_v40  ;;  %v3290_v40 = vadd.f32 %v12842_v36, %v2872_v33  ;;  %v13063_v32 = vld [vmem:[#allocation2 + $0x14f] sm:$0xff] }
 0x30d   : > { %v4175_v58 = vmax.f32 %v4120_v11, 0.0  ;;  %v4123_v17 = vadd.f32 %v10102_v1, %v14208_v16 }
 0x30e   : > { %v4051_v24 = vpop.f32.mrf.mxu0  ;;  %v13053_v3 = vld [vmem:[#allocation2 + $0x13f] sm:$0xff]  ;;  %v13055_v31 = vld [vmem:[#allocation2 + $0x147] sm:$0xff]  ;;  %v3708_v11 = vadd.f32 %v3653_v38, %v3290_v40 }
 0x30f   : > { %4277 = vst [vmem:[#allocation2 + $0x160] sm:$0xff] %v4175_v58  ;;  %v4178_v25 = vmax.f32 %v4123_v17, 0.0  ;;  %v4122_v9 = vadd.f32 %v4051_v24, %v3704_v7  ;;  %10199 = vmatmul.mubr.f32.gmra.mxu1 %v13053_v3  ;;  %10309 = vmatmul.mubr.f32.gmra.mxu0 %v4175_v58  ;;  %v6283_v40 = vld [vmem:[#allocation8 + $0x2e8] sm:$0xff]  ;;  %v5896_v38 = vld [vmem:[#allocation8 + $0x260] sm:$0xff] }
 0x310   : > { %v10105_v42 = vpop.f32.mrf.mxu0  ;;  %10201 = vmatprep.mubr.f32.mxu1 %v13055_v31  ;;  %10311 = vmatprep.mubr.f32.mxu0 %v13047_v26  ;;  %v13071_v34 = vld [vmem:[#allocation2 + $0x157] sm:$0xff] }
 0x311   : > { %4280 = vst [vmem:[#allocation2 + $0x178] sm:$0xff] %v4178_v25  ;;  %v4177_v50 = vmax.f32 %v4122_v9, 0.0  ;;  %v4125_v5 = vadd.f32 %v10105_v42, %v12839_v51  ;;  %v10143_v51 = vpop.f32.mrf.mxu1  ;;  %v6284_v9 = vld [vmem:[#allocation8 + $0x2f0] sm:$0xff] }
 0x312   : > { %v4061_v4 = vpop.f32.mrf.mxu0  ;;  %v4646_v1 = vadd.f32 %v10143_v51, %v13068_v18  ;;  %v5063_v42 = vld [vmem:[#allocation2 + $0x9] sm:$0xff] }
 0x313   : > { %4279 = vst [vmem:[#allocation2 + $0x170] sm:$0xff] %v4177_v50  ;;  %v4180_v27 = vmax.f32 %v4125_v5, 0.0  ;;  %10202 = vmatmul.mubr.f32.gmra.mxu1 %v13063_v32  ;;  %10312 = vmatmul.mubr.f32.gmra.mxu0 %v4177_v50  ;;  %v5064_v50 = vld [vmem:[#allocation2 + $0x11] sm:$0xff]  ;;  %v5897_v5 = vld [vmem:[#allocation8 + $0x268] sm:$0xff]  ;;  %v6282_v4 = vld [vmem:[#allocation8 + $0x2e0] sm:$0xff] }
 0x314   : > { %v10108_v36 = vpop.f32.mrf.mxu0  ;;  %10204 = vmatprep.mubr.f32.mxu1 %v13071_v34  ;;  %10314 = vmatprep.mubr.f32.mxu0 %v4178_v25  ;;  %v5894_v51 = vld [vmem:[#allocation8 + $0x250] sm:$0xff] }
 0x315   : > { %4282 = vst [vmem:[#allocation2 + $0x188] sm:$0xff] %v4180_v27  ;;  %v5895_v27 = vld [vmem:[#allocation8 + $0x258] sm:$0xff]  ;;  %v13121_v36 = vld [vmem:[#allocation2 + $0x49] sm:$0xff] }
 0x316   : > { %v4071_v2 = vpop.f32.mrf.mxu0  ;;  %v13075_v7 = vld [vmem:[#allocation2 + $0x15f] sm:$0xff]  ;;  %v13077_v58 = vld [vmem:[#allocation2 + $0x167] sm:$0xff] }
 0x317   : > { %v4126_v16 = vadd.f32 %v4071_v2, %v3708_v11  ;;  %10205 = vmatmul.mubr.f32.gmra.mxu1 %v13075_v7  ;;  %10315 = vmatmul.mubr.f32.gmra.mxu0 %v13047_v26  ;;  %v13129_v11 = vld [vmem:[#allocation2 + $0x59] sm:$0xff]  ;;  %v13137_v2 = vld [vmem:[#allocation2 + $0x69] sm:$0xff] }
 0x318   : > { %10207 = vmatprep.mubr.f32.mxu1 %v13077_v58  ;;  %10453 = vmatprep.mubr.f32.mxu0 %v12857_v30  ;;  %v10247_v17 = vpop.f32.mrf.mxu0  ;;  %v13094_v30 = vld [vmem:[#allocation2 + $0x17f] sm:$0xff] }
 0x319   : > { %v4181_v24 = vmax.f32 %v4126_v16, 0.0  ;;  %v13083_v20 = vadd.f32 %v10247_v17, %v4646_v1  ;;  %v5893_v1 = vld [vmem:[#allocation8 + $0x248] sm:$0xff]  ;;  %v5892_v16 = vld [vmem:[#allocation8 + $0x240] sm:$0xff] }
 0x31a   : > { %v13085_v33 = vld [vmem:[#allocation2 + $0x16f] sm:$0xff]  ;;  %v13087_v25 = vld [vmem:[#allocation2 + $0x177] sm:$0xff] }
 0x31b   : > { %4283 = vst [vmem:[#allocation2 + $0x190] sm:$0xff] %v4181_v24  ;;  %10208 = vmatmul.mubr.f32.gmra.mxu1 %v13085_v33  ;;  %10454 = vmatmul.mubr.f32.vlgmr.msra.gmra.mxu0 %v12859_v55  ;;  %v5898_v55 = vld [vmem:[#allocation8 + $0x270] sm:$0xff]  ;;  %v13145_v17 = vld [vmem:[#allocation2 + $0x79] sm:$0xff] }
 0x31c   : > { %10210 = vmatprep.mubr.f32.mxu1 %v13087_v25  ;;  %10456 = vmatprep.mubr.f32.mxu0 %v12868_v35  ;;  %v5065_v35 = vld [vmem:[#allocation2 + $0x19] sm:$0xff] }
 0x31d   : > { %10630 = vmatpush3.msra.mxu0 %v12914_v60  ;;  %v14210_v60 = vld [vmem:[#allocation48_spill] sm:$0xff] }
 0x31e   : > { %10631 = vmatprep.subr.mxu0 %v6284_v9  ;;  %v5891_v24 = vld [vmem:[#allocation8 + $0x238] sm:$0xff] }
 0x31f   : > { %10211 = vmatmul.mubr.f32.gmra.mxu1 %v13094_v30  ;;  %10457 = vmatmul.mubr.f32.gmra.mxu0 %v12873_v6  ;;  %v13102_v6 = vld [vmem:[#allocation2 + $0x21] sm:$0xff] }
 0x320   : > { %10349 = vmatprep.mubr.f32.mxu1 %v5063_v42  ;;  %10459 = vmatprep.mubr.f32.mxu0 %v12878_v13  ;;  %v13105_v13 = vld [vmem:[#allocation2 + $0x29] sm:$0xff] }
 0x321   : > { %10632 = vmatpush3.msra.mxu0 %v6284_v9  ;;  %v13153_v9 = vld [vmem:[#allocation2 + $0x89] sm:$0xff] }
 0x322   : > { %10633 = vmatprep.subr.mxu0 %v6283_v40  ;;  %v5890_v42 = vld [vmem:[#allocation8 + $0x230] sm:$0xff] }
 0x323   : > { %10350 = vmatmul.mubr.f32.vlgmr.msra.gmra.mxu1 %v5064_v50  ;;  %10460 = vmatmul.mubr.f32.gmra.mxu0 %v12880_v28  ;;  %v13110_v28 = vld [vmem:[#allocation2 + $0x31] sm:$0xff]  ;;  %v5889_v50 = vld [vmem:[#allocation8 + $0x228] sm:$0xff] }
 0x324   : > { %10352 = vmatprep.mubr.f32.mxu1 %v5065_v35  ;;  %10526 = vmatpush3.msra.mxu1 %v14210_v60  ;;  %v5888_v35 = vld [vmem:[#allocation8 + $0x220] sm:$0xff] }
 0x325   : > { %10527 = vmatprep.subr.mxu1 %v5898_v55  ;;  %10462 = vmatprep.mubr.f32.mxu0 %v12887_v53  ;;  %v13113_v53 = vld [vmem:[#allocation2 + $0x39] sm:$0xff] }
 0x326   : > { %10528 = vmatpush3.msra.mxu1 %v5898_v55  ;;  %10634 = vmatpush3.msra.mxu0 %v6283_v40  ;;  %v13161_v40 = vld [vmem:[#allocation2 + $0x99] sm:$0xff]  ;;  %v13169_v55 = vld [vmem:[#allocation2 + $0xa9] sm:$0xff] }
 0x327   : > { %10353 = vmatmul.mubr.f32.gmra.mxu1 %v13102_v6  ;;  %10463 = vmatmul.mubr.f32.gmra.mxu0 %v12889_v0  ;;  %v6281_v0 = vld [vmem:[#allocation8 + $0x2d8] sm:$0xff] }
 0x328   : > { %10355 = vmatprep.mubr.f32.mxu1 %v13105_v13  ;;  %10529 = vmatprep.subr.mxu1 %v5897_v5  ;;  %v13177_v60 = vld [vmem:[#allocation2 + $0xb9] sm:$0xff] }
 0x329   : > { %10465 = vmatprep.mubr.f32.mxu0 %v12898_v8  ;;  %10530 = vmatpush3.msra.mxu1 %v5897_v5  ;;  %v13118_v8 = vld [vmem:[#allocation2 + $0x41] sm:$0xff]  ;;  %v5887_v5 = vld [vmem:[#allocation8 + $0x218] sm:$0xff] }
 0x32a   : > { %10531 = vmatprep.subr.mxu1 %v5896_v38  ;;  %10635 = vmatprep.subr.mxu0 %v6282_v4 }
 0x32b   : > { %10356 = vmatmul.mubr.f32.gmra.mxu1 %v13110_v28  ;;  %10466 = vmatmul.mubr.f32.gmra.mxu0 %v12903_v19  ;;  %v6280_v19 = vld [vmem:[#allocation8 + $0x2d0] sm:$0xff] }
 0x32c   : > { %10358 = vmatprep.mubr.f32.mxu1 %v13113_v53  ;;  %10468 = vmatprep.mubr.f32.mxu0 %v12908_v15  ;;  %v13126_v15 = vld [vmem:[#allocation2 + $0x51] sm:$0xff] }
 0x32d   : > { %10532 = vmatpush3.msra.mxu1 %v5896_v38  ;;  %10636 = vmatpush3.msra.mxu0 %v6282_v4  ;;  %v13185_v38 = vld [vmem:[#allocation2 + $0xc9] sm:$0xff] }
 0x32e   : > { %10533 = vmatprep.subr.mxu1 %v5895_v27  ;;  %10637 = vmatprep.subr.mxu0 %v6281_v0  ;;  %v5886_v4 = vld [vmem:[#allocation8 + $0x210] sm:$0xff] }
 0x32f   : > { %10359 = vmatmul.mubr.f32.gmra.mxu1 %v13118_v8  ;;  %10469 = vmatmul.mubr.f32.gmra.mxu0 %v12910_v57  ;;  %v6279_v57 = vld [vmem:[#allocation8 + $0x2c8] sm:$0xff] }
 0x330   : > { %10361 = vmatprep.mubr.f32.mxu1 %v13121_v36  ;;  %10471 = vmatprep.mubr.f32.mxu0 %v12920_v48  ;;  %v13134_v48 = vld [vmem:[#allocation2 + $0x61] sm:$0xff] }
 0x331   : > { %10534 = vmatpush3.msra.mxu1 %v5895_v27  ;;  %10638 = vmatpush3.msra.mxu0 %v6281_v0  ;;  %v13193_v27 = vld [vmem:[#allocation2 + $0xd9] sm:$0xff]  ;;  %v5885_v0 = vld [vmem:[#allocation8 + $0x208] sm:$0xff] }
 0x332   : > { %10535 = vmatprep.subr.mxu1 %v5894_v51  ;;  %10639 = vmatprep.subr.mxu0 %v6280_v19 }
 0x333   : > { %10362 = vmatmul.mubr.f32.gmra.mxu1 %v13126_v15  ;;  %10472 = vmatmul.mubr.f32.gmra.mxu0 %v12922_v44  ;;  %v6278_v44 = vld [vmem:[#allocation8 + $0x2c0] sm:$0xff] }
 0x334   : > { %10364 = vmatprep.mubr.f32.mxu1 %v13129_v11  ;;  %10474 = vmatprep.mubr.f32.mxu0 %v12931_v47  ;;  %v13142_v47 = vld [vmem:[#allocation2 + $0x71] sm:$0xff] }
 0x335   : > { %10536 = vmatpush3.msra.mxu1 %v5894_v51  ;;  %10640 = vmatpush3.msra.mxu0 %v6280_v19  ;;  %v13201_v51 = vld [vmem:[#allocation2 + $0xe9] sm:$0xff]  ;;  %v5884_v19 = vld [vmem:[#allocation8 + $0x200] sm:$0xff] }
 0x336   : > { %10537 = vmatprep.subr.mxu1 %v5893_v1  ;;  %10641 = vmatprep.subr.mxu0 %v6279_v57 }
 0x337   : > { %10365 = vmatmul.mubr.f32.gmra.mxu1 %v13134_v48  ;;  %10475 = vmatmul.mubr.f32.gmra.mxu0 %v12936_v39  ;;  %v6277_v39 = vld [vmem:[#allocation8 + $0x2b8] sm:$0xff] }
 0x338   : > { %10367 = vmatprep.mubr.f32.mxu1 %v13137_v2  ;;  %10477 = vmatprep.mubr.f32.mxu0 %v12941_v41  ;;  %v13150_v41 = vld [vmem:[#allocation2 + $0x81] sm:$0xff] }
 0x339   : > { %10538 = vmatpush3.msra.mxu1 %v5893_v1  ;;  %10642 = vmatpush3.msra.mxu0 %v6279_v57  ;;  %v13209_v1 = vld [vmem:[#allocation2 + $0xf9] sm:$0xff] }
 0x33a   : > { %10539 = vmatprep.subr.mxu1 %v5892_v16  ;;  %10643 = vmatprep.subr.mxu0 %v6278_v44  ;;  %v13212_v57 = vld [vmem:[#allocation8 + $0x378] sm:$0xff] }
 0x33b   : > { %10368 = vmatmul.mubr.f32.gmra.mxu1 %v13142_v47  ;;  %10478 = vmatmul.mubr.f32.gmra.mxu0 %v12943_v59  ;;  %v6276_v59 = vld [vmem:[#allocation8 + $0x2b0] sm:$0xff] }
 0x33c   : > { %10370 = vmatprep.mubr.f32.mxu1 %v13145_v17  ;;  %10480 = vmatprep.mubr.f32.mxu0 %v12950_v14  ;;  %v13158_v14 = vld [vmem:[#allocation2 + $0x91] sm:$0xff] }
 0x33d   : > { %10540 = vmatpush3.msra.mxu1 %v5892_v16  ;;  %10644 = vmatpush3.msra.mxu0 %v6278_v44  ;;  %v13220_v16 = vld [vmem:[#allocation2 + $0x109] sm:$0xff]  ;;  %v13233_v44 = vld [vmem:[#allocation2 + $0x121] sm:$0xff] }
 0x33e   : > { %10541 = vmatprep.subr.mxu1 %v5891_v24  ;;  %10645 = vmatprep.subr.mxu0 %v6277_v39 }
 0x33f   : > { %10371 = vmatmul.mubr.f32.gmra.mxu1 %v13150_v41  ;;  %10481 = vmatmul.mubr.f32.gmra.mxu0 %v12952_v62  ;;  %v6275_v62 = vld [vmem:[#allocation8 + $0x2a8] sm:$0xff] }
 0x340   : > { %10373 = vmatprep.mubr.f32.mxu1 %v13153_v9  ;;  %10483 = vmatprep.mubr.f32.mxu0 %v12961_v37  ;;  %v13166_v37 = vld [vmem:[#allocation2 + $0xa1] sm:$0xff] }
 0x341   : > { %10542 = vmatpush3.msra.mxu1 %v5891_v24  ;;  %10646 = vmatpush3.msra.mxu0 %v6277_v39  ;;  %v5494_v24 = vld [vmem:[#allocation2 + $0x187] sm:$0xff] }
 0x342   : > { %10543 = vmatprep.subr.mxu1 %v5890_v42  ;;  %10647 = vmatprep.subr.mxu0 %v6276_v59  ;;  %v13263_v39 = vld [vmem:[#allocation2 + $0x161] sm:$0xff] }
 0x343   : > { %10374 = vmatmul.mubr.f32.gmra.mxu1 %v13158_v14  ;;  %10484 = vmatmul.mubr.f32.gmra.mxu0 %v12966_v52  ;;  %v6274_v52 = vld [vmem:[#allocation8 + $0x2a0] sm:$0xff] }
 0x344   : > { %10376 = vmatprep.mubr.f32.mxu1 %v13161_v40  ;;  %10486 = vmatprep.mubr.f32.mxu0 %v12973_v22  ;;  %v13174_v22 = vld [vmem:[#allocation2 + $0xb1] sm:$0xff] }
 0x345   : > { %10544 = vmatpush3.msra.mxu1 %v5890_v42  ;;  %10648 = vmatpush3.msra.mxu0 %v6276_v59  ;;  %v5496_v42 = vld [vmem:[#allocation2 + $0x197] sm:$0xff] }
 0x346   : > { %10545 = vmatprep.subr.mxu1 %v5889_v50  ;;  %10649 = vmatprep.subr.mxu0 %v6275_v62  ;;  %v13273_v59 = vld [vmem:[#allocation2 + $0x179] sm:$0xff] }
 0x347   : > { %10377 = vmatmul.mubr.f32.gmra.mxu1 %v13166_v37  ;;  %10487 = vmatmul.mubr.f32.gmra.mxu0 %v12975_v54  ;;  %v6273_v54 = vld [vmem:[#allocation8 + $0x298] sm:$0xff] }
 0x348   : > { %10379 = vmatprep.mubr.f32.mxu1 %v13169_v55  ;;  %10489 = vmatprep.mubr.f32.mxu0 %v12985_v21  ;;  %v13182_v21 = vld [vmem:[#allocation2 + $0xc1] sm:$0xff] }
 0x349   : > { %10546 = vmatpush3.msra.mxu1 %v5889_v50  ;;  %10650 = vmatpush3.msra.mxu0 %v6275_v62  ;;  %v13276_v50 = vpop.f32.mrf.mxu0  ;;  %v7056_v62 = vld [vmem:[#allocation8 + $0x3f0] sm:$0xff] }
 0x34a   : > { %10547 = vmatprep.subr.mxu1 %v5888_v35  ;;  %10651 = vmatprep.subr.mxu0 %v6274_v52 }
 0x34b   : > { %10380 = vmatmul.mubr.f32.gmra.mxu1 %v13174_v22  ;;  %10490 = vmatmul.mubr.f32.gmra.mxu0 %v12987_v61  ;;  %v6272_v61 = vld [vmem:[#allocation8 + $0x290] sm:$0xff] }
 0x34c   : > { %10382 = vmatprep.mubr.f32.mxu1 %v13177_v60  ;;  %10492 = vmatprep.mubr.f32.mxu0 %v12996_v45  ;;  %v13190_v45 = vld [vmem:[#allocation2 + $0xd1] sm:$0xff] }
 0x34d   : > { %10548 = vmatpush3.msra.mxu1 %v5888_v35  ;;  %10652 = vmatpush3.msra.mxu0 %v6274_v52  ;;  %v13280_v35 = vld [vmem:[#allocation2 + $0x181] sm:$0xff] }
 0x34e   : > { %10549 = vmatprep.subr.mxu1 %v5887_v5  ;;  %10653 = vmatprep.subr.mxu0 %v6273_v54 }
 0x34f   : > { %10383 = vmatmul.mubr.f32.gmra.mxu1 %v13182_v21  ;;  %10493 = vmatmul.mubr.f32.gmra.mxu0 %v13000_v46  ;;  %v6271_v46 = vld [vmem:[#allocation8 + $0x288] sm:$0xff] }
 0x350   : > { %10385 = vmatprep.mubr.f32.mxu1 %v13185_v38  ;;  %10495 = vmatprep.mubr.f32.mxu0 %v13007_v49  ;;  %v13198_v49 = vld [vmem:[#allocation2 + $0xe1] sm:$0xff] }
 0x351   : > { %10550 = vmatpush3.msra.mxu1 %v5887_v5  ;;  %10654 = vmatpush3.msra.mxu0 %v6273_v54  ;;  %v7055_v5 = vld [vmem:[#allocation8 + $0x3e8] sm:$0xff] }
 0x352   : > { %10551 = vmatprep.subr.mxu1 %v5886_v4  ;;  %10655 = vmatprep.subr.mxu0 %v6272_v61  ;;  %v5836_v54 = vld [vmem:[#allocation2 + $0x28] sm:$0xff] }
 0x353   : > { %10386 = vmatmul.mubr.f32.gmra.mxu1 %v13190_v45  ;;  %10496 = vmatmul.mubr.f32.gmra.mxu0 %v13009_v10  ;;  %v6270_v10 = vld [vmem:[#allocation8 + $0x280] sm:$0xff] }
 0x354   : > { %10388 = vmatprep.mubr.f32.mxu1 %v13193_v27  ;;  %10498 = vmatprep.mubr.f32.mxu0 %v13019_v63  ;;  %v13206_v63 = vld [vmem:[#allocation2 + $0xf1] sm:$0xff] }
 0x355   : > { %10552 = vmatpush3.msra.mxu1 %v5886_v4  ;;  %10656 = vmatpush3.msra.mxu0 %v6272_v61  ;;  %v6670_v4 = vld [vmem:[#allocation8 + $0x370] sm:$0xff]  ;;  %v13288_v61 = vpop.f32.mrf.mxu1 }
 0x356   : > { %10553 = vmatprep.subr.mxu1 %v5885_v0  ;;  %10657 = vmatprep.subr.mxu0 %v6271_v46 }
 0x357   : > { %10389 = vmatmul.mubr.f32.gmra.mxu1 %v13198_v49  ;;  %10499 = vmatmul.mubr.f32.gmra.mxu0 %v13021_v12  ;;  %v7057_v12 = vld [vmem:[#allocation8 + $0x3f8] sm:$0xff] }
 0x358   : > { %10391 = vmatprep.mubr.f32.mxu1 %v13201_v51  ;;  %10501 = vmatprep.mubr.f32.mxu0 %v13030_v29  ;;  %v13216_v29 = vld [vmem:[#allocation2 + $0x101] sm:$0xff] }
 0x359   : > { %10554 = vmatpush3.msra.mxu1 %v5885_v0  ;;  %10658 = vmatpush3.msra.mxu0 %v6271_v46  ;;  %v13291_v0 = vld [vmem:[#allocation2 + $0x38] sm:$0xff] }
 0x35a   : > { %10555 = vmatprep.subr.mxu1 %v5884_v19  ;;  %10659 = vmatprep.subr.mxu0 %v6270_v10 }
 0x35b   : > { %10392 = vmatmul.mubr.f32.gmra.mxu1 %v13206_v63  ;;  %10502 = vmatmul.mubr.f32.gmra.mxu0 %v13034_v43  ;;  %v13225_v43 = vld [vmem:[#allocation2 + $0x111] sm:$0xff] }
 0x35c   : > { %10394 = vmatprep.mubr.f32.mxu1 %v13209_v1  ;;  %10504 = vmatprep.mubr.f32.mxu0 %v13041_v56  ;;  %v13228_v56 = vld [vmem:[#allocation2 + $0x119] sm:$0xff] }
 0x35d   : > { %10556 = vmatpush3.msra.mxu1 %v5884_v19  ;;  %10660 = vmatpush3.msra.mxu0 %v6270_v10  ;;  %v13294_v19 = vld [vmem:[#allocation2 + $0x40] sm:$0xff] }
 0x35e   : > { %10733 = vmatprep.subr.mxu1 %v13212_v57  ;;  %10837 = vmatprep.subr.mxu0 %v7057_v12  ;;  %v6668_v10 = vld [vmem:[#allocation8 + $0x360] sm:$0xff] }
 0x35f   : > { %10395 = vmatmul.mubr.f32.gmra.mxu1 %v13216_v29  ;;  %10505 = vmatmul.mubr.f32.gmra.mxu0 %v13043_v23  ;;  %v13236_v23 = vld [vmem:[#allocation2 + $0x129] sm:$0xff] }
 0x360   : > { %10397 = vmatprep.mubr.f32.mxu1 %v13220_v16  ;;  %10507 = vmatprep.mubr.f32.mxu0 %v13053_v3  ;;  %v13241_v3 = vld [vmem:[#allocation2 + $0x131] sm:$0xff] }
 0x363   : > { %10398 = vmatmul.mubr.f32.gmra.mxu1 %v13225_v43  ;;  %10508 = vmatmul.mubr.f32.gmra.mxu0 %v13055_v31  ;;  %v13244_v31 = vld [vmem:[#allocation2 + $0x139] sm:$0xff] }
 0x364   : > { %10400 = vmatprep.mubr.f32.mxu1 %v13228_v56  ;;  %10510 = vmatprep.mubr.f32.mxu0 %v13063_v32  ;;  %v13249_v32 = vld [vmem:[#allocation2 + $0x141] sm:$0xff] }
 0x367   : > { %10401 = vmatmul.mubr.f32.gmra.mxu1 %v13233_v44  ;;  %10511 = vmatmul.mubr.f32.gmra.mxu0 %v13071_v34  ;;  %v13252_v34 = vld [vmem:[#allocation2 + $0x149] sm:$0xff] }
 0x368   : > { %10403 = vmatprep.mubr.f32.mxu1 %v13236_v23  ;;  %10513 = vmatprep.mubr.f32.mxu0 %v13075_v7  ;;  %v13257_v7 = vld [vmem:[#allocation2 + $0x151] sm:$0xff] }
 0x36b   : > { %10404 = vmatmul.mubr.f32.gmra.mxu1 %v13241_v3  ;;  %10514 = vmatmul.mubr.f32.gmra.mxu0 %v13077_v58  ;;  %v13260_v58 = vld [vmem:[#allocation2 + $0x159] sm:$0xff] }
 0x36c   : > { %10406 = vmatprep.mubr.f32.mxu1 %v13244_v31  ;;  %10516 = vmatprep.mubr.f32.mxu0 %v13085_v33  ;;  %v5495_v33 = vld [vmem:[#allocation2 + $0x18f] sm:$0xff] }
 0x36f   : > { %10407 = vmatmul.mubr.f32.gmra.mxu1 %v13249_v32  ;;  %10517 = vmatmul.mubr.f32.gmra.mxu0 %v13087_v25  ;;  %v13266_v25 = vld [vmem:[#allocation2 + $0x169] sm:$0xff] }
 0x370   : > { %10409 = vmatprep.mubr.f32.mxu1 %v13252_v34  ;;  %10519 = vmatprep.mubr.f32.mxu0 %v13094_v30  ;;  %v13270_v30 = vld [vmem:[#allocation2 + $0x171] sm:$0xff] }
 0x373   : > { %10410 = vmatmul.mubr.f32.gmra.mxu1 %v13257_v7  ;;  %10520 = vmatmul.mubr.f32.gmra.mxu0 %v5494_v24 }
 0x374   : > { %10412 = vmatprep.mubr.f32.mxu1 %v13260_v58  ;;  %10522 = vmatprep.mubr.f32.mxu0 %v5495_v33 }
 0x377   : > { %10413 = vmatmul.mubr.f32.gmra.mxu1 %v13263_v39  ;;  %10523 = vmatmul.mubr.f32.gmra.mxu0 %v5496_v42 }
 0x378   : > { %10415 = vmatprep.mubr.f32.mxu1 %v13266_v25  ;;  %10661 = vmatprep.mubr.f32.mxu0 %v13102_v6  ;;  %v5835_v6 = vld [vmem:[#allocation2 + $0x20] sm:$0xff] }
 0x37b   : > { %10416 = vmatmul.mubr.f32.gmra.mxu1 %v13270_v30  ;;  %10662 = vmatmul.mubr.f32.vlgmr.msra.gmra.mxu0 %v13105_v13 }
 0x37c   : > { %10418 = vmatprep.mubr.f32.mxu1 %v13273_v59  ;;  %10664 = vmatprep.mubr.f32.mxu0 %v13110_v28 }
 0x37d   : > { %10838 = vmatpush3.msra.mxu0 %v7057_v12 }
 0x37e   : > { %10839 = vmatprep.subr.mxu0 %v7056_v62 }
 0x37f   : > { %10419 = vmatmul.mubr.f32.gmra.mxu1 %v13280_v35  ;;  %v10250_v52 = vpop.f32.mrf.mxu0  ;;  %10665 = vmatmul.mubr.f32.gmra.mxu0 %v13113_v53 }
 0x380   : > { %10557 = vmatprep.mubr.f32.mxu1 %v5835_v6  ;;  %10667 = vmatprep.mubr.f32.mxu0 %v13118_v8  ;;  %v6669_v8 = vld [vmem:[#allocation8 + $0x368] sm:$0xff]  ;;  %v6667_v6 = vld [vmem:[#allocation8 + $0x358] sm:$0xff] }
 0x381   : > { %v4818_v13 = vpop.f32.mrf.mxu0  ;;  %10840 = vmatpush3.msra.mxu0 %v7056_v62 }
 0x382   : > { %10841 = vmatprep.subr.mxu0 %v7055_v5 }
 0x383   : > { %10558 = vmatmul.mubr.f32.vlgmr.msra.gmra.mxu1 %v5836_v54  ;;  %v10253_v28 = vpop.f32.mrf.mxu0  ;;  %10668 = vmatmul.mubr.f32.gmra.mxu0 %v13121_v36  ;;  %v13309_v54 = vld [vmem:[#allocation2 + $0x58] sm:$0xff] }
 0x384   : > { %10734 = vmatpush3.msra.mxu1 %v13212_v57  ;;  %10560 = vmatprep.mubr.f32.mxu1 %v13047_v26  ;;  %v7054_v57 = vld [vmem:[#allocation8 + $0x3e0] sm:$0xff]  ;;  %v6666_v28 = vld [vmem:[#allocation8 + $0x350] sm:$0xff] }
 0x385   : > { %10735 = vmatprep.subr.mxu1 %v6670_v4  ;;  %10670 = vmatprep.mubr.f32.mxu0 %v13126_v15  ;;  %v4827_v53 = vpop.f32.mrf.mxu0 }
 0x386   : > { %10736 = vmatpush3.msra.mxu1 %v6670_v4  ;;  %10842 = vmatpush3.msra.mxu0 %v7055_v5  ;;  %v7053_v5 = vld [vmem:[#allocation8 + $0x3d8] sm:$0xff] }
 0x387   : > { %v10146_v46 = vpop.f32.mrf.mxu1  ;;  %10561 = vmatmul.mubr.f32.gmra.mxu1 %v13291_v0  ;;  %v10256_v36 = vpop.f32.mrf.mxu0  ;;  %10671 = vmatmul.mubr.f32.gmra.mxu0 %v13129_v11  ;;  %v13303_v11 = vld [vmem:[#allocation2 + $0x50] sm:$0xff] }
 0x388   : > { %v4647_v12 = vadd.f32 %v10146_v46, %v13068_v18  ;;  %10563 = vmatprep.mubr.f32.mxu1 %v13294_v19  ;;  %10737 = vmatprep.subr.mxu1 %v6669_v8 }
 0x389   : > { %v4432_v15 = vpop.f32.mrf.mxu1  ;;  %10673 = vmatprep.mubr.f32.mxu0 %v13134_v48  ;;  %10738 = vmatpush3.msra.mxu1 %v6669_v8  ;;  %v4836_v24 = vpop.f32.mrf.mxu0  ;;  %v7052_v8 = vld [vmem:[#allocation8 + $0x3d0] sm:$0xff] }
 0x38a   : > { %v13300_v33 = vadd.f32 %v10250_v52, %v4647_v12  ;;  %10739 = vmatprep.subr.mxu1 %v6668_v10  ;;  %10843 = vmatprep.subr.mxu0 %v7054_v57 }
 0x38b   : > { %v10149_v42 = vpop.f32.mrf.mxu1  ;;  %10564 = vmatmul.mubr.f32.gmra.mxu1 %v13047_v26  ;;  %v10259_v62 = vpop.f32.mrf.mxu0  ;;  %10674 = vmatmul.mubr.f32.gmra.mxu0 %v13137_v2 }
 0x38c   : > { %10566 = vmatprep.mubr.f32.mxu1 %v13303_v11  ;;  %10676 = vmatprep.mubr.f32.mxu0 %v13142_v47  ;;  %v13321_v42 = vld [vmem:[#allocation2 + $0x68] sm:$0xff] }
 0x38d   : > { %v4441_v48 = vpop.f32.mrf.mxu1  ;;  %v4846_v13 = vpop.f32.mrf.mxu0  ;;  %10740 = vmatpush3.msra.mxu1 %v6668_v10  ;;  %10844 = vmatpush3.msra.mxu0 %v7054_v57 }
 0x38e   : > { %v4648_v52 = vadd.f32 %v13068_v18, %v4441_v48  ;;  %10741 = vmatprep.subr.mxu1 %v6667_v6  ;;  %10845 = vmatprep.subr.mxu0 %v7053_v5  ;;  %v7051_v13 = vld [vmem:[#allocation8 + $0x3c8] sm:$0xff] }
 0x38f   : > { %v10152_v4 = vpop.f32.mrf.mxu1  ;;  %10567 = vmatmul.mubr.f32.gmra.mxu1 %v13309_v54  ;;  %v10262_v2 = vpop.f32.mrf.mxu0  ;;  %10677 = vmatmul.mubr.f32.gmra.mxu0 %v13145_v17 }
 0x390   : > { %v13313_v46 = vadd.f32 %v4827_v53, %v4648_v52  ;;  %v4650_v47 = vadd.f32 %v10152_v4, %v13068_v18  ;;  %10569 = vmatprep.mubr.f32.mxu1 %v13047_v26  ;;  %10679 = vmatprep.mubr.f32.mxu0 %v13150_v41  ;;  %v13324_v53 = vld [vmem:[#allocation2 + $0x70] sm:$0xff]  ;;  %v6665_v41 = vld [vmem:[#allocation8 + $0x348] sm:$0xff] }
 0x391   : > { %v4450_v10 = vpop.f32.mrf.mxu1  ;;  %v4855_v57 = vpop.f32.mrf.mxu0  ;;  %10742 = vmatpush3.msra.mxu1 %v6667_v6  ;;  %10846 = vmatpush3.msra.mxu0 %v7053_v5 }
 0x392   : > { %v13318_v12 = vadd.f32 %v10256_v36, %v4650_v47  ;;  %v4649_v15 = vadd.f32 %v13068_v18, %v4450_v10  ;;  %10743 = vmatprep.subr.mxu1 %v6666_v28  ;;  %10847 = vmatprep.subr.mxu0 %v7052_v8  ;;  %v6664_v47 = vld [vmem:[#allocation8 + $0x340] sm:$0xff] }
 0x393   : > { %v10155_v17 = vpop.f32.mrf.mxu1  ;;  %10570 = vmatmul.mubr.f32.gmra.mxu1 %v13321_v42  ;;  %v10265_v48 = vpop.f32.mrf.mxu0  ;;  %10680 = vmatmul.mubr.f32.gmra.mxu0 %v13153_v9  ;;  %v13335_v9 = vld [vmem:[#allocation2 + $0x80] sm:$0xff] }
 0x394   : > { %v13327_v6 = vadd.f32 %v4836_v24, %v4649_v15  ;;  %v4651_v36 = vadd.f32 %v10155_v17, %v13068_v18  ;;  %10572 = vmatprep.mubr.f32.mxu1 %v13324_v53  ;;  %10682 = vmatprep.mubr.f32.mxu0 %v13158_v14  ;;  %v7050_v10 = vld [vmem:[#allocation8 + $0x3c0] sm:$0xff]  ;;  %v6663_v17 = vld [vmem:[#allocation8 + $0x338] sm:$0xff] }
 0x395   : > { %v4460_v5 = vpop.f32.mrf.mxu1  ;;  %v4864_v52 = vpop.f32.mrf.mxu0  ;;  %10744 = vmatpush3.msra.mxu1 %v6666_v28  ;;  %10848 = vmatpush3.msra.mxu0 %v7052_v8  ;;  %v13341_v8 = vld [vmem:[#allocation2 + $0x88] sm:$0xff] }
 0x396   : > { %v13332_v4 = vadd.f32 %v10259_v62, %v4651_v36  ;;  %10745 = vmatprep.subr.mxu1 %v6665_v41  ;;  %10849 = vmatprep.subr.mxu0 %v7051_v13  ;;  %v7049_v36 = vld [vmem:[#allocation8 + $0x3b8] sm:$0xff] }
 0x397   : > { %v10158_v2 = vpop.f32.mrf.mxu1  ;;  %10573 = vmatmul.mubr.f32.gmra.mxu1 %v13047_v26  ;;  %v10268_v24 = vpop.f32.mrf.mxu0  ;;  %10683 = vmatmul.mubr.f32.gmra.mxu0 %v13161_v40 }
 0x398   : > { %10575 = vmatprep.mubr.f32.mxu1 %v13335_v9  ;;  %10685 = vmatprep.mubr.f32.mxu0 %v13166_v37 }
 0x399   : > { %v4469_v14 = vpop.f32.mrf.mxu1  ;;  %v4874_v28 = vpop.f32.mrf.mxu0  ;;  %10746 = vmatpush3.msra.mxu1 %v6665_v41  ;;  %10850 = vmatpush3.msra.mxu0 %v7051_v13 }
 0x39a   : > { %v4652_v62 = vadd.f32 %v13068_v18, %v4469_v14  ;;  %10747 = vmatprep.subr.mxu1 %v6664_v47  ;;  %10851 = vmatprep.subr.mxu0 %v7050_v10  ;;  %v13353_v28 = vld [vmem:[#allocation2 + $0x98] sm:$0xff] }
 0x39b   : > { %v10161_v15 = vpop.f32.mrf.mxu1  ;;  %10576 = vmatmul.mubr.f32.gmra.mxu1 %v13341_v8  ;;  %v10271_v40 = vpop.f32.mrf.mxu0  ;;  %10686 = vmatmul.mubr.f32.gmra.mxu0 %v13169_v55 }
 0x39c   : > { %v13345_v5 = vadd.f32 %v4855_v57, %v4652_v62  ;;  %v4654_v37 = vadd.f32 %v10161_v15, %v13068_v18  ;;  %10578 = vmatprep.mubr.f32.mxu1 %v13047_v26  ;;  %10688 = vmatprep.mubr.f32.mxu0 %v13174_v22  ;;  %v13356_v57 = vld [vmem:[#allocation2 + $0xa0] sm:$0xff]  ;;  %v6662_v22 = vld [vmem:[#allocation8 + $0x330] sm:$0xff] }
 0x39d   : > { %v4478_v41 = vpop.f32.mrf.mxu1  ;;  %v4883_v13 = vpop.f32.mrf.mxu0  ;;  %10748 = vmatpush3.msra.mxu1 %v6664_v47  ;;  %10852 = vmatpush3.msra.mxu0 %v7050_v10  ;;  %v7048_v15 = vld [vmem:[#allocation8 + $0x3b0] sm:$0xff] }
 0x39e   : > { %v13350_v2 = vadd.f32 %v10265_v48, %v4654_v37  ;;  %v4653_v14 = vadd.f32 %v13068_v18, %v4478_v41  ;;  %10749 = vmatprep.subr.mxu1 %v6663_v17  ;;  %10853 = vmatprep.subr.mxu0 %v7049_v36 }
 0x39f   : > { %v10164_v55 = vpop.f32.mrf.mxu1  ;;  %10579 = vmatmul.mubr.f32.gmra.mxu1 %v13353_v28  ;;  %v10274_v62 = vpop.f32.mrf.mxu0  ;;  %10689 = vmatmul.mubr.f32.gmra.mxu0 %v13177_v60  ;;  %v13367_v60 = vld [vmem:[#allocation2 + $0xb0] sm:$0xff] }
 0x3a0   : > { %v13359_v47 = vadd.f32 %v4864_v52, %v4653_v14  ;;  %v4655_v48 = vadd.f32 %v10164_v55, %v13068_v18  ;;  %10581 = vmatprep.mubr.f32.mxu1 %v13356_v57  ;;  %10691 = vmatprep.mubr.f32.mxu0 %v13182_v21  ;;  %v6661_v14 = vld [vmem:[#allocation8 + $0x328] sm:$0xff] }
 0x3a1   : > { %v4488_v10 = vpop.f32.mrf.mxu1  ;;  %v4892_v40 = vpop.f32.mrf.mxu0  ;;  %10750 = vmatpush3.msra.mxu1 %v6663_v17  ;;  %10854 = vmatpush3.msra.mxu0 %v7049_v36  ;;  %v7047_v55 = vld [vmem:[#allocation8 + $0x3a8] sm:$0xff]  ;;  %v13373_v36 = vld [vmem:[#allocation2 + $0xb8] sm:$0xff] }
 0x3a2   : > { %v13364_v37 = vadd.f32 %v10268_v24, %v4655_v48  ;;  %10751 = vmatprep.subr.mxu1 %v6662_v22  ;;  %10855 = vmatprep.subr.mxu0 %v7048_v15  ;;  %v6660_v10 = vld [vmem:[#allocation8 + $0x320] sm:$0xff] }
 0x3a3   : > { %v10167_v41 = vpop.f32.mrf.mxu1  ;;  %10582 = vmatmul.mubr.f32.gmra.mxu1 %v13047_v26  ;;  %v10277_v52 = vpop.f32.mrf.mxu0  ;;  %10692 = vmatmul.mubr.f32.gmra.mxu0 %v13185_v38 }
 0x3a4   : > { %14211 = vst [vmem:[#allocation42_spill] sm:$0xff] %v13364_v37  ;;  %10584 = vmatprep.mubr.f32.mxu1 %v13367_v60  ;;  %10694 = vmatprep.mubr.f32.mxu0 %v13190_v45  ;;  %v7046_v41 = vld [vmem:[#allocation8 + $0x3a0] sm:$0xff] }
 0x3a5   : > { %v4497_v21 = vpop.f32.mrf.mxu1  ;;  %v4902_v17 = vpop.f32.mrf.mxu0  ;;  %10752 = vmatpush3.msra.mxu1 %v6662_v22  ;;  %10856 = vmatpush3.msra.mxu0 %v7048_v15 }
 0x3a6   : > { %v4656_v24 = vadd.f32 %v13068_v18, %v4497_v21  ;;  %10753 = vmatprep.subr.mxu1 %v6661_v14  ;;  %10857 = vmatprep.subr.mxu0 %v7047_v55 }
 0x3a7   : > { %v10170_v48 = vpop.f32.mrf.mxu1  ;;  %10585 = vmatmul.mubr.f32.gmra.mxu1 %v13373_v36  ;;  %v10280_v38 = vpop.f32.mrf.mxu0  ;;  %10695 = vmatmul.mubr.f32.gmra.mxu0 %v13193_v27 }
 0x3a8   : > { %v13377_v37 = vadd.f32 %v4883_v13, %v4656_v24  ;;  %v4658_v45 = vadd.f32 %v10170_v48, %v13068_v18  ;;  %10587 = vmatprep.mubr.f32.mxu1 %v13047_v26  ;;  %10697 = vmatprep.mubr.f32.mxu0 %v13198_v49  ;;  %v13385_v38 = vld [vmem:[#allocation2 + $0xc8] sm:$0xff]  ;;  %v13388_v13 = vld [vmem:[#allocation2 + $0xd0] sm:$0xff]  ;;  %v6659_v49 = vld [vmem:[#allocation8 + $0x318] sm:$0xff] }
 0x3a9   : > { %v4506_v22 = vpop.f32.mrf.mxu1  ;;  %v4911_v15 = vpop.f32.mrf.mxu0  ;;  %10754 = vmatpush3.msra.mxu1 %v6661_v14  ;;  %10858 = vmatpush3.msra.mxu0 %v7047_v55  ;;  %v7045_v48 = vld [vmem:[#allocation8 + $0x398] sm:$0xff] }
 0x3aa   : > { %v13382_v21 = vadd.f32 %v10274_v62, %v4658_v45  ;;  %v4657_v17 = vadd.f32 %v13068_v18, %v4506_v22  ;;  %10755 = vmatprep.subr.mxu1 %v6660_v10  ;;  %10859 = vmatprep.subr.mxu0 %v7046_v41 }
 0x3ab   : > { %v10173_v27 = vpop.f32.mrf.mxu1  ;;  %10588 = vmatmul.mubr.f32.gmra.mxu1 %v13385_v38  ;;  %v10283_v24 = vpop.f32.mrf.mxu0  ;;  %10698 = vmatmul.mubr.f32.gmra.mxu0 %v13201_v51  ;;  %v13399_v51 = vld [vmem:[#allocation2 + $0xe0] sm:$0xff] }
 0x3ac   : > { %14212 = vst [vmem:[#allocation43_spill] sm:$0xff] %v13382_v21  ;;  %v13391_v14 = vadd.f32 %v4892_v40, %v4657_v17  ;;  %v4659_v62 = vadd.f32 %v10173_v27, %v13068_v18  ;;  %10590 = vmatprep.mubr.f32.mxu1 %v13388_v13  ;;  %10700 = vmatprep.mubr.f32.mxu0 %v13206_v63  ;;  %v6658_v17 = vld [vmem:[#allocation8 + $0x310] sm:$0xff] }
 0x3ad   : > { %v4516_v55 = vpop.f32.mrf.mxu1  ;;  %v4920_v45 = vpop.f32.mrf.mxu0  ;;  %10756 = vmatpush3.msra.mxu1 %v6660_v10  ;;  %10860 = vmatpush3.msra.mxu0 %v7046_v41  ;;  %v7044_v27 = vld [vmem:[#allocation8 + $0x390] sm:$0xff]  ;;  %v13405_v41 = vld [vmem:[#allocation2 + $0xe8] sm:$0xff] }
 0x3ae   : > { %v13396_v22 = vadd.f32 %v10277_v52, %v4659_v62  ;;  %10757 = vmatprep.subr.mxu1 %v6659_v49  ;;  %10861 = vmatprep.subr.mxu0 %v7045_v48  ;;  %v7043_v62 = vld [vmem:[#allocation8 + $0x388] sm:$0xff] }
 0x3af   : > { %v10176_v21 = vpop.f32.mrf.mxu1  ;;  %10591 = vmatmul.mubr.f32.gmra.mxu1 %v13047_v26  ;;  %v10286_v40 = vpop.f32.mrf.mxu0  ;;  %10701 = vmatmul.mubr.f32.gmra.mxu0 %v13209_v1 }
 0x3b0   : > { %10593 = vmatprep.mubr.f32.mxu1 %v13399_v51  ;;  %10703 = vmatprep.mubr.f32.mxu0 %v13216_v29  ;;  %v6657_v21 = vld [vmem:[#allocation8 + $0x308] sm:$0xff] }
 0x3b1   : > { %v4525_v63 = vpop.f32.mrf.mxu1  ;;  %v4930_v10 = vpop.f32.mrf.mxu0  ;;  %10758 = vmatpush3.msra.mxu1 %v6659_v49  ;;  %10862 = vmatpush3.msra.mxu0 %v7045_v48  ;;  %v13412_v49 = vld [vmem:[#allocation2] sm:$0xff] }
 0x3b2   : > { %v4660_v52 = vadd.f32 %v13068_v18, %v4525_v63  ;;  %10759 = vmatprep.subr.mxu1 %v6658_v17  ;;  %10863 = vmatprep.subr.mxu0 %v7044_v27 }
 0x3b3   : > { %v10179_v26 = vpop.f32.mrf.mxu1  ;;  %10594 = vmatmul.mubr.f32.gmra.mxu1 %v13405_v41  ;;  %v10289_v1 = vpop.f32.mrf.mxu0  ;;  %10704 = vmatmul.mubr.f32.gmra.mxu0 %v13220_v16  ;;  %v13421_v16 = vld [vmem:[%s14027_s4] ss:$0 sm:$0xff] }
 0x3b4   : > { %v13409_v55 = vadd.f32 %v4911_v15, %v4660_v52  ;;  %v4662_v29 = vadd.f32 %v10179_v26, %v13068_v18  ;;  %10596 = vmatprep.mubr.f32.mxu1 %v13412_v49  ;;  %10706 = vmatprep.mubr.f32.mxu0 %v13225_v43  ;;  %v13424_v18 = vld [vmem:[#allocation2 + $0xf8] sm:$0xff]  ;;  %v13427_v43 = vld [vmem:[#allocation2 + $0x100] sm:$0xff] }
 0x3b5   : > { %v4534_v48 = vpop.f32.mrf.mxu1  ;;  %v4939_v63 = vpop.f32.mrf.mxu0  ;;  %10760 = vmatpush3.msra.mxu1 %v6658_v17  ;;  %10864 = vmatpush3.msra.mxu0 %v7044_v27  ;;  %v7042_v27 = vld [vmem:[#allocation8 + $0x380] sm:$0xff] }
 0x3b6   : > { %14213 = vst [vmem:[#allocation32_spill] sm:$0xff] %v13409_v55  ;;  %v13416_v10 = vadd.f32 %v10283_v24, %v4662_v29  ;;  %v4661_v15 = vadd.f32 %v13421_v16, %v4534_v48  ;;  %10761 = vmatprep.subr.mxu1 %v6657_v21  ;;  %10865 = vmatprep.subr.mxu0 %v7043_v62  ;;  %v6656_v24 = vld [vmem:[#allocation8 + $0x300] sm:$0xff] }
 0x3b7   : > { %v10182_v52 = vpop.f32.mrf.mxu1  ;;  %10597 = vmatmul.mubr.f32.gmra.mxu1 %v13424_v18  ;;  %v10292_v17 = vpop.f32.mrf.mxu0  ;;  %10707 = vmatmul.mubr.f32.gmra.mxu0 %v13228_v56  ;;  %v13438_v56 = vld [vmem:[#allocation2 + $0x110] sm:$0xff] }
 0x3b8   : > { %14214 = vst [vmem:[#allocation36_spill] sm:$0xff] %v13416_v10  ;;  %v13430_v26 = vadd.f32 %v4920_v45, %v4661_v15  ;;  %v4663_v1 = vadd.f32 %v13421_v16, %v10182_v52  ;;  %10599 = vmatprep.mubr.f32.mxu1 %v13427_v43  ;;  %10709 = vmatprep.mubr.f32.mxu0 %v13233_v44  ;;  %v13441_v15 = vld [vmem:[#allocation8 + $0x478] sm:$0xff] }
 0x3b9   : > { %v4544_v29 = vpop.f32.mrf.mxu1  ;;  %v4948_v48 = vpop.f32.mrf.mxu0  ;;  %10762 = vmatpush3.msra.mxu1 %v6657_v21  ;;  %10866 = vmatpush3.msra.mxu0 %v7043_v62  ;;  %v13446_v62 = vld [vmem:[#allocation2 + $0x118] sm:$0xff] }
 0x3ba   : > { %v13435_v10 = vadd.f32 %v10286_v40, %v4663_v1  ;;  %10763 = vmatprep.subr.mxu1 %v6656_v24  ;;  %10867 = vmatprep.subr.mxu0 %v7042_v27 }
 0x3bb   : > { %v10185_v55 = vpop.f32.mrf.mxu1  ;;  %10600 = vmatmul.mubr.f32.gmra.mxu1 %v13412_v49  ;;  %v10295_v45 = vpop.f32.mrf.mxu0  ;;  %10710 = vmatmul.mubr.f32.gmra.mxu0 %v13236_v23 }
 0x3bc   : > { %10602 = vmatprep.mubr.f32.mxu1 %v13438_v56  ;;  %10712 = vmatprep.mubr.f32.mxu0 %v13241_v3 }
 0x3bd   : > { %v4553_v44 = vpop.f32.mrf.mxu1  ;;  %v4958_v21 = vpop.f32.mrf.mxu0  ;;  %10764 = vmatpush3.msra.mxu1 %v6656_v24  ;;  %10868 = vmatpush3.msra.mxu0 %v7042_v27 }
 0x3be   : > { %v4664_v40 = vadd.f32 %v13421_v16, %v4553_v44  ;;  %10941 = vmatprep.subr.mxu1 %v13441_v15  ;;  %v13459_v44 = vld [vmem:[#allocation2 + $0x128] sm:$0xff] }
 0x3bf   : > { %v10188_v55 = vpop.f32.mrf.mxu1  ;;  %10603 = vmatmul.mubr.f32.gmra.mxu1 %v13446_v62  ;;  %v10298_v23 = vpop.f32.mrf.mxu0  ;;  %10713 = vmatmul.mubr.f32.gmra.mxu0 %v13244_v31  ;;  %v13462_v31 = vld [vmem:[#allocation2 + $0x130] sm:$0xff] }
 0x3c0   : > { %v13451_v52 = vadd.f32 %v4939_v63, %v4664_v40  ;;  %v4666_v3 = vadd.f32 %v13421_v16, %v10188_v55  ;;  %10605 = vmatprep.mubr.f32.mxu1 %v13412_v49  ;;  %10715 = vmatprep.mubr.f32.mxu0 %v13249_v32 }
 0x3c1   : > { %v4562_v24 = vpop.f32.mrf.mxu1  ;;  %v4967_v27 = vpop.f32.mrf.mxu0 }
 0x3c2   : > { %v13456_v1 = vadd.f32 %v10292_v17, %v4666_v3  ;;  %v4665_v29 = vadd.f32 %v13421_v16, %v4562_v24  ;;  %v13473_v24 = vld [vmem:[#allocation2 + $0x140] sm:$0xff] }
 0x3c3   : > { %v10191_v21 = vpop.f32.mrf.mxu1  ;;  %10606 = vmatmul.mubr.f32.gmra.mxu1 %v13459_v44  ;;  %v10301_v63 = vpop.f32.mrf.mxu0  ;;  %10716 = vmatmul.mubr.f32.gmra.mxu0 %v13252_v34 }
 0x3c4   : > { %14215 = vst [vmem:[#allocation45_spill] sm:$0xff] %v13456_v1  ;;  %v13465_v40 = vadd.f32 %v4948_v48, %v4665_v29  ;;  %v4667_v32 = vadd.f32 %v13421_v16, %v10191_v21  ;;  %10608 = vmatprep.mubr.f32.mxu1 %v13462_v31  ;;  %10718 = vmatprep.mubr.f32.mxu0 %v13257_v7  ;;  %v13479_v29 = vld [vmem:[#allocation2 + $0x148] sm:$0xff] }
 0x3c5   : > { %v4572_v17 = vpop.f32.mrf.mxu1  ;;  %v4976_v55 = vpop.f32.mrf.mxu0 }
 0x3c6   : > { %v13470_v23 = vadd.f32 %v10295_v45, %v4667_v32 }
 0x3c7   : > { %v10194_v3 = vpop.f32.mrf.mxu1  ;;  %10609 = vmatmul.mubr.f32.gmra.mxu1 %v13412_v49  ;;  %v10304_v1 = vpop.f32.mrf.mxu0  ;;  %10719 = vmatmul.mubr.f32.gmra.mxu0 %v13260_v58 }
 0x3c8   : > { %14216 = vst [vmem:[#allocation44_spill] sm:$0xff] %v13470_v23  ;;  %10611 = vmatprep.mubr.f32.mxu1 %v13473_v24  ;;  %10721 = vmatprep.mubr.f32.mxu0 %v13263_v39 }
 0x3c9   : > { %v4581_v34 = vpop.f32.mrf.mxu1  ;;  %v4986_v48 = vpop.f32.mrf.mxu0 }
 0x3ca   : > { %v4668_v7 = vadd.f32 %v13421_v16, %v4581_v34  ;;  %v13491_v48 = vld [vmem:[#allocation2 + $0x158] sm:$0xff] }
 0x3cb   : > { %v10197_v45 = vpop.f32.mrf.mxu1  ;;  %10612 = vmatmul.mubr.f32.gmra.mxu1 %v13479_v29  ;;  %v10307_v21 = vpop.f32.mrf.mxu0  ;;  %10722 = vmatmul.mubr.f32.gmra.mxu0 %v13266_v25  ;;  %v13494_v25 = vld [vmem:[#allocation2 + $0x160] sm:$0xff] }
 0x3cc   : > { %v13483_v32 = vadd.f32 %v4967_v27, %v4668_v7  ;;  %v4670_v58 = vadd.f32 %v13421_v16, %v10197_v45  ;;  %10614 = vmatprep.mubr.f32.mxu1 %v13412_v49  ;;  %10724 = vmatprep.mubr.f32.mxu0 %v13270_v30 }
 0x3cd   : > { %v4590_v39 = vpop.f32.mrf.mxu1  ;;  %v4995_v17 = vpop.f32.mrf.mxu0 }
 0x3ce   : > { %14217 = vst [vmem:[#allocation33_spill] sm:$0xff] %v13483_v32  ;;  %v13488_v3 = vadd.f32 %v10301_v63, %v4670_v58  ;;  %v4669_v34 = vadd.f32 %v13421_v16, %v4590_v39  ;;  %v6266_v58 = vld [vmem:[#allocation2 + $0x189] sm:$0xff] }
 0x3cf   : > { %v10200_v23 = vpop.f32.mrf.mxu1  ;;  %10615 = vmatmul.mubr.f32.gmra.mxu1 %v13491_v48  ;;  %v10310_v27 = vpop.f32.mrf.mxu0  ;;  %10725 = vmatmul.mubr.f32.gmra.mxu0 %v13273_v59  ;;  %v6267_v59 = vld [vmem:[#allocation2 + $0x191] sm:$0xff] }
 0x3d0   : > { %14218 = vst [vmem:[#allocation37_spill] sm:$0xff] %v13488_v3  ;;  %v13497_v7 = vadd.f32 %v4976_v55, %v4669_v34  ;;  %v4671_v30 = vadd.f32 %v13421_v16, %v10200_v23  ;;  %10617 = vmatprep.mubr.f32.mxu1 %v13494_v25  ;;  %10727 = vmatprep.mubr.f32.mxu0 %v13280_v35  ;;  %v13505_v3 = vld [vmem:[#allocation2 + $0x170] sm:$0xff]  ;;  %v6268_v55 = vld [vmem:[#allocation2 + $0x199] sm:$0xff] }
 0x3d1   : > { %v4600_v63 = vpop.f32.mrf.mxu1  ;;  %v5004_v45 = vpop.f32.mrf.mxu0  ;;  %14221 = vst [vmem:[#allocation13_spill] sm:$0xff] %v13505_v3 }
 0x3d2   : > { %14219 = vst [vmem:[#allocation18_spill] sm:$0xff] %v13497_v7  ;;  %v13502_v21 = vadd.f32 %v10304_v1, %v4671_v30  ;;  %v13509_v63 = vld [vmem:[#allocation2 + $0x178] sm:$0xff]  ;;  %v13520_v7 = vld [vmem:[#allocation2 + $0x188] sm:$0xff] }
 0x3d3   : > { %v10203_v39 = vpop.f32.mrf.mxu1  ;;  %10618 = vmatmul.mubr.f32.gmra.mxu1 %v13412_v49  ;;  %v10313_v32 = vpop.f32.mrf.mxu0  ;;  %10728 = vmatmul.mubr.f32.gmra.mxu0 %v6266_v58 }
 0x3d4   : > { %14220 = vst [vmem:[#allocation19_spill] sm:$0xff] %v13502_v21  ;;  %10620 = vmatprep.mubr.f32.mxu1 %v13505_v3  ;;  %10730 = vmatprep.mubr.f32.mxu0 %v6267_v59 }
 0x3d5   : > { %v4609_v23 = vpop.f32.mrf.mxu1  ;;  %v5014_v34 = vpop.f32.mrf.mxu0 }
 0x3d6   : > { %v4672_v35 = vadd.f32 %v13421_v16, %v4609_v23 }
 0x3d7   : > { %v10206_v1 = vpop.f32.mrf.mxu1  ;;  %10621 = vmatmul.mubr.f32.gmra.mxu1 %v13509_v63  ;;  %v10316_v30 = vpop.f32.mrf.mxu0  ;;  %10731 = vmatmul.mubr.f32.gmra.mxu0 %v6268_v55  ;;  %v13523_v55 = vld [vmem:[#allocation2 + $0x190] sm:$0xff] }
 0x3d8   : > { %v13512_v39 = vadd.f32 %v4995_v17, %v4672_v35  ;;  %v4674_v58 = vadd.f32 %v13421_v16, %v10206_v1  ;;  %10623 = vmatprep.mubr.f32.mxu1 %v13412_v49  ;;  %10869 = vmatprep.mubr.f32.mxu0 %v13291_v0 }
 0x3d9   : > { %v4618_v59 = vpop.f32.mrf.mxu1  ;;  %v5023_v21 = vpop.f32.mrf.mxu0 }
 0x3da   : > { %v13517_v34 = vadd.f32 %v10310_v27, %v4674_v58  ;;  %v4673_v23 = vadd.f32 %v13421_v16, %v4618_v59  ;;  %v6607_v59 = vld [vmem:[#allocation2 + $0x37] sm:$0xff] }
 0x3db   : > { %v10209_v3 = vpop.f32.mrf.mxu1  ;;  %10624 = vmatmul.mubr.f32.gmra.mxu1 %v13520_v7  ;;  %v10455_v17 = vpop.f32.mrf.mxu0  ;;  %10870 = vmatmul.mubr.f32.vlgmr.msra.gmra.mxu0 %v13294_v19  ;;  %v4645_v19 = vadd.f32 %v13421_v16, %v13288_v61 }
 0x3dc   : > { %14222 = vst [vmem:[#allocation14_spill] sm:$0xff] %v13517_v34  ;;  %v13526_v35 = vadd.f32 %v5004_v45, %v4673_v23  ;;  %v4675_v0 = vadd.f32 %v13421_v16, %v10209_v3  ;;  %10626 = vmatprep.mubr.f32.mxu1 %v13523_v55  ;;  %10872 = vmatprep.mubr.f32.mxu0 %v13412_v49 }
 0x3dd   : > { %v4628_v27 = vpop.f32.mrf.mxu1  ;;  %v5580_v1 = vpop.f32.mrf.mxu0 }
 0x3de   : > { %14223 = vst [vmem:[#allocation40_spill] sm:$0xff] %v13526_v35  ;;  %v13531_v30 = vadd.f32 %v10313_v32, %v4675_v0  ;;  %v6608_v27 = vld [vmem:[#allocation2 + $0x3f] sm:$0xff]  ;;  %v7442_v32 = vld [vmem:[#allocation8 + $0x470] sm:$0xff] }
 0x3df   : > { %v10212_v58 = vpop.f32.mrf.mxu1  ;;  %10627 = vmatmul.mubr.f32.gmra.mxu1 %v13412_v49  ;;  %v10458_v34 = vpop.f32.mrf.mxu0  ;;  %10873 = vmatmul.mubr.f32.gmra.mxu0 %v13303_v11  ;;  %v5031_v11 = vadd.f32 %v13276_v50, %v4645_v19  ;;  %v6611_v50 = vld [vmem:[#allocation2 + $0x57] sm:$0xff] }
 0x3e0   : > { %14224 = vst [vmem:[#allocation20_spill] sm:$0xff] %v13531_v30  ;;  %10765 = vmatprep.mubr.f32.mxu1 %v6607_v59  ;;  %10875 = vmatprep.mubr.f32.mxu0 %v13309_v54  ;;  %v6609_v58 = vld [vmem:[#allocation2 + $0x47] sm:$0xff] }
 0x3e1   : > { %v4637_v3 = vpop.f32.mrf.mxu1  ;;  %v5590_v45 = vpop.f32.mrf.mxu0  ;;  %v7441_v59 = vld [vmem:[#allocation8 + $0x468] sm:$0xff] }
 0x3e2   : > { %v4676_v23 = vadd.f32 %v13421_v16, %v4637_v3  ;;  %v6610_v45 = vld [vmem:[#allocation2 + $0x4f] sm:$0xff] }
 0x3e3   : > { %v10351_v0 = vpop.f32.mrf.mxu1  ;;  %10766 = vmatmul.mubr.f32.vlgmr.msra.gmra.mxu1 %v6608_v27  ;;  %v10461_v30 = vpop.f32.mrf.mxu0  ;;  %10876 = vmatmul.mubr.f32.gmra.mxu0 %v13412_v49 }
 0x3e4   : > { %v13541_v35 = vadd.f32 %v5023_v21, %v4676_v23  ;;  %v5418_v61 = vadd.f32 %v10351_v0, %v13083_v20  ;;  %10768 = vmatprep.mubr.f32.mxu1 %v6609_v58  ;;  %10942 = vmatpush3.msra.mxu1 %v13441_v15  ;;  %v7440_v20 = vld [vmem:[#allocation8 + $0x460] sm:$0xff] }
 0x3e5   : > { %v5194_v54 = vpop.f32.mrf.mxu1  ;;  %10943 = vmatprep.subr.mxu1 %v7442_v32  ;;  %10878 = vmatprep.mubr.f32.mxu0 %v13321_v42  ;;  %v5599_v16 = vpop.f32.mrf.mxu0  ;;  %v6613_v58 = vld [vmem:[#allocation2 + $0x67] sm:$0xff] }
 0x3e6   : > { %v13546_v3 = vadd.f32 %v10455_v17, %v5418_v61  ;;  %v5417_v30 = vadd.f32 %v5194_v54, %v5031_v11  ;;  %10944 = vmatpush3.msra.mxu1 %v7442_v32  ;;  %v6612_v32 = vld [vmem:[#allocation2 + $0x5f] sm:$0xff]  ;;  %v6614_v54 = vld [vmem:[#allocation2 + $0x6f] sm:$0xff] }
 0x3e7   : > { %v10354_v27 = vpop.f32.mrf.mxu1  ;;  %10769 = vmatmul.mubr.f32.gmra.mxu1 %v6610_v45  ;;  %v10464_v21 = vpop.f32.mrf.mxu0  ;;  %10879 = vmatmul.mubr.f32.gmra.mxu0 %v13324_v53  ;;  %v7438_v45 = vld [vmem:[#allocation8 + $0x450] sm:$0xff] }
 0x3e8   : > { %v13549_v19 = vadd.f32 %v5580_v1, %v5417_v30  ;;  %v5419_v15 = vadd.f32 %v10354_v27, %v13300_v33  ;;  %10771 = vmatprep.mubr.f32.mxu1 %v6611_v50  ;;  %10945 = vmatprep.subr.mxu1 %v7441_v59  ;;  %v7439_v1 = vld [vmem:[#allocation8 + $0x458] sm:$0xff] }
 0x3e9   : > { %v5204_v42 = vpop.f32.mrf.mxu1  ;;  %10946 = vmatpush3.msra.mxu1 %v7441_v59  ;;  %v5608_v17 = vpop.f32.mrf.mxu0  ;;  %10881 = vmatprep.mubr.f32.mxu0 %v13412_v49  ;;  %v6615_v59 = vld [vmem:[#allocation2 + $0x77] sm:$0xff] }
 0x3ea   : > { %v13553_v23 = vadd.f32 %v10458_v34, %v5419_v15  ;;  %10947 = vmatprep.subr.mxu1 %v7440_v20  ;;  %v6616_v15 = vld [vmem:[#allocation2 + $0x7f] sm:$0xff] }
 0x3eb   : > { %v10357_v0 = vpop.f32.mrf.mxu1  ;;  %10772 = vmatmul.mubr.f32.gmra.mxu1 %v6612_v32  ;;  %v10467_v53 = vpop.f32.mrf.mxu0  ;;  %10882 = vmatmul.mubr.f32.gmra.mxu0 %v13335_v9  ;;  %v6617_v32 = vld [vmem:[#allocation2 + $0x87] sm:$0xff] }
 0x3ec   : > { %10774 = vmatprep.mubr.f32.mxu1 %v6613_v58  ;;  %10884 = vmatprep.mubr.f32.mxu0 %v13341_v8 }
 0x3ed   : > { %v5213_v33 = vpop.f32.mrf.mxu1  ;;  %v5618_v11 = vpop.f32.mrf.mxu0  ;;  %10948 = vmatpush3.msra.mxu1 %v7440_v20 }
 0x3ee   : > { %v5420_v61 = vadd.f32 %v5213_v33, %v13313_v46  ;;  %10949 = vmatprep.subr.mxu1 %v7439_v1  ;;  %v6619_v11 = vld [vmem:[#allocation2 + $0x97] sm:$0xff] }
 0x3ef   : > { %v10360_v34 = vpop.f32.mrf.mxu1  ;;  %10775 = vmatmul.mubr.f32.gmra.mxu1 %v6614_v54  ;;  %v10470_v30 = vpop.f32.mrf.mxu0  ;;  %10885 = vmatmul.mubr.f32.gmra.mxu0 %v13412_v49 }
 0x3f0   : > { %v13559_v27 = vadd.f32 %v5599_v16, %v5420_v61  ;;  %v5422_v9 = vadd.f32 %v10360_v34, %v13318_v12  ;;  %10777 = vmatprep.mubr.f32.mxu1 %v6615_v59  ;;  %10887 = vmatprep.mubr.f32.mxu0 %v13353_v28  ;;  %v7437_v16 = vld [vmem:[#allocation8 + $0x448] sm:$0xff]  ;;  %v6620_v34 = vld [vmem:[#allocation2 + $0x9f] sm:$0xff] }
 0x3f1   : > { %v5222_v8 = vpop.f32.mrf.mxu1  ;;  %v5627_v50 = vpop.f32.mrf.mxu0  ;;  %10950 = vmatpush3.msra.mxu1 %v7439_v1  ;;  %v6618_v1 = vld [vmem:[#allocation2 + $0x8f] sm:$0xff]  ;;  %v6621_v59 = vld [vmem:[#allocation2 + $0xa7] sm:$0xff] }
 0x3f2   : > { %v13563_v46 = vadd.f32 %v10464_v21, %v5422_v9  ;;  %v5421_v20 = vadd.f32 %v5222_v8, %v13327_v6  ;;  %10951 = vmatprep.subr.mxu1 %v7438_v45 }
 0x3f3   : > { %v10363_v42 = vpop.f32.mrf.mxu1  ;;  %10778 = vmatmul.mubr.f32.gmra.mxu1 %v6616_v15  ;;  %v10473_v0 = vpop.f32.mrf.mxu0  ;;  %10888 = vmatmul.mubr.f32.gmra.mxu0 %v13356_v57  ;;  %v7436_v57 = vld [vmem:[#allocation8 + $0x440] sm:$0xff]  ;;  %v6622_v15 = vld [vmem:[#allocation2 + $0xaf] sm:$0xff] }
 0x3f4   : > { %v13567_v12 = vadd.f32 %v5608_v17, %v5421_v20  ;;  %v5423_v28 = vadd.f32 %v10363_v42, %v13332_v4  ;;  %10780 = vmatprep.mubr.f32.mxu1 %v6617_v32  ;;  %10890 = vmatprep.mubr.f32.mxu0 %v13412_v49  ;;  %v6623_v32 = vld [vmem:[#allocation2 + $0xb7] sm:$0xff] }
 0x3f5   : > { %v5232_v21 = vpop.f32.mrf.mxu1  ;;  %v5636_v58 = vpop.f32.mrf.mxu0  ;;  %10952 = vmatpush3.msra.mxu1 %v7438_v45  ;;  %v7435_v45 = vld [vmem:[#allocation8 + $0x438] sm:$0xff] }
 0x3f6   : > { %v13571_v6 = vadd.f32 %v10467_v53, %v5423_v28  ;;  %10953 = vmatprep.subr.mxu1 %v7437_v16  ;;  %v14225_v28 = vld [vmem:[#allocation42_spill] sm:$0xff] }
 0x3f7   : > { %v10366_v33 = vpop.f32.mrf.mxu1  ;;  %10781 = vmatmul.mubr.f32.gmra.mxu1 %v6618_v1  ;;  %v10476_v61 = vpop.f32.mrf.mxu0  ;;  %10891 = vmatmul.mubr.f32.gmra.mxu0 %v13367_v60  ;;  %v6624_v1 = vld [vmem:[#allocation2 + $0xbf] sm:$0xff] }
 0x3f8   : > { %10783 = vmatprep.mubr.f32.mxu1 %v6619_v11  ;;  %10893 = vmatprep.mubr.f32.mxu0 %v13373_v36  ;;  %v6625_v11 = vld [vmem:[#allocation2 + $0xc7] sm:$0xff] }
 0x3f9   : > { %v5241_v4 = vpop.f32.mrf.mxu1  ;;  %v5646_v17 = vpop.f32.mrf.mxu0  ;;  %10954 = vmatpush3.msra.mxu1 %v7437_v16 }
 0x3fa   : > { %v5424_v54 = vadd.f32 %v5241_v4, %v13345_v5  ;;  %10955 = vmatprep.subr.mxu1 %v7436_v57 }
 0x3fb   : > { %v10369_v53 = vpop.f32.mrf.mxu1  ;;  %10784 = vmatmul.mubr.f32.gmra.mxu1 %v6620_v34  ;;  %v10479_v30 = vpop.f32.mrf.mxu0  ;;  %10894 = vmatmul.mubr.f32.gmra.mxu0 %v13412_v49  ;;  %v6627_v34 = vld [vmem:[#allocation2 + $0xd7] sm:$0xff] }
 0x3fc   : > { %v13577_v9 = vadd.f32 %v5627_v50, %v5424_v54  ;;  %v5426_v60 = vadd.f32 %v10369_v53, %v13350_v2  ;;  %10786 = vmatprep.mubr.f32.mxu1 %v6621_v59  ;;  %10896 = vmatprep.mubr.f32.mxu0 %v13385_v38  ;;  %v7434_v50 = vld [vmem:[#allocation8 + $0x430] sm:$0xff]  ;;  %v7432_v59 = vld [vmem:[#allocation8 + $0x420] sm:$0xff] }
 0x3fd   : > { %v5250_v36 = vpop.f32.mrf.mxu1  ;;  %v5655_v8 = vpop.f32.mrf.mxu0  ;;  %10956 = vmatpush3.msra.mxu1 %v7436_v57  ;;  %v6626_v54 = vld [vmem:[#allocation2 + $0xcf] sm:$0xff] }
 0x3fe   : > { %v13581_v5 = vadd.f32 %v10473_v0, %v5426_v60  ;;  %v5425_v20 = vadd.f32 %v5250_v36, %v13359_v47  ;;  %10957 = vmatprep.subr.mxu1 %v7435_v45 }
 0x3ff   : > { %v10372_v42 = vpop.f32.mrf.mxu1  ;;  %10787 = vmatmul.mubr.f32.gmra.mxu1 %v6622_v15  ;;  %v10482_v16 = vpop.f32.mrf.mxu0  ;;  %10897 = vmatmul.mubr.f32.gmra.mxu0 %v13388_v13  ;;  %v7433_v13 = vld [vmem:[#allocation8 + $0x428] sm:$0xff] }
 0x400   : > { %v13585_v2 = vadd.f32 %v5636_v58, %v5425_v20  ;;  %v5427_v38 = vadd.f32 %v10372_v42, %v14225_v28  ;;  %10789 = vmatprep.mubr.f32.mxu1 %v6623_v32  ;;  %10899 = vmatprep.mubr.f32.mxu0 %v13412_v49  ;;  %v6628_v20 = vld [vmem:[#allocation2 + $0xdf] sm:$0xff]  ;;  %v6629_v42 = vld [vmem:[#allocation2 + $0xe7] sm:$0xff] }
 0x401   : > { %v5260_v0 = vpop.f32.mrf.mxu1  ;;  %v5664_v21 = vpop.f32.mrf.mxu0  ;;  %10958 = vmatpush3.msra.mxu1 %v7435_v45 }
 0x402   : > { %v13589_v47 = vadd.f32 %v10476_v61, %v5427_v38  ;;  %10959 = vmatprep.subr.mxu1 %v7434_v50  ;;  %v6630_v38 = vld [vmem:[#allocation2 + $0xef] sm:$0xff] }
 0x403   : > { %v10375_v33 = vpop.f32.mrf.mxu1  ;;  %10790 = vmatmul.mubr.f32.gmra.mxu1 %v6624_v1  ;;  %v10485_v57 = vpop.f32.mrf.mxu0  ;;  %10900 = vmatmul.mubr.f32.gmra.mxu0 %v13399_v51  ;;  %v14226_v51 = vld [vmem:[#allocation43_spill] sm:$0xff] }
 0x404   : > { %10792 = vmatprep.mubr.f32.mxu1 %v6625_v11  ;;  %10902 = vmatprep.mubr.f32.mxu0 %v13405_v41  ;;  %v6631_v1 = vld [vmem:[#allocation2 + $0xf7] sm:$0xff] }
 0x405   : > { %v5269_v58 = vpop.f32.mrf.mxu1  ;;  %v5674_v4 = vpop.f32.mrf.mxu0  ;;  %10960 = vmatpush3.msra.mxu1 %v7434_v50  ;;  %v14227_v11 = vld [vmem:[#allocation32_spill] sm:$0xff] }
 0x406   : > { %v5428_v17 = vadd.f32 %v5269_v58, %v13377_v37  ;;  %10961 = vmatprep.subr.mxu1 %v7433_v13  ;;  %v6632_v58 = vld [vmem:[#allocation2 + $0xff] sm:$0xff]  ;;  %v6633_v4 = vld [vmem:[#allocation2 + $0x107] sm:$0xff] }
 0x407   : > { %v10378_v61 = vpop.f32.mrf.mxu1  ;;  %10793 = vmatmul.mubr.f32.gmra.mxu1 %v6626_v54  ;;  %v10488_v53 = vpop.f32.mrf.mxu0  ;;  %10903 = vmatmul.mubr.f32.gmra.mxu0 %v13412_v49  ;;  %v7429_v54 = vld [vmem:[#allocation8 + $0x408] sm:$0xff] }
 0x408   : > { %v13595_v30 = vadd.f32 %v5655_v8, %v5428_v17  ;;  %v5430_v45 = vadd.f32 %v10378_v61, %v14226_v51  ;;  %10795 = vmatprep.mubr.f32.mxu1 %v6627_v34  ;;  %10905 = vmatprep.mubr.f32.mxu0 %v13424_v18  ;;  %v7431_v8 = vld [vmem:[#allocation8 + $0x418] sm:$0xff] }
 0x409   : > { %v5278_v41 = vpop.f32.mrf.mxu1  ;;  %v5683_v60 = vpop.f32.mrf.mxu0  ;;  %10962 = vmatpush3.msra.mxu1 %v7433_v13 }
 0x40a   : > { %v13599_v37 = vadd.f32 %v10482_v16, %v5430_v45  ;;  %v5429_v36 = vadd.f32 %v5278_v41, %v13391_v14  ;;  %10963 = vmatprep.subr.mxu1 %v7432_v59  ;;  %v6634_v45 = vld [vmem:[#allocation2 + $0x10f] sm:$0xff] }
 0x40b   : > { %v10381_v15 = vpop.f32.mrf.mxu1  ;;  %10796 = vmatmul.mubr.f32.gmra.mxu1 %v6628_v20  ;;  %v10491_v32 = vpop.f32.mrf.mxu0  ;;  %10906 = vmatmul.mubr.f32.gmra.mxu0 %v13427_v43  ;;  %v7430_v43 = vld [vmem:[#allocation8 + $0x410] sm:$0xff] }
 0x40c   : > { %v13603_v50 = vadd.f32 %v5664_v21, %v5429_v36  ;;  %v5431_v18 = vadd.f32 %v10381_v15, %v13396_v22  ;;  %10798 = vmatprep.mubr.f32.mxu1 %v6629_v42  ;;  %10908 = vmatprep.mubr.f32.mxu0 %v13412_v49  ;;  %v6635_v36 = vld [vmem:[#allocation2 + $0x117] sm:$0xff] }
 0x40d   : > { %v5288_v16 = vpop.f32.mrf.mxu1  ;;  %v5692_v28 = vpop.f32.mrf.mxu0  ;;  %10964 = vmatpush3.msra.mxu1 %v7432_v59 }
 0x40e   : > { %v13607_v14 = vadd.f32 %v10485_v57, %v5431_v18  ;;  %10965 = vmatprep.subr.mxu1 %v7431_v8  ;;  %v6637_v16 = vld [vmem:[#allocation2 + $0x127] sm:$0xff] }
 0x40f   : > { %v10384_v0 = vpop.f32.mrf.mxu1  ;;  %10799 = vmatmul.mubr.f32.gmra.mxu1 %v6630_v38  ;;  %v10494_v33 = vpop.f32.mrf.mxu0  ;;  %10909 = vmatmul.mubr.f32.gmra.mxu0 %v13438_v56  ;;  %v14228_v56 = vld [vmem:[#allocation36_spill] sm:$0xff] }
 0x410   : > { %10801 = vmatprep.mubr.f32.mxu1 %v6631_v1  ;;  %10911 = vmatprep.mubr.f32.mxu0 %v13446_v62  ;;  %v6638_v0 = vld [vmem:[#allocation2 + $0x12f] sm:$0xff] }
 0x411   : > { %v5297_v22 = vpop.f32.mrf.mxu1  ;;  %v5702_v21 = vpop.f32.mrf.mxu0  ;;  %10966 = vmatpush3.msra.mxu1 %v7431_v8  ;;  %v6636_v8 = vld [vmem:[#allocation2 + $0x11f] sm:$0xff] }
 0x412   : > { %v5432_v13 = vadd.f32 %v5297_v22, %v14227_v11  ;;  %10967 = vmatprep.subr.mxu1 %v7430_v43  ;;  %v14229_v21 = vld [vmem:[#allocation45_spill] sm:$0xff] }
 0x413   : > { %v10387_v57 = vpop.f32.mrf.mxu1  ;;  %10802 = vmatmul.mubr.f32.gmra.mxu1 %v6632_v58  ;;  %v10497_v17 = vpop.f32.mrf.mxu0  ;;  %10912 = vmatmul.mubr.f32.gmra.mxu0 %v13412_v49  ;;  %v6640_v58 = vld [vmem:[#allocation2 + $0x13f] sm:$0xff] }
 0x414   : > { %v13613_v61 = vadd.f32 %v5683_v60, %v5432_v13  ;;  %v5434_v34 = vadd.f32 %v10387_v57, %v14228_v56  ;;  %10804 = vmatprep.mubr.f32.mxu1 %v6633_v4  ;;  %10914 = vmatprep.mubr.f32.mxu0 %v13459_v44  ;;  %v7428_v60 = vld [vmem:[#allocation8 + $0x400] sm:$0xff]  ;;  %v14230_v56 = vld [vmem:[#allocation44_spill] sm:$0xff] }
 0x415   : > { %v5306_v62 = vpop.f32.mrf.mxu1  ;;  %v5711_v53 = vpop.f32.mrf.mxu0  ;;  %10968 = vmatpush3.msra.mxu1 %v7430_v43  ;;  %v6641_v4 = vld [vmem:[#allocation2 + $0x147] sm:$0xff] }
 0x416   : > { %v13617_v59 = vadd.f32 %v10491_v32, %v5434_v34  ;;  %v5433_v51 = vadd.f32 %v5306_v62, %v13430_v26  ;;  %10969 = vmatprep.subr.mxu1 %v7429_v54 }
 0x417   : > { %v10390_v41 = vpop.f32.mrf.mxu1  ;;  %10805 = vmatmul.mubr.f32.gmra.mxu1 %v6634_v45  ;;  %v10500_v20 = vpop.f32.mrf.mxu0  ;;  %10915 = vmatmul.mubr.f32.gmra.mxu0 %v13462_v31  ;;  %v6643_v45 = vld [vmem:[#allocation2 + $0x157] sm:$0xff] }
 0x418   : > { %v13621_v15 = vadd.f32 %v5692_v28, %v5433_v51  ;;  %v5435_v44 = vadd.f32 %v10390_v41, %v13435_v10  ;;  %10807 = vmatprep.mubr.f32.mxu1 %v6635_v36  ;;  %10917 = vmatprep.mubr.f32.mxu0 %v13412_v49  ;;  %v6642_v51 = vld [vmem:[#allocation2 + $0x14f] sm:$0xff]  ;;  %v14231_v36 = vld [vmem:[#allocation13_spill] sm:$0xff] }
 0x419   : > { %v5316_v42 = vpop.f32.mrf.mxu1  ;;  %v5720_v32 = vpop.f32.mrf.mxu0  ;;  %10970 = vmatpush3.msra.mxu1 %v7429_v54 }
 0x41a   : > { %v13625_v26 = vadd.f32 %v10494_v33, %v5435_v44  ;;  %10971 = vmatprep.subr.mxu1 %v7428_v60  ;;  %v6639_v33 = vld [vmem:[#allocation2 + $0x137] sm:$0xff]  ;;  %v6644_v42 = vld [vmem:[#allocation2 + $0x15f] sm:$0xff] }
 0x41b   : > { %v10393_v18 = vpop.f32.mrf.mxu1  ;;  %10808 = vmatmul.mubr.f32.gmra.mxu1 %v6636_v8  ;;  %v10503_v38 = vpop.f32.mrf.mxu0  ;;  %10918 = vmatmul.mubr.f32.gmra.mxu0 %v13473_v24  ;;  %v6645_v8 = vld [vmem:[#allocation2 + $0x167] sm:$0xff] }
 0x41c   : > { %10810 = vmatprep.mubr.f32.mxu1 %v6637_v16  ;;  %10920 = vmatprep.mubr.f32.mxu0 %v13479_v29 }
 0x41d   : > { %v5325_v10 = vpop.f32.mrf.mxu1  ;;  %v5730_v31 = vpop.f32.mrf.mxu0  ;;  %10972 = vmatpush3.msra.mxu1 %v7428_v60  ;;  %v14232_v60 = vld [vmem:[#allocation33_spill] sm:$0xff] }
 0x41e   : > { %v5436_v28 = vadd.f32 %v5325_v10, %v13451_v52 }
 0x41f   : > { %v10396_v1 = vpop.f32.mrf.mxu1  ;;  %10811 = vmatmul.mubr.f32.gmra.mxu1 %v6638_v0  ;;  %v10506_v43 = vpop.f32.mrf.mxu0  ;;  %10921 = vmatmul.mubr.f32.gmra.mxu0 %v13412_v49  ;;  %v14234_v0 = vld [vmem:[#allocation18_spill] sm:$0xff] }
 0x420   : > { %v13631_v22 = vadd.f32 %v5711_v53, %v5436_v28  ;;  %v5438_v11 = vadd.f32 %v10396_v1, %v14229_v21  ;;  %10813 = vmatprep.mubr.f32.mxu1 %v6639_v33  ;;  %10923 = vmatprep.mubr.f32.mxu0 %v13491_v48  ;;  %v6646_v33 = vld [vmem:[#allocation2 + $0x16f] sm:$0xff]  ;;  %v6647_v21 = vld [vmem:[#allocation2 + $0x177] sm:$0xff] }
 0x421   : > { %v5334_v24 = vpop.f32.mrf.mxu1  ;;  %v5739_v29 = vpop.f32.mrf.mxu0 }
 0x422   : > { %v13635_v13 = vadd.f32 %v10500_v20, %v5438_v11  ;;  %v5437_v52 = vadd.f32 %v5334_v24, %v13465_v40 }
 0x423   : > { %v10399_v57 = vpop.f32.mrf.mxu1  ;;  %10814 = vmatmul.mubr.f32.gmra.mxu1 %v6640_v58  ;;  %v10509_v17 = vpop.f32.mrf.mxu0  ;;  %10924 = vmatmul.mubr.f32.gmra.mxu0 %v13494_v25 }
 0x424   : > { %v13639_v54 = vadd.f32 %v5720_v32, %v5437_v52  ;;  %v5439_v34 = vadd.f32 %v10399_v57, %v14230_v56  ;;  %10816 = vmatprep.mubr.f32.mxu1 %v6641_v4  ;;  %10926 = vmatprep.mubr.f32.mxu0 %v13412_v49  ;;  %v6648_v4 = vld [vmem:[#allocation2 + $0x17f] sm:$0xff]  ;;  %v6649_v56 = vld [vmem:[#allocation2 + $0x187] sm:$0xff] }
 0x425   : > { %v5344_v48 = vpop.f32.mrf.mxu1  ;;  %v5748_v62 = vpop.f32.mrf.mxu0 }
 0x426   : > { %v13643_v53 = vadd.f32 %v10503_v38, %v5439_v34  ;;  %v14233_v38 = vld [vmem:[#allocation37_spill] sm:$0xff] }
 0x427   : > { %v10402_v40 = vpop.f32.mrf.mxu1  ;;  %10817 = vmatmul.mubr.f32.gmra.mxu1 %v6642_v51  ;;  %v10512_v41 = vpop.f32.mrf.mxu0  ;;  %10927 = vmatmul.mubr.f32.gmra.mxu0 %v14231_v36  ;;  %v6650_v51 = vld [vmem:[#allocation2 + $0x18f] sm:$0xff] }
 0x428   : > { %10819 = vmatprep.mubr.f32.mxu1 %v6643_v45  ;;  %10929 = vmatprep.mubr.f32.mxu0 %v13509_v63  ;;  %v6651_v45 = vld [vmem:[#allocation2 + $0x197] sm:$0xff] }
 0x429   : > { %v5353_v25 = vpop.f32.mrf.mxu1  ;;  %v5758_v20 = vpop.f32.mrf.mxu0 }
 0x42a   : > { %v5440_v44 = vadd.f32 %v5353_v25, %v14232_v60  ;;  %v14236_v25 = vld [vmem:[#allocation14_spill] sm:$0xff]  ;;  %v6652_v60 = vld [vmem:[#allocation2 + $0x19f] sm:$0xff] }
 0x42b   : > { %v10405_v32 = vpop.f32.mrf.mxu1  ;;  %10820 = vmatmul.mubr.f32.gmra.mxu1 %v6644_v42  ;;  %v10515_v18 = vpop.f32.mrf.mxu0  ;;  %10930 = vmatmul.mubr.f32.gmra.mxu0 %v13412_v49  ;;  %v6653_v42 = vld [vmem:[#allocation2 + $0x1a7] sm:$0xff] }
 0x42c   : > { %v13649_v16 = vadd.f32 %v5739_v29, %v5440_v44  ;;  %v5442_v10 = vadd.f32 %v10405_v32, %v14233_v38  ;;  %10822 = vmatprep.mubr.f32.mxu1 %v6645_v8  ;;  %10932 = vmatprep.mubr.f32.mxu0 %v13520_v7  ;;  %v14235_v29 = vld [vmem:[#allocation19_spill] sm:$0xff]  ;;  %v14237_v18 = vld [vmem:[#allocation40_spill] sm:$0xff] }
 0x42d   : > { %v5362_v31 = vpop.f32.mrf.mxu1  ;;  %v5767_v63 = vpop.f32.mrf.mxu0 }
 0x42e   : > { %v13653_v28 = vadd.f32 %v10509_v17, %v5442_v10  ;;  %v5441_v1 = vadd.f32 %v5362_v31, %v14234_v0  ;;  %v14238_v0 = vld [vmem:[#allocation20_spill] sm:$0xff] }
 0x42f   : > { %v10408_v43 = vpop.f32.mrf.mxu1  ;;  %10823 = vmatmul.mubr.f32.gmra.mxu1 %v6646_v33  ;;  %v10518_v11 = vpop.f32.mrf.mxu0  ;;  %10933 = vmatmul.mubr.f32.gmra.mxu0 %v13523_v55 }
 0x430   : > { %v13657_v24 = vadd.f32 %v5748_v62, %v5441_v1  ;;  %v5443_v52 = vadd.f32 %v10408_v43, %v14235_v29  ;;  %10825 = vmatprep.mubr.f32.mxu1 %v6647_v21  ;;  %10935 = vmatprep.mubr.f32.mxu0 %v13412_v49  ;;  %v7379_v29 = vld [vmem:[#allocation2 + $0x39] sm:$0xff] }
 0x431   : > { %v5372_v7 = vpop.f32.mrf.mxu1  ;;  %v5776_v58 = vpop.f32.mrf.mxu0 }
 0x432   : > { %v13661_v57 = vadd.f32 %v10512_v41, %v5443_v52 }
 0x433   : > { %v10411_v17 = vpop.f32.mrf.mxu1  ;;  %10826 = vmatmul.mubr.f32.gmra.mxu1 %v6648_v4  ;;  %v10521_v34 = vpop.f32.mrf.mxu0  ;;  %10936 = vmatmul.mubr.f32.gmra.mxu0 %v13412_v49 }
 0x434   : > { %10828 = vmatprep.mubr.f32.mxu1 %v6649_v56  ;;  %10938 = vmatprep.mubr.f32.mxu0 %v13412_v49  ;;  %v7380_v17 = vld [vmem:[#allocation2 + $0x41] sm:$0xff]  ;;  %v7381_v56 = vld [vmem:[#allocation2 + $0x49] sm:$0xff] }
 0x435   : > { %v5381_v55 = vpop.f32.mrf.mxu1  ;;  %v5786_v48 = vpop.f32.mrf.mxu0 }
 0x436   : > { %v5444_v62 = vadd.f32 %v5381_v55, %v13512_v39 }
 0x437   : > { %v10414_v40 = vpop.f32.mrf.mxu1  ;;  %10829 = vmatmul.mubr.f32.gmra.mxu1 %v6650_v51  ;;  %v10524_v41 = vpop.f32.mrf.mxu0  ;;  %10939 = vmatmul.mubr.f32.gmra.mxu0 %v13412_v49 }
 0x438   : > { %v13667_v36 = vadd.f32 %v5767_v63, %v5444_v62  ;;  %v5446_v20 = vadd.f32 %v10414_v40, %v14236_v25  ;;  %10831 = vmatprep.mubr.f32.mxu1 %v6651_v45  ;;  %v6654_v63 = vld [vmem:[#allocation2 + $0x1af] sm:$0xff] }
 0x439   : > { %v5390_v44 = vpop.f32.mrf.mxu1  ;;  %v5795_v32 = vpop.f32.mrf.mxu0  ;;  %v7382_v41 = vld [vmem:[#allocation2 + $0x51] sm:$0xff] }
 0x43a   : > { %v13670_v8 = vadd.f32 %v10518_v11, %v5446_v20  ;;  %v5445_v39 = vadd.f32 %v5390_v44, %v14237_v18  ;;  %v7384_v18 = vld [vmem:[#allocation2 + $0x61] sm:$0xff] }
 0x43b   : > { %v10417_v38 = vpop.f32.mrf.mxu1  ;;  %10832 = vmatmul.mubr.f32.gmra.mxu1 %v6652_v60  ;;  %v10663_v10 = vpop.f32.mrf.mxu0 }
 0x43c   : > { %v13673_v31 = vadd.f32 %v5776_v58, %v5445_v39  ;;  %v5447_v49 = vadd.f32 %v10417_v38, %v14238_v0  ;;  %10834 = vmatprep.mubr.f32.mxu1 %v6653_v42  ;;  %v7385_v38 = vld [vmem:[#allocation2 + $0x69] sm:$0xff] }
 0x43d   : > { %v5400_v1 = vpop.f32.mrf.mxu1  ;;  %v6352_v33 = vpop.f32.mrf.mxu0 }
 0x43e   : > { %v13676_v43 = vadd.f32 %v10521_v34, %v5447_v49 }
 0x43f   : > { %v10420_v21 = vpop.f32.mrf.mxu1  ;;  %10835 = vmatmul.mubr.f32.gmra.mxu1 %v6654_v63  ;;  %v10666_v11 = vpop.f32.mrf.mxu0  ;;  %v7386_v63 = vld [vmem:[#allocation2 + $0x71] sm:$0xff] }
 0x440   : > { %10973 = vmatprep.mubr.f32.mxu1 %v7379_v29 }
 0x441   : > { %v5409_v52 = vpop.f32.mrf.mxu1  ;;  %v6362_v7 = vpop.f32.mrf.mxu0 }
 0x442   : > { %v5448_v4 = vadd.f32 %v5409_v52, %v13541_v35  ;;  %v7383_v35 = vld [vmem:[#allocation2 + $0x59] sm:$0xff] }
 0x443   : > { %v10559_v58 = vpop.f32.mrf.mxu1  ;;  %10974 = vmatmul.mubr.f32.vlgmr.msra.gmra.mxu1 %v7380_v17  ;;  %v10669_v55 = vpop.f32.mrf.mxu0  ;;  %v7388_v17 = vld [vmem:[#allocation2 + $0x81] sm:$0xff] }
 0x444   : > { %v13679_v48 = vadd.f32 %v5795_v32, %v5448_v4  ;;  %v6190_v62 = vadd.f32 %v10559_v58, %v13546_v3  ;;  %10976 = vmatprep.mubr.f32.mxu1 %v7381_v56 }
 0x445   : > { %v5966_v34 = vpop.f32.mrf.mxu1  ;;  %v6371_v51 = vpop.f32.mrf.mxu0 }
 0x446   : > { %v13682_v40 = vadd.f32 %v10663_v10, %v6190_v62  ;;  %v6189_v45 = vadd.f32 %v5966_v34, %v13549_v19 }
 0x447   : > { %v10562_v25 = vpop.f32.mrf.mxu1  ;;  %10977 = vmatmul.mubr.f32.gmra.mxu1 %v7382_v41  ;;  %v10672_v20 = vpop.f32.mrf.mxu0 }
 0x448   : > { %v13685_v60 = vadd.f32 %v6352_v33, %v6189_v45  ;;  %v6191_v44 = vadd.f32 %v10562_v25, %v13553_v23  ;;  %10979 = vmatprep.mubr.f32.mxu1 %v7383_v35  ;;  %v7387_v33 = vld [vmem:[#allocation2 + $0x79] sm:$0xff]  ;;  %v7390_v45 = vld [vmem:[#allocation2 + $0x91] sm:$0xff] }
 0x449   : > { %v5976_v42 = vpop.f32.mrf.mxu1  ;;  %v6380_v32 = vpop.f32.mrf.mxu0  ;;  %v7391_v25 = vld [vmem:[#allocation2 + $0x99] sm:$0xff] }
 0x44a   : > { %v13688_v3 = vadd.f32 %v10666_v11, %v6191_v44  ;;  %v7392_v42 = vld [vmem:[#allocation2 + $0xa1] sm:$0xff] }
 0x44b   : > { %v10565_v39 = vpop.f32.mrf.mxu1  ;;  %10980 = vmatmul.mubr.f32.gmra.mxu1 %v7384_v18  ;;  %v10675_v10 = vpop.f32.mrf.mxu0  ;;  %v7393_v18 = vld [vmem:[#allocation2 + $0xa9] sm:$0xff] }
 0x44c   : > { %10982 = vmatprep.mubr.f32.mxu1 %v7385_v38 }
 0x44d   : > { %v5985_v19 = vpop.f32.mrf.mxu1  ;;  %v6390_v0 = vpop.f32.mrf.mxu0 }
 0x44e   : > { %v6192_v49 = vadd.f32 %v5985_v19, %v13559_v27  ;;  %v7389_v27 = vld [vmem:[#allocation2 + $0x89] sm:$0xff] }
 0x44f   : > { %v10568_v1 = vpop.f32.mrf.mxu1  ;;  %10983 = vmatmul.mubr.f32.gmra.mxu1 %v7386_v63  ;;  %v10678_v23 = vpop.f32.mrf.mxu0  ;;  %v7394_v63 = vld [vmem:[#allocation2 + $0xb1] sm:$0xff] }
 0x450   : > { %v13691_v21 = vadd.f32 %v6371_v51, %v6192_v49  ;;  %v6194_v29 = vadd.f32 %v10568_v1, %v13563_v46  ;;  %10985 = vmatprep.mubr.f32.mxu1 %v7387_v33 }
 0x451   : > { %v5994_v11 = vpop.f32.mrf.mxu1  ;;  %v6399_v52 = vpop.f32.mrf.mxu0 }
 0x452   : > { %v13694_v7 = vadd.f32 %v10672_v20, %v6194_v29  ;;  %v6193_v4 = vadd.f32 %v5994_v11, %v13567_v12 }
 0x453   : > { %v10571_v58 = vpop.f32.mrf.mxu1  ;;  %10986 = vmatmul.mubr.f32.gmra.mxu1 %v7388_v17  ;;  %v10681_v56 = vpop.f32.mrf.mxu0 }
 0x454   : > { %v13697_v55 = vadd.f32 %v6380_v32, %v6193_v4  ;;  %v6195_v62 = vadd.f32 %v10571_v58, %v13571_v6  ;;  %10988 = vmatprep.mubr.f32.mxu1 %v7389_v27  ;;  %v7396_v4 = vld [vmem:[#allocation2 + $0xc1] sm:$0xff]  ;;  %v7397_v58 = vld [vmem:[#allocation2 + $0xc9] sm:$0xff] }
 0x455   : > { %v6004_v34 = vpop.f32.mrf.mxu1  ;;  %v6408_v51 = vpop.f32.mrf.mxu0 }
 0x456   : > { %v13700_v46 = vadd.f32 %v10675_v10, %v6195_v62  ;;  %v7398_v34 = vld [vmem:[#allocation2 + $0xd1] sm:$0xff] }
 0x457   : > { %v10574_v41 = vpop.f32.mrf.mxu1  ;;  %10989 = vmatmul.mubr.f32.gmra.mxu1 %v7390_v45  ;;  %v10684_v35 = vpop.f32.mrf.mxu0  ;;  %v7399_v45 = vld [vmem:[#allocation2 + $0xd9] sm:$0xff] }
 0x458   : > { %10991 = vmatprep.mubr.f32.mxu1 %v7391_v25 }
 0x459   : > { %v6013_v12 = vpop.f32.mrf.mxu1  ;;  %v6418_v20 = vpop.f32.mrf.mxu0 }
 0x45a   : > { %v6196_v44 = vadd.f32 %v6013_v12, %v13577_v9  ;;  %v7395_v9 = vld [vmem:[#allocation2 + $0xb9] sm:$0xff] }
 0x45b   : > { %v10577_v32 = vpop.f32.mrf.mxu1  ;;  %10992 = vmatmul.mubr.f32.gmra.mxu1 %v7392_v42  ;;  %v10687_v6 = vpop.f32.mrf.mxu0  ;;  %v7400_v42 = vld [vmem:[#allocation2 + $0xe1] sm:$0xff] }
 0x45c   : > { %v13703_v39 = vadd.f32 %v6399_v52, %v6196_v44  ;;  %v6198_v38 = vadd.f32 %v10577_v32, %v13581_v5  ;;  %10994 = vmatprep.mubr.f32.mxu1 %v7393_v18 }
 0x45d   : > { %v6022_v10 = vpop.f32.mrf.mxu1  ;;  %v6427_v19 = vpop.f32.mrf.mxu0 }
 0x45e   : > { %v13706_v0 = vadd.f32 %v10681_v56, %v6198_v38  ;;  %v6197_v49 = vadd.f32 %v6022_v10, %v13585_v2 }
 0x45f   : > { %v10580_v1 = vpop.f32.mrf.mxu1  ;;  %10995 = vmatmul.mubr.f32.gmra.mxu1 %v7394_v63  ;;  %v10690_v33 = vpop.f32.mrf.mxu0 }
 0x460   : > { %v13709_v23 = vadd.f32 %v6408_v51, %v6197_v49  ;;  %v6199_v29 = vadd.f32 %v10580_v1, %v13589_v47  ;;  %10997 = vmatprep.mubr.f32.mxu1 %v7395_v9  ;;  %v7402_v49 = vld [vmem:[#allocation2 + $0xf1] sm:$0xff]  ;;  %v7403_v1 = vld [vmem:[#allocation2 + $0xf9] sm:$0xff] }
 0x461   : > { %v6032_v11 = vpop.f32.mrf.mxu1  ;;  %v6436_v52 = vpop.f32.mrf.mxu0 }
 0x462   : > { %v13712_v5 = vadd.f32 %v10684_v35, %v6199_v29  ;;  %v7404_v11 = vld [vmem:[#allocation2 + $0x101] sm:$0xff] }
 0x463   : > { %v10583_v17 = vpop.f32.mrf.mxu1  ;;  %10998 = vmatmul.mubr.f32.gmra.mxu1 %v7396_v4  ;;  %v10693_v27 = vpop.f32.mrf.mxu0  ;;  %v7405_v4 = vld [vmem:[#allocation2 + $0x109] sm:$0xff] }
 0x464   : > { %11000 = vmatprep.mubr.f32.mxu1 %v7397_v58 }
 0x465   : > { %v6041_v2 = vpop.f32.mrf.mxu1  ;;  %v6446_v56 = vpop.f32.mrf.mxu0 }
 0x466   : > { %v6200_v62 = vadd.f32 %v6041_v2, %v13595_v30  ;;  %v7401_v30 = vld [vmem:[#allocation2 + $0xe9] sm:$0xff] }
 0x467   : > { %v10586_v51 = vpop.f32.mrf.mxu1  ;;  %11001 = vmatmul.mubr.f32.gmra.mxu1 %v7398_v34  ;;  %v10696_v47 = vpop.f32.mrf.mxu0  ;;  %v7406_v34 = vld [vmem:[#allocation2 + $0x111] sm:$0xff] }
 0x468   : > { %v13715_v41 = vadd.f32 %v6427_v19, %v6200_v62  ;;  %v6202_v25 = vadd.f32 %v10586_v51, %v13599_v37  ;;  %11003 = vmatprep.mubr.f32.mxu1 %v7399_v45 }
 0x469   : > { %v6050_v35 = vpop.f32.mrf.mxu1  ;;  %v6455_v12 = vpop.f32.mrf.mxu0 }
 0x46a   : > { %v13718_v20 = vadd.f32 %v10690_v33, %v6202_v25  ;;  %v6201_v44 = vadd.f32 %v6050_v35, %v13603_v50 }
 0x46b   : > { %v10589_v32 = vpop.f32.mrf.mxu1  ;;  %11004 = vmatmul.mubr.f32.gmra.mxu1 %v7400_v42  ;;  %v10699_v18 = vpop.f32.mrf.mxu0 }
 0x46c   : > { %v13721_v6 = vadd.f32 %v6436_v52, %v6201_v44  ;;  %v6203_v38 = vadd.f32 %v10589_v32, %v13607_v14  ;;  %11006 = vmatprep.mubr.f32.mxu1 %v7401_v30  ;;  %v7408_v44 = vld [vmem:[#allocation2 + $0x121] sm:$0xff]  ;;  %v7409_v32 = vld [vmem:[#allocation2 + $0x129] sm:$0xff] }
 0x46d   : > { %v6060_v10 = vpop.f32.mrf.mxu1  ;;  %v6464_v19 = vpop.f32.mrf.mxu0 }
 0x46e   : > { %v13724_v37 = vadd.f32 %v10693_v27, %v6203_v38  ;;  %v7410_v10 = vld [vmem:[#allocation2 + $0x131] sm:$0xff] }
 0x46f   : > { %v10592_v63 = vpop.f32.mrf.mxu1  ;;  %11007 = vmatmul.mubr.f32.gmra.mxu1 %v7402_v49  ;;  %v10702_v9 = vpop.f32.mrf.mxu0  ;;  %v7411_v49 = vld [vmem:[#allocation2 + $0x139] sm:$0xff] }
 0x470   : > { %11009 = vmatprep.mubr.f32.mxu1 %v7403_v1 }
 0x471   : > { %v6069_v50 = vpop.f32.mrf.mxu1  ;;  %v6474_v33 = vpop.f32.mrf.mxu0 }
 0x472   : > { %v6204_v29 = vadd.f32 %v6069_v50, %v13613_v61  ;;  %v7407_v61 = vld [vmem:[#allocation2 + $0x119] sm:$0xff] }
 0x473   : > { %v10595_v52 = vpop.f32.mrf.mxu1  ;;  %11010 = vmatmul.mubr.f32.gmra.mxu1 %v7404_v11  ;;  %v10705_v14 = vpop.f32.mrf.mxu0  ;;  %v7412_v11 = vld [vmem:[#allocation2 + $0x141] sm:$0xff] }
 0x474   : > { %v13727_v17 = vadd.f32 %v6455_v12, %v6204_v29  ;;  %v6206_v58 = vadd.f32 %v10595_v52, %v13617_v59  ;;  %11012 = vmatprep.mubr.f32.mxu1 %v7405_v4 }
 0x475   : > { %v6078_v27 = vpop.f32.mrf.mxu1  ;;  %v6483_v2 = vpop.f32.mrf.mxu0 }
 0x476   : > { %v13730_v56 = vadd.f32 %v10699_v18, %v6206_v58  ;;  %v6205_v62 = vadd.f32 %v6078_v27, %v13621_v15 }
 0x477   : > { %v10598_v51 = vpop.f32.mrf.mxu1  ;;  %11013 = vmatmul.mubr.f32.gmra.mxu1 %v7406_v34  ;;  %v10708_v45 = vpop.f32.mrf.mxu0 }
 0x478   : > { %v13733_v47 = vadd.f32 %v6464_v19, %v6205_v62  ;;  %v6207_v25 = vadd.f32 %v10598_v51, %v13625_v26  ;;  %11015 = vmatprep.mubr.f32.mxu1 %v7407_v61  ;;  %v7414_v62 = vld [vmem:[#allocation2 + $0x151] sm:$0xff]  ;;  %v7415_v51 = vld [vmem:[#allocation2 + $0x159] sm:$0xff] }
 0x479   : > { %v6088_v35 = vpop.f32.mrf.mxu1  ;;  %v6492_v12 = vpop.f32.mrf.mxu0 }
 0x47a   : > { %v13736_v59 = vadd.f32 %v10702_v9, %v6207_v25  ;;  %v7416_v35 = vld [vmem:[#allocation2 + $0x161] sm:$0xff] }
 0x47b   : > { %v10601_v42 = vpop.f32.mrf.mxu1  ;;  %11016 = vmatmul.mubr.f32.gmra.mxu1 %v7408_v44  ;;  %v10711_v30 = vpop.f32.mrf.mxu0  ;;  %v7417_v44 = vld [vmem:[#allocation2 + $0x169] sm:$0xff] }
 0x47c   : > { %11018 = vmatprep.mubr.f32.mxu1 %v7409_v32 }
 0x47d   : > { %v6097_v15 = vpop.f32.mrf.mxu1  ;;  %v6502_v18 = vpop.f32.mrf.mxu0 }
 0x47e   : > { %v6208_v38 = vadd.f32 %v6097_v15, %v13631_v22  ;;  %v7413_v22 = vld [vmem:[#allocation2 + $0x149] sm:$0xff] }
 0x47f   : > { %v10604_v19 = vpop.f32.mrf.mxu1  ;;  %11019 = vmatmul.mubr.f32.gmra.mxu1 %v7410_v10  ;;  %v10714_v26 = vpop.f32.mrf.mxu0  ;;  %v7418_v10 = vld [vmem:[#allocation2 + $0x171] sm:$0xff] }
 0x480   : > { %v13739_v63 = vadd.f32 %v6483_v2, %v6208_v38  ;;  %v6210_v1 = vadd.f32 %v10604_v19, %v13635_v13  ;;  %11021 = vmatprep.mubr.f32.mxu1 %v7411_v49 }
 0x481   : > { %v6106_v9 = vpop.f32.mrf.mxu1  ;;  %v6511_v50 = vpop.f32.mrf.mxu0 }
 0x482   : > { %v13742_v33 = vadd.f32 %v10708_v45, %v6210_v1  ;;  %v6209_v29 = vadd.f32 %v6106_v9, %v13639_v54 }
 0x483   : > { %v10607_v52 = vpop.f32.mrf.mxu1  ;;  %11022 = vmatmul.mubr.f32.gmra.mxu1 %v7412_v11  ;;  %v10717_v4 = vpop.f32.mrf.mxu0 }
 0x484   : > { %v13745_v14 = vadd.f32 %v6492_v12, %v6209_v29  ;;  %v6211_v58 = vadd.f32 %v10607_v52, %v13643_v53  ;;  %11024 = vmatprep.mubr.f32.mxu1 %v7413_v22  ;;  %v7420_v29 = vld [vmem:[#allocation2 + $0x181] sm:$0xff]  ;;  %v7421_v52 = vld [vmem:[#allocation2 + $0x189] sm:$0xff] }
 0x485   : > { %v6116_v27 = vpop.f32.mrf.mxu1  ;;  %v6520_v2 = vpop.f32.mrf.mxu0 }
 0x486   : > { %v13748_v13 = vadd.f32 %v10711_v30, %v6211_v58 }
 0x487   : > { %v10610_v34 = vpop.f32.mrf.mxu1  ;;  %11025 = vmatmul.mubr.f32.gmra.mxu1 %v7414_v62  ;;  %v10720_v61 = vpop.f32.mrf.mxu0 }
 0x488   : > { %11027 = vmatprep.mubr.f32.mxu1 %v7415_v51 }
 0x489   : > { %v6125_v54 = vpop.f32.mrf.mxu1  ;;  %v6530_v45 = vpop.f32.mrf.mxu0 }
 0x48a   : > { %v6212_v25 = vadd.f32 %v6125_v54, %v13649_v16  ;;  %v7419_v16 = vld [vmem:[#allocation2 + $0x179] sm:$0xff]  ;;  %v7425_v45 = vld [vmem:[#allocation2 + $0x1a9] sm:$0xff] }
 0x48b   : > { %v10613_v12 = vpop.f32.mrf.mxu1  ;;  %11028 = vmatmul.mubr.f32.gmra.mxu1 %v7416_v35  ;;  %v10723_v53 = vpop.f32.mrf.mxu0 }
 0x48c   : > { %v13751_v42 = vadd.f32 %v6511_v50, %v6212_v25  ;;  %v6214_v32 = vadd.f32 %v10613_v12, %v13653_v28  ;;  %11030 = vmatprep.mubr.f32.mxu1 %v7417_v44 }
 0x48d   : > { %v6134_v30 = vpop.f32.mrf.mxu1  ;;  %v6539_v15 = vpop.f32.mrf.mxu0 }
 0x48e   : > { %v13754_v18 = vadd.f32 %v10717_v4, %v6214_v32  ;;  %v6213_v38 = vadd.f32 %v6134_v30, %v13657_v24  ;;  %v7423_v4 = vld [vmem:[#allocation2 + $0x199] sm:$0xff]  ;;  %v7426_v30 = vld [vmem:[#allocation2 + $0x1b1] sm:$0xff] }
 0x48f   : > { %v10616_v19 = vpop.f32.mrf.mxu1  ;;  %11031 = vmatmul.mubr.f32.gmra.mxu1 %v7418_v10  ;;  %v10726_v49 = vpop.f32.mrf.mxu0 }
 0x490   : > { %v13757_v26 = vadd.f32 %v6520_v2, %v6213_v38  ;;  %v6215_v1 = vadd.f32 %v10616_v19, %v13661_v57  ;;  %11033 = vmatprep.mubr.f32.mxu1 %v7419_v16  ;;  %v7422_v2 = vld [vmem:[#allocation2 + $0x191] sm:$0xff] }
 0x491   : > { %v6144_v9 = vpop.f32.mrf.mxu1  ;;  %v6548_v50 = vpop.f32.mrf.mxu0 }
 0x492   : > { %v13760_v28 = vadd.f32 %v10720_v61, %v6215_v1  ;;  %v7424_v61 = vld [vmem:[#allocation2 + $0x1a1] sm:$0xff] }
 0x493   : > { %v10619_v11 = vpop.f32.mrf.mxu1  ;;  %11034 = vmatmul.mubr.f32.gmra.mxu1 %v7420_v29  ;;  %v10729_v22 = vpop.f32.mrf.mxu0 }
 0x494   : > { %11036 = vmatprep.mubr.f32.mxu1 %v7421_v52 }
 0x495   : > { %v6153_v24 = vpop.f32.mrf.mxu1  ;;  %v6558_v58 = vpop.f32.mrf.mxu0 }
 0x496   : > { %v6216_v27 = vadd.f32 %v6153_v24, %v13667_v36 }
 0x497   : > { %v10622_v62 = vpop.f32.mrf.mxu1  ;;  %11037 = vmatmul.mubr.f32.gmra.mxu1 %v7422_v2  ;;  %v10732_v57 = vpop.f32.mrf.mxu0 }
 0x498   : > { %v13763_v34 = vadd.f32 %v6539_v15, %v6216_v27  ;;  %v6218_v51 = vadd.f32 %v10622_v62, %v13670_v8  ;;  %11039 = vmatprep.mubr.f32.mxu1 %v7423_v4 }
 0x499   : > { %v6162_v54 = vpop.f32.mrf.mxu1  ;;  %v6567_v25 = vpop.f32.mrf.mxu0 }
 0x49a   : > { %v13766_v35 = vadd.f32 %v10726_v49, %v6218_v51  ;;  %v6217_v12 = vadd.f32 %v6162_v54, %v13673_v31 }
 0x49b   : > { %v10625_v44 = vpop.f32.mrf.mxu1  ;;  %11040 = vmatmul.mubr.f32.gmra.mxu1 %v7424_v61  ;;  %v10871_v36 = vpop.f32.mrf.mxu0 }
 0x49c   : > { %v13769_v53 = vadd.f32 %v6548_v50, %v6217_v12  ;;  %v6219_v32 = vadd.f32 %v10625_v44, %v13676_v43  ;;  %11042 = vmatprep.mubr.f32.mxu1 %v7425_v45 }
 0x49d   : > { %v6172_v15 = vpop.f32.mrf.mxu1  ;;  %v7124_v8 = vpop.f32.mrf.mxu0 }
 0x49e   : > { %v13772_v38 = vadd.f32 %v10729_v22, %v6219_v32 }
 0x49f   : > { %v10628_v10 = vpop.f32.mrf.mxu1  ;;  %11043 = vmatmul.mubr.f32.gmra.mxu1 %v7426_v30  ;;  %v10874_v19 = vpop.f32.mrf.mxu0 }
 0x4a1   : > { %v6181_v16 = vpop.f32.mrf.mxu1  ;;  %v7134_v49 = vpop.f32.mrf.mxu0 }
 0x4a2   : > { %v6220_v31 = vadd.f32 %v6181_v16, %v13679_v48 }
 0x4a3   : > { %v10767_v1 = vpop.f32.mrf.mxu1  ;;  %v10877_v9 = vpop.f32.mrf.mxu0 }
 0x4a4   : > { %v13775_v29 = vadd.f32 %v6567_v25, %v6220_v31  ;;  %v6962_v50 = vadd.f32 %v10767_v1, %v13682_v40 }
 0x4a5   : > { %v6738_v43 = vpop.f32.mrf.mxu1  ;;  %v7143_v11 = vpop.f32.mrf.mxu0 }
 0x4a6   : > { %v13778_v52 = vadd.f32 %v10871_v36, %v6962_v50  ;;  %v6961_v22 = vadd.f32 %v6738_v43, %v13685_v60 }
 0x4a7   : > { %v10770_v24 = vpop.f32.mrf.mxu1  ;;  %v10880_v4 = vpop.f32.mrf.mxu0 }
 0x4a8   : > { %v13781_v58 = vadd.f32 %v7124_v8, %v6961_v22  ;;  %v6963_v27 = vadd.f32 %v10770_v24, %v13688_v3 }
 0x4a9   : > { %v6748_v2 = vpop.f32.mrf.mxu1  ;;  %v7152_v48 = vpop.f32.mrf.mxu0 }
 0x4aa   : > { %v13784_v62 = vadd.f32 %v10874_v19, %v6963_v27 }
 0x4ab   : > { %v10773_v57 = vpop.f32.mrf.mxu1  ;;  %v10883_v51 = vpop.f32.mrf.mxu0 }
 0x4ad   : > { %v6757_v61 = vpop.f32.mrf.mxu1  ;;  %v7162_v40 = vpop.f32.mrf.mxu0 }
 0x4ae   : > { %v6964_v54 = vadd.f32 %v6757_v61, %v13691_v21 }
 0x4af   : > { %v10776_v45 = vpop.f32.mrf.mxu1  ;;  %v10886_v25 = vpop.f32.mrf.mxu0 }
 0x4b0   : > { %v13787_v12 = vadd.f32 %v7143_v11, %v6964_v54  ;;  %v6966_v60 = vadd.f32 %v10776_v45, %v13694_v7 }
 0x4b1   : > { %v6766_v44 = vpop.f32.mrf.mxu1  ;;  %v7171_v36 = vpop.f32.mrf.mxu0 }
 0x4b2   : > { %v13790_v32 = vadd.f32 %v10880_v4, %v6966_v60  ;;  %v6965_v3 = vadd.f32 %v6766_v44, %v13697_v55 }
 0x4b3   : > { %v10779_v30 = vpop.f32.mrf.mxu1  ;;  %v10889_v15 = vpop.f32.mrf.mxu0 }
 0x4b4   : > { %v13793_v8 = vadd.f32 %v7152_v48, %v6965_v3  ;;  %v6967_v10 = vadd.f32 %v10779_v30, %v13700_v46 }
 0x4b5   : > { %v6776_v19 = vpop.f32.mrf.mxu1  ;;  %v7180_v21 = vpop.f32.mrf.mxu0 }
 0x4b6   : > { %v13796_v16 = vadd.f32 %v10883_v51, %v6967_v10 }
 0x4b7   : > { %v10782_v49 = vpop.f32.mrf.mxu1  ;;  %v10892_v31 = vpop.f32.mrf.mxu0 }
 0x4b9   : > { %v6785_v1 = vpop.f32.mrf.mxu1  ;;  %v7190_v7 = vpop.f32.mrf.mxu0 }
 0x4ba   : > { %v6968_v9 = vadd.f32 %v6785_v1, %v13703_v39 }
 0x4bb   : > { %v10785_v50 = vpop.f32.mrf.mxu1  ;;  %v10895_v43 = vpop.f32.mrf.mxu0 }
 0x4bc   : > { %v13799_v11 = vadd.f32 %v7171_v36, %v6968_v9  ;;  %v6970_v55 = vadd.f32 %v10785_v50, %v13706_v0 }
 0x4bd   : > { %v6794_v22 = vpop.f32.mrf.mxu1  ;;  %v7199_v24 = vpop.f32.mrf.mxu0 }
 0x4be   : > { %v13802_v4 = vadd.f32 %v10889_v15, %v6970_v55  ;;  %v6969_v46 = vadd.f32 %v6794_v22, %v13709_v23 }
 0x4bf   : > { %v10788_v27 = vpop.f32.mrf.mxu1  ;;  %v10898_v2 = vpop.f32.mrf.mxu0 }
 0x4c0   : > { %v13805_v48 = vadd.f32 %v7180_v21, %v6969_v46  ;;  %v6971_v57 = vadd.f32 %v10788_v27, %v13712_v5 }
 0x4c1   : > { %v6804_v51 = vpop.f32.mrf.mxu1  ;;  %v7208_v39 = vpop.f32.mrf.mxu0 }
 0x4c2   : > { %v13808_v61 = vadd.f32 %v10892_v31, %v6971_v57 }
 0x4c3   : > { %v10791_v40 = vpop.f32.mrf.mxu1  ;;  %v10901_v54 = vpop.f32.mrf.mxu0 }
 0x4c5   : > { %v6813_v45 = vpop.f32.mrf.mxu1  ;;  %v7218_v0 = vpop.f32.mrf.mxu0 }
 0x4c6   : > { %v6972_v25 = vadd.f32 %v6813_v45, %v13715_v41 }
 0x4c7   : > { %v10794_v60 = vpop.f32.mrf.mxu1  ;;  %v10904_v44 = vpop.f32.mrf.mxu0 }
 0x4c8   : > { %v13811_v36 = vadd.f32 %v7199_v24, %v6972_v25  ;;  %v6974_v23 = vadd.f32 %v10794_v60, %v13718_v20 }
 0x4c9   : > { %v6822_v3 = vpop.f32.mrf.mxu1  ;;  %v7227_v30 = vpop.f32.mrf.mxu0 }
 0x4ca   : > { %v13814_v15 = vadd.f32 %v10898_v2, %v6974_v23  ;;  %v6973_v5 = vadd.f32 %v6822_v3, %v13721_v6 }
 0x4cb   : > { %v10797_v10 = vpop.f32.mrf.mxu1  ;;  %v10907_v19 = vpop.f32.mrf.mxu0 }
 0x4cc   : > { %v13817_v21 = vadd.f32 %v7208_v39, %v6973_v5  ;;  %v6975_v49 = vadd.f32 %v10797_v10, %v13724_v37 }
 0x4cd   : > { %v6832_v31 = vpop.f32.mrf.mxu1  ;;  %v7236_v41 = vpop.f32.mrf.mxu0 }
 0x4ce   : > { %v13820_v1 = vadd.f32 %v10901_v54, %v6975_v49 }
 0x4cf   : > { %v10800_v7 = vpop.f32.mrf.mxu1  ;;  %v10910_v9 = vpop.f32.mrf.mxu0 }
 0x4d1   : > { %v6841_v50 = vpop.f32.mrf.mxu1  ;;  %v7246_v20 = vpop.f32.mrf.mxu0 }
 0x4d2   : > { %v6976_v43 = vadd.f32 %v6841_v50, %v13727_v17 }
 0x4d3   : > { %v10803_v55 = vpop.f32.mrf.mxu1  ;;  %v10913_v22 = vpop.f32.mrf.mxu0 }
 0x4d4   : > { %v13823_v24 = vadd.f32 %v7227_v30, %v6976_v43  ;;  %v6978_v6 = vadd.f32 %v10803_v55, %v13730_v56 }
 0x4d5   : > { %v6850_v46 = vpop.f32.mrf.mxu1  ;;  %v7255_v27 = vpop.f32.mrf.mxu0 }
 0x4d6   : > { %v13826_v2 = vadd.f32 %v10907_v19, %v6978_v6  ;;  %v6977_v37 = vadd.f32 %v6850_v46, %v13733_v47 }
 0x4d7   : > { %v10806_v57 = vpop.f32.mrf.mxu1  ;;  %v10916_v51 = vpop.f32.mrf.mxu0 }
 0x4d8   : > { %v13829_v39 = vadd.f32 %v7236_v41, %v6977_v37  ;;  %v6979_v40 = vadd.f32 %v10806_v57, %v13736_v59 }
 0x4d9   : > { %v6860_v54 = vpop.f32.mrf.mxu1  ;;  %v7264_v17 = vpop.f32.mrf.mxu0 }
 0x4da   : > { %v13832_v45 = vadd.f32 %v10910_v9, %v6979_v40 }
 0x4db   : > { %v10809_v0 = vpop.f32.mrf.mxu1  ;;  %v10919_v25 = vpop.f32.mrf.mxu0 }
 0x4dd   : > { %v6869_v60 = vpop.f32.mrf.mxu1  ;;  %v7274_v56 = vpop.f32.mrf.mxu0 }
 0x4de   : > { %v6980_v44 = vadd.f32 %v6869_v60, %v13739_v63 }
 0x4df   : > { %v10812_v23 = vpop.f32.mrf.mxu1  ;;  %v10922_v3 = vpop.f32.mrf.mxu0 }
 0x4e0   : > { %v13835_v30 = vadd.f32 %v7255_v27, %v6980_v44  ;;  %v6982_v47 = vadd.f32 %v10812_v23, %v13742_v33 }
 0x4e1   : > { %v6878_v5 = vpop.f32.mrf.mxu1  ;;  %v7283_v10 = vpop.f32.mrf.mxu0 }
 0x4e2   : > { %v13838_v19 = vadd.f32 %v10916_v51, %v6982_v47  ;;  %v6981_v59 = vadd.f32 %v6878_v5, %v13745_v14 }
 0x4e3   : > { %v10815_v49 = vpop.f32.mrf.mxu1  ;;  %v10925_v31 = vpop.f32.mrf.mxu0 }
 0x4e4   : > { %v13841_v41 = vadd.f32 %v7264_v17, %v6981_v59  ;;  %v6983_v7 = vadd.f32 %v10815_v49, %v13748_v13 }
 0x4e5   : > { %v6888_v9 = vpop.f32.mrf.mxu1  ;;  %v7292_v63 = vpop.f32.mrf.mxu0 }
 0x4e6   : > { %v13844_v50 = vadd.f32 %v10919_v25, %v6983_v7 }
 0x4e7   : > { %v10818_v20 = vpop.f32.mrf.mxu1  ;;  %v10928_v43 = vpop.f32.mrf.mxu0 }
 0x4e9   : > { %v6897_v55 = vpop.f32.mrf.mxu1  ;;  %v7302_v33 = vpop.f32.mrf.mxu0 }
 0x4ea   : > { %v6984_v22 = vadd.f32 %v6897_v55, %v13751_v42  ;;  %v7766_v33 = vld [vmem:[%s11456_s13 + $0x8] sm:$0xff] }
 0x4eb   : > { %v10821_v6 = vpop.f32.mrf.mxu1  ;;  %v10931_v46 = vpop.f32.mrf.mxu0 }
 0x4ec   : > { %v13847_v27 = vadd.f32 %v7283_v10, %v6984_v22  ;;  %v6986_v14 = vadd.f32 %v10821_v6, %v13754_v18  ;;  %v7765_v6 = vld [vmem:[%s11456_s13] sm:$0xff] }
 0x4ed   : > { %v6906_v37 = vpop.f32.mrf.mxu1  ;;  %v7311_v57 = vpop.f32.mrf.mxu0 }
 0x4ee   : > { %v13850_v51 = vadd.f32 %v10925_v31, %v6986_v14  ;;  %v6985_v13 = vadd.f32 %v6906_v37, %v13757_v26  ;;  %v7767_v37 = vld [vmem:[%s11456_s13 + $0x10] sm:$0xff] }
 0x4ef   : > { %v10824_v40 = vpop.f32.mrf.mxu1  ;;  %v10934_v54 = vpop.f32.mrf.mxu0 }
 0x4f0   : > { %v13853_v17 = vadd.f32 %v7292_v63, %v6985_v13  ;;  %v6987_v0 = vadd.f32 %v10824_v40, %v13760_v28 }
 0x4f1   : > { %v6916_v25 = vpop.f32.mrf.mxu1  ;;  %v7320_v42 = vpop.f32.mrf.mxu0 }
 0x4f2   : > { %v13856_v60 = vadd.f32 %v10928_v43, %v6987_v0 }
 0x4f3   : > { %v10827_v56 = vpop.f32.mrf.mxu1  ;;  %v10937_v44 = vpop.f32.mrf.mxu0 }
 0x4f5   : > { %v6925_v23 = vpop.f32.mrf.mxu1  ;;  %v7330_v18 = vpop.f32.mrf.mxu0 }
 0x4f6   : > { %v6988_v3 = vadd.f32 %v6925_v23, %v13763_v34 }
 0x4f7   : > { %v10830_v47 = vpop.f32.mrf.mxu1  ;;  %v10940_v5 = vpop.f32.mrf.mxu0 }
 0x4f8   : > { %v13859_v26 = vadd.f32 %v7311_v57, %v6988_v3  ;;  %v6990_v10 = vadd.f32 %v10830_v47, %v13766_v35  ;;  %v7769_v47 = vld [vmem:[%s11456_s13 + $0x20] sm:$0xff] }
 0x4f9   : > { %v6934_v59 = vpop.f32.mrf.mxu1 }
 0x4fa   : > { %v13862_v28 = vadd.f32 %v10934_v54, %v6990_v10  ;;  %v6989_v49 = vadd.f32 %v6934_v59, %v13769_v53 }
 0x4fb   : > { %v10833_v31 = vpop.f32.mrf.mxu1 }
 0x4fc   : > { %v13865_v7 = vadd.f32 %v7320_v42, %v6989_v49  ;;  %v6991_v9 = vadd.f32 %v10833_v31, %v13772_v38  ;;  %v7768_v42 = vld [vmem:[%s11456_s13 + $0x18] sm:$0xff]  ;;  %v7771_v31 = vld [vmem:[%s11456_s13 + $0x30] sm:$0xff] }
 0x4fd   : > { %v6944_v34 = vpop.f32.mrf.mxu1 }
 0x4fe   : > { %v13868_v63 = vadd.f32 %v10937_v44, %v6991_v9  ;;  %v7770_v44 = vld [vmem:[%s11456_s13 + $0x28] sm:$0xff] }
 0x4ff   : > { %v10836_v20 = vpop.f32.mrf.mxu1 }
 0x501   : > { %v6953_v43 = vpop.f32.mrf.mxu1 }
 0x502   : > { %v13871_v35 = vadd.f32 %v6953_v43, %v13775_v29 }
 0x503   : > { %v10975_v55 = vpop.f32.mrf.mxu1 }
 0x504   : > { %v7734_v22 = vadd.f32 %v10975_v55, %v13778_v52 }
 0x505   : > { %v7510_v53 = vpop.f32.mrf.mxu1 }
 0x506   : > { %v7798_v46 = vadd.f32 %v7766_v33, %v7734_v22  ;;  %v7733_v14 = vadd.f32 %v7510_v53, %v13781_v58  ;;  %v7772_v22 = vld [vmem:[%s11456_s13 + $0x38] sm:$0xff] }
 0x507   : > { %v10978_v38 = vpop.f32.mrf.mxu1 }
 0x508   : > { %v7830_v57 = vmax.f32 %v7798_v46, 0.0  ;;  %v7797_v13 = vadd.f32 %v7765_v6, %v7733_v14  ;;  %v7735_v40 = vadd.f32 %v10978_v38, %v13784_v62  ;;  %v7774_v46 = vld [vmem:[%s11456_s13 + $0x48] sm:$0xff] }
 0x509   : > { %v7520_v54 = vpop.f32.mrf.mxu1 }
 0x50a   : > { %7862 = vst [vmem:[%s13881_s6 + $0x8] sm:$0xff] %v7830_v57  ;;  %v7829_v29 = vmax.f32 %v7797_v13, 0.0  ;;  %v7799_v52 = vadd.f32 %v7767_v37, %v7735_v40  ;;  %v7773_v37 = vld [vmem:[%s11456_s13 + $0x40] sm:$0xff] }
 0x50b   : > { %v10981_v0 = vpop.f32.mrf.mxu1 }
 0x50c   : > { %7861 = vst [vmem:[%s13881_s6] sm:$0xff] %v7829_v29  ;;  %v7831_v58 = vmax.f32 %v7799_v52, 0.0  ;;  %v7775_v29 = vld [vmem:[%s11456_s13 + $0x50] sm:$0xff] }
 0x50d   : > { %v7529_v25 = vpop.f32.mrf.mxu1 }
 0x50e   : > { %7863 = vst [vmem:[%s13881_s6 + $0x10] sm:$0xff] %v7831_v58  ;;  %v7736_v62 = vadd.f32 %v7529_v25, %v13787_v12 }
 0x50f   : > { %v10984_v56 = vpop.f32.mrf.mxu1 }
 0x510   : > { %v7800_v23 = vadd.f32 %v7768_v42, %v7736_v62  ;;  %v7738_v18 = vadd.f32 %v10984_v56, %v13790_v32  ;;  %v7776_v56 = vld [vmem:[%s11456_s13 + $0x58] sm:$0xff] }
 0x511   : > { %v7538_v3 = vpop.f32.mrf.mxu1 }
 0x512   : > { %v7832_v5 = vmax.f32 %v7800_v23, 0.0  ;;  %v7802_v10 = vadd.f32 %v7770_v44, %v7738_v18  ;;  %v7737_v59 = vadd.f32 %v7538_v3, %v13793_v8  ;;  %v7778_v18 = vld [vmem:[%s11456_s13 + $0x68] sm:$0xff] }
 0x513   : > { %v10987_v49 = vpop.f32.mrf.mxu1 }
 0x514   : > { %7864 = vst [vmem:[%s13881_s6 + $0x18] sm:$0xff] %v7832_v5  ;;  %v7834_v12 = vmax.f32 %v7802_v10, 0.0  ;;  %v7801_v9 = vadd.f32 %v7769_v47, %v7737_v59  ;;  %v7739_v34 = vadd.f32 %v10987_v49, %v13796_v16  ;;  %v7777_v5 = vld [vmem:[%s11456_s13 + $0x60] sm:$0xff] }
 0x515   : > { %v7548_v20 = vpop.f32.mrf.mxu1 }
 0x516   : > { %7866 = vst [vmem:[%s13881_s6 + $0x28] sm:$0xff] %v7834_v12  ;;  %v7833_v32 = vmax.f32 %v7801_v9, 0.0  ;;  %v7803_v43 = vadd.f32 %v7771_v31, %v7739_v34  ;;  %v7779_v12 = vld [vmem:[%s11456_s13 + $0x70] sm:$0xff] }
 0x517   : > { %v10990_v55 = vpop.f32.mrf.mxu1 }
 0x518   : > { %7865 = vst [vmem:[%s13881_s6 + $0x20] sm:$0xff] %v7833_v32  ;;  %v7835_v33 = vmax.f32 %v7803_v43, 0.0 }
 0x519   : > { %v7557_v8 = vpop.f32.mrf.mxu1 }
 0x51a   : > { %7867 = vst [vmem:[%s13881_s6 + $0x30] sm:$0xff] %v7835_v33  ;;  %v7740_v53 = vadd.f32 %v7557_v8, %v13799_v11  ;;  %v7780_v33 = vld [vmem:[%s11456_s13 + $0x78] sm:$0xff] }
 0x51b   : > { %v10993_v6 = vpop.f32.mrf.mxu1 }
 0x51c   : > { %v7804_v14 = vadd.f32 %v7772_v22, %v7740_v53  ;;  %v7742_v16 = vadd.f32 %v10993_v6, %v13802_v4  ;;  %v7782_v53 = vld [vmem:[%s11456_s13 + $0x88] sm:$0xff] }
 0x51d   : > { %v7566_v38 = vpop.f32.mrf.mxu1 }
 0x51e   : > { %v7836_v57 = vmax.f32 %v7804_v14, 0.0  ;;  %v7806_v13 = vadd.f32 %v7774_v46, %v7742_v16  ;;  %v7741_v40 = vadd.f32 %v7566_v38, %v13805_v48  ;;  %v7781_v14 = vld [vmem:[%s11456_s13 + $0x80] sm:$0xff] }
 0x51f   : > { %v10996_v54 = vpop.f32.mrf.mxu1 }
 0x520   : > { %7868 = vst [vmem:[%s13881_s6 + $0x38] sm:$0xff] %v7836_v57  ;;  %v7838_v11 = vmax.f32 %v7806_v13, 0.0  ;;  %v7805_v52 = vadd.f32 %v7773_v37, %v7741_v40  ;;  %v7743_v0 = vadd.f32 %v10996_v54, %v13808_v61  ;;  %v7783_v13 = vld [vmem:[%s11456_s13 + $0x90] sm:$0xff] }
 0x521   : > { %v7576_v58 = vpop.f32.mrf.mxu1 }
 0x522   : > { %7870 = vst [vmem:[%s13881_s6 + $0x48] sm:$0xff] %v7838_v11  ;;  %v7837_v4 = vmax.f32 %v7805_v52, 0.0  ;;  %v7807_v25 = vadd.f32 %v7775_v29, %v7743_v0  ;;  %v7784_v58 = vld [vmem:[%s11456_s13 + $0x98] sm:$0xff] }
 0x523   : > { %v10999_v42 = vpop.f32.mrf.mxu1 }
 0x524   : > { %7869 = vst [vmem:[%s13881_s6 + $0x40] sm:$0xff] %v7837_v4  ;;  %v7839_v62 = vmax.f32 %v7807_v25, 0.0  ;;  %v7786_v42 = vld [vmem:[%s11456_s13 + $0xa8] sm:$0xff] }
 0x525   : > { %v7585_v48 = vpop.f32.mrf.mxu1 }
 0x526   : > { %7871 = vst [vmem:[%s13881_s6 + $0x50] sm:$0xff] %v7839_v62  ;;  %v7744_v44 = vadd.f32 %v7585_v48, %v13811_v36 }
 0x527   : > { %v11002_v23 = vpop.f32.mrf.mxu1 }
 0x528   : > { %v7808_v3 = vadd.f32 %v7776_v56, %v7744_v44  ;;  %v7746_v61 = vadd.f32 %v11002_v23, %v13814_v15  ;;  %v7785_v56 = vld [vmem:[%s11456_s13 + $0xa0] sm:$0xff] }
 0x529   : > { %v7594_v47 = vpop.f32.mrf.mxu1 }
 0x52a   : > { %v7840_v10 = vmax.f32 %v7808_v3, 0.0  ;;  %v7810_v59 = vadd.f32 %v7778_v18, %v7746_v61  ;;  %v7745_v49 = vadd.f32 %v7594_v47, %v13817_v21  ;;  %v7787_v61 = vld [vmem:[%s11456_s13 + $0xb0] sm:$0xff] }
 0x52b   : > { %v11005_v31 = vpop.f32.mrf.mxu1 }
 0x52c   : > { %7872 = vst [vmem:[%s13881_s6 + $0x58] sm:$0xff] %v7840_v10  ;;  %v7842_v36 = vmax.f32 %v7810_v59, 0.0  ;;  %v7809_v9 = vadd.f32 %v7777_v5, %v7745_v49  ;;  %v7747_v34 = vadd.f32 %v11005_v31, %v13820_v1 }
 0x52d   : > { %v7604_v20 = vpop.f32.mrf.mxu1 }
 0x52e   : > { %7874 = vst [vmem:[%s13881_s6 + $0x68] sm:$0xff] %v7842_v36  ;;  %v7841_v15 = vmax.f32 %v7809_v9, 0.0  ;;  %v7811_v32 = vadd.f32 %v7779_v12, %v7747_v34  ;;  %v7788_v12 = vld [vmem:[%s11456_s13 + $0xb8] sm:$0xff]  ;;  %v7790_v34 = vld [vmem:[%s11456_s13 + $0xc8] sm:$0xff] }
 0x52f   : > { %v11008_v43 = vpop.f32.mrf.mxu1 }
 0x530   : > { %7873 = vst [vmem:[%s13881_s6 + $0x60] sm:$0xff] %v7841_v15  ;;  %v7843_v55 = vmax.f32 %v7811_v32, 0.0  ;;  %v7789_v32 = vld [vmem:[%s11456_s13 + $0xc0] sm:$0xff] }
 0x531   : > { %v7613_v21 = vpop.f32.mrf.mxu1 }
 0x532   : > { %7875 = vst [vmem:[%s13881_s6 + $0x70] sm:$0xff] %v7843_v55  ;;  %v7748_v8 = vadd.f32 %v7613_v21, %v13823_v24 }
 0x533   : > { %v11011_v22 = vpop.f32.mrf.mxu1 }
 0x534   : > { %v7812_v6 = vadd.f32 %v7780_v33, %v7748_v8  ;;  %v7750_v1 = vadd.f32 %v11011_v22, %v13826_v2  ;;  %v7791_v8 = vld [vmem:[%s11456_s13 + $0xd0] sm:$0xff] }
 0x535   : > { %v7622_v46 = vpop.f32.mrf.mxu1 }
 0x536   : > { %v7844_v16 = vmax.f32 %v7812_v6, 0.0  ;;  %v7814_v38 = vadd.f32 %v7782_v53, %v7750_v1  ;;  %v7749_v37 = vadd.f32 %v7622_v46, %v13829_v39 }
 0x537   : > { %v11014_v57 = vpop.f32.mrf.mxu1 }
 0x538   : > { %7876 = vst [vmem:[%s13881_s6 + $0x78] sm:$0xff] %v7844_v16  ;;  %v7846_v24 = vmax.f32 %v7814_v38, 0.0  ;;  %v7813_v40 = vadd.f32 %v7781_v14, %v7749_v37  ;;  %v7751_v54 = vadd.f32 %v11014_v57, %v13832_v45  ;;  %v7792_v16 = vld [vmem:[%s11456_s13 + $0xd8] sm:$0xff]  ;;  %v7794_v57 = vld [vmem:[%s11456_s13 + $0xe8] sm:$0xff] }
 0x539   : > { %v7632_v29 = vpop.f32.mrf.mxu1 }
 0x53a   : > { %7878 = vst [vmem:[%s13881_s6 + $0x88] sm:$0xff] %v7846_v24  ;;  %v7845_v2 = vmax.f32 %v7813_v40, 0.0  ;;  %v7815_v11 = vadd.f32 %v7783_v13, %v7751_v54  ;;  %v7793_v40 = vld [vmem:[%s11456_s13 + $0xe0] sm:$0xff] }
 0x53b   : > { %v11017_v52 = vpop.f32.mrf.mxu1 }
 0x53c   : > { %7877 = vst [vmem:[%s13881_s6 + $0x80] sm:$0xff] %v7845_v2  ;;  %v7847_v0 = vmax.f32 %v7815_v11, 0.0  ;;  %v7795_v52 = vld [vmem:[%s11456_s13 + $0xf0] sm:$0xff] }
 0x53d   : > { %v7641_v39 = vpop.f32.mrf.mxu1 }
 0x53e   : > { %7879 = vst [vmem:[%s13881_s6 + $0x90] sm:$0xff] %v7847_v0  ;;  %v7752_v4 = vadd.f32 %v7641_v39, %v13835_v30 }
 0x53f   : > { %v11020_v25 = vpop.f32.mrf.mxu1 }
 0x540   : > { %v7816_v62 = vadd.f32 %v7784_v58, %v7752_v4  ;;  %v7754_v45 = vadd.f32 %v11020_v25, %v13838_v19  ;;  %v7339_v58 = vpop.f32.mrf.mxu0 }
 0x541   : > { %v7650_v48 = vpop.f32.mrf.mxu1 }
 0x542   : > { %v7848_v44 = vmax.f32 %v7816_v62, 0.0  ;;  %v7818_v23 = vadd.f32 %v7786_v42, %v7754_v45  ;;  %v7753_v18 = vadd.f32 %v7650_v48, %v13841_v41  ;;  %v7796_v48 = vld [vmem:[%s11456_s13 + $0xf8] sm:$0xff]  ;;  %s11209_s13 = sshll.u32 %s11281_s22, 4  ;;  %s11210_s13 = int_to_ptr.vmem [resolvable:$false] %s11209_s13 }
 0x543   : > { %v11023_v3 = vpop.f32.mrf.mxu1  ;;  %s11211_s24 = scalar_lea.vmem %s11210_s13, 8192  ;;  %p11212_p13 = scmp.lt.s32.totalorder %s13979_s28, %s11210_s13 }
 0x544   : > { %7880 = vst [vmem:[%s13881_s6 + $0x98] sm:$0xff] %v7848_v44  ;;  %v7850_v30 = vmax.f32 %v7818_v23, 0.0  ;;  %v7817_v47 = vadd.f32 %v7785_v56, %v7753_v18  ;;  %v7755_v5 = vadd.f32 %v11023_v3, %v13844_v50  ;;  %p11213_p0 = scmp.lt.s32.totalorder %s11211_s24, %s11205_s29 }
 0x545   : > { %v7660_v10 = vpop.f32.mrf.mxu1 }
 0x546   : > { %7882 = vst [vmem:[%s13881_s6 + $0xa8] sm:$0xff] %v7850_v30  ;;  %v7849_v19 = vmax.f32 %v7817_v47, 0.0  ;;  %v7819_v59 = vadd.f32 %v7787_v61, %v7755_v5  ;;  %p11214_p10 = por %p11213_p0, %p11212_p13 }
 0x547   : > { %v11026_v49 = vpop.f32.mrf.mxu1 }
 0x548   : > { %7881 = vst [vmem:[%s13881_s6 + $0xa0] sm:$0xff] %v7849_v19  ;;  %v7851_v31 = vmax.f32 %v7819_v59, 0.0  ;;  %p11215_p3 = pnand %p11214_p10, %p11208_p12 }
 0x549   : > { %v7669_v41 = vpop.f32.mrf.mxu1 }
 0x54a   : > { %7883 = vst [vmem:[%s13881_s6 + $0xb0] sm:$0xff] %v7851_v31  ;;  %v7756_v36 = vadd.f32 %v7669_v41, %v13847_v27 }
 0x54b   : > { %v11029_v9 = vpop.f32.mrf.mxu1 }
 0x54c   : > { %v7820_v20 = vadd.f32 %v7788_v12, %v7756_v36  ;;  %v7758_v50 = vadd.f32 %v11029_v9, %v13850_v51 }
 0x54d   : > { %v7678_v15 = vpop.f32.mrf.mxu1 }
 0x54e   : > { %v7852_v43 = vmax.f32 %v7820_v20, 0.0  ;;  %v7822_v55 = vadd.f32 %v7790_v34, %v7758_v50  ;;  %v7757_v21 = vadd.f32 %v7678_v15, %v13853_v17 }
 0x54f   : > { %v11032_v33 = vpop.f32.mrf.mxu1 }
 0x550   : > { %7884 = vst [vmem:[%s13881_s6 + $0xb8] sm:$0xff] %v7852_v43  ;;  %v7854_v27 = vmax.f32 %v7822_v55, 0.0  ;;  %v7821_v22 = vadd.f32 %v7789_v32, %v7757_v21  ;;  %v7759_v53 = vadd.f32 %v11032_v33, %v13856_v60 }
 0x551   : > { %v7688_v6 = vpop.f32.mrf.mxu1 }
 0x552   : > { %7886 = vst [vmem:[%s13881_s6 + $0xc8] sm:$0xff] %v7854_v27  ;;  %v7853_v51 = vmax.f32 %v7821_v22, 0.0  ;;  %v7823_v1 = vadd.f32 %v7791_v8, %v7759_v53 }
 0x553   : > { %v11035_v46 = vpop.f32.mrf.mxu1 }
 0x554   : > { %7885 = vst [vmem:[%s13881_s6 + $0xc0] sm:$0xff] %v7853_v51  ;;  %v7855_v14 = vmax.f32 %v7823_v1, 0.0 }
 0x555   : > { %v7697_v17 = vpop.f32.mrf.mxu1 }
 0x556   : > { %7887 = vst [vmem:[%s13881_s6 + $0xd0] sm:$0xff] %v7855_v14  ;;  %v7760_v38 = vadd.f32 %v7697_v17, %v13859_v26 }
 0x557   : > { %v11038_v37 = vpop.f32.mrf.mxu1 }
 0x558   : > { %v7824_v13 = vadd.f32 %v7792_v16, %v7760_v38  ;;  %v7762_v60 = vadd.f32 %v11038_v37, %v13862_v28 }
 0x559   : > { %v7706_v24 = vpop.f32.mrf.mxu1 }
 0x55a   : > { %v7856_v54 = vmax.f32 %v7824_v13, 0.0  ;;  %v7826_v29 = vadd.f32 %v7794_v57, %v7762_v60  ;;  %v7761_v2 = vadd.f32 %v7706_v24, %v13865_v7  ;;  %v7378_v7 = vadd.f32 %v7339_v58, %v13871_v35 }
 0x55b   : > { %v11041_v11 = vpop.f32.mrf.mxu1 }
 0x55c   : > { %7888 = vst [vmem:[%s13881_s6 + $0xd8] sm:$0xff] %v7856_v54  ;;  %v7858_v0 = vmax.f32 %v7826_v29, 0.0  ;;  %v7825_v26 = vadd.f32 %v7793_v40, %v7761_v2  ;;  %v7763_v39 = vadd.f32 %v11041_v11, %v13868_v63 }
 0x55d   : > { %v7716_v28 = vpop.f32.mrf.mxu1 }
 0x55e   : > { %7890 = vst [vmem:[%s13881_s6 + $0xe8] sm:$0xff] %v7858_v0  ;;  %v7857_v4 = vmax.f32 %v7825_v26, 0.0  ;;  %v7827_v25 = vadd.f32 %v7795_v52, %v7763_v39 }
 0x55f   : > { %v11044_v42 = vpop.f32.mrf.mxu1 }
 0x560   : > { %7889 = vst [vmem:[%s13881_s6 + $0xe0] sm:$0xff] %v7857_v4  ;;  %v7859_v62 = vmax.f32 %v7827_v25, 0.0 }
 0x561   : > { %v7725_v45 = vpop.f32.mrf.mxu1 }
 0x562   : > { %7891 = vst [vmem:[%s13881_s6 + $0xf0] sm:$0xff] %v7859_v62  ;;  %v7764_v56 = vadd.f32 %v7725_v45, %v7378_v7 }
 0x564   : > { %v7828_v63 = vadd.f32 %v7796_v48, %v7764_v56 }
 0x566   : > { %v7860_v35 = vmax.f32 %v7828_v63, 0.0 }
 0x568   : > { %7892 = vst [vmem:[%s13881_s6 + $0xf8] sm:$0xff] %v7860_v35 }
 0x569   : > { %11218 = shalt.err (!%p11215_p3)
}
 0x56a   : > { %s11219_s26 = scalar_lea.hbm %s13977_s16, 4096  ;;  %s11223_s12 = scalar_lea.hbm %s14028_s5, 8192 }
 0x56b   : > { %p11220_p11 = scmp.ne.s32.totalorder %s13977_s16, %s11219_s26  ;;  %p11224_p4 = scmp.lt.s32.totalorder %s13977_s16, %s14028_s5 }
 0x56c   : > { %p11225_p6 = scmp.lt.s32.totalorder %s11223_s12, %s11219_s26 }
 0x56d   : > { %p11221_p9 = pnand %p11220_p11, %p14239_p2 }
 0x56e   : > { %p11226_p8 = por %p11225_p6, %p11224_p4 }
 0x56f   : > { %p11222_p1 = pneg %p11221_p9 }
 0x571   : > { %p11227_p5 = pnand %p11226_p8, %p11222_p1 }
 0x573   : > { %11230 = shalt.err (!%p11227_p5)
}
 0x574   : > { %s11282_s7 = smov 128   ;;  %s11283_s11 = smov 8  }
 0x575   : > { %11055 = dma.vmem_to_hbm [thread:$0]  (%p14239_p2), %s13979_s28, 4096, %s13977_s16, %s7894_s8, %s11282_s7, %s11282_s7, %s11283_s11  }
 0x576 PF: > { %s7922_s17 = sand.u32 1, %s11261_s18   ;;  %p14240_p7 = scmp.ne.s32.totalorder %s14045_s25, 0 }
 0x577   : > { %p14241_p12 = scmp.ge.s32.totalorder %s11273_s21, 2  ;;  %s7923_s29 = scalar_lea.sflag [#allocation5], %s7922_s17 }
 0x579   : > { %p11069_p13 = pnand %p14241_p12, %p14240_p7 }
 0x57b   : > { %p11070_p0 = pneg %p11069_p13 }
 0x57d   : > { %11256 = dma.done.wait (%p11070_p0), %s7923_s29, 4096  }
 0x57e   : > { %11258 = vsyncadd (%p11070_p0), %s7923_s29, 4294963200  ;;  %p19_p10 = scmp.ge.s32.totalorder %s11392_s15, 4   ;;  %s14242_s18 = smov %s11265_s19 }
 0x57f   : > { %s14243_s19 = smov %s11269_s20  ;;  %s14244_s20 = smov %s11408_s27 }
 0x580   : > { %s14245_s21 = smov %s11392_s15  ;;  %21 = sbr.rel (!%p19_p10) target bundleno = 6 (0x6), region = 109 }
 0x585   :  { %7928 = vsyncpa [#allocation4], 1 }
 0x586   :  { %7930 = vsyncpa [#allocation4 + $0x1], 1 }
 0x587   :  { %7931 = vsyncpa [#allocation7], 1 }
 0x588   :  { %7932 = vsyncpa [#allocation5], 1 }
 0x589   :  { %7934 = vsyncpa [#allocation5 + $0x1], 1 }

</bundles_post_ra>
